<compile_context>
chip_gen: v7x
topology: tpu7x:2x2x1
jax: 0.10.0
libtpu: 0.0.40
codegen_flags: <defaults>
</compile_context>

<pallas_src>
import jax
import jax.numpy as jnp
from jax.experimental import pallas as pl
from jax.experimental.pallas import tpu as pltpu

_BN_EPS = 1e-5
_VMEM_LIMIT = 32 * 1024 * 1024          # safe scoped limit on v5e/v6e/v7x
_TM_MAX, _TN_MAX, _TK_MAX = 1024, 512, 512


def _cdiv(a, b):
    return -(-a // b)


def _round_up(x, m):
    return _cdiv(x, m) * m


def _choose_tile(dim, max_tile, align):
    """Pick (tile, padded_dim) with tile % align == 0 and padded_dim % tile == 0."""
    dim_a = _round_up(dim, align)
    if dim_a <= max_tile:
        return dim_a, dim_a
    n = _cdiv(dim_a, max_tile)
    t = _round_up(_cdiv(dim_a, n), align)
    return t, t * n


def _pad2d(x, rows, cols):
    r, c = x.shape
    if r == rows and c == cols:
        return x
    return jnp.pad(x, ((0, rows - r), (0, cols - c)))


# ---------------------------------------------------------------------------
# Pallas kernels
# ---------------------------------------------------------------------------
def _make_fused_kernel(inv_m, relu, has_residual):
    """One-pass conv+BN(+residual)(+relu): valid when grid_M == 1.

    Grid is (N_blocks, K_blocks); the f32 accumulator holds the full-M column
    block, so batch statistics for its channels are complete in the finalize.
    """
    def _finalize(acc, g, b, res):
        s = jnp.sum(acc, axis=0, keepdims=True)
        sq = jnp.sum(acc * acc, axis=0, keepdims=True)
        mean = s * inv_m
        var = jnp.maximum(sq * inv_m - mean * mean, 0.0)
        scale = g * jax.lax.rsqrt(var + _BN_EPS)
        shift = b - mean * scale
        out = acc * scale + shift
        if res is not None:
            out = out + res
        if relu:
            out = jnp.maximum(out, 0.0)
        return out

    if has_residual:
        def kernel(p_ref, w_ref, g_ref, b_ref, r_ref, o_ref, acc_ref):
            @pl.when(pl.program_id(1) == 0)
            def _():
                acc_ref[...] = jnp.zeros_like(acc_ref)

            acc_ref[...] += jnp.dot(p_ref[...], w_ref[...],
                                    preferred_element_type=jnp.float32)

            @pl.when(pl.program_id(1) == pl.num_programs(1) - 1)
            def _():
                o_ref[...] = _finalize(
                    acc_ref[...], g_ref[...], b_ref[...],
                    r_ref[...].astype(jnp.float32)).astype(o_ref.dtype)
    else:
        def kernel(p_ref, w_ref, g_ref, b_ref, o_ref, acc_ref):
            @pl.when(pl.program_id(1) == 0)
            def _():
                acc_ref[...] = jnp.zeros_like(acc_ref)

            acc_ref[...] += jnp.dot(p_ref[...], w_ref[...],
                                    preferred_element_type=jnp.float32)

            @pl.when(pl.program_id(1) == pl.num_programs(1) - 1)
            def _():
                o_ref[...] = _finalize(
                    acc_ref[...], g_ref[...], b_ref[...], None).astype(o_ref.dtype)
    return kernel


def _matmul_stats_kernel(p_ref, w_ref, y_ref, st_ref, acc_ref):
    """Tiled MXU matmul (bf16 x bf16 -> f32 acc) that also emits per-tile
    channel sum / sum-of-squares from the accumulator in its epilogue."""
    @pl.when(pl.program_id(2) == 0)
    def _():
        acc_ref[...] = jnp.zeros_like(acc_ref)

    acc_ref[...] += jnp.dot(p_ref[...], w_ref[...],
                            preferred_element_type=jnp.float32)

    @pl.when(pl.program_id(2) == pl.num_programs(2) - 1)
    def _():
        acc = acc_ref[...]
        y_ref[...] = acc.astype(y_ref.dtype)
        s = jnp.sum(acc, axis=0, keepdims=True)
        sq = jnp.sum(acc * acc, axis=0, keepdims=True)
        pad = jnp.zeros((6, acc.shape[1]), jnp.float32)
        # single unmasked store (8 sublanes), rows 0/1 carry sum / sumsq
        st_ref[...] = jnp.concatenate([s, sq, pad], axis=0)[None]


def _make_norm_kernel(relu, has_residual):
    """y * scale + shift (+ residual) (+ relu) — one FMA per element, bf16 I/O."""
    if has_residual:
        def kernel(y_ref, ss_ref, r_ref, o_ref):
            out = (y_ref[...].astype(jnp.float32) * ss_ref[0:1, :]
                   + ss_ref[1:2, :] + r_ref[...].astype(jnp.float32))
            if relu:
                out = jnp.maximum(out, 0.0)
            o_ref[...] = out.astype(o_ref.dtype)
    else:
        def kernel(y_ref, ss_ref, o_ref):
            out = y_ref[...].astype(jnp.float32) * ss_ref[0:1, :] + ss_ref[1:2, :]
            if relu:
                out = jnp.maximum(out, 0.0)
            o_ref[...] = out.astype(o_ref.dtype)
    return kernel


# ---------------------------------------------------------------------------
# Glue: im2col patch extraction (pure data movement, stays in plain JAX)
# ---------------------------------------------------------------------------
def _im2col(x_nhwc, k, stride, padding, dilation):
    """bf16 (M, Cin*k*k) patches; K ordered (Cin, kh, kw) to match
    PyTorch's weight.reshape(Cout, -1)."""
    x_nhwc = x_nhwc.astype(jnp.bfloat16)     # cast BEFORE any patch blow-up
    N, H, W, C = x_nhwc.shape
    if k == 1 and padding == 0:
        xs = x_nhwc[:, ::stride, ::stride, :]
        OH, OW = xs.shape[1], xs.shape[2]
        return xs.reshape(N * OH * OW, C), (N, OH, OW)

    xp = jnp.pad(x_nhwc, ((0, 0), (padding, padding), (padding, padding), (0, 0)))
    Hp, Wp = H + 2 * padding, W + 2 * padding
    OH = (Hp - dilation * (k - 1) - 1) // stride + 1
    OW = (Wp - dilation * (k - 1) - 1) // stride + 1
    cols = []
    for i in range(k):
        for j in range(k):
            sl = xp[:, i * dilation: i * dilation + stride * (OH - 1) + 1: stride,
                       j * dilation: j * dilation + stride * (OW - 1) + 1: stride, :]
            cols.append(sl)                                   # (N, OH, OW, C)
    patches = jnp.stack(cols, axis=-1)                        # (N, OH, OW, C, k*k)
    patches = patches.reshape(N * OH * OW, C * k * k)
    return patches, (N, OH, OW)


# ---------------------------------------------------------------------------
# Conv + BN (+ReLU) (+residual)   [ConvBN / ConvBNReLU equivalents]
# ---------------------------------------------------------------------------
def conv_bn_act(x_nhwc, params, *, kernel_size, stride, padding, dilation,
                relu, residual=None):
    patches, (N, OH, OW) = _im2col(x_nhwc, kernel_size, stride, padding, dilation)
    M, K = patches.shape
    w = params["w"]                                           # (Cout, Cin, k, k)
    cout = w.shape[0]
    w2d = w.reshape(cout, -1).T.astype(jnp.bfloat16)          # (K, Cout)

    tm, M_pad = _choose_tile(M, _TM_MAX, 16)
    tk, K_pad = _choose_tile(K, _TK_MAX, 128)
    tn, C_pad = _choose_tile(cout, _TN_MAX, 128)

    patches_p = _pad2d(patches, M_pad, K_pad)
    w_p = _pad2d(w2d, K_pad, C_pad)
    gamma_p = jnp.pad(params["gamma"], (0, C_pad - cout)).reshape(1, C_pad)
    beta_p = jnp.pad(params["beta"], (0, C_pad - cout)).reshape(1, C_pad)

    has_res = residual is not None
    if has_res:
        res_p = _pad2d(residual.reshape(M, cout).astype(jnp.bfloat16), M_pad, C_pad)

    grid_m, grid_n, grid_k = M_pad // tm, C_pad // tn, K_pad // tk
    flops = 2 * M_pad * K_pad * C_pad
    bytes_accessed = M_pad * K_pad * 2 + K_pad * C_pad * 2 + M_pad * C_pad * 2

    if grid_m == 1:
        # ---- fully fused: matmul + BN stats + normalize (+res) (+relu) ----
        kernel = _make_fused_kernel(1.0 / float(M), relu, has_res)
        in_specs = [pl.BlockSpec((tm, tk), lambda j, k: (0, k)),
                    pl.BlockSpec((tk, tn), lambda j, k: (k, j)),
                    pl.BlockSpec((1, tn), lambda j, k: (0, j)),
                    pl.BlockSpec((1, tn), lambda j, k: (0, j))]
        inputs = [patches_p, w_p, gamma_p, beta_p]
        if has_res:
            in_specs.append(pl.BlockSpec((tm, tn), lambda j, k: (0, j)))
            inputs.append(res_p)

        out = pl.pallas_call(
            kernel,
            out_shape=jax.ShapeDtypeStruct((M_pad, C_pad), jnp.bfloat16),
            grid_spec=pltpu.PrefetchScalarGridSpec(
                num_scalar_prefetch=0,
                grid=(grid_n, grid_k),
                in_specs=in_specs,
                out_specs=pl.BlockSpec((tm, tn), lambda j, k: (0, j)),
                scratch_shapes=[pltpu.VMEM((tm, tn), jnp.float32)]),
            compiler_params=pltpu.CompilerParams(
                dimension_semantics=("parallel", "arbitrary"),
                vmem_limit_bytes=_VMEM_LIMIT),
            cost_estimate=pl.CostEstimate(
                flops=flops, transcendentals=0, bytes_accessed=bytes_accessed),
        )(*inputs)
        return out[:M, :cout].reshape(N, OH, OW, cout)

    # ---- pass 1: matmul + per-tile BN stats in the epilogue ---------------
    y, stats = pl.pallas_call(
        _matmul_stats_kernel,
        out_shape=(jax.ShapeDtypeStruct((M_pad, C_pad), jnp.bfloat16),
                   jax.ShapeDtypeStruct((grid_m, 8, C_pad), jnp.float32)),
        grid_spec=pltpu.PrefetchScalarGridSpec(
            num_scalar_prefetch=0,
            grid=(grid_m, grid_n, grid_k),
            in_specs=[pl.BlockSpec((tm, tk), lambda i, j, k: (i, k)),
                      pl.BlockSpec((tk, tn), lambda i, j, k: (k, j))],
            out_specs=[pl.BlockSpec((tm, tn), lambda i, j, k: (i, j)),
                       pl.BlockSpec((1, 8, tn), lambda i, j, k: (i, 0, j))],
            scratch_shapes=[pltpu.VMEM((tm, tn), jnp.float32)]),
        compiler_params=pltpu.CompilerParams(
            dimension_semantics=("parallel", "parallel", "arbitrary"),
            vmem_limit_bytes=_VMEM_LIMIT),
        cost_estimate=pl.CostEstimate(
            flops=flops, transcendentals=0, bytes_accessed=bytes_accessed),
    )(patches_p, w_p)

    # ---- tiny XLA fold of per-tile stats -> per-channel scale/shift -------
    s = jnp.sum(stats[:, 0, :], axis=0)
    sq = jnp.sum(stats[:, 1, :], axis=0)
    mean = s / float(M)
    var = jnp.maximum(sq / float(M) - mean * mean, 0.0)
    scale = gamma_p[0] * jax.lax.rsqrt(var + _BN_EPS)
    shift = beta_p[0] - mean * scale
    ss = jnp.stack([scale, shift], axis=0)                    # (2, C_pad) f32

    # ---- pass 2: normalize (+ residual) (+ relu), tiled over M ------------
    norm_kernel = _make_norm_kernel(relu, has_res)
    row_spec = pl.BlockSpec((tm, C_pad), lambda i: (i, 0))
    ss_spec = pl.BlockSpec((2, C_pad), lambda i: (0, 0))
    inputs = [y, ss]
    in_specs = [row_spec, ss_spec]
    if has_res:
        inputs.append(res_p)
        in_specs.append(row_spec)

    out = pl.pallas_call(
        norm_kernel,
        out_shape=jax.ShapeDtypeStruct((M_pad, C_pad), jnp.bfloat16),
        grid_spec=pltpu.PrefetchScalarGridSpec(
            num_scalar_prefetch=0,
            grid=(grid_m,),
            in_specs=in_specs,
            out_specs=row_spec),
        compiler_params=pltpu.CompilerParams(
            dimension_semantics=("parallel",),
            vmem_limit_bytes=_VMEM_LIMIT),
    )(*inputs)

    return out[:M, :cout].reshape(N, OH, OW, cout)


# ---------------------------------------------------------------------------
# MaxPool 3x3 / stride 2 / pad 1
# ---------------------------------------------------------------------------
def maxpool_3x3_s2_p1(x_nhwc):
    # TODO(synk): left as an XLA-fused elementwise running-max over the 9
    # shifted strided slices (avoids a 9x stacked HBM tensor).
    N, H, W, C = x_nhwc.shape
    k, stride, padding = 3, 2, 1
    neg = jnp.finfo(x_nhwc.dtype).min
    xp = jnp.pad(x_nhwc, ((0, 0), (padding, padding), (padding, padding), (0, 0)),
                 constant_values=neg)
    Hp, Wp = H + 2 * padding, W + 2 * padding
    OH = (Hp - k) // stride + 1
    OW = (Wp - k) // stride + 1
    out = None
    for i in range(k):
        for j in range(k):
            sl = xp[:, i: i + stride * (OH - 1) + 1: stride,
                       j: j + stride * (OW - 1) + 1: stride, :]
            out = sl if out is None else jnp.maximum(out, sl)
    return out


# ---------------------------------------------------------------------------
# ResNetBlock
# ---------------------------------------------------------------------------
def resnet_block(x, params, *, dilation=1, stride=1):
    fx = conv_bn_act(x, params["reduce"], kernel_size=1, stride=stride, padding=0,
                     dilation=1, relu=True)
    fx = conv_bn_act(fx, params["conv3"], kernel_size=3, stride=1, padding=dilation,
                     dilation=dilation, relu=True)
    if "proj" in params:
        res = conv_bn_act(x, params["proj"], kernel_size=1, stride=stride, padding=0,
                          dilation=1, relu=False)
    else:
        res = x
    # conv_1x1_increase (BN, no relu) + residual add + relu, fused in-kernel.
    out = conv_bn_act(fx, params["increase"], kernel_size=1, stride=1, padding=0,
                      dilation=1, relu=True, residual=res)
    return out


# ---------------------------------------------------------------------------
# Parameter init (deterministic, synthetic)
# ---------------------------------------------------------------------------
def _init_convbn(key, cin, cout, k):
    kw, kg, kb = jax.random.split(key, 3)
    fan_in = cin * k * k
    return {
        "w": jax.random.normal(kw, (cout, cin, k, k), jnp.float32) / jnp.sqrt(float(fan_in)),
        "gamma": 1.0 + 0.1 * jax.random.normal(kg, (cout,), jnp.float32),
        "beta": 0.1 * jax.random.normal(kb, (cout,), jnp.float32),
    }


def init_backbone(key, in_channels):
    keys = iter(jax.random.split(key, 256))

    def block(cin, red, inc, need_proj):
        p = {"reduce": _init_convbn(next(keys), cin, red, 1),
             "conv3": _init_convbn(next(keys), red, red, 3),
             "increase": _init_convbn(next(keys), red, inc, 1)}
        if need_proj:
            p["proj"] = _init_convbn(next(keys), cin, inc, 1)
        return p

    params = {}
    params["conv1"] = [
        _init_convbn(next(keys), in_channels, 32, 3),
        _init_convbn(next(keys), 32, 32, 3),
        _init_convbn(next(keys), 32, 64, 3),
    ]
    params["conv2"] = [block(64, 32, 128, True),
                       block(128, 32, 128, False),
                       block(128, 32, 128, False)]
    params["conv3_1"] = block(128, 64, 256, True)
    params["conv3_rest"] = [block(256, 64, 256, False) for _ in range(3)]
    params["conv4"] = [block(256, 128, 512, True)] + \
                      [block(512, 128, 512, False) for _ in range(5)]
    params["conv5"] = [block(512, 256, 1024, True)] + \
                      [block(1024, 256, 1024, False) for _ in range(2)]
    return params


# ---------------------------------------------------------------------------
# ICNetBackbone forward (canonical stage chain)
# ---------------------------------------------------------------------------
@jax.jit
def icnet_backbone_forward(x_nchw, params):
    x = jnp.transpose(x_nchw, (0, 2, 3, 1))  # NCHW -> NHWC

    # conv1: 3x ConvBNReLU
    x = conv_bn_act(x, params["conv1"][0], kernel_size=3, stride=2, padding=1,
                    dilation=1, relu=True)
    x = conv_bn_act(x, params["conv1"][1], kernel_size=3, stride=1, padding=1,
                    dilation=1, relu=True)
    x = conv_bn_act(x, params["conv1"][2], kernel_size=3, stride=1, padding=1,
                    dilation=1, relu=True)

    x = maxpool_3x3_s2_p1(x)

    for p in params["conv2"]:
        x = resnet_block(x, p)
    x = resnet_block(x, params["conv3_1"], stride=2)
    for p in params["conv3_rest"]:
        x = resnet_block(x, p)
    for p in params["conv4"]:
        x = resnet_block(x, p, dilation=2)
    for p in params["conv5"]:
        x = resnet_block(x, p, dilation=4)

    return jnp.transpose(x, (0, 3, 1, 2)).astype(jnp.float32)  # NHWC -> NCHW


if __name__ == "__main__":
    key = jax.random.PRNGKey(0)
    kx, kp = jax.random.split(key)

    in_channels = 4
    x = jax.random.normal(kx, (2, in_channels, 16, 16), jnp.float32)
    params = init_backbone(kp, in_channels)

    out = icnet_backbone_forward(x, params)
    out = jax.block_until_ready(out)

    # input 16x16 -> conv1 s2 -> 8 -> maxpool s2 -> 4 -> conv3_1 s2 -> 2
    assert out.shape == (2, 1024, 2, 2), out.shape
    assert bool(jnp.all(jnp.isfinite(out)))
    print("KERNEL_OK")
</pallas_src>

<mosaic_0001>
module attributes {stable_mosaic.version = 11 : i64} {
  func.func @kernel(%arg0: i32, %arg1: i32, %arg2: memref<128x128xbf16, #tpu.memory_space<vmem>>, %arg3: memref<128x128xbf16, #tpu.memory_space<vmem>>, %arg4: memref<1x128xf32, #tpu.memory_space<vmem>>, %arg5: memref<1x128xf32, #tpu.memory_space<vmem>>, %arg6: memref<128x128xbf16, #tpu.memory_space<vmem>>, %arg7: memref<128x128xf32, #tpu.memory_space<vmem>>) attributes {dimension_semantics = [#tpu.dimension_semantics<parallel>, #tpu.dimension_semantics<arbitrary>], iteration_bounds = array<i64: 1, 1>, scalar_prefetch = 0 : i64, scratch_operands = 1 : i64, tpu.core_type = #tpu.core_type<tc>, window_params = [{transform_indices = @transform_0, window_bounds = array<i64: 128, 128>}, {transform_indices = @transform_1, window_bounds = array<i64: 128, 128>}, {transform_indices = @transform_2, window_bounds = array<i64: 1, 128>}, {transform_indices = @transform_3, window_bounds = array<i64: 1, 128>}, {transform_indices = @transform_4, window_bounds = array<i64: 128, 128>}]} {
    %c0_i32 = arith.constant 0 : i32
    %0 = arith.cmpi eq, %arg1, %c0_i32 : i32
    %1 = arith.extui %0 : i1 to i32
    %c0_i32_0 = arith.constant 0 : i32
    %2 = arith.cmpi ne, %1, %c0_i32_0 : i32
    scf.if %2 {
      %cst_10 = arith.constant 0.000000e+00 : f32
      %12 = vector.broadcast %cst_10 : f32 to vector<128x128xf32>
      %c0_11 = arith.constant 0 : index
      %c0_12 = arith.constant 0 : index
      %13 = vector.load %arg7[%c0_11, %c0_12] : memref<128x128xf32, #tpu.memory_space<vmem>>, vector<128x128xf32>
      tpu.vector_store %arg7[%c0_11, %c0_12], %12 {strides = array<i32>} : memref<128x128xf32, #tpu.memory_space<vmem>>, vector<128x128xf32>,
    } else {
    }
    %c0 = arith.constant 0 : index
    %c0_1 = arith.constant 0 : index
    %3 = vector.load %arg7[%c0, %c0_1] : memref<128x128xf32, #tpu.memory_space<vmem>>, vector<128x128xf32>
    %c0_2 = arith.constant 0 : index
    %c0_3 = arith.constant 0 : index
    %4 = vector.load %arg2[%c0_2, %c0_3] : memref<128x128xbf16, #tpu.memory_space<vmem>>, vector<128x128xbf16>
    %c0_4 = arith.constant 0 : index
    %c0_5 = arith.constant 0 : index
    %5 = vector.load %arg3[%c0_4, %c0_5] : memref<128x128xbf16, #tpu.memory_space<vmem>>, vector<128x128xbf16>
    %cst = arith.constant dense<0.000000e+00> : vector<128x128xf32>
    %6 = tpu.matmul %4, %5, %cst {dimension_numbers = #tpu.dot_dimension_numbers<[1], [0], [0], [1], [0, 0, 1, 1], [], []>} : vector<128x128xbf16>, vector<128x128xbf16>, vector<128x128xf32> -> vector<128x128xf32>
    %7 = arith.addf %3, %6 : vector<128x128xf32>
    %c0_6 = arith.constant 0 : index
    %c0_7 = arith.constant 0 : index
    %8 = vector.load %arg7[%c0_6, %c0_7] : memref<128x128xf32, #tpu.memory_space<vmem>>, vector<128x128xf32>
    tpu.vector_store %arg7[%c0_6, %c0_7], %7 {strides = array<i32>} : memref<128x128xf32, #tpu.memory_space<vmem>>, vector<128x128xf32>,
    %c0_i32_8 = arith.constant 0 : i32
    %9 = arith.cmpi eq, %arg1, %c0_i32_8 : i32
    %10 = arith.extui %9 : i1 to i32
    %c0_i32_9 = arith.constant 0 : i32
    %11 = arith.cmpi ne, %10, %c0_i32_9 : i32
    scf.if %11 {
      %c0_10 = arith.constant 0 : index
      %c0_11 = arith.constant 0 : index
      %12 = vector.load %arg7[%c0_10, %c0_11] : memref<128x128xf32, #tpu.memory_space<vmem>>, vector<128x128xf32>
      %c0_12 = arith.constant 0 : index
      %c0_13 = arith.constant 0 : index
      %13 = vector.load %arg4[%c0_12, %c0_13] : memref<1x128xf32, #tpu.memory_space<vmem>>, vector<1x128xf32>
      %c0_14 = arith.constant 0 : index
      %c0_15 = arith.constant 0 : index
      %14 = vector.load %arg5[%c0_14, %c0_15] : memref<1x128xf32, #tpu.memory_space<vmem>>, vector<1x128xf32>
      %cst_16 = arith.constant dense<0.000000e+00> : vector<128xf32>
      %15 = vector.multi_reduction <add>, %12, %cst_16 [0] : vector<128x128xf32> to vector<128xf32>
      %16 = vector.shape_cast %15 : vector<128xf32> to vector<1x128xf32>
      %17 = arith.mulf %12, %12 : vector<128x128xf32>
      %cst_17 = arith.constant dense<0.000000e+00> : vector<128xf32>
      %18 = vector.multi_reduction <add>, %17, %cst_17 [0] : vector<128x128xf32> to vector<128xf32>
      %19 = vector.shape_cast %18 : vector<128xf32> to vector<1x128xf32>
      %cst_18 = arith.constant 7.812500e-03 : f32
      %20 = vector.broadcast %cst_18 : f32 to vector<1x128xf32>
      %21 = arith.mulf %16, %20 : vector<1x128xf32>
      %cst_19 = arith.constant 7.812500e-03 : f32
      %22 = vector.broadcast %cst_19 : f32 to vector<1x128xf32>
      %23 = arith.mulf %19, %22 : vector<1x128xf32>
      %24 = arith.mulf %21, %21 : vector<1x128xf32>
      %25 = arith.subf %23, %24 : vector<1x128xf32>
      %cst_20 = arith.constant 0.000000e+00 : f32
      %26 = vector.broadcast %cst_20 : f32 to vector<1x128xf32>
      %27 = arith.maximumf %25, %26 : vector<1x128xf32>
      %cst_21 = arith.constant 9.99999974E-6 : f32
      %28 = vector.broadcast %cst_21 : f32 to vector<1x128xf32>
      %29 = arith.addf %27, %28 : vector<1x128xf32>
      %30 = math.rsqrt %29 : vector<1x128xf32>
      %31 = arith.mulf %13, %30 : vector<1x128xf32>
      %32 = arith.mulf %21, %31 : vector<1x128xf32>
      %33 = arith.subf %14, %32 : vector<1x128xf32>
      %34 = vector.broadcast %31 : vector<1x128xf32> to vector<128x128xf32>
      %35 = arith.mulf %12, %34 : vector<128x128xf32>
      %36 = vector.broadcast %33 : vector<1x128xf32> to vector<128x128xf32>
      %37 = arith.addf %35, %36 : vector<128x128xf32>
      %cst_22 = arith.constant 0.000000e+00 : f32
      %38 = vector.broadcast %cst_22 : f32 to vector<128x128xf32>
      %39 = arith.maximumf %37, %38 : vector<128x128xf32>
      %40 = arith.truncf %39 : vector<128x128xf32> to vector<128x128xbf16>
      %c0_23 = arith.constant 0 : index
      %c0_24 = arith.constant 0 : index
      %41 = vector.load %arg6[%c0_23, %c0_24] : memref<128x128xbf16, #tpu.memory_space<vmem>>, vector<128x128xbf16>
      tpu.vector_store %arg6[%c0_23, %c0_24], %40 {strides = array<i32>} : memref<128x128xbf16, #tpu.memory_space<vmem>>, vector<128x128xbf16>,
    } else {
    }
    return
  }
  func.func @transform_0(%arg0: i32, %arg1: i32) -> (i32, i32) {
    %c0_i32 = arith.constant 0 : i32
    %c0_i32_0 = arith.constant 0 : i32
    return %c0_i32, %arg1 : i32, i32
  }
  func.func @transform_1(%arg0: i32, %arg1: i32) -> (i32, i32) {
    %c0_i32 = arith.constant 0 : i32
    return %arg1, %arg0 : i32, i32
  }
  func.func @transform_2(%arg0: i32, %arg1: i32) -> (i32, i32) {
    %c0_i32 = arith.constant 0 : i32
    %c0_i32_0 = arith.constant 0 : i32
    return %c0_i32, %arg0 : i32, i32
  }
  func.func @transform_3(%arg0: i32, %arg1: i32) -> (i32, i32) {
    %c0_i32 = arith.constant 0 : i32
    %c0_i32_0 = arith.constant 0 : i32
    return %c0_i32, %arg0 : i32, i32
  }
  func.func @transform_4(%arg0: i32, %arg1: i32) -> (i32, i32) {
    %c0_i32 = arith.constant 0 : i32
    %c0_i32_0 = arith.constant 0 : i32
    return %c0_i32, %arg0 : i32, i32
  }
}

module attributes {stable_mosaic.version = 11 : i64} {
  func.func @kernel(%arg0: i32, %arg1: i32, %arg2: memref<128x384xbf16, #tpu.memory_space<vmem>>, %arg3: memref<384x128xbf16, #tpu.memory_space<vmem>>, %arg4: memref<1x128xf32, #tpu.memory_space<vmem>>, %arg5: memref<1x128xf32, #tpu.memory_space<vmem>>, %arg6: memref<128x128xbf16, #tpu.memory_space<vmem>>, %arg7: memref<128x128xf32, #tpu.memory_space<vmem>>) attributes {dimension_semantics = [#tpu.dimension_semantics<parallel>, #tpu.dimension_semantics<arbitrary>], iteration_bounds = array<i64: 1, 1>, scalar_prefetch = 0 : i64, scratch_operands = 1 : i64, tpu.core_type = #tpu.core_type<tc>, window_params = [{transform_indices = @transform_0, window_bounds = array<i64: 128, 384>}, {transform_indices = @transform_1, window_bounds = array<i64: 384, 128>}, {transform_indices = @transform_2, window_bounds = array<i64: 1, 128>}, {transform_indices = @transform_3, window_bounds = array<i64: 1, 128>}, {transform_indices = @transform_4, window_bounds = array<i64: 128, 128>}]} {
    %c0_i32 = arith.constant 0 : i32
    %0 = arith.cmpi eq, %arg1, %c0_i32 : i32
    %1 = arith.extui %0 : i1 to i32
    %c0_i32_0 = arith.constant 0 : i32
    %2 = arith.cmpi ne, %1, %c0_i32_0 : i32
    scf.if %2 {
      %cst_10 = arith.constant 0.000000e+00 : f32
      %12 = vector.broadcast %cst_10 : f32 to vector<128x128xf32>
      %c0_11 = arith.constant 0 : index
      %c0_12 = arith.constant 0 : index
      %13 = vector.load %arg7[%c0_11, %c0_12] : memref<128x128xf32, #tpu.memory_space<vmem>>, vector<128x128xf32>
      tpu.vector_store %arg7[%c0_11, %c0_12], %12 {strides = array<i32>} : memref<128x128xf32, #tpu.memory_space<vmem>>, vector<128x128xf32>,
    } else {
    }
    %c0 = arith.constant 0 : index
    %c0_1 = arith.constant 0 : index
    %3 = vector.load %arg7[%c0, %c0_1] : memref<128x128xf32, #tpu.memory_space<vmem>>, vector<128x128xf32>
    %c0_2 = arith.constant 0 : index
    %c0_3 = arith.constant 0 : index
    %4 = vector.load %arg2[%c0_2, %c0_3] : memref<128x384xbf16, #tpu.memory_space<vmem>>, vector<128x384xbf16>
    %c0_4 = arith.constant 0 : index
    %c0_5 = arith.constant 0 : index
    %5 = vector.load %arg3[%c0_4, %c0_5] : memref<384x128xbf16, #tpu.memory_space<vmem>>, vector<384x128xbf16>
    %cst = arith.constant dense<0.000000e+00> : vector<128x128xf32>
    %6 = tpu.matmul %4, %5, %cst {dimension_numbers = #tpu.dot_dimension_numbers<[1], [0], [0], [1], [0, 0, 1, 1], [], []>} : vector<128x384xbf16>, vector<384x128xbf16>, vector<128x128xf32> -> vector<128x128xf32>
    %7 = arith.addf %3, %6 : vector<128x128xf32>
    %c0_6 = arith.constant 0 : index
    %c0_7 = arith.constant 0 : index
    %8 = vector.load %arg7[%c0_6, %c0_7] : memref<128x128xf32, #tpu.memory_space<vmem>>, vector<128x128xf32>
    tpu.vector_store %arg7[%c0_6, %c0_7], %7 {strides = array<i32>} : memref<128x128xf32, #tpu.memory_space<vmem>>, vector<128x128xf32>,
    %c0_i32_8 = arith.constant 0 : i32
    %9 = arith.cmpi eq, %arg1, %c0_i32_8 : i32
    %10 = arith.extui %9 : i1 to i32
    %c0_i32_9 = arith.constant 0 : i32
    %11 = arith.cmpi ne, %10, %c0_i32_9 : i32
    scf.if %11 {
      %c0_10 = arith.constant 0 : index
      %c0_11 = arith.constant 0 : index
      %12 = vector.load %arg7[%c0_10, %c0_11] : memref<128x128xf32, #tpu.memory_space<vmem>>, vector<128x128xf32>
      %c0_12 = arith.constant 0 : index
      %c0_13 = arith.constant 0 : index
      %13 = vector.load %arg4[%c0_12, %c0_13] : memref<1x128xf32, #tpu.memory_space<vmem>>, vector<1x128xf32>
      %c0_14 = arith.constant 0 : index
      %c0_15 = arith.constant 0 : index
      %14 = vector.load %arg5[%c0_14, %c0_15] : memref<1x128xf32, #tpu.memory_space<vmem>>, vector<1x128xf32>
      %cst_16 = arith.constant dense<0.000000e+00> : vector<128xf32>
      %15 = vector.multi_reduction <add>, %12, %cst_16 [0] : vector<128x128xf32> to vector<128xf32>
      %16 = vector.shape_cast %15 : vector<128xf32> to vector<1x128xf32>
      %17 = arith.mulf %12, %12 : vector<128x128xf32>
      %cst_17 = arith.constant dense<0.000000e+00> : vector<128xf32>
      %18 = vector.multi_reduction <add>, %17, %cst_17 [0] : vector<128x128xf32> to vector<128xf32>
      %19 = vector.shape_cast %18 : vector<128xf32> to vector<1x128xf32>
      %cst_18 = arith.constant 7.812500e-03 : f32
      %20 = vector.broadcast %cst_18 : f32 to vector<1x128xf32>
      %21 = arith.mulf %16, %20 : vector<1x128xf32>
      %cst_19 = arith.constant 7.812500e-03 : f32
      %22 = vector.broadcast %cst_19 : f32 to vector<1x128xf32>
      %23 = arith.mulf %19, %22 : vector<1x128xf32>
      %24 = arith.mulf %21, %21 : vector<1x128xf32>
      %25 = arith.subf %23, %24 : vector<1x128xf32>
      %cst_20 = arith.constant 0.000000e+00 : f32
      %26 = vector.broadcast %cst_20 : f32 to vector<1x128xf32>
      %27 = arith.maximumf %25, %26 : vector<1x128xf32>
      %cst_21 = arith.constant 9.99999974E-6 : f32
      %28 = vector.broadcast %cst_21 : f32 to vector<1x128xf32>
      %29 = arith.addf %27, %28 : vector<1x128xf32>
      %30 = math.rsqrt %29 : vector<1x128xf32>
      %31 = arith.mulf %13, %30 : vector<1x128xf32>
      %32 = arith.mulf %21, %31 : vector<1x128xf32>
      %33 = arith.subf %14, %32 : vector<1x128xf32>
      %34 = vector.broadcast %31 : vector<1x128xf32> to vector<128x128xf32>
      %35 = arith.mulf %12, %34 : vector<128x128xf32>
      %36 = vector.broadcast %33 : vector<1x128xf32> to vector<128x128xf32>
      %37 = arith.addf %35, %36 : vector<128x128xf32>
      %cst_22 = arith.constant 0.000000e+00 : f32
      %38 = vector.broadcast %cst_22 : f32 to vector<128x128xf32>
      %39 = arith.maximumf %37, %38 : vector<128x128xf32>
      %40 = arith.truncf %39 : vector<128x128xf32> to vector<128x128xbf16>
      %c0_23 = arith.constant 0 : index
      %c0_24 = arith.constant 0 : index
      %41 = vector.load %arg6[%c0_23, %c0_24] : memref<128x128xbf16, #tpu.memory_space<vmem>>, vector<128x128xbf16>
      tpu.vector_store %arg6[%c0_23, %c0_24], %40 {strides = array<i32>} : memref<128x128xbf16, #tpu.memory_space<vmem>>, vector<128x128xbf16>,
    } else {
    }
    return
  }
  func.func @transform_0(%arg0: i32, %arg1: i32) -> (i32, i32) {
    %c0_i32 = arith.constant 0 : i32
    %c0_i32_0 = arith.constant 0 : i32
    return %c0_i32, %arg1 : i32, i32
  }
  func.func @transform_1(%arg0: i32, %arg1: i32) -> (i32, i32) {
    %c0_i32 = arith.constant 0 : i32
    return %arg1, %arg0 : i32, i32
  }
  func.func @transform_2(%arg0: i32, %arg1: i32) -> (i32, i32) {
    %c0_i32 = arith.constant 0 : i32
    %c0_i32_0 = arith.constant 0 : i32
    return %c0_i32, %arg0 : i32, i32
  }
  func.func @transform_3(%arg0: i32, %arg1: i32) -> (i32, i32) {
    %c0_i32 = arith.constant 0 : i32
    %c0_i32_0 = arith.constant 0 : i32
    return %c0_i32, %arg0 : i32, i32
  }
  func.func @transform_4(%arg0: i32, %arg1: i32) -> (i32, i32) {
    %c0_i32 = arith.constant 0 : i32
    %c0_i32_0 = arith.constant 0 : i32
    return %c0_i32, %arg0 : i32, i32
  }
}

module attributes {stable_mosaic.version = 11 : i64} {
  func.func @kernel(%arg0: i32, %arg1: i32, %arg2: memref<32x128xbf16, #tpu.memory_space<vmem>>, %arg3: memref<128x128xbf16, #tpu.memory_space<vmem>>, %arg4: memref<1x128xf32, #tpu.memory_space<vmem>>, %arg5: memref<1x128xf32, #tpu.memory_space<vmem>>, %arg6: memref<32x128xbf16, #tpu.memory_space<vmem>>, %arg7: memref<32x128xf32, #tpu.memory_space<vmem>>) attributes {dimension_semantics = [#tpu.dimension_semantics<parallel>, #tpu.dimension_semantics<arbitrary>], iteration_bounds = array<i64: 1, 1>, scalar_prefetch = 0 : i64, scratch_operands = 1 : i64, tpu.core_type = #tpu.core_type<tc>, window_params = [{transform_indices = @transform_0, window_bounds = array<i64: 32, 128>}, {transform_indices = @transform_1, window_bounds = array<i64: 128, 128>}, {transform_indices = @transform_2, window_bounds = array<i64: 1, 128>}, {transform_indices = @transform_3, window_bounds = array<i64: 1, 128>}, {transform_indices = @transform_4, window_bounds = array<i64: 32, 128>}]} {
    %c0_i32 = arith.constant 0 : i32
    %0 = arith.cmpi eq, %arg1, %c0_i32 : i32
    %1 = arith.extui %0 : i1 to i32
    %c0_i32_0 = arith.constant 0 : i32
    %2 = arith.cmpi ne, %1, %c0_i32_0 : i32
    scf.if %2 {
      %cst_10 = arith.constant 0.000000e+00 : f32
      %12 = vector.broadcast %cst_10 : f32 to vector<32x128xf32>
      %c0_11 = arith.constant 0 : index
      %c0_12 = arith.constant 0 : index
      %13 = vector.load %arg7[%c0_11, %c0_12] : memref<32x128xf32, #tpu.memory_space<vmem>>, vector<32x128xf32>
      tpu.vector_store %arg7[%c0_11, %c0_12], %12 {strides = array<i32>} : memref<32x128xf32, #tpu.memory_space<vmem>>, vector<32x128xf32>,
    } else {
    }
    %c0 = arith.constant 0 : index
    %c0_1 = arith.constant 0 : index
    %3 = vector.load %arg7[%c0, %c0_1] : memref<32x128xf32, #tpu.memory_space<vmem>>, vector<32x128xf32>
    %c0_2 = arith.constant 0 : index
    %c0_3 = arith.constant 0 : index
    %4 = vector.load %arg2[%c0_2, %c0_3] : memref<32x128xbf16, #tpu.memory_space<vmem>>, vector<32x128xbf16>
    %c0_4 = arith.constant 0 : index
    %c0_5 = arith.constant 0 : index
    %5 = vector.load %arg3[%c0_4, %c0_5] : memref<128x128xbf16, #tpu.memory_space<vmem>>, vector<128x128xbf16>
    %cst = arith.constant dense<0.000000e+00> : vector<32x128xf32>
    %6 = tpu.matmul %4, %5, %cst {dimension_numbers = #tpu.dot_dimension_numbers<[1], [0], [0], [1], [0, 0, 1, 1], [], []>} : vector<32x128xbf16>, vector<128x128xbf16>, vector<32x128xf32> -> vector<32x128xf32>
    %7 = arith.addf %3, %6 : vector<32x128xf32>
    %c0_6 = arith.constant 0 : index
    %c0_7 = arith.constant 0 : index
    %8 = vector.load %arg7[%c0_6, %c0_7] : memref<32x128xf32, #tpu.memory_space<vmem>>, vector<32x128xf32>
    tpu.vector_store %arg7[%c0_6, %c0_7], %7 {strides = array<i32>} : memref<32x128xf32, #tpu.memory_space<vmem>>, vector<32x128xf32>,
    %c0_i32_8 = arith.constant 0 : i32
    %9 = arith.cmpi eq, %arg1, %c0_i32_8 : i32
    %10 = arith.extui %9 : i1 to i32
    %c0_i32_9 = arith.constant 0 : i32
    %11 = arith.cmpi ne, %10, %c0_i32_9 : i32
    scf.if %11 {
      %c0_10 = arith.constant 0 : index
      %c0_11 = arith.constant 0 : index
      %12 = vector.load %arg7[%c0_10, %c0_11] : memref<32x128xf32, #tpu.memory_space<vmem>>, vector<32x128xf32>
      %c0_12 = arith.constant 0 : index
      %c0_13 = arith.constant 0 : index
      %13 = vector.load %arg4[%c0_12, %c0_13] : memref<1x128xf32, #tpu.memory_space<vmem>>, vector<1x128xf32>
      %c0_14 = arith.constant 0 : index
      %c0_15 = arith.constant 0 : index
      %14 = vector.load %arg5[%c0_14, %c0_15] : memref<1x128xf32, #tpu.memory_space<vmem>>, vector<1x128xf32>
      %cst_16 = arith.constant dense<0.000000e+00> : vector<128xf32>
      %15 = vector.multi_reduction <add>, %12, %cst_16 [0] : vector<32x128xf32> to vector<128xf32>
      %16 = vector.shape_cast %15 : vector<128xf32> to vector<1x128xf32>
      %17 = arith.mulf %12, %12 : vector<32x128xf32>
      %cst_17 = arith.constant dense<0.000000e+00> : vector<128xf32>
      %18 = vector.multi_reduction <add>, %17, %cst_17 [0] : vector<32x128xf32> to vector<128xf32>
      %19 = vector.shape_cast %18 : vector<128xf32> to vector<1x128xf32>
      %cst_18 = arith.constant 3.125000e-02 : f32
      %20 = vector.broadcast %cst_18 : f32 to vector<1x128xf32>
      %21 = arith.mulf %16, %20 : vector<1x128xf32>
      %cst_19 = arith.constant 3.125000e-02 : f32
      %22 = vector.broadcast %cst_19 : f32 to vector<1x128xf32>
      %23 = arith.mulf %19, %22 : vector<1x128xf32>
      %24 = arith.mulf %21, %21 : vector<1x128xf32>
      %25 = arith.subf %23, %24 : vector<1x128xf32>
      %cst_20 = arith.constant 0.000000e+00 : f32
      %26 = vector.broadcast %cst_20 : f32 to vector<1x128xf32>
      %27 = arith.maximumf %25, %26 : vector<1x128xf32>
      %cst_21 = arith.constant 9.99999974E-6 : f32
      %28 = vector.broadcast %cst_21 : f32 to vector<1x128xf32>
      %29 = arith.addf %27, %28 : vector<1x128xf32>
      %30 = math.rsqrt %29 : vector<1x128xf32>
      %31 = arith.mulf %13, %30 : vector<1x128xf32>
      %32 = arith.mulf %21, %31 : vector<1x128xf32>
      %33 = arith.subf %14, %32 : vector<1x128xf32>
      %34 = vector.broadcast %31 : vector<1x128xf32> to vector<32x128xf32>
      %35 = arith.mulf %12, %34 : vector<32x128xf32>
      %36 = vector.broadcast %33 : vector<1x128xf32> to vector<32x128xf32>
      %37 = arith.addf %35, %36 : vector<32x128xf32>
      %cst_22 = arith.constant 0.000000e+00 : f32
      %38 = vector.broadcast %cst_22 : f32 to vector<32x128xf32>
      %39 = arith.maximumf %37, %38 : vector<32x128xf32>
      %40 = arith.truncf %39 : vector<32x128xf32> to vector<32x128xbf16>
      %c0_23 = arith.constant 0 : index
      %c0_24 = arith.constant 0 : index
      %41 = vector.load %arg6[%c0_23, %c0_24] : memref<32x128xbf16, #tpu.memory_space<vmem>>, vector<32x128xbf16>
      tpu.vector_store %arg6[%c0_23, %c0_24], %40 {strides = array<i32>} : memref<32x128xbf16, #tpu.memory_space<vmem>>, vector<32x128xbf16>,
    } else {
    }
    return
  }
  func.func @transform_0(%arg0: i32, %arg1: i32) -> (i32, i32) {
    %c0_i32 = arith.constant 0 : i32
    %c0_i32_0 = arith.constant 0 : i32
    return %c0_i32, %arg1 : i32, i32
  }
  func.func @transform_1(%arg0: i32, %arg1: i32) -> (i32, i32) {
    %c0_i32 = arith.constant 0 : i32
    return %arg1, %arg0 : i32, i32
  }
  func.func @transform_2(%arg0: i32, %arg1: i32) -> (i32, i32) {
    %c0_i32 = arith.constant 0 : i32
    %c0_i32_0 = arith.constant 0 : i32
    return %c0_i32, %arg0 : i32, i32
  }
  func.func @transform_3(%arg0: i32, %arg1: i32) -> (i32, i32) {
    %c0_i32 = arith.constant 0 : i32
    %c0_i32_0 = arith.constant 0 : i32
    return %c0_i32, %arg0 : i32, i32
  }
  func.func @transform_4(%arg0: i32, %arg1: i32) -> (i32, i32) {
    %c0_i32 = arith.constant 0 : i32
    %c0_i32_0 = arith.constant 0 : i32
    return %c0_i32, %arg0 : i32, i32
  }
}

module attributes {stable_mosaic.version = 11 : i64} {
  func.func @kernel(%arg0: i32, %arg1: i32, %arg2: memref<32x384xbf16, #tpu.memory_space<vmem>>, %arg3: memref<384x128xbf16, #tpu.memory_space<vmem>>, %arg4: memref<1x128xf32, #tpu.memory_space<vmem>>, %arg5: memref<1x128xf32, #tpu.memory_space<vmem>>, %arg6: memref<32x128xbf16, #tpu.memory_space<vmem>>, %arg7: memref<32x128xf32, #tpu.memory_space<vmem>>) attributes {dimension_semantics = [#tpu.dimension_semantics<parallel>, #tpu.dimension_semantics<arbitrary>], iteration_bounds = array<i64: 1, 1>, scalar_prefetch = 0 : i64, scratch_operands = 1 : i64, tpu.core_type = #tpu.core_type<tc>, window_params = [{transform_indices = @transform_0, window_bounds = array<i64: 32, 384>}, {transform_indices = @transform_1, window_bounds = array<i64: 384, 128>}, {transform_indices = @transform_2, window_bounds = array<i64: 1, 128>}, {transform_indices = @transform_3, window_bounds = array<i64: 1, 128>}, {transform_indices = @transform_4, window_bounds = array<i64: 32, 128>}]} {
    %c0_i32 = arith.constant 0 : i32
    %0 = arith.cmpi eq, %arg1, %c0_i32 : i32
    %1 = arith.extui %0 : i1 to i32
    %c0_i32_0 = arith.constant 0 : i32
    %2 = arith.cmpi ne, %1, %c0_i32_0 : i32
    scf.if %2 {
      %cst_10 = arith.constant 0.000000e+00 : f32
      %12 = vector.broadcast %cst_10 : f32 to vector<32x128xf32>
      %c0_11 = arith.constant 0 : index
      %c0_12 = arith.constant 0 : index
      %13 = vector.load %arg7[%c0_11, %c0_12] : memref<32x128xf32, #tpu.memory_space<vmem>>, vector<32x128xf32>
      tpu.vector_store %arg7[%c0_11, %c0_12], %12 {strides = array<i32>} : memref<32x128xf32, #tpu.memory_space<vmem>>, vector<32x128xf32>,
    } else {
    }
    %c0 = arith.constant 0 : index
    %c0_1 = arith.constant 0 : index
    %3 = vector.load %arg7[%c0, %c0_1] : memref<32x128xf32, #tpu.memory_space<vmem>>, vector<32x128xf32>
    %c0_2 = arith.constant 0 : index
    %c0_3 = arith.constant 0 : index
    %4 = vector.load %arg2[%c0_2, %c0_3] : memref<32x384xbf16, #tpu.memory_space<vmem>>, vector<32x384xbf16>
    %c0_4 = arith.constant 0 : index
    %c0_5 = arith.constant 0 : index
    %5 = vector.load %arg3[%c0_4, %c0_5] : memref<384x128xbf16, #tpu.memory_space<vmem>>, vector<384x128xbf16>
    %cst = arith.constant dense<0.000000e+00> : vector<32x128xf32>
    %6 = tpu.matmul %4, %5, %cst {dimension_numbers = #tpu.dot_dimension_numbers<[1], [0], [0], [1], [0, 0, 1, 1], [], []>} : vector<32x384xbf16>, vector<384x128xbf16>, vector<32x128xf32> -> vector<32x128xf32>
    %7 = arith.addf %3, %6 : vector<32x128xf32>
    %c0_6 = arith.constant 0 : index
    %c0_7 = arith.constant 0 : index
    %8 = vector.load %arg7[%c0_6, %c0_7] : memref<32x128xf32, #tpu.memory_space<vmem>>, vector<32x128xf32>
    tpu.vector_store %arg7[%c0_6, %c0_7], %7 {strides = array<i32>} : memref<32x128xf32, #tpu.memory_space<vmem>>, vector<32x128xf32>,
    %c0_i32_8 = arith.constant 0 : i32
    %9 = arith.cmpi eq, %arg1, %c0_i32_8 : i32
    %10 = arith.extui %9 : i1 to i32
    %c0_i32_9 = arith.constant 0 : i32
    %11 = arith.cmpi ne, %10, %c0_i32_9 : i32
    scf.if %11 {
      %c0_10 = arith.constant 0 : index
      %c0_11 = arith.constant 0 : index
      %12 = vector.load %arg7[%c0_10, %c0_11] : memref<32x128xf32, #tpu.memory_space<vmem>>, vector<32x128xf32>
      %c0_12 = arith.constant 0 : index
      %c0_13 = arith.constant 0 : index
      %13 = vector.load %arg4[%c0_12, %c0_13] : memref<1x128xf32, #tpu.memory_space<vmem>>, vector<1x128xf32>
      %c0_14 = arith.constant 0 : index
      %c0_15 = arith.constant 0 : index
      %14 = vector.load %arg5[%c0_14, %c0_15] : memref<1x128xf32, #tpu.memory_space<vmem>>, vector<1x128xf32>
      %cst_16 = arith.constant dense<0.000000e+00> : vector<128xf32>
      %15 = vector.multi_reduction <add>, %12, %cst_16 [0] : vector<32x128xf32> to vector<128xf32>
      %16 = vector.shape_cast %15 : vector<128xf32> to vector<1x128xf32>
      %17 = arith.mulf %12, %12 : vector<32x128xf32>
      %cst_17 = arith.constant dense<0.000000e+00> : vector<128xf32>
      %18 = vector.multi_reduction <add>, %17, %cst_17 [0] : vector<32x128xf32> to vector<128xf32>
      %19 = vector.shape_cast %18 : vector<128xf32> to vector<1x128xf32>
      %cst_18 = arith.constant 3.125000e-02 : f32
      %20 = vector.broadcast %cst_18 : f32 to vector<1x128xf32>
      %21 = arith.mulf %16, %20 : vector<1x128xf32>
      %cst_19 = arith.constant 3.125000e-02 : f32
      %22 = vector.broadcast %cst_19 : f32 to vector<1x128xf32>
      %23 = arith.mulf %19, %22 : vector<1x128xf32>
      %24 = arith.mulf %21, %21 : vector<1x128xf32>
      %25 = arith.subf %23, %24 : vector<1x128xf32>
      %cst_20 = arith.constant 0.000000e+00 : f32
      %26 = vector.broadcast %cst_20 : f32 to vector<1x128xf32>
      %27 = arith.maximumf %25, %26 : vector<1x128xf32>
      %cst_21 = arith.constant 9.99999974E-6 : f32
      %28 = vector.broadcast %cst_21 : f32 to vector<1x128xf32>
      %29 = arith.addf %27, %28 : vector<1x128xf32>
      %30 = math.rsqrt %29 : vector<1x128xf32>
      %31 = arith.mulf %13, %30 : vector<1x128xf32>
      %32 = arith.mulf %21, %31 : vector<1x128xf32>
      %33 = arith.subf %14, %32 : vector<1x128xf32>
      %34 = vector.broadcast %31 : vector<1x128xf32> to vector<32x128xf32>
      %35 = arith.mulf %12, %34 : vector<32x128xf32>
      %36 = vector.broadcast %33 : vector<1x128xf32> to vector<32x128xf32>
      %37 = arith.addf %35, %36 : vector<32x128xf32>
      %cst_22 = arith.constant 0.000000e+00 : f32
      %38 = vector.broadcast %cst_22 : f32 to vector<32x128xf32>
      %39 = arith.maximumf %37, %38 : vector<32x128xf32>
      %40 = arith.truncf %39 : vector<32x128xf32> to vector<32x128xbf16>
      %c0_23 = arith.constant 0 : index
      %c0_24 = arith.constant 0 : index
      %41 = vector.load %arg6[%c0_23, %c0_24] : memref<32x128xbf16, #tpu.memory_space<vmem>>, vector<32x128xbf16>
      tpu.vector_store %arg6[%c0_23, %c0_24], %40 {strides = array<i32>} : memref<32x128xbf16, #tpu.memory_space<vmem>>, vector<32x128xbf16>,
    } else {
    }
    return
  }
  func.func @transform_0(%arg0: i32, %arg1: i32) -> (i32, i32) {
    %c0_i32 = arith.constant 0 : i32
    %c0_i32_0 = arith.constant 0 : i32
    return %c0_i32, %arg1 : i32, i32
  }
  func.func @transform_1(%arg0: i32, %arg1: i32) -> (i32, i32) {
    %c0_i32 = arith.constant 0 : i32
    return %arg1, %arg0 : i32, i32
  }
  func.func @transform_2(%arg0: i32, %arg1: i32) -> (i32, i32) {
    %c0_i32 = arith.constant 0 : i32
    %c0_i32_0 = arith.constant 0 : i32
    return %c0_i32, %arg0 : i32, i32
  }
  func.func @transform_3(%arg0: i32, %arg1: i32) -> (i32, i32) {
    %c0_i32 = arith.constant 0 : i32
    %c0_i32_0 = arith.constant 0 : i32
    return %c0_i32, %arg0 : i32, i32
  }
  func.func @transform_4(%arg0: i32, %arg1: i32) -> (i32, i32) {
    %c0_i32 = arith.constant 0 : i32
    %c0_i32_0 = arith.constant 0 : i32
    return %c0_i32, %arg0 : i32, i32
  }
}

module attributes {stable_mosaic.version = 11 : i64} {
  func.func @kernel(%arg0: i32, %arg1: i32, %arg2: memref<32x128xbf16, #tpu.memory_space<vmem>>, %arg3: memref<128x128xbf16, #tpu.memory_space<vmem>>, %arg4: memref<1x128xf32, #tpu.memory_space<vmem>>, %arg5: memref<1x128xf32, #tpu.memory_space<vmem>>, %arg6: memref<32x128xbf16, #tpu.memory_space<vmem>>, %arg7: memref<32x128xf32, #tpu.memory_space<vmem>>) attributes {dimension_semantics = [#tpu.dimension_semantics<parallel>, #tpu.dimension_semantics<arbitrary>], iteration_bounds = array<i64: 1, 1>, scalar_prefetch = 0 : i64, scratch_operands = 1 : i64, tpu.core_type = #tpu.core_type<tc>, window_params = [{transform_indices = @transform_0, window_bounds = array<i64: 32, 128>}, {transform_indices = @transform_1, window_bounds = array<i64: 128, 128>}, {transform_indices = @transform_2, window_bounds = array<i64: 1, 128>}, {transform_indices = @transform_3, window_bounds = array<i64: 1, 128>}, {transform_indices = @transform_4, window_bounds = array<i64: 32, 128>}]} {
    %c0_i32 = arith.constant 0 : i32
    %0 = arith.cmpi eq, %arg1, %c0_i32 : i32
    %1 = arith.extui %0 : i1 to i32
    %c0_i32_0 = arith.constant 0 : i32
    %2 = arith.cmpi ne, %1, %c0_i32_0 : i32
    scf.if %2 {
      %cst_10 = arith.constant 0.000000e+00 : f32
      %12 = vector.broadcast %cst_10 : f32 to vector<32x128xf32>
      %c0_11 = arith.constant 0 : index
      %c0_12 = arith.constant 0 : index
      %13 = vector.load %arg7[%c0_11, %c0_12] : memref<32x128xf32, #tpu.memory_space<vmem>>, vector<32x128xf32>
      tpu.vector_store %arg7[%c0_11, %c0_12], %12 {strides = array<i32>} : memref<32x128xf32, #tpu.memory_space<vmem>>, vector<32x128xf32>,
    } else {
    }
    %c0 = arith.constant 0 : index
    %c0_1 = arith.constant 0 : index
    %3 = vector.load %arg7[%c0, %c0_1] : memref<32x128xf32, #tpu.memory_space<vmem>>, vector<32x128xf32>
    %c0_2 = arith.constant 0 : index
    %c0_3 = arith.constant 0 : index
    %4 = vector.load %arg2[%c0_2, %c0_3] : memref<32x128xbf16, #tpu.memory_space<vmem>>, vector<32x128xbf16>
    %c0_4 = arith.constant 0 : index
    %c0_5 = arith.constant 0 : index
    %5 = vector.load %arg3[%c0_4, %c0_5] : memref<128x128xbf16, #tpu.memory_space<vmem>>, vector<128x128xbf16>
    %cst = arith.constant dense<0.000000e+00> : vector<32x128xf32>
    %6 = tpu.matmul %4, %5, %cst {dimension_numbers = #tpu.dot_dimension_numbers<[1], [0], [0], [1], [0, 0, 1, 1], [], []>} : vector<32x128xbf16>, vector<128x128xbf16>, vector<32x128xf32> -> vector<32x128xf32>
    %7 = arith.addf %3, %6 : vector<32x128xf32>
    %c0_6 = arith.constant 0 : index
    %c0_7 = arith.constant 0 : index
    %8 = vector.load %arg7[%c0_6, %c0_7] : memref<32x128xf32, #tpu.memory_space<vmem>>, vector<32x128xf32>
    tpu.vector_store %arg7[%c0_6, %c0_7], %7 {strides = array<i32>} : memref<32x128xf32, #tpu.memory_space<vmem>>, vector<32x128xf32>,
    %c0_i32_8 = arith.constant 0 : i32
    %9 = arith.cmpi eq, %arg1, %c0_i32_8 : i32
    %10 = arith.extui %9 : i1 to i32
    %c0_i32_9 = arith.constant 0 : i32
    %11 = arith.cmpi ne, %10, %c0_i32_9 : i32
    scf.if %11 {
      %c0_10 = arith.constant 0 : index
      %c0_11 = arith.constant 0 : index
      %12 = vector.load %arg7[%c0_10, %c0_11] : memref<32x128xf32, #tpu.memory_space<vmem>>, vector<32x128xf32>
      %c0_12 = arith.constant 0 : index
      %c0_13 = arith.constant 0 : index
      %13 = vector.load %arg4[%c0_12, %c0_13] : memref<1x128xf32, #tpu.memory_space<vmem>>, vector<1x128xf32>
      %c0_14 = arith.constant 0 : index
      %c0_15 = arith.constant 0 : index
      %14 = vector.load %arg5[%c0_14, %c0_15] : memref<1x128xf32, #tpu.memory_space<vmem>>, vector<1x128xf32>
      %cst_16 = arith.constant dense<0.000000e+00> : vector<128xf32>
      %15 = vector.multi_reduction <add>, %12, %cst_16 [0] : vector<32x128xf32> to vector<128xf32>
      %16 = vector.shape_cast %15 : vector<128xf32> to vector<1x128xf32>
      %17 = arith.mulf %12, %12 : vector<32x128xf32>
      %cst_17 = arith.constant dense<0.000000e+00> : vector<128xf32>
      %18 = vector.multi_reduction <add>, %17, %cst_17 [0] : vector<32x128xf32> to vector<128xf32>
      %19 = vector.shape_cast %18 : vector<128xf32> to vector<1x128xf32>
      %cst_18 = arith.constant 3.125000e-02 : f32
      %20 = vector.broadcast %cst_18 : f32 to vector<1x128xf32>
      %21 = arith.mulf %16, %20 : vector<1x128xf32>
      %cst_19 = arith.constant 3.125000e-02 : f32
      %22 = vector.broadcast %cst_19 : f32 to vector<1x128xf32>
      %23 = arith.mulf %19, %22 : vector<1x128xf32>
      %24 = arith.mulf %21, %21 : vector<1x128xf32>
      %25 = arith.subf %23, %24 : vector<1x128xf32>
      %cst_20 = arith.constant 0.000000e+00 : f32
      %26 = vector.broadcast %cst_20 : f32 to vector<1x128xf32>
      %27 = arith.maximumf %25, %26 : vector<1x128xf32>
      %cst_21 = arith.constant 9.99999974E-6 : f32
      %28 = vector.broadcast %cst_21 : f32 to vector<1x128xf32>
      %29 = arith.addf %27, %28 : vector<1x128xf32>
      %30 = math.rsqrt %29 : vector<1x128xf32>
      %31 = arith.mulf %13, %30 : vector<1x128xf32>
      %32 = arith.mulf %21, %31 : vector<1x128xf32>
      %33 = arith.subf %14, %32 : vector<1x128xf32>
      %34 = vector.broadcast %31 : vector<1x128xf32> to vector<32x128xf32>
      %35 = arith.mulf %12, %34 : vector<32x128xf32>
      %36 = vector.broadcast %33 : vector<1x128xf32> to vector<32x128xf32>
      %37 = arith.addf %35, %36 : vector<32x128xf32>
      %38 = arith.truncf %37 : vector<32x128xf32> to vector<32x128xbf16>
      %c0_22 = arith.constant 0 : index
      %c0_23 = arith.constant 0 : index
      %39 = vector.load %arg6[%c0_22, %c0_23] : memref<32x128xbf16, #tpu.memory_space<vmem>>, vector<32x128xbf16>
      tpu.vector_store %arg6[%c0_22, %c0_23], %38 {strides = array<i32>} : memref<32x128xbf16, #tpu.memory_space<vmem>>, vector<32x128xbf16>,
    } else {
    }
    return
  }
  func.func @transform_0(%arg0: i32, %arg1: i32) -> (i32, i32) {
    %c0_i32 = arith.constant 0 : i32
    %c0_i32_0 = arith.constant 0 : i32
    return %c0_i32, %arg1 : i32, i32
  }
  func.func @transform_1(%arg0: i32, %arg1: i32) -> (i32, i32) {
    %c0_i32 = arith.constant 0 : i32
    return %arg1, %arg0 : i32, i32
  }
  func.func @transform_2(%arg0: i32, %arg1: i32) -> (i32, i32) {
    %c0_i32 = arith.constant 0 : i32
    %c0_i32_0 = arith.constant 0 : i32
    return %c0_i32, %arg0 : i32, i32
  }
  func.func @transform_3(%arg0: i32, %arg1: i32) -> (i32, i32) {
    %c0_i32 = arith.constant 0 : i32
    %c0_i32_0 = arith.constant 0 : i32
    return %c0_i32, %arg0 : i32, i32
  }
  func.func @transform_4(%arg0: i32, %arg1: i32) -> (i32, i32) {
    %c0_i32 = arith.constant 0 : i32
    %c0_i32_0 = arith.constant 0 : i32
    return %c0_i32, %arg0 : i32, i32
  }
}

module attributes {stable_mosaic.version = 11 : i64} {
  func.func @kernel(%arg0: i32, %arg1: i32, %arg2: memref<32x128xbf16, #tpu.memory_space<vmem>>, %arg3: memref<128x128xbf16, #tpu.memory_space<vmem>>, %arg4: memref<1x128xf32, #tpu.memory_space<vmem>>, %arg5: memref<1x128xf32, #tpu.memory_space<vmem>>, %arg6: memref<32x128xbf16, #tpu.memory_space<vmem>>, %arg7: memref<32x128xbf16, #tpu.memory_space<vmem>>, %arg8: memref<32x128xf32, #tpu.memory_space<vmem>>) attributes {dimension_semantics = [#tpu.dimension_semantics<parallel>, #tpu.dimension_semantics<arbitrary>], iteration_bounds = array<i64: 1, 1>, scalar_prefetch = 0 : i64, scratch_operands = 1 : i64, tpu.core_type = #tpu.core_type<tc>, window_params = [{transform_indices = @transform_0, window_bounds = array<i64: 32, 128>}, {transform_indices = @transform_1, window_bounds = array<i64: 128, 128>}, {transform_indices = @transform_2, window_bounds = array<i64: 1, 128>}, {transform_indices = @transform_3, window_bounds = array<i64: 1, 128>}, {transform_indices = @transform_4, window_bounds = array<i64: 32, 128>}, {transform_indices = @transform_5, window_bounds = array<i64: 32, 128>}]} {
    %c0_i32 = arith.constant 0 : i32
    %0 = arith.cmpi eq, %arg1, %c0_i32 : i32
    %1 = arith.extui %0 : i1 to i32
    %c0_i32_0 = arith.constant 0 : i32
    %2 = arith.cmpi ne, %1, %c0_i32_0 : i32
    scf.if %2 {
      %cst_10 = arith.constant 0.000000e+00 : f32
      %12 = vector.broadcast %cst_10 : f32 to vector<32x128xf32>
      %c0_11 = arith.constant 0 : index
      %c0_12 = arith.constant 0 : index
      %13 = vector.load %arg8[%c0_11, %c0_12] : memref<32x128xf32, #tpu.memory_space<vmem>>, vector<32x128xf32>
      tpu.vector_store %arg8[%c0_11, %c0_12], %12 {strides = array<i32>} : memref<32x128xf32, #tpu.memory_space<vmem>>, vector<32x128xf32>,
    } else {
    }
    %c0 = arith.constant 0 : index
    %c0_1 = arith.constant 0 : index
    %3 = vector.load %arg8[%c0, %c0_1] : memref<32x128xf32, #tpu.memory_space<vmem>>, vector<32x128xf32>
    %c0_2 = arith.constant 0 : index
    %c0_3 = arith.constant 0 : index
    %4 = vector.load %arg2[%c0_2, %c0_3] : memref<32x128xbf16, #tpu.memory_space<vmem>>, vector<32x128xbf16>
    %c0_4 = arith.constant 0 : index
    %c0_5 = arith.constant 0 : index
    %5 = vector.load %arg3[%c0_4, %c0_5] : memref<128x128xbf16, #tpu.memory_space<vmem>>, vector<128x128xbf16>
    %cst = arith.constant dense<0.000000e+00> : vector<32x128xf32>
    %6 = tpu.matmul %4, %5, %cst {dimension_numbers = #tpu.dot_dimension_numbers<[1], [0], [0], [1], [0, 0, 1, 1], [], []>} : vector<32x128xbf16>, vector<128x128xbf16>, vector<32x128xf32> -> vector<32x128xf32>
    %7 = arith.addf %3, %6 : vector<32x128xf32>
    %c0_6 = arith.constant 0 : index
    %c0_7 = arith.constant 0 : index
    %8 = vector.load %arg8[%c0_6, %c0_7] : memref<32x128xf32, #tpu.memory_space<vmem>>, vector<32x128xf32>
    tpu.vector_store %arg8[%c0_6, %c0_7], %7 {strides = array<i32>} : memref<32x128xf32, #tpu.memory_space<vmem>>, vector<32x128xf32>,
    %c0_i32_8 = arith.constant 0 : i32
    %9 = arith.cmpi eq, %arg1, %c0_i32_8 : i32
    %10 = arith.extui %9 : i1 to i32
    %c0_i32_9 = arith.constant 0 : i32
    %11 = arith.cmpi ne, %10, %c0_i32_9 : i32
    scf.if %11 {
      %c0_10 = arith.constant 0 : index
      %c0_11 = arith.constant 0 : index
      %12 = vector.load %arg8[%c0_10, %c0_11] : memref<32x128xf32, #tpu.memory_space<vmem>>, vector<32x128xf32>
      %c0_12 = arith.constant 0 : index
      %c0_13 = arith.constant 0 : index
      %13 = vector.load %arg4[%c0_12, %c0_13] : memref<1x128xf32, #tpu.memory_space<vmem>>, vector<1x128xf32>
      %c0_14 = arith.constant 0 : index
      %c0_15 = arith.constant 0 : index
      %14 = vector.load %arg5[%c0_14, %c0_15] : memref<1x128xf32, #tpu.memory_space<vmem>>, vector<1x128xf32>
      %c0_16 = arith.constant 0 : index
      %c0_17 = arith.constant 0 : index
      %15 = vector.load %arg6[%c0_16, %c0_17] : memref<32x128xbf16, #tpu.memory_space<vmem>>, vector<32x128xbf16>
      %16 = arith.extf %15 : vector<32x128xbf16> to vector<32x128xf32>
      %cst_18 = arith.constant dense<0.000000e+00> : vector<128xf32>
      %17 = vector.multi_reduction <add>, %12, %cst_18 [0] : vector<32x128xf32> to vector<128xf32>
      %18 = vector.shape_cast %17 : vector<128xf32> to vector<1x128xf32>
      %19 = arith.mulf %12, %12 : vector<32x128xf32>
      %cst_19 = arith.constant dense<0.000000e+00> : vector<128xf32>
      %20 = vector.multi_reduction <add>, %19, %cst_19 [0] : vector<32x128xf32> to vector<128xf32>
      %21 = vector.shape_cast %20 : vector<128xf32> to vector<1x128xf32>
      %cst_20 = arith.constant 3.125000e-02 : f32
      %22 = vector.broadcast %cst_20 : f32 to vector<1x128xf32>
      %23 = arith.mulf %18, %22 : vector<1x128xf32>
      %cst_21 = arith.constant 3.125000e-02 : f32
      %24 = vector.broadcast %cst_21 : f32 to vector<1x128xf32>
      %25 = arith.mulf %21, %24 : vector<1x128xf32>
      %26 = arith.mulf %23, %23 : vector<1x128xf32>
      %27 = arith.subf %25, %26 : vector<1x128xf32>
      %cst_22 = arith.constant 0.000000e+00 : f32
      %28 = vector.broadcast %cst_22 : f32 to vector<1x128xf32>
      %29 = arith.maximumf %27, %28 : vector<1x128xf32>
      %cst_23 = arith.constant 9.99999974E-6 : f32
      %30 = vector.broadcast %cst_23 : f32 to vector<1x128xf32>
      %31 = arith.addf %29, %30 : vector<1x128xf32>
      %32 = math.rsqrt %31 : vector<1x128xf32>
      %33 = arith.mulf %13, %32 : vector<1x128xf32>
      %34 = arith.mulf %23, %33 : vector<1x128xf32>
      %35 = arith.subf %14, %34 : vector<1x128xf32>
      %36 = vector.broadcast %33 : vector<1x128xf32> to vector<32x128xf32>
      %37 = arith.mulf %12, %36 : vector<32x128xf32>
      %38 = vector.broadcast %35 : vector<1x128xf32> to vector<32x128xf32>
      %39 = arith.addf %37, %38 : vector<32x128xf32>
      %40 = arith.addf %39, %16 : vector<32x128xf32>
      %cst_24 = arith.constant 0.000000e+00 : f32
      %41 = vector.broadcast %cst_24 : f32 to vector<32x128xf32>
      %42 = arith.maximumf %40, %41 : vector<32x128xf32>
      %43 = arith.truncf %42 : vector<32x128xf32> to vector<32x128xbf16>
      %c0_25 = arith.constant 0 : index
      %c0_26 = arith.constant 0 : index
      %44 = vector.load %arg7[%c0_25, %c0_26] : memref<32x128xbf16, #tpu.memory_space<vmem>>, vector<32x128xbf16>
      tpu.vector_store %arg7[%c0_25, %c0_26], %43 {strides = array<i32>} : memref<32x128xbf16, #tpu.memory_space<vmem>>, vector<32x128xbf16>,
    } else {
    }
    return
  }
  func.func @transform_0(%arg0: i32, %arg1: i32) -> (i32, i32) {
    %c0_i32 = arith.constant 0 : i32
    %c0_i32_0 = arith.constant 0 : i32
    return %c0_i32, %arg1 : i32, i32
  }
  func.func @transform_1(%arg0: i32, %arg1: i32) -> (i32, i32) {
    %c0_i32 = arith.constant 0 : i32
    return %arg1, %arg0 : i32, i32
  }
  func.func @transform_2(%arg0: i32, %arg1: i32) -> (i32, i32) {
    %c0_i32 = arith.constant 0 : i32
    %c0_i32_0 = arith.constant 0 : i32
    return %c0_i32, %arg0 : i32, i32
  }
  func.func @transform_3(%arg0: i32, %arg1: i32) -> (i32, i32) {
    %c0_i32 = arith.constant 0 : i32
    %c0_i32_0 = arith.constant 0 : i32
    return %c0_i32, %arg0 : i32, i32
  }
  func.func @transform_4(%arg0: i32, %arg1: i32) -> (i32, i32) {
    %c0_i32 = arith.constant 0 : i32
    %c0_i32_0 = arith.constant 0 : i32
    return %c0_i32, %arg0 : i32, i32
  }
  func.func @transform_5(%arg0: i32, %arg1: i32) -> (i32, i32) {
    %c0_i32 = arith.constant 0 : i32
    %c0_i32_0 = arith.constant 0 : i32
    return %c0_i32, %arg0 : i32, i32
  }
}

module attributes {stable_mosaic.version = 11 : i64} {
  func.func @kernel(%arg0: i32, %arg1: i32, %arg2: memref<16x128xbf16, #tpu.memory_space<vmem>>, %arg3: memref<128x128xbf16, #tpu.memory_space<vmem>>, %arg4: memref<1x128xf32, #tpu.memory_space<vmem>>, %arg5: memref<1x128xf32, #tpu.memory_space<vmem>>, %arg6: memref<16x128xbf16, #tpu.memory_space<vmem>>, %arg7: memref<16x128xf32, #tpu.memory_space<vmem>>) attributes {dimension_semantics = [#tpu.dimension_semantics<parallel>, #tpu.dimension_semantics<arbitrary>], iteration_bounds = array<i64: 1, 1>, scalar_prefetch = 0 : i64, scratch_operands = 1 : i64, tpu.core_type = #tpu.core_type<tc>, window_params = [{transform_indices = @transform_0, window_bounds = array<i64: 16, 128>}, {transform_indices = @transform_1, window_bounds = array<i64: 128, 128>}, {transform_indices = @transform_2, window_bounds = array<i64: 1, 128>}, {transform_indices = @transform_3, window_bounds = array<i64: 1, 128>}, {transform_indices = @transform_4, window_bounds = array<i64: 16, 128>}]} {
    %c0_i32 = arith.constant 0 : i32
    %0 = arith.cmpi eq, %arg1, %c0_i32 : i32
    %1 = arith.extui %0 : i1 to i32
    %c0_i32_0 = arith.constant 0 : i32
    %2 = arith.cmpi ne, %1, %c0_i32_0 : i32
    scf.if %2 {
      %cst_10 = arith.constant 0.000000e+00 : f32
      %12 = vector.broadcast %cst_10 : f32 to vector<16x128xf32>
      %c0_11 = arith.constant 0 : index
      %c0_12 = arith.constant 0 : index
      %13 = vector.load %arg7[%c0_11, %c0_12] : memref<16x128xf32, #tpu.memory_space<vmem>>, vector<16x128xf32>
      tpu.vector_store %arg7[%c0_11, %c0_12], %12 {strides = array<i32>} : memref<16x128xf32, #tpu.memory_space<vmem>>, vector<16x128xf32>,
    } else {
    }
    %c0 = arith.constant 0 : index
    %c0_1 = arith.constant 0 : index
    %3 = vector.load %arg7[%c0, %c0_1] : memref<16x128xf32, #tpu.memory_space<vmem>>, vector<16x128xf32>
    %c0_2 = arith.constant 0 : index
    %c0_3 = arith.constant 0 : index
    %4 = vector.load %arg2[%c0_2, %c0_3] : memref<16x128xbf16, #tpu.memory_space<vmem>>, vector<16x128xbf16>
    %c0_4 = arith.constant 0 : index
    %c0_5 = arith.constant 0 : index
    %5 = vector.load %arg3[%c0_4, %c0_5] : memref<128x128xbf16, #tpu.memory_space<vmem>>, vector<128x128xbf16>
    %cst = arith.constant dense<0.000000e+00> : vector<16x128xf32>
    %6 = tpu.matmul %4, %5, %cst {dimension_numbers = #tpu.dot_dimension_numbers<[1], [0], [0], [1], [0, 0, 1, 1], [], []>} : vector<16x128xbf16>, vector<128x128xbf16>, vector<16x128xf32> -> vector<16x128xf32>
    %7 = arith.addf %3, %6 : vector<16x128xf32>
    %c0_6 = arith.constant 0 : index
    %c0_7 = arith.constant 0 : index
    %8 = vector.load %arg7[%c0_6, %c0_7] : memref<16x128xf32, #tpu.memory_space<vmem>>, vector<16x128xf32>
    tpu.vector_store %arg7[%c0_6, %c0_7], %7 {strides = array<i32>} : memref<16x128xf32, #tpu.memory_space<vmem>>, vector<16x128xf32>,
    %c0_i32_8 = arith.constant 0 : i32
    %9 = arith.cmpi eq, %arg1, %c0_i32_8 : i32
    %10 = arith.extui %9 : i1 to i32
    %c0_i32_9 = arith.constant 0 : i32
    %11 = arith.cmpi ne, %10, %c0_i32_9 : i32
    scf.if %11 {
      %c0_10 = arith.constant 0 : index
      %c0_11 = arith.constant 0 : index
      %12 = vector.load %arg7[%c0_10, %c0_11] : memref<16x128xf32, #tpu.memory_space<vmem>>, vector<16x128xf32>
      %c0_12 = arith.constant 0 : index
      %c0_13 = arith.constant 0 : index
      %13 = vector.load %arg4[%c0_12, %c0_13] : memref<1x128xf32, #tpu.memory_space<vmem>>, vector<1x128xf32>
      %c0_14 = arith.constant 0 : index
      %c0_15 = arith.constant 0 : index
      %14 = vector.load %arg5[%c0_14, %c0_15] : memref<1x128xf32, #tpu.memory_space<vmem>>, vector<1x128xf32>
      %cst_16 = arith.constant dense<0.000000e+00> : vector<128xf32>
      %15 = vector.multi_reduction <add>, %12, %cst_16 [0] : vector<16x128xf32> to vector<128xf32>
      %16 = vector.shape_cast %15 : vector<128xf32> to vector<1x128xf32>
      %17 = arith.mulf %12, %12 : vector<16x128xf32>
      %cst_17 = arith.constant dense<0.000000e+00> : vector<128xf32>
      %18 = vector.multi_reduction <add>, %17, %cst_17 [0] : vector<16x128xf32> to vector<128xf32>
      %19 = vector.shape_cast %18 : vector<128xf32> to vector<1x128xf32>
      %cst_18 = arith.constant 1.250000e-01 : f32
      %20 = vector.broadcast %cst_18 : f32 to vector<1x128xf32>
      %21 = arith.mulf %16, %20 : vector<1x128xf32>
      %cst_19 = arith.constant 1.250000e-01 : f32
      %22 = vector.broadcast %cst_19 : f32 to vector<1x128xf32>
      %23 = arith.mulf %19, %22 : vector<1x128xf32>
      %24 = arith.mulf %21, %21 : vector<1x128xf32>
      %25 = arith.subf %23, %24 : vector<1x128xf32>
      %cst_20 = arith.constant 0.000000e+00 : f32
      %26 = vector.broadcast %cst_20 : f32 to vector<1x128xf32>
      %27 = arith.maximumf %25, %26 : vector<1x128xf32>
      %cst_21 = arith.constant 9.99999974E-6 : f32
      %28 = vector.broadcast %cst_21 : f32 to vector<1x128xf32>
      %29 = arith.addf %27, %28 : vector<1x128xf32>
      %30 = math.rsqrt %29 : vector<1x128xf32>
      %31 = arith.mulf %13, %30 : vector<1x128xf32>
      %32 = arith.mulf %21, %31 : vector<1x128xf32>
      %33 = arith.subf %14, %32 : vector<1x128xf32>
      %34 = vector.broadcast %31 : vector<1x128xf32> to vector<16x128xf32>
      %35 = arith.mulf %12, %34 : vector<16x128xf32>
      %36 = vector.broadcast %33 : vector<1x128xf32> to vector<16x128xf32>
      %37 = arith.addf %35, %36 : vector<16x128xf32>
      %cst_22 = arith.constant 0.000000e+00 : f32
      %38 = vector.broadcast %cst_22 : f32 to vector<16x128xf32>
      %39 = arith.maximumf %37, %38 : vector<16x128xf32>
      %40 = arith.truncf %39 : vector<16x128xf32> to vector<16x128xbf16>
      %c0_23 = arith.constant 0 : index
      %c0_24 = arith.constant 0 : index
      %41 = vector.load %arg6[%c0_23, %c0_24] : memref<16x128xbf16, #tpu.memory_space<vmem>>, vector<16x128xbf16>
      tpu.vector_store %arg6[%c0_23, %c0_24], %40 {strides = array<i32>} : memref<16x128xbf16, #tpu.memory_space<vmem>>, vector<16x128xbf16>,
    } else {
    }
    return
  }
  func.func @transform_0(%arg0: i32, %arg1: i32) -> (i32, i32) {
    %c0_i32 = arith.constant 0 : i32
    %c0_i32_0 = arith.constant 0 : i32
    return %c0_i32, %arg1 : i32, i32
  }
  func.func @transform_1(%arg0: i32, %arg1: i32) -> (i32, i32) {
    %c0_i32 = arith.constant 0 : i32
    return %arg1, %arg0 : i32, i32
  }
  func.func @transform_2(%arg0: i32, %arg1: i32) -> (i32, i32) {
    %c0_i32 = arith.constant 0 : i32
    %c0_i32_0 = arith.constant 0 : i32
    return %c0_i32, %arg0 : i32, i32
  }
  func.func @transform_3(%arg0: i32, %arg1: i32) -> (i32, i32) {
    %c0_i32 = arith.constant 0 : i32
    %c0_i32_0 = arith.constant 0 : i32
    return %c0_i32, %arg0 : i32, i32
  }
  func.func @transform_4(%arg0: i32, %arg1: i32) -> (i32, i32) {
    %c0_i32 = arith.constant 0 : i32
    %c0_i32_0 = arith.constant 0 : i32
    return %c0_i32, %arg0 : i32, i32
  }
}

module attributes {stable_mosaic.version = 11 : i64} {
  func.func @kernel(%arg0: i32, %arg1: i32, %arg2: memref<16x384xbf16, #tpu.memory_space<vmem>>, %arg3: memref<384x128xbf16, #tpu.memory_space<vmem>>, %arg4: memref<1x128xf32, #tpu.memory_space<vmem>>, %arg5: memref<1x128xf32, #tpu.memory_space<vmem>>, %arg6: memref<16x128xbf16, #tpu.memory_space<vmem>>, %arg7: memref<16x128xf32, #tpu.memory_space<vmem>>) attributes {dimension_semantics = [#tpu.dimension_semantics<parallel>, #tpu.dimension_semantics<arbitrary>], iteration_bounds = array<i64: 1, 2>, scalar_prefetch = 0 : i64, scratch_operands = 1 : i64, tpu.core_type = #tpu.core_type<tc>, window_params = [{transform_indices = @transform_0, window_bounds = array<i64: 16, 384>}, {transform_indices = @transform_1, window_bounds = array<i64: 384, 128>}, {transform_indices = @transform_2, window_bounds = array<i64: 1, 128>}, {transform_indices = @transform_3, window_bounds = array<i64: 1, 128>}, {transform_indices = @transform_4, window_bounds = array<i64: 16, 128>}]} {
    %c0_i32 = arith.constant 0 : i32
    %0 = arith.cmpi eq, %arg1, %c0_i32 : i32
    %1 = arith.extui %0 : i1 to i32
    %c0_i32_0 = arith.constant 0 : i32
    %2 = arith.cmpi ne, %1, %c0_i32_0 : i32
    scf.if %2 {
      %cst_9 = arith.constant 0.000000e+00 : f32
      %12 = vector.broadcast %cst_9 : f32 to vector<16x128xf32>
      %c0_10 = arith.constant 0 : index
      %c0_11 = arith.constant 0 : index
      %13 = vector.load %arg7[%c0_10, %c0_11] : memref<16x128xf32, #tpu.memory_space<vmem>>, vector<16x128xf32>
      tpu.vector_store %arg7[%c0_10, %c0_11], %12 {strides = array<i32>} : memref<16x128xf32, #tpu.memory_space<vmem>>, vector<16x128xf32>,
    } else {
    }
    %c0 = arith.constant 0 : index
    %c0_1 = arith.constant 0 : index
    %3 = vector.load %arg7[%c0, %c0_1] : memref<16x128xf32, #tpu.memory_space<vmem>>, vector<16x128xf32>
    %c0_2 = arith.constant 0 : index
    %c0_3 = arith.constant 0 : index
    %4 = vector.load %arg2[%c0_2, %c0_3] : memref<16x384xbf16, #tpu.memory_space<vmem>>, vector<16x384xbf16>
    %c0_4 = arith.constant 0 : index
    %c0_5 = arith.constant 0 : index
    %5 = vector.load %arg3[%c0_4, %c0_5] : memref<384x128xbf16, #tpu.memory_space<vmem>>, vector<384x128xbf16>
    %cst = arith.constant dense<0.000000e+00> : vector<16x128xf32>
    %6 = tpu.matmul %4, %5, %cst {dimension_numbers = #tpu.dot_dimension_numbers<[1], [0], [0], [1], [0, 0, 1, 1], [], []>} : vector<16x384xbf16>, vector<384x128xbf16>, vector<16x128xf32> -> vector<16x128xf32>
    %7 = arith.addf %3, %6 : vector<16x128xf32>
    %c0_6 = arith.constant 0 : index
    %c0_7 = arith.constant 0 : index
    %8 = vector.load %arg7[%c0_6, %c0_7] : memref<16x128xf32, #tpu.memory_space<vmem>>, vector<16x128xf32>
    tpu.vector_store %arg7[%c0_6, %c0_7], %7 {strides = array<i32>} : memref<16x128xf32, #tpu.memory_space<vmem>>, vector<16x128xf32>,
    %c1_i32 = arith.constant 1 : i32
    %9 = arith.cmpi eq, %arg1, %c1_i32 : i32
    %10 = arith.extui %9 : i1 to i32
    %c0_i32_8 = arith.constant 0 : i32
    %11 = arith.cmpi ne, %10, %c0_i32_8 : i32
    scf.if %11 {
      %c0_9 = arith.constant 0 : index
      %c0_10 = arith.constant 0 : index
      %12 = vector.load %arg7[%c0_9, %c0_10] : memref<16x128xf32, #tpu.memory_space<vmem>>, vector<16x128xf32>
      %c0_11 = arith.constant 0 : index
      %c0_12 = arith.constant 0 : index
      %13 = vector.load %arg4[%c0_11, %c0_12] : memref<1x128xf32, #tpu.memory_space<vmem>>, vector<1x128xf32>
      %c0_13 = arith.constant 0 : index
      %c0_14 = arith.constant 0 : index
      %14 = vector.load %arg5[%c0_13, %c0_14] : memref<1x128xf32, #tpu.memory_space<vmem>>, vector<1x128xf32>
      %cst_15 = arith.constant dense<0.000000e+00> : vector<128xf32>
      %15 = vector.multi_reduction <add>, %12, %cst_15 [0] : vector<16x128xf32> to vector<128xf32>
      %16 = vector.shape_cast %15 : vector<128xf32> to vector<1x128xf32>
      %17 = arith.mulf %12, %12 : vector<16x128xf32>
      %cst_16 = arith.constant dense<0.000000e+00> : vector<128xf32>
      %18 = vector.multi_reduction <add>, %17, %cst_16 [0] : vector<16x128xf32> to vector<128xf32>
      %19 = vector.shape_cast %18 : vector<128xf32> to vector<1x128xf32>
      %cst_17 = arith.constant 1.250000e-01 : f32
      %20 = vector.broadcast %cst_17 : f32 to vector<1x128xf32>
      %21 = arith.mulf %16, %20 : vector<1x128xf32>
      %cst_18 = arith.constant 1.250000e-01 : f32
      %22 = vector.broadcast %cst_18 : f32 to vector<1x128xf32>
      %23 = arith.mulf %19, %22 : vector<1x128xf32>
      %24 = arith.mulf %21, %21 : vector<1x128xf32>
      %25 = arith.subf %23, %24 : vector<1x128xf32>
      %cst_19 = arith.constant 0.000000e+00 : f32
      %26 = vector.broadcast %cst_19 : f32 to vector<1x128xf32>
      %27 = arith.maximumf %25, %26 : vector<1x128xf32>
      %cst_20 = arith.constant 9.99999974E-6 : f32
      %28 = vector.broadcast %cst_20 : f32 to vector<1x128xf32>
      %29 = arith.addf %27, %28 : vector<1x128xf32>
      %30 = math.rsqrt %29 : vector<1x128xf32>
      %31 = arith.mulf %13, %30 : vector<1x128xf32>
      %32 = arith.mulf %21, %31 : vector<1x128xf32>
      %33 = arith.subf %14, %32 : vector<1x128xf32>
      %34 = vector.broadcast %31 : vector<1x128xf32> to vector<16x128xf32>
      %35 = arith.mulf %12, %34 : vector<16x128xf32>
      %36 = vector.broadcast %33 : vector<1x128xf32> to vector<16x128xf32>
      %37 = arith.addf %35, %36 : vector<16x128xf32>
      %cst_21 = arith.constant 0.000000e+00 : f32
      %38 = vector.broadcast %cst_21 : f32 to vector<16x128xf32>
      %39 = arith.maximumf %37, %38 : vector<16x128xf32>
      %40 = arith.truncf %39 : vector<16x128xf32> to vector<16x128xbf16>
      %c0_22 = arith.constant 0 : index
      %c0_23 = arith.constant 0 : index
      %41 = vector.load %arg6[%c0_22, %c0_23] : memref<16x128xbf16, #tpu.memory_space<vmem>>, vector<16x128xbf16>
      tpu.vector_store %arg6[%c0_22, %c0_23], %40 {strides = array<i32>} : memref<16x128xbf16, #tpu.memory_space<vmem>>, vector<16x128xbf16>,
    } else {
    }
    return
  }
  func.func @transform_0(%arg0: i32, %arg1: i32) -> (i32, i32) {
    %c0_i32 = arith.constant 0 : i32
    %c0_i32_0 = arith.constant 0 : i32
    return %c0_i32, %arg1 : i32, i32
  }
  func.func @transform_1(%arg0: i32, %arg1: i32) -> (i32, i32) {
    %c0_i32 = arith.constant 0 : i32
    return %arg1, %arg0 : i32, i32
  }
  func.func @transform_2(%arg0: i32, %arg1: i32) -> (i32, i32) {
    %c0_i32 = arith.constant 0 : i32
    %c0_i32_0 = arith.constant 0 : i32
    return %c0_i32, %arg0 : i32, i32
  }
  func.func @transform_3(%arg0: i32, %arg1: i32) -> (i32, i32) {
    %c0_i32 = arith.constant 0 : i32
    %c0_i32_0 = arith.constant 0 : i32
    return %c0_i32, %arg0 : i32, i32
  }
  func.func @transform_4(%arg0: i32, %arg1: i32) -> (i32, i32) {
    %c0_i32 = arith.constant 0 : i32
    %c0_i32_0 = arith.constant 0 : i32
    return %c0_i32, %arg0 : i32, i32
  }
}

module attributes {stable_mosaic.version = 11 : i64} {
  func.func @kernel(%arg0: i32, %arg1: i32, %arg2: memref<16x128xbf16, #tpu.memory_space<vmem>>, %arg3: memref<128x256xbf16, #tpu.memory_space<vmem>>, %arg4: memref<1x256xf32, #tpu.memory_space<vmem>>, %arg5: memref<1x256xf32, #tpu.memory_space<vmem>>, %arg6: memref<16x256xbf16, #tpu.memory_space<vmem>>, %arg7: memref<16x256xf32, #tpu.memory_space<vmem>>) attributes {dimension_semantics = [#tpu.dimension_semantics<parallel>, #tpu.dimension_semantics<arbitrary>], iteration_bounds = array<i64: 1, 1>, scalar_prefetch = 0 : i64, scratch_operands = 1 : i64, tpu.core_type = #tpu.core_type<tc>, window_params = [{transform_indices = @transform_0, window_bounds = array<i64: 16, 128>}, {transform_indices = @transform_1, window_bounds = array<i64: 128, 256>}, {transform_indices = @transform_2, window_bounds = array<i64: 1, 256>}, {transform_indices = @transform_3, window_bounds = array<i64: 1, 256>}, {transform_indices = @transform_4, window_bounds = array<i64: 16, 256>}]} {
    %c0_i32 = arith.constant 0 : i32
    %0 = arith.cmpi eq, %arg1, %c0_i32 : i32
    %1 = arith.extui %0 : i1 to i32
    %c0_i32_0 = arith.constant 0 : i32
    %2 = arith.cmpi ne, %1, %c0_i32_0 : i32
    scf.if %2 {
      %cst_10 = arith.constant 0.000000e+00 : f32
      %12 = vector.broadcast %cst_10 : f32 to vector<16x256xf32>
      %c0_11 = arith.constant 0 : index
      %c0_12 = arith.constant 0 : index
      %13 = vector.load %arg7[%c0_11, %c0_12] : memref<16x256xf32, #tpu.memory_space<vmem>>, vector<16x256xf32>
      tpu.vector_store %arg7[%c0_11, %c0_12], %12 {strides = array<i32>} : memref<16x256xf32, #tpu.memory_space<vmem>>, vector<16x256xf32>,
    } else {
    }
    %c0 = arith.constant 0 : index
    %c0_1 = arith.constant 0 : index
    %3 = vector.load %arg7[%c0, %c0_1] : memref<16x256xf32, #tpu.memory_space<vmem>>, vector<16x256xf32>
    %c0_2 = arith.constant 0 : index
    %c0_3 = arith.constant 0 : index
    %4 = vector.load %arg2[%c0_2, %c0_3] : memref<16x128xbf16, #tpu.memory_space<vmem>>, vector<16x128xbf16>
    %c0_4 = arith.constant 0 : index
    %c0_5 = arith.constant 0 : index
    %5 = vector.load %arg3[%c0_4, %c0_5] : memref<128x256xbf16, #tpu.memory_space<vmem>>, vector<128x256xbf16>
    %cst = arith.constant dense<0.000000e+00> : vector<16x256xf32>
    %6 = tpu.matmul %4, %5, %cst {dimension_numbers = #tpu.dot_dimension_numbers<[1], [0], [0], [1], [0, 0, 1, 1], [], []>} : vector<16x128xbf16>, vector<128x256xbf16>, vector<16x256xf32> -> vector<16x256xf32>
    %7 = arith.addf %3, %6 : vector<16x256xf32>
    %c0_6 = arith.constant 0 : index
    %c0_7 = arith.constant 0 : index
    %8 = vector.load %arg7[%c0_6, %c0_7] : memref<16x256xf32, #tpu.memory_space<vmem>>, vector<16x256xf32>
    tpu.vector_store %arg7[%c0_6, %c0_7], %7 {strides = array<i32>} : memref<16x256xf32, #tpu.memory_space<vmem>>, vector<16x256xf32>,
    %c0_i32_8 = arith.constant 0 : i32
    %9 = arith.cmpi eq, %arg1, %c0_i32_8 : i32
    %10 = arith.extui %9 : i1 to i32
    %c0_i32_9 = arith.constant 0 : i32
    %11 = arith.cmpi ne, %10, %c0_i32_9 : i32
    scf.if %11 {
      %c0_10 = arith.constant 0 : index
      %c0_11 = arith.constant 0 : index
      %12 = vector.load %arg7[%c0_10, %c0_11] : memref<16x256xf32, #tpu.memory_space<vmem>>, vector<16x256xf32>
      %c0_12 = arith.constant 0 : index
      %c0_13 = arith.constant 0 : index
      %13 = vector.load %arg4[%c0_12, %c0_13] : memref<1x256xf32, #tpu.memory_space<vmem>>, vector<1x256xf32>
      %c0_14 = arith.constant 0 : index
      %c0_15 = arith.constant 0 : index
      %14 = vector.load %arg5[%c0_14, %c0_15] : memref<1x256xf32, #tpu.memory_space<vmem>>, vector<1x256xf32>
      %cst_16 = arith.constant dense<0.000000e+00> : vector<256xf32>
      %15 = vector.multi_reduction <add>, %12, %cst_16 [0] : vector<16x256xf32> to vector<256xf32>
      %16 = vector.shape_cast %15 : vector<256xf32> to vector<1x256xf32>
      %17 = arith.mulf %12, %12 : vector<16x256xf32>
      %cst_17 = arith.constant dense<0.000000e+00> : vector<256xf32>
      %18 = vector.multi_reduction <add>, %17, %cst_17 [0] : vector<16x256xf32> to vector<256xf32>
      %19 = vector.shape_cast %18 : vector<256xf32> to vector<1x256xf32>
      %cst_18 = arith.constant 1.250000e-01 : f32
      %20 = vector.broadcast %cst_18 : f32 to vector<1x256xf32>
      %21 = arith.mulf %16, %20 : vector<1x256xf32>
      %cst_19 = arith.constant 1.250000e-01 : f32
      %22 = vector.broadcast %cst_19 : f32 to vector<1x256xf32>
      %23 = arith.mulf %19, %22 : vector<1x256xf32>
      %24 = arith.mulf %21, %21 : vector<1x256xf32>
      %25 = arith.subf %23, %24 : vector<1x256xf32>
      %cst_20 = arith.constant 0.000000e+00 : f32
      %26 = vector.broadcast %cst_20 : f32 to vector<1x256xf32>
      %27 = arith.maximumf %25, %26 : vector<1x256xf32>
      %cst_21 = arith.constant 9.99999974E-6 : f32
      %28 = vector.broadcast %cst_21 : f32 to vector<1x256xf32>
      %29 = arith.addf %27, %28 : vector<1x256xf32>
      %30 = math.rsqrt %29 : vector<1x256xf32>
      %31 = arith.mulf %13, %30 : vector<1x256xf32>
      %32 = arith.mulf %21, %31 : vector<1x256xf32>
      %33 = arith.subf %14, %32 : vector<1x256xf32>
      %34 = vector.broadcast %31 : vector<1x256xf32> to vector<16x256xf32>
      %35 = arith.mulf %12, %34 : vector<16x256xf32>
      %36 = vector.broadcast %33 : vector<1x256xf32> to vector<16x256xf32>
      %37 = arith.addf %35, %36 : vector<16x256xf32>
      %38 = arith.truncf %37 : vector<16x256xf32> to vector<16x256xbf16>
      %c0_22 = arith.constant 0 : index
      %c0_23 = arith.constant 0 : index
      %39 = vector.load %arg6[%c0_22, %c0_23] : memref<16x256xbf16, #tpu.memory_space<vmem>>, vector<16x256xbf16>
      tpu.vector_store %arg6[%c0_22, %c0_23], %38 {strides = array<i32>} : memref<16x256xbf16, #tpu.memory_space<vmem>>, vector<16x256xbf16>,
    } else {
    }
    return
  }
  func.func @transform_0(%arg0: i32, %arg1: i32) -> (i32, i32) {
    %c0_i32 = arith.constant 0 : i32
    %c0_i32_0 = arith.constant 0 : i32
    return %c0_i32, %arg1 : i32, i32
  }
  func.func @transform_1(%arg0: i32, %arg1: i32) -> (i32, i32) {
    %c0_i32 = arith.constant 0 : i32
    return %arg1, %arg0 : i32, i32
  }
  func.func @transform_2(%arg0: i32, %arg1: i32) -> (i32, i32) {
    %c0_i32 = arith.constant 0 : i32
    %c0_i32_0 = arith.constant 0 : i32
    return %c0_i32, %arg0 : i32, i32
  }
  func.func @transform_3(%arg0: i32, %arg1: i32) -> (i32, i32) {
    %c0_i32 = arith.constant 0 : i32
    %c0_i32_0 = arith.constant 0 : i32
    return %c0_i32, %arg0 : i32, i32
  }
  func.func @transform_4(%arg0: i32, %arg1: i32) -> (i32, i32) {
    %c0_i32 = arith.constant 0 : i32
    %c0_i32_0 = arith.constant 0 : i32
    return %c0_i32, %arg0 : i32, i32
  }
}

module attributes {stable_mosaic.version = 11 : i64} {
  func.func @kernel(%arg0: i32, %arg1: i32, %arg2: memref<16x128xbf16, #tpu.memory_space<vmem>>, %arg3: memref<128x256xbf16, #tpu.memory_space<vmem>>, %arg4: memref<1x256xf32, #tpu.memory_space<vmem>>, %arg5: memref<1x256xf32, #tpu.memory_space<vmem>>, %arg6: memref<16x256xbf16, #tpu.memory_space<vmem>>, %arg7: memref<16x256xbf16, #tpu.memory_space<vmem>>, %arg8: memref<16x256xf32, #tpu.memory_space<vmem>>) attributes {dimension_semantics = [#tpu.dimension_semantics<parallel>, #tpu.dimension_semantics<arbitrary>], iteration_bounds = array<i64: 1, 1>, scalar_prefetch = 0 : i64, scratch_operands = 1 : i64, tpu.core_type = #tpu.core_type<tc>, window_params = [{transform_indices = @transform_0, window_bounds = array<i64: 16, 128>}, {transform_indices = @transform_1, window_bounds = array<i64: 128, 256>}, {transform_indices = @transform_2, window_bounds = array<i64: 1, 256>}, {transform_indices = @transform_3, window_bounds = array<i64: 1, 256>}, {transform_indices = @transform_4, window_bounds = array<i64: 16, 256>}, {transform_indices = @transform_5, window_bounds = array<i64: 16, 256>}]} {
    %c0_i32 = arith.constant 0 : i32
    %0 = arith.cmpi eq, %arg1, %c0_i32 : i32
    %1 = arith.extui %0 : i1 to i32
    %c0_i32_0 = arith.constant 0 : i32
    %2 = arith.cmpi ne, %1, %c0_i32_0 : i32
    scf.if %2 {
      %cst_10 = arith.constant 0.000000e+00 : f32
      %12 = vector.broadcast %cst_10 : f32 to vector<16x256xf32>
      %c0_11 = arith.constant 0 : index
      %c0_12 = arith.constant 0 : index
      %13 = vector.load %arg8[%c0_11, %c0_12] : memref<16x256xf32, #tpu.memory_space<vmem>>, vector<16x256xf32>
      tpu.vector_store %arg8[%c0_11, %c0_12], %12 {strides = array<i32>} : memref<16x256xf32, #tpu.memory_space<vmem>>, vector<16x256xf32>,
    } else {
    }
    %c0 = arith.constant 0 : index
    %c0_1 = arith.constant 0 : index
    %3 = vector.load %arg8[%c0, %c0_1] : memref<16x256xf32, #tpu.memory_space<vmem>>, vector<16x256xf32>
    %c0_2 = arith.constant 0 : index
    %c0_3 = arith.constant 0 : index
    %4 = vector.load %arg2[%c0_2, %c0_3] : memref<16x128xbf16, #tpu.memory_space<vmem>>, vector<16x128xbf16>
    %c0_4 = arith.constant 0 : index
    %c0_5 = arith.constant 0 : index
    %5 = vector.load %arg3[%c0_4, %c0_5] : memref<128x256xbf16, #tpu.memory_space<vmem>>, vector<128x256xbf16>
    %cst = arith.constant dense<0.000000e+00> : vector<16x256xf32>
    %6 = tpu.matmul %4, %5, %cst {dimension_numbers = #tpu.dot_dimension_numbers<[1], [0], [0], [1], [0, 0, 1, 1], [], []>} : vector<16x128xbf16>, vector<128x256xbf16>, vector<16x256xf32> -> vector<16x256xf32>
    %7 = arith.addf %3, %6 : vector<16x256xf32>
    %c0_6 = arith.constant 0 : index
    %c0_7 = arith.constant 0 : index
    %8 = vector.load %arg8[%c0_6, %c0_7] : memref<16x256xf32, #tpu.memory_space<vmem>>, vector<16x256xf32>
    tpu.vector_store %arg8[%c0_6, %c0_7], %7 {strides = array<i32>} : memref<16x256xf32, #tpu.memory_space<vmem>>, vector<16x256xf32>,
    %c0_i32_8 = arith.constant 0 : i32
    %9 = arith.cmpi eq, %arg1, %c0_i32_8 : i32
    %10 = arith.extui %9 : i1 to i32
    %c0_i32_9 = arith.constant 0 : i32
    %11 = arith.cmpi ne, %10, %c0_i32_9 : i32
    scf.if %11 {
      %c0_10 = arith.constant 0 : index
      %c0_11 = arith.constant 0 : index
      %12 = vector.load %arg8[%c0_10, %c0_11] : memref<16x256xf32, #tpu.memory_space<vmem>>, vector<16x256xf32>
      %c0_12 = arith.constant 0 : index
      %c0_13 = arith.constant 0 : index
      %13 = vector.load %arg4[%c0_12, %c0_13] : memref<1x256xf32, #tpu.memory_space<vmem>>, vector<1x256xf32>
      %c0_14 = arith.constant 0 : index
      %c0_15 = arith.constant 0 : index
      %14 = vector.load %arg5[%c0_14, %c0_15] : memref<1x256xf32, #tpu.memory_space<vmem>>, vector<1x256xf32>
      %c0_16 = arith.constant 0 : index
      %c0_17 = arith.constant 0 : index
      %15 = vector.load %arg6[%c0_16, %c0_17] : memref<16x256xbf16, #tpu.memory_space<vmem>>, vector<16x256xbf16>
      %16 = arith.extf %15 : vector<16x256xbf16> to vector<16x256xf32>
      %cst_18 = arith.constant dense<0.000000e+00> : vector<256xf32>
      %17 = vector.multi_reduction <add>, %12, %cst_18 [0] : vector<16x256xf32> to vector<256xf32>
      %18 = vector.shape_cast %17 : vector<256xf32> to vector<1x256xf32>
      %19 = arith.mulf %12, %12 : vector<16x256xf32>
      %cst_19 = arith.constant dense<0.000000e+00> : vector<256xf32>
      %20 = vector.multi_reduction <add>, %19, %cst_19 [0] : vector<16x256xf32> to vector<256xf32>
      %21 = vector.shape_cast %20 : vector<256xf32> to vector<1x256xf32>
      %cst_20 = arith.constant 1.250000e-01 : f32
      %22 = vector.broadcast %cst_20 : f32 to vector<1x256xf32>
      %23 = arith.mulf %18, %22 : vector<1x256xf32>
      %cst_21 = arith.constant 1.250000e-01 : f32
      %24 = vector.broadcast %cst_21 : f32 to vector<1x256xf32>
      %25 = arith.mulf %21, %24 : vector<1x256xf32>
      %26 = arith.mulf %23, %23 : vector<1x256xf32>
      %27 = arith.subf %25, %26 : vector<1x256xf32>
      %cst_22 = arith.constant 0.000000e+00 : f32
      %28 = vector.broadcast %cst_22 : f32 to vector<1x256xf32>
      %29 = arith.maximumf %27, %28 : vector<1x256xf32>
      %cst_23 = arith.constant 9.99999974E-6 : f32
      %30 = vector.broadcast %cst_23 : f32 to vector<1x256xf32>
      %31 = arith.addf %29, %30 : vector<1x256xf32>
      %32 = math.rsqrt %31 : vector<1x256xf32>
      %33 = arith.mulf %13, %32 : vector<1x256xf32>
      %34 = arith.mulf %23, %33 : vector<1x256xf32>
      %35 = arith.subf %14, %34 : vector<1x256xf32>
      %36 = vector.broadcast %33 : vector<1x256xf32> to vector<16x256xf32>
      %37 = arith.mulf %12, %36 : vector<16x256xf32>
      %38 = vector.broadcast %35 : vector<1x256xf32> to vector<16x256xf32>
      %39 = arith.addf %37, %38 : vector<16x256xf32>
      %40 = arith.addf %39, %16 : vector<16x256xf32>
      %cst_24 = arith.constant 0.000000e+00 : f32
      %41 = vector.broadcast %cst_24 : f32 to vector<16x256xf32>
      %42 = arith.maximumf %40, %41 : vector<16x256xf32>
      %43 = arith.truncf %42 : vector<16x256xf32> to vector<16x256xbf16>
      %c0_25 = arith.constant 0 : index
      %c0_26 = arith.constant 0 : index
      %44 = vector.load %arg7[%c0_25, %c0_26] : memref<16x256xbf16, #tpu.memory_space<vmem>>, vector<16x256xbf16>
      tpu.vector_store %arg7[%c0_25, %c0_26], %43 {strides = array<i32>} : memref<16x256xbf16, #tpu.memory_space<vmem>>, vector<16x256xbf16>,
    } else {
    }
    return
  }
  func.func @transform_0(%arg0: i32, %arg1: i32) -> (i32, i32) {
    %c0_i32 = arith.constant 0 : i32
    %c0_i32_0 = arith.constant 0 : i32
    return %c0_i32, %arg1 : i32, i32
  }
  func.func @transform_1(%arg0: i32, %arg1: i32) -> (i32, i32) {
    %c0_i32 = arith.constant 0 : i32
    return %arg1, %arg0 : i32, i32
  }
  func.func @transform_2(%arg0: i32, %arg1: i32) -> (i32, i32) {
    %c0_i32 = arith.constant 0 : i32
    %c0_i32_0 = arith.constant 0 : i32
    return %c0_i32, %arg0 : i32, i32
  }
  func.func @transform_3(%arg0: i32, %arg1: i32) -> (i32, i32) {
    %c0_i32 = arith.constant 0 : i32
    %c0_i32_0 = arith.constant 0 : i32
    return %c0_i32, %arg0 : i32, i32
  }
  func.func @transform_4(%arg0: i32, %arg1: i32) -> (i32, i32) {
    %c0_i32 = arith.constant 0 : i32
    %c0_i32_0 = arith.constant 0 : i32
    return %c0_i32, %arg0 : i32, i32
  }
  func.func @transform_5(%arg0: i32, %arg1: i32) -> (i32, i32) {
    %c0_i32 = arith.constant 0 : i32
    %c0_i32_0 = arith.constant 0 : i32
    return %c0_i32, %arg0 : i32, i32
  }
}

module attributes {stable_mosaic.version = 11 : i64} {
  func.func @kernel(%arg0: i32, %arg1: i32, %arg2: memref<16x256xbf16, #tpu.memory_space<vmem>>, %arg3: memref<256x128xbf16, #tpu.memory_space<vmem>>, %arg4: memref<1x128xf32, #tpu.memory_space<vmem>>, %arg5: memref<1x128xf32, #tpu.memory_space<vmem>>, %arg6: memref<16x128xbf16, #tpu.memory_space<vmem>>, %arg7: memref<16x128xf32, #tpu.memory_space<vmem>>) attributes {dimension_semantics = [#tpu.dimension_semantics<parallel>, #tpu.dimension_semantics<arbitrary>], iteration_bounds = array<i64: 1, 1>, scalar_prefetch = 0 : i64, scratch_operands = 1 : i64, tpu.core_type = #tpu.core_type<tc>, window_params = [{transform_indices = @transform_0, window_bounds = array<i64: 16, 256>}, {transform_indices = @transform_1, window_bounds = array<i64: 256, 128>}, {transform_indices = @transform_2, window_bounds = array<i64: 1, 128>}, {transform_indices = @transform_3, window_bounds = array<i64: 1, 128>}, {transform_indices = @transform_4, window_bounds = array<i64: 16, 128>}]} {
    %c0_i32 = arith.constant 0 : i32
    %0 = arith.cmpi eq, %arg1, %c0_i32 : i32
    %1 = arith.extui %0 : i1 to i32
    %c0_i32_0 = arith.constant 0 : i32
    %2 = arith.cmpi ne, %1, %c0_i32_0 : i32
    scf.if %2 {
      %cst_10 = arith.constant 0.000000e+00 : f32
      %12 = vector.broadcast %cst_10 : f32 to vector<16x128xf32>
      %c0_11 = arith.constant 0 : index
      %c0_12 = arith.constant 0 : index
      %13 = vector.load %arg7[%c0_11, %c0_12] : memref<16x128xf32, #tpu.memory_space<vmem>>, vector<16x128xf32>
      tpu.vector_store %arg7[%c0_11, %c0_12], %12 {strides = array<i32>} : memref<16x128xf32, #tpu.memory_space<vmem>>, vector<16x128xf32>,
    } else {
    }
    %c0 = arith.constant 0 : index
    %c0_1 = arith.constant 0 : index
    %3 = vector.load %arg7[%c0, %c0_1] : memref<16x128xf32, #tpu.memory_space<vmem>>, vector<16x128xf32>
    %c0_2 = arith.constant 0 : index
    %c0_3 = arith.constant 0 : index
    %4 = vector.load %arg2[%c0_2, %c0_3] : memref<16x256xbf16, #tpu.memory_space<vmem>>, vector<16x256xbf16>
    %c0_4 = arith.constant 0 : index
    %c0_5 = arith.constant 0 : index
    %5 = vector.load %arg3[%c0_4, %c0_5] : memref<256x128xbf16, #tpu.memory_space<vmem>>, vector<256x128xbf16>
    %cst = arith.constant dense<0.000000e+00> : vector<16x128xf32>
    %6 = tpu.matmul %4, %5, %cst {dimension_numbers = #tpu.dot_dimension_numbers<[1], [0], [0], [1], [0, 0, 1, 1], [], []>} : vector<16x256xbf16>, vector<256x128xbf16>, vector<16x128xf32> -> vector<16x128xf32>
    %7 = arith.addf %3, %6 : vector<16x128xf32>
    %c0_6 = arith.constant 0 : index
    %c0_7 = arith.constant 0 : index
    %8 = vector.load %arg7[%c0_6, %c0_7] : memref<16x128xf32, #tpu.memory_space<vmem>>, vector<16x128xf32>
    tpu.vector_store %arg7[%c0_6, %c0_7], %7 {strides = array<i32>} : memref<16x128xf32, #tpu.memory_space<vmem>>, vector<16x128xf32>,
    %c0_i32_8 = arith.constant 0 : i32
    %9 = arith.cmpi eq, %arg1, %c0_i32_8 : i32
    %10 = arith.extui %9 : i1 to i32
    %c0_i32_9 = arith.constant 0 : i32
    %11 = arith.cmpi ne, %10, %c0_i32_9 : i32
    scf.if %11 {
      %c0_10 = arith.constant 0 : index
      %c0_11 = arith.constant 0 : index
      %12 = vector.load %arg7[%c0_10, %c0_11] : memref<16x128xf32, #tpu.memory_space<vmem>>, vector<16x128xf32>
      %c0_12 = arith.constant 0 : index
      %c0_13 = arith.constant 0 : index
      %13 = vector.load %arg4[%c0_12, %c0_13] : memref<1x128xf32, #tpu.memory_space<vmem>>, vector<1x128xf32>
      %c0_14 = arith.constant 0 : index
      %c0_15 = arith.constant 0 : index
      %14 = vector.load %arg5[%c0_14, %c0_15] : memref<1x128xf32, #tpu.memory_space<vmem>>, vector<1x128xf32>
      %cst_16 = arith.constant dense<0.000000e+00> : vector<128xf32>
      %15 = vector.multi_reduction <add>, %12, %cst_16 [0] : vector<16x128xf32> to vector<128xf32>
      %16 = vector.shape_cast %15 : vector<128xf32> to vector<1x128xf32>
      %17 = arith.mulf %12, %12 : vector<16x128xf32>
      %cst_17 = arith.constant dense<0.000000e+00> : vector<128xf32>
      %18 = vector.multi_reduction <add>, %17, %cst_17 [0] : vector<16x128xf32> to vector<128xf32>
      %19 = vector.shape_cast %18 : vector<128xf32> to vector<1x128xf32>
      %cst_18 = arith.constant 1.250000e-01 : f32
      %20 = vector.broadcast %cst_18 : f32 to vector<1x128xf32>
      %21 = arith.mulf %16, %20 : vector<1x128xf32>
      %cst_19 = arith.constant 1.250000e-01 : f32
      %22 = vector.broadcast %cst_19 : f32 to vector<1x128xf32>
      %23 = arith.mulf %19, %22 : vector<1x128xf32>
      %24 = arith.mulf %21, %21 : vector<1x128xf32>
      %25 = arith.subf %23, %24 : vector<1x128xf32>
      %cst_20 = arith.constant 0.000000e+00 : f32
      %26 = vector.broadcast %cst_20 : f32 to vector<1x128xf32>
      %27 = arith.maximumf %25, %26 : vector<1x128xf32>
      %cst_21 = arith.constant 9.99999974E-6 : f32
      %28 = vector.broadcast %cst_21 : f32 to vector<1x128xf32>
      %29 = arith.addf %27, %28 : vector<1x128xf32>
      %30 = math.rsqrt %29 : vector<1x128xf32>
      %31 = arith.mulf %13, %30 : vector<1x128xf32>
      %32 = arith.mulf %21, %31 : vector<1x128xf32>
      %33 = arith.subf %14, %32 : vector<1x128xf32>
      %34 = vector.broadcast %31 : vector<1x128xf32> to vector<16x128xf32>
      %35 = arith.mulf %12, %34 : vector<16x128xf32>
      %36 = vector.broadcast %33 : vector<1x128xf32> to vector<16x128xf32>
      %37 = arith.addf %35, %36 : vector<16x128xf32>
      %cst_22 = arith.constant 0.000000e+00 : f32
      %38 = vector.broadcast %cst_22 : f32 to vector<16x128xf32>
      %39 = arith.maximumf %37, %38 : vector<16x128xf32>
      %40 = arith.truncf %39 : vector<16x128xf32> to vector<16x128xbf16>
      %c0_23 = arith.constant 0 : index
      %c0_24 = arith.constant 0 : index
      %41 = vector.load %arg6[%c0_23, %c0_24] : memref<16x128xbf16, #tpu.memory_space<vmem>>, vector<16x128xbf16>
      tpu.vector_store %arg6[%c0_23, %c0_24], %40 {strides = array<i32>} : memref<16x128xbf16, #tpu.memory_space<vmem>>, vector<16x128xbf16>,
    } else {
    }
    return
  }
  func.func @transform_0(%arg0: i32, %arg1: i32) -> (i32, i32) {
    %c0_i32 = arith.constant 0 : i32
    %c0_i32_0 = arith.constant 0 : i32
    return %c0_i32, %arg1 : i32, i32
  }
  func.func @transform_1(%arg0: i32, %arg1: i32) -> (i32, i32) {
    %c0_i32 = arith.constant 0 : i32
    return %arg1, %arg0 : i32, i32
  }
  func.func @transform_2(%arg0: i32, %arg1: i32) -> (i32, i32) {
    %c0_i32 = arith.constant 0 : i32
    %c0_i32_0 = arith.constant 0 : i32
    return %c0_i32, %arg0 : i32, i32
  }
  func.func @transform_3(%arg0: i32, %arg1: i32) -> (i32, i32) {
    %c0_i32 = arith.constant 0 : i32
    %c0_i32_0 = arith.constant 0 : i32
    return %c0_i32, %arg0 : i32, i32
  }
  func.func @transform_4(%arg0: i32, %arg1: i32) -> (i32, i32) {
    %c0_i32 = arith.constant 0 : i32
    %c0_i32_0 = arith.constant 0 : i32
    return %c0_i32, %arg0 : i32, i32
  }
}

module attributes {stable_mosaic.version = 11 : i64} {
  func.func @kernel(%arg0: i32, %arg1: i32, %arg2: memref<16x384xbf16, #tpu.memory_space<vmem>>, %arg3: memref<384x128xbf16, #tpu.memory_space<vmem>>, %arg4: memref<1x128xf32, #tpu.memory_space<vmem>>, %arg5: memref<1x128xf32, #tpu.memory_space<vmem>>, %arg6: memref<16x128xbf16, #tpu.memory_space<vmem>>, %arg7: memref<16x128xf32, #tpu.memory_space<vmem>>) attributes {dimension_semantics = [#tpu.dimension_semantics<parallel>, #tpu.dimension_semantics<arbitrary>], iteration_bounds = array<i64: 1, 3>, scalar_prefetch = 0 : i64, scratch_operands = 1 : i64, tpu.core_type = #tpu.core_type<tc>, window_params = [{transform_indices = @transform_0, window_bounds = array<i64: 16, 384>}, {transform_indices = @transform_1, window_bounds = array<i64: 384, 128>}, {transform_indices = @transform_2, window_bounds = array<i64: 1, 128>}, {transform_indices = @transform_3, window_bounds = array<i64: 1, 128>}, {transform_indices = @transform_4, window_bounds = array<i64: 16, 128>}]} {
    %c0_i32 = arith.constant 0 : i32
    %0 = arith.cmpi eq, %arg1, %c0_i32 : i32
    %1 = arith.extui %0 : i1 to i32
    %c0_i32_0 = arith.constant 0 : i32
    %2 = arith.cmpi ne, %1, %c0_i32_0 : i32
    scf.if %2 {
      %cst_9 = arith.constant 0.000000e+00 : f32
      %12 = vector.broadcast %cst_9 : f32 to vector<16x128xf32>
      %c0_10 = arith.constant 0 : index
      %c0_11 = arith.constant 0 : index
      %13 = vector.load %arg7[%c0_10, %c0_11] : memref<16x128xf32, #tpu.memory_space<vmem>>, vector<16x128xf32>
      tpu.vector_store %arg7[%c0_10, %c0_11], %12 {strides = array<i32>} : memref<16x128xf32, #tpu.memory_space<vmem>>, vector<16x128xf32>,
    } else {
    }
    %c0 = arith.constant 0 : index
    %c0_1 = arith.constant 0 : index
    %3 = vector.load %arg7[%c0, %c0_1] : memref<16x128xf32, #tpu.memory_space<vmem>>, vector<16x128xf32>
    %c0_2 = arith.constant 0 : index
    %c0_3 = arith.constant 0 : index
    %4 = vector.load %arg2[%c0_2, %c0_3] : memref<16x384xbf16, #tpu.memory_space<vmem>>, vector<16x384xbf16>
    %c0_4 = arith.constant 0 : index
    %c0_5 = arith.constant 0 : index
    %5 = vector.load %arg3[%c0_4, %c0_5] : memref<384x128xbf16, #tpu.memory_space<vmem>>, vector<384x128xbf16>
    %cst = arith.constant dense<0.000000e+00> : vector<16x128xf32>
    %6 = tpu.matmul %4, %5, %cst {dimension_numbers = #tpu.dot_dimension_numbers<[1], [0], [0], [1], [0, 0, 1, 1], [], []>} : vector<16x384xbf16>, vector<384x128xbf16>, vector<16x128xf32> -> vector<16x128xf32>
    %7 = arith.addf %3, %6 : vector<16x128xf32>
    %c0_6 = arith.constant 0 : index
    %c0_7 = arith.constant 0 : index
    %8 = vector.load %arg7[%c0_6, %c0_7] : memref<16x128xf32, #tpu.memory_space<vmem>>, vector<16x128xf32>
    tpu.vector_store %arg7[%c0_6, %c0_7], %7 {strides = array<i32>} : memref<16x128xf32, #tpu.memory_space<vmem>>, vector<16x128xf32>,
    %c2_i32 = arith.constant 2 : i32
    %9 = arith.cmpi eq, %arg1, %c2_i32 : i32
    %10 = arith.extui %9 : i1 to i32
    %c0_i32_8 = arith.constant 0 : i32
    %11 = arith.cmpi ne, %10, %c0_i32_8 : i32
    scf.if %11 {
      %c0_9 = arith.constant 0 : index
      %c0_10 = arith.constant 0 : index
      %12 = vector.load %arg7[%c0_9, %c0_10] : memref<16x128xf32, #tpu.memory_space<vmem>>, vector<16x128xf32>
      %c0_11 = arith.constant 0 : index
      %c0_12 = arith.constant 0 : index
      %13 = vector.load %arg4[%c0_11, %c0_12] : memref<1x128xf32, #tpu.memory_space<vmem>>, vector<1x128xf32>
      %c0_13 = arith.constant 0 : index
      %c0_14 = arith.constant 0 : index
      %14 = vector.load %arg5[%c0_13, %c0_14] : memref<1x128xf32, #tpu.memory_space<vmem>>, vector<1x128xf32>
      %cst_15 = arith.constant dense<0.000000e+00> : vector<128xf32>
      %15 = vector.multi_reduction <add>, %12, %cst_15 [0] : vector<16x128xf32> to vector<128xf32>
      %16 = vector.shape_cast %15 : vector<128xf32> to vector<1x128xf32>
      %17 = arith.mulf %12, %12 : vector<16x128xf32>
      %cst_16 = arith.constant dense<0.000000e+00> : vector<128xf32>
      %18 = vector.multi_reduction <add>, %17, %cst_16 [0] : vector<16x128xf32> to vector<128xf32>
      %19 = vector.shape_cast %18 : vector<128xf32> to vector<1x128xf32>
      %cst_17 = arith.constant 1.250000e-01 : f32
      %20 = vector.broadcast %cst_17 : f32 to vector<1x128xf32>
      %21 = arith.mulf %16, %20 : vector<1x128xf32>
      %cst_18 = arith.constant 1.250000e-01 : f32
      %22 = vector.broadcast %cst_18 : f32 to vector<1x128xf32>
      %23 = arith.mulf %19, %22 : vector<1x128xf32>
      %24 = arith.mulf %21, %21 : vector<1x128xf32>
      %25 = arith.subf %23, %24 : vector<1x128xf32>
      %cst_19 = arith.constant 0.000000e+00 : f32
      %26 = vector.broadcast %cst_19 : f32 to vector<1x128xf32>
      %27 = arith.maximumf %25, %26 : vector<1x128xf32>
      %cst_20 = arith.constant 9.99999974E-6 : f32
      %28 = vector.broadcast %cst_20 : f32 to vector<1x128xf32>
      %29 = arith.addf %27, %28 : vector<1x128xf32>
      %30 = math.rsqrt %29 : vector<1x128xf32>
      %31 = arith.mulf %13, %30 : vector<1x128xf32>
      %32 = arith.mulf %21, %31 : vector<1x128xf32>
      %33 = arith.subf %14, %32 : vector<1x128xf32>
      %34 = vector.broadcast %31 : vector<1x128xf32> to vector<16x128xf32>
      %35 = arith.mulf %12, %34 : vector<16x128xf32>
      %36 = vector.broadcast %33 : vector<1x128xf32> to vector<16x128xf32>
      %37 = arith.addf %35, %36 : vector<16x128xf32>
      %cst_21 = arith.constant 0.000000e+00 : f32
      %38 = vector.broadcast %cst_21 : f32 to vector<16x128xf32>
      %39 = arith.maximumf %37, %38 : vector<16x128xf32>
      %40 = arith.truncf %39 : vector<16x128xf32> to vector<16x128xbf16>
      %c0_22 = arith.constant 0 : index
      %c0_23 = arith.constant 0 : index
      %41 = vector.load %arg6[%c0_22, %c0_23] : memref<16x128xbf16, #tpu.memory_space<vmem>>, vector<16x128xbf16>
      tpu.vector_store %arg6[%c0_22, %c0_23], %40 {strides = array<i32>} : memref<16x128xbf16, #tpu.memory_space<vmem>>, vector<16x128xbf16>,
    } else {
    }
    return
  }
  func.func @transform_0(%arg0: i32, %arg1: i32) -> (i32, i32) {
    %c0_i32 = arith.constant 0 : i32
    %c0_i32_0 = arith.constant 0 : i32
    return %c0_i32, %arg1 : i32, i32
  }
  func.func @transform_1(%arg0: i32, %arg1: i32) -> (i32, i32) {
    %c0_i32 = arith.constant 0 : i32
    return %arg1, %arg0 : i32, i32
  }
  func.func @transform_2(%arg0: i32, %arg1: i32) -> (i32, i32) {
    %c0_i32 = arith.constant 0 : i32
    %c0_i32_0 = arith.constant 0 : i32
    return %c0_i32, %arg0 : i32, i32
  }
  func.func @transform_3(%arg0: i32, %arg1: i32) -> (i32, i32) {
    %c0_i32 = arith.constant 0 : i32
    %c0_i32_0 = arith.constant 0 : i32
    return %c0_i32, %arg0 : i32, i32
  }
  func.func @transform_4(%arg0: i32, %arg1: i32) -> (i32, i32) {
    %c0_i32 = arith.constant 0 : i32
    %c0_i32_0 = arith.constant 0 : i32
    return %c0_i32, %arg0 : i32, i32
  }
}

module attributes {stable_mosaic.version = 11 : i64} {
  func.func @kernel(%arg0: i32, %arg1: i32, %arg2: memref<16x256xbf16, #tpu.memory_space<vmem>>, %arg3: memref<256x512xbf16, #tpu.memory_space<vmem>>, %arg4: memref<1x512xf32, #tpu.memory_space<vmem>>, %arg5: memref<1x512xf32, #tpu.memory_space<vmem>>, %arg6: memref<16x512xbf16, #tpu.memory_space<vmem>>, %arg7: memref<16x512xf32, #tpu.memory_space<vmem>>) attributes {dimension_semantics = [#tpu.dimension_semantics<parallel>, #tpu.dimension_semantics<arbitrary>], iteration_bounds = array<i64: 1, 1>, scalar_prefetch = 0 : i64, scratch_operands = 1 : i64, tpu.core_type = #tpu.core_type<tc>, window_params = [{transform_indices = @transform_0, window_bounds = array<i64: 16, 256>}, {transform_indices = @transform_1, window_bounds = array<i64: 256, 512>}, {transform_indices = @transform_2, window_bounds = array<i64: 1, 512>}, {transform_indices = @transform_3, window_bounds = array<i64: 1, 512>}, {transform_indices = @transform_4, window_bounds = array<i64: 16, 512>}]} {
    %c0_i32 = arith.constant 0 : i32
    %0 = arith.cmpi eq, %arg1, %c0_i32 : i32
    %1 = arith.extui %0 : i1 to i32
    %c0_i32_0 = arith.constant 0 : i32
    %2 = arith.cmpi ne, %1, %c0_i32_0 : i32
    scf.if %2 {
      %cst_10 = arith.constant 0.000000e+00 : f32
      %12 = vector.broadcast %cst_10 : f32 to vector<16x512xf32>
      %c0_11 = arith.constant 0 : index
      %c0_12 = arith.constant 0 : index
      %13 = vector.load %arg7[%c0_11, %c0_12] : memref<16x512xf32, #tpu.memory_space<vmem>>, vector<16x512xf32>
      tpu.vector_store %arg7[%c0_11, %c0_12], %12 {strides = array<i32>} : memref<16x512xf32, #tpu.memory_space<vmem>>, vector<16x512xf32>,
    } else {
    }
    %c0 = arith.constant 0 : index
    %c0_1 = arith.constant 0 : index
    %3 = vector.load %arg7[%c0, %c0_1] : memref<16x512xf32, #tpu.memory_space<vmem>>, vector<16x512xf32>
    %c0_2 = arith.constant 0 : index
    %c0_3 = arith.constant 0 : index
    %4 = vector.load %arg2[%c0_2, %c0_3] : memref<16x256xbf16, #tpu.memory_space<vmem>>, vector<16x256xbf16>
    %c0_4 = arith.constant 0 : index
    %c0_5 = arith.constant 0 : index
    %5 = vector.load %arg3[%c0_4, %c0_5] : memref<256x512xbf16, #tpu.memory_space<vmem>>, vector<256x512xbf16>
    %cst = arith.constant dense<0.000000e+00> : vector<16x512xf32>
    %6 = tpu.matmul %4, %5, %cst {dimension_numbers = #tpu.dot_dimension_numbers<[1], [0], [0], [1], [0, 0, 1, 1], [], []>} : vector<16x256xbf16>, vector<256x512xbf16>, vector<16x512xf32> -> vector<16x512xf32>
    %7 = arith.addf %3, %6 : vector<16x512xf32>
    %c0_6 = arith.constant 0 : index
    %c0_7 = arith.constant 0 : index
    %8 = vector.load %arg7[%c0_6, %c0_7] : memref<16x512xf32, #tpu.memory_space<vmem>>, vector<16x512xf32>
    tpu.vector_store %arg7[%c0_6, %c0_7], %7 {strides = array<i32>} : memref<16x512xf32, #tpu.memory_space<vmem>>, vector<16x512xf32>,
    %c0_i32_8 = arith.constant 0 : i32
    %9 = arith.cmpi eq, %arg1, %c0_i32_8 : i32
    %10 = arith.extui %9 : i1 to i32
    %c0_i32_9 = arith.constant 0 : i32
    %11 = arith.cmpi ne, %10, %c0_i32_9 : i32
    scf.if %11 {
      %c0_10 = arith.constant 0 : index
      %c0_11 = arith.constant 0 : index
      %12 = vector.load %arg7[%c0_10, %c0_11] : memref<16x512xf32, #tpu.memory_space<vmem>>, vector<16x512xf32>
      %c0_12 = arith.constant 0 : index
      %c0_13 = arith.constant 0 : index
      %13 = vector.load %arg4[%c0_12, %c0_13] : memref<1x512xf32, #tpu.memory_space<vmem>>, vector<1x512xf32>
      %c0_14 = arith.constant 0 : index
      %c0_15 = arith.constant 0 : index
      %14 = vector.load %arg5[%c0_14, %c0_15] : memref<1x512xf32, #tpu.memory_space<vmem>>, vector<1x512xf32>
      %cst_16 = arith.constant dense<0.000000e+00> : vector<512xf32>
      %15 = vector.multi_reduction <add>, %12, %cst_16 [0] : vector<16x512xf32> to vector<512xf32>
      %16 = vector.shape_cast %15 : vector<512xf32> to vector<1x512xf32>
      %17 = arith.mulf %12, %12 : vector<16x512xf32>
      %cst_17 = arith.constant dense<0.000000e+00> : vector<512xf32>
      %18 = vector.multi_reduction <add>, %17, %cst_17 [0] : vector<16x512xf32> to vector<512xf32>
      %19 = vector.shape_cast %18 : vector<512xf32> to vector<1x512xf32>
      %cst_18 = arith.constant 1.250000e-01 : f32
      %20 = vector.broadcast %cst_18 : f32 to vector<1x512xf32>
      %21 = arith.mulf %16, %20 : vector<1x512xf32>
      %cst_19 = arith.constant 1.250000e-01 : f32
      %22 = vector.broadcast %cst_19 : f32 to vector<1x512xf32>
      %23 = arith.mulf %19, %22 : vector<1x512xf32>
      %24 = arith.mulf %21, %21 : vector<1x512xf32>
      %25 = arith.subf %23, %24 : vector<1x512xf32>
      %cst_20 = arith.constant 0.000000e+00 : f32
      %26 = vector.broadcast %cst_20 : f32 to vector<1x512xf32>
      %27 = arith.maximumf %25, %26 : vector<1x512xf32>
      %cst_21 = arith.constant 9.99999974E-6 : f32
      %28 = vector.broadcast %cst_21 : f32 to vector<1x512xf32>
      %29 = arith.addf %27, %28 : vector<1x512xf32>
      %30 = math.rsqrt %29 : vector<1x512xf32>
      %31 = arith.mulf %13, %30 : vector<1x512xf32>
      %32 = arith.mulf %21, %31 : vector<1x512xf32>
      %33 = arith.subf %14, %32 : vector<1x512xf32>
      %34 = vector.broadcast %31 : vector<1x512xf32> to vector<16x512xf32>
      %35 = arith.mulf %12, %34 : vector<16x512xf32>
      %36 = vector.broadcast %33 : vector<1x512xf32> to vector<16x512xf32>
      %37 = arith.addf %35, %36 : vector<16x512xf32>
      %38 = arith.truncf %37 : vector<16x512xf32> to vector<16x512xbf16>
      %c0_22 = arith.constant 0 : index
      %c0_23 = arith.constant 0 : index
      %39 = vector.load %arg6[%c0_22, %c0_23] : memref<16x512xbf16, #tpu.memory_space<vmem>>, vector<16x512xbf16>
      tpu.vector_store %arg6[%c0_22, %c0_23], %38 {strides = array<i32>} : memref<16x512xbf16, #tpu.memory_space<vmem>>, vector<16x512xbf16>,
    } else {
    }
    return
  }
  func.func @transform_0(%arg0: i32, %arg1: i32) -> (i32, i32) {
    %c0_i32 = arith.constant 0 : i32
    %c0_i32_0 = arith.constant 0 : i32
    return %c0_i32, %arg1 : i32, i32
  }
  func.func @transform_1(%arg0: i32, %arg1: i32) -> (i32, i32) {
    %c0_i32 = arith.constant 0 : i32
    return %arg1, %arg0 : i32, i32
  }
  func.func @transform_2(%arg0: i32, %arg1: i32) -> (i32, i32) {
    %c0_i32 = arith.constant 0 : i32
    %c0_i32_0 = arith.constant 0 : i32
    return %c0_i32, %arg0 : i32, i32
  }
  func.func @transform_3(%arg0: i32, %arg1: i32) -> (i32, i32) {
    %c0_i32 = arith.constant 0 : i32
    %c0_i32_0 = arith.constant 0 : i32
    return %c0_i32, %arg0 : i32, i32
  }
  func.func @transform_4(%arg0: i32, %arg1: i32) -> (i32, i32) {
    %c0_i32 = arith.constant 0 : i32
    %c0_i32_0 = arith.constant 0 : i32
    return %c0_i32, %arg0 : i32, i32
  }
}

module attributes {stable_mosaic.version = 11 : i64} {
  func.func @kernel(%arg0: i32, %arg1: i32, %arg2: memref<16x128xbf16, #tpu.memory_space<vmem>>, %arg3: memref<128x512xbf16, #tpu.memory_space<vmem>>, %arg4: memref<1x512xf32, #tpu.memory_space<vmem>>, %arg5: memref<1x512xf32, #tpu.memory_space<vmem>>, %arg6: memref<16x512xbf16, #tpu.memory_space<vmem>>, %arg7: memref<16x512xbf16, #tpu.memory_space<vmem>>, %arg8: memref<16x512xf32, #tpu.memory_space<vmem>>) attributes {dimension_semantics = [#tpu.dimension_semantics<parallel>, #tpu.dimension_semantics<arbitrary>], iteration_bounds = array<i64: 1, 1>, scalar_prefetch = 0 : i64, scratch_operands = 1 : i64, tpu.core_type = #tpu.core_type<tc>, window_params = [{transform_indices = @transform_0, window_bounds = array<i64: 16, 128>}, {transform_indices = @transform_1, window_bounds = array<i64: 128, 512>}, {transform_indices = @transform_2, window_bounds = array<i64: 1, 512>}, {transform_indices = @transform_3, window_bounds = array<i64: 1, 512>}, {transform_indices = @transform_4, window_bounds = array<i64: 16, 512>}, {transform_indices = @transform_5, window_bounds = array<i64: 16, 512>}]} {
    %c0_i32 = arith.constant 0 : i32
    %0 = arith.cmpi eq, %arg1, %c0_i32 : i32
    %1 = arith.extui %0 : i1 to i32
    %c0_i32_0 = arith.constant 0 : i32
    %2 = arith.cmpi ne, %1, %c0_i32_0 : i32
    scf.if %2 {
      %cst_10 = arith.constant 0.000000e+00 : f32
      %12 = vector.broadcast %cst_10 : f32 to vector<16x512xf32>
      %c0_11 = arith.constant 0 : index
      %c0_12 = arith.constant 0 : index
      %13 = vector.load %arg8[%c0_11, %c0_12] : memref<16x512xf32, #tpu.memory_space<vmem>>, vector<16x512xf32>
      tpu.vector_store %arg8[%c0_11, %c0_12], %12 {strides = array<i32>} : memref<16x512xf32, #tpu.memory_space<vmem>>, vector<16x512xf32>,
    } else {
    }
    %c0 = arith.constant 0 : index
    %c0_1 = arith.constant 0 : index
    %3 = vector.load %arg8[%c0, %c0_1] : memref<16x512xf32, #tpu.memory_space<vmem>>, vector<16x512xf32>
    %c0_2 = arith.constant 0 : index
    %c0_3 = arith.constant 0 : index
    %4 = vector.load %arg2[%c0_2, %c0_3] : memref<16x128xbf16, #tpu.memory_space<vmem>>, vector<16x128xbf16>
    %c0_4 = arith.constant 0 : index
    %c0_5 = arith.constant 0 : index
    %5 = vector.load %arg3[%c0_4, %c0_5] : memref<128x512xbf16, #tpu.memory_space<vmem>>, vector<128x512xbf16>
    %cst = arith.constant dense<0.000000e+00> : vector<16x512xf32>
    %6 = tpu.matmul %4, %5, %cst {dimension_numbers = #tpu.dot_dimension_numbers<[1], [0], [0], [1], [0, 0, 1, 1], [], []>} : vector<16x128xbf16>, vector<128x512xbf16>, vector<16x512xf32> -> vector<16x512xf32>
    %7 = arith.addf %3, %6 : vector<16x512xf32>
    %c0_6 = arith.constant 0 : index
    %c0_7 = arith.constant 0 : index
    %8 = vector.load %arg8[%c0_6, %c0_7] : memref<16x512xf32, #tpu.memory_space<vmem>>, vector<16x512xf32>
    tpu.vector_store %arg8[%c0_6, %c0_7], %7 {strides = array<i32>} : memref<16x512xf32, #tpu.memory_space<vmem>>, vector<16x512xf32>,
    %c0_i32_8 = arith.constant 0 : i32
    %9 = arith.cmpi eq, %arg1, %c0_i32_8 : i32
    %10 = arith.extui %9 : i1 to i32
    %c0_i32_9 = arith.constant 0 : i32
    %11 = arith.cmpi ne, %10, %c0_i32_9 : i32
    scf.if %11 {
      %c0_10 = arith.constant 0 : index
      %c0_11 = arith.constant 0 : index
      %12 = vector.load %arg8[%c0_10, %c0_11] : memref<16x512xf32, #tpu.memory_space<vmem>>, vector<16x512xf32>
      %c0_12 = arith.constant 0 : index
      %c0_13 = arith.constant 0 : index
      %13 = vector.load %arg4[%c0_12, %c0_13] : memref<1x512xf32, #tpu.memory_space<vmem>>, vector<1x512xf32>
      %c0_14 = arith.constant 0 : index
      %c0_15 = arith.constant 0 : index
      %14 = vector.load %arg5[%c0_14, %c0_15] : memref<1x512xf32, #tpu.memory_space<vmem>>, vector<1x512xf32>
      %c0_16 = arith.constant 0 : index
      %c0_17 = arith.constant 0 : index
      %15 = vector.load %arg6[%c0_16, %c0_17] : memref<16x512xbf16, #tpu.memory_space<vmem>>, vector<16x512xbf16>
      %16 = arith.extf %15 : vector<16x512xbf16> to vector<16x512xf32>
      %cst_18 = arith.constant dense<0.000000e+00> : vector<512xf32>
      %17 = vector.multi_reduction <add>, %12, %cst_18 [0] : vector<16x512xf32> to vector<512xf32>
      %18 = vector.shape_cast %17 : vector<512xf32> to vector<1x512xf32>
      %19 = arith.mulf %12, %12 : vector<16x512xf32>
      %cst_19 = arith.constant dense<0.000000e+00> : vector<512xf32>
      %20 = vector.multi_reduction <add>, %19, %cst_19 [0] : vector<16x512xf32> to vector<512xf32>
      %21 = vector.shape_cast %20 : vector<512xf32> to vector<1x512xf32>
      %cst_20 = arith.constant 1.250000e-01 : f32
      %22 = vector.broadcast %cst_20 : f32 to vector<1x512xf32>
      %23 = arith.mulf %18, %22 : vector<1x512xf32>
      %cst_21 = arith.constant 1.250000e-01 : f32
      %24 = vector.broadcast %cst_21 : f32 to vector<1x512xf32>
      %25 = arith.mulf %21, %24 : vector<1x512xf32>
      %26 = arith.mulf %23, %23 : vector<1x512xf32>
      %27 = arith.subf %25, %26 : vector<1x512xf32>
      %cst_22 = arith.constant 0.000000e+00 : f32
      %28 = vector.broadcast %cst_22 : f32 to vector<1x512xf32>
      %29 = arith.maximumf %27, %28 : vector<1x512xf32>
      %cst_23 = arith.constant 9.99999974E-6 : f32
      %30 = vector.broadcast %cst_23 : f32 to vector<1x512xf32>
      %31 = arith.addf %29, %30 : vector<1x512xf32>
      %32 = math.rsqrt %31 : vector<1x512xf32>
      %33 = arith.mulf %13, %32 : vector<1x512xf32>
      %34 = arith.mulf %23, %33 : vector<1x512xf32>
      %35 = arith.subf %14, %34 : vector<1x512xf32>
      %36 = vector.broadcast %33 : vector<1x512xf32> to vector<16x512xf32>
      %37 = arith.mulf %12, %36 : vector<16x512xf32>
      %38 = vector.broadcast %35 : vector<1x512xf32> to vector<16x512xf32>
      %39 = arith.addf %37, %38 : vector<16x512xf32>
      %40 = arith.addf %39, %16 : vector<16x512xf32>
      %cst_24 = arith.constant 0.000000e+00 : f32
      %41 = vector.broadcast %cst_24 : f32 to vector<16x512xf32>
      %42 = arith.maximumf %40, %41 : vector<16x512xf32>
      %43 = arith.truncf %42 : vector<16x512xf32> to vector<16x512xbf16>
      %c0_25 = arith.constant 0 : index
      %c0_26 = arith.constant 0 : index
      %44 = vector.load %arg7[%c0_25, %c0_26] : memref<16x512xbf16, #tpu.memory_space<vmem>>, vector<16x512xbf16>
      tpu.vector_store %arg7[%c0_25, %c0_26], %43 {strides = array<i32>} : memref<16x512xbf16, #tpu.memory_space<vmem>>, vector<16x512xbf16>,
    } else {
    }
    return
  }
  func.func @transform_0(%arg0: i32, %arg1: i32) -> (i32, i32) {
    %c0_i32 = arith.constant 0 : i32
    %c0_i32_0 = arith.constant 0 : i32
    return %c0_i32, %arg1 : i32, i32
  }
  func.func @transform_1(%arg0: i32, %arg1: i32) -> (i32, i32) {
    %c0_i32 = arith.constant 0 : i32
    return %arg1, %arg0 : i32, i32
  }
  func.func @transform_2(%arg0: i32, %arg1: i32) -> (i32, i32) {
    %c0_i32 = arith.constant 0 : i32
    %c0_i32_0 = arith.constant 0 : i32
    return %c0_i32, %arg0 : i32, i32
  }
  func.func @transform_3(%arg0: i32, %arg1: i32) -> (i32, i32) {
    %c0_i32 = arith.constant 0 : i32
    %c0_i32_0 = arith.constant 0 : i32
    return %c0_i32, %arg0 : i32, i32
  }
  func.func @transform_4(%arg0: i32, %arg1: i32) -> (i32, i32) {
    %c0_i32 = arith.constant 0 : i32
    %c0_i32_0 = arith.constant 0 : i32
    return %c0_i32, %arg0 : i32, i32
  }
  func.func @transform_5(%arg0: i32, %arg1: i32) -> (i32, i32) {
    %c0_i32 = arith.constant 0 : i32
    %c0_i32_0 = arith.constant 0 : i32
    return %c0_i32, %arg0 : i32, i32
  }
}

module attributes {stable_mosaic.version = 11 : i64} {
  func.func @kernel(%arg0: i32, %arg1: i32, %arg2: memref<16x512xbf16, #tpu.memory_space<vmem>>, %arg3: memref<512x128xbf16, #tpu.memory_space<vmem>>, %arg4: memref<1x128xf32, #tpu.memory_space<vmem>>, %arg5: memref<1x128xf32, #tpu.memory_space<vmem>>, %arg6: memref<16x128xbf16, #tpu.memory_space<vmem>>, %arg7: memref<16x128xf32, #tpu.memory_space<vmem>>) attributes {dimension_semantics = [#tpu.dimension_semantics<parallel>, #tpu.dimension_semantics<arbitrary>], iteration_bounds = array<i64: 1, 1>, scalar_prefetch = 0 : i64, scratch_operands = 1 : i64, tpu.core_type = #tpu.core_type<tc>, window_params = [{transform_indices = @transform_0, window_bounds = array<i64: 16, 512>}, {transform_indices = @transform_1, window_bounds = array<i64: 512, 128>}, {transform_indices = @transform_2, window_bounds = array<i64: 1, 128>}, {transform_indices = @transform_3, window_bounds = array<i64: 1, 128>}, {transform_indices = @transform_4, window_bounds = array<i64: 16, 128>}]} {
    %c0_i32 = arith.constant 0 : i32
    %0 = arith.cmpi eq, %arg1, %c0_i32 : i32
    %1 = arith.extui %0 : i1 to i32
    %c0_i32_0 = arith.constant 0 : i32
    %2 = arith.cmpi ne, %1, %c0_i32_0 : i32
    scf.if %2 {
      %cst_10 = arith.constant 0.000000e+00 : f32
      %12 = vector.broadcast %cst_10 : f32 to vector<16x128xf32>
      %c0_11 = arith.constant 0 : index
      %c0_12 = arith.constant 0 : index
      %13 = vector.load %arg7[%c0_11, %c0_12] : memref<16x128xf32, #tpu.memory_space<vmem>>, vector<16x128xf32>
      tpu.vector_store %arg7[%c0_11, %c0_12], %12 {strides = array<i32>} : memref<16x128xf32, #tpu.memory_space<vmem>>, vector<16x128xf32>,
    } else {
    }
    %c0 = arith.constant 0 : index
    %c0_1 = arith.constant 0 : index
    %3 = vector.load %arg7[%c0, %c0_1] : memref<16x128xf32, #tpu.memory_space<vmem>>, vector<16x128xf32>
    %c0_2 = arith.constant 0 : index
    %c0_3 = arith.constant 0 : index
    %4 = vector.load %arg2[%c0_2, %c0_3] : memref<16x512xbf16, #tpu.memory_space<vmem>>, vector<16x512xbf16>
    %c0_4 = arith.constant 0 : index
    %c0_5 = arith.constant 0 : index
    %5 = vector.load %arg3[%c0_4, %c0_5] : memref<512x128xbf16, #tpu.memory_space<vmem>>, vector<512x128xbf16>
    %cst = arith.constant dense<0.000000e+00> : vector<16x128xf32>
    %6 = tpu.matmul %4, %5, %cst {dimension_numbers = #tpu.dot_dimension_numbers<[1], [0], [0], [1], [0, 0, 1, 1], [], []>} : vector<16x512xbf16>, vector<512x128xbf16>, vector<16x128xf32> -> vector<16x128xf32>
    %7 = arith.addf %3, %6 : vector<16x128xf32>
    %c0_6 = arith.constant 0 : index
    %c0_7 = arith.constant 0 : index
    %8 = vector.load %arg7[%c0_6, %c0_7] : memref<16x128xf32, #tpu.memory_space<vmem>>, vector<16x128xf32>
    tpu.vector_store %arg7[%c0_6, %c0_7], %7 {strides = array<i32>} : memref<16x128xf32, #tpu.memory_space<vmem>>, vector<16x128xf32>,
    %c0_i32_8 = arith.constant 0 : i32
    %9 = arith.cmpi eq, %arg1, %c0_i32_8 : i32
    %10 = arith.extui %9 : i1 to i32
    %c0_i32_9 = arith.constant 0 : i32
    %11 = arith.cmpi ne, %10, %c0_i32_9 : i32
    scf.if %11 {
      %c0_10 = arith.constant 0 : index
      %c0_11 = arith.constant 0 : index
      %12 = vector.load %arg7[%c0_10, %c0_11] : memref<16x128xf32, #tpu.memory_space<vmem>>, vector<16x128xf32>
      %c0_12 = arith.constant 0 : index
      %c0_13 = arith.constant 0 : index
      %13 = vector.load %arg4[%c0_12, %c0_13] : memref<1x128xf32, #tpu.memory_space<vmem>>, vector<1x128xf32>
      %c0_14 = arith.constant 0 : index
      %c0_15 = arith.constant 0 : index
      %14 = vector.load %arg5[%c0_14, %c0_15] : memref<1x128xf32, #tpu.memory_space<vmem>>, vector<1x128xf32>
      %cst_16 = arith.constant dense<0.000000e+00> : vector<128xf32>
      %15 = vector.multi_reduction <add>, %12, %cst_16 [0] : vector<16x128xf32> to vector<128xf32>
      %16 = vector.shape_cast %15 : vector<128xf32> to vector<1x128xf32>
      %17 = arith.mulf %12, %12 : vector<16x128xf32>
      %cst_17 = arith.constant dense<0.000000e+00> : vector<128xf32>
      %18 = vector.multi_reduction <add>, %17, %cst_17 [0] : vector<16x128xf32> to vector<128xf32>
      %19 = vector.shape_cast %18 : vector<128xf32> to vector<1x128xf32>
      %cst_18 = arith.constant 1.250000e-01 : f32
      %20 = vector.broadcast %cst_18 : f32 to vector<1x128xf32>
      %21 = arith.mulf %16, %20 : vector<1x128xf32>
      %cst_19 = arith.constant 1.250000e-01 : f32
      %22 = vector.broadcast %cst_19 : f32 to vector<1x128xf32>
      %23 = arith.mulf %19, %22 : vector<1x128xf32>
      %24 = arith.mulf %21, %21 : vector<1x128xf32>
      %25 = arith.subf %23, %24 : vector<1x128xf32>
      %cst_20 = arith.constant 0.000000e+00 : f32
      %26 = vector.broadcast %cst_20 : f32 to vector<1x128xf32>
      %27 = arith.maximumf %25, %26 : vector<1x128xf32>
      %cst_21 = arith.constant 9.99999974E-6 : f32
      %28 = vector.broadcast %cst_21 : f32 to vector<1x128xf32>
      %29 = arith.addf %27, %28 : vector<1x128xf32>
      %30 = math.rsqrt %29 : vector<1x128xf32>
      %31 = arith.mulf %13, %30 : vector<1x128xf32>
      %32 = arith.mulf %21, %31 : vector<1x128xf32>
      %33 = arith.subf %14, %32 : vector<1x128xf32>
      %34 = vector.broadcast %31 : vector<1x128xf32> to vector<16x128xf32>
      %35 = arith.mulf %12, %34 : vector<16x128xf32>
      %36 = vector.broadcast %33 : vector<1x128xf32> to vector<16x128xf32>
      %37 = arith.addf %35, %36 : vector<16x128xf32>
      %cst_22 = arith.constant 0.000000e+00 : f32
      %38 = vector.broadcast %cst_22 : f32 to vector<16x128xf32>
      %39 = arith.maximumf %37, %38 : vector<16x128xf32>
      %40 = arith.truncf %39 : vector<16x128xf32> to vector<16x128xbf16>
      %c0_23 = arith.constant 0 : index
      %c0_24 = arith.constant 0 : index
      %41 = vector.load %arg6[%c0_23, %c0_24] : memref<16x128xbf16, #tpu.memory_space<vmem>>, vector<16x128xbf16>
      tpu.vector_store %arg6[%c0_23, %c0_24], %40 {strides = array<i32>} : memref<16x128xbf16, #tpu.memory_space<vmem>>, vector<16x128xbf16>,
    } else {
    }
    return
  }
  func.func @transform_0(%arg0: i32, %arg1: i32) -> (i32, i32) {
    %c0_i32 = arith.constant 0 : i32
    %c0_i32_0 = arith.constant 0 : i32
    return %c0_i32, %arg1 : i32, i32
  }
  func.func @transform_1(%arg0: i32, %arg1: i32) -> (i32, i32) {
    %c0_i32 = arith.constant 0 : i32
    return %arg1, %arg0 : i32, i32
  }
  func.func @transform_2(%arg0: i32, %arg1: i32) -> (i32, i32) {
    %c0_i32 = arith.constant 0 : i32
    %c0_i32_0 = arith.constant 0 : i32
    return %c0_i32, %arg0 : i32, i32
  }
  func.func @transform_3(%arg0: i32, %arg1: i32) -> (i32, i32) {
    %c0_i32 = arith.constant 0 : i32
    %c0_i32_0 = arith.constant 0 : i32
    return %c0_i32, %arg0 : i32, i32
  }
  func.func @transform_4(%arg0: i32, %arg1: i32) -> (i32, i32) {
    %c0_i32 = arith.constant 0 : i32
    %c0_i32_0 = arith.constant 0 : i32
    return %c0_i32, %arg0 : i32, i32
  }
}

module attributes {stable_mosaic.version = 11 : i64} {
  func.func @kernel(%arg0: i32, %arg1: i32, %arg2: memref<16x512xbf16, #tpu.memory_space<vmem>>, %arg3: memref<512x256xbf16, #tpu.memory_space<vmem>>, %arg4: memref<1x256xf32, #tpu.memory_space<vmem>>, %arg5: memref<1x256xf32, #tpu.memory_space<vmem>>, %arg6: memref<16x256xbf16, #tpu.memory_space<vmem>>, %arg7: memref<16x256xf32, #tpu.memory_space<vmem>>) attributes {dimension_semantics = [#tpu.dimension_semantics<parallel>, #tpu.dimension_semantics<arbitrary>], iteration_bounds = array<i64: 1, 1>, scalar_prefetch = 0 : i64, scratch_operands = 1 : i64, tpu.core_type = #tpu.core_type<tc>, window_params = [{transform_indices = @transform_0, window_bounds = array<i64: 16, 512>}, {transform_indices = @transform_1, window_bounds = array<i64: 512, 256>}, {transform_indices = @transform_2, window_bounds = array<i64: 1, 256>}, {transform_indices = @transform_3, window_bounds = array<i64: 1, 256>}, {transform_indices = @transform_4, window_bounds = array<i64: 16, 256>}]} {
    %c0_i32 = arith.constant 0 : i32
    %0 = arith.cmpi eq, %arg1, %c0_i32 : i32
    %1 = arith.extui %0 : i1 to i32
    %c0_i32_0 = arith.constant 0 : i32
    %2 = arith.cmpi ne, %1, %c0_i32_0 : i32
    scf.if %2 {
      %cst_10 = arith.constant 0.000000e+00 : f32
      %12 = vector.broadcast %cst_10 : f32 to vector<16x256xf32>
      %c0_11 = arith.constant 0 : index
      %c0_12 = arith.constant 0 : index
      %13 = vector.load %arg7[%c0_11, %c0_12] : memref<16x256xf32, #tpu.memory_space<vmem>>, vector<16x256xf32>
      tpu.vector_store %arg7[%c0_11, %c0_12], %12 {strides = array<i32>} : memref<16x256xf32, #tpu.memory_space<vmem>>, vector<16x256xf32>,
    } else {
    }
    %c0 = arith.constant 0 : index
    %c0_1 = arith.constant 0 : index
    %3 = vector.load %arg7[%c0, %c0_1] : memref<16x256xf32, #tpu.memory_space<vmem>>, vector<16x256xf32>
    %c0_2 = arith.constant 0 : index
    %c0_3 = arith.constant 0 : index
    %4 = vector.load %arg2[%c0_2, %c0_3] : memref<16x512xbf16, #tpu.memory_space<vmem>>, vector<16x512xbf16>
    %c0_4 = arith.constant 0 : index
    %c0_5 = arith.constant 0 : index
    %5 = vector.load %arg3[%c0_4, %c0_5] : memref<512x256xbf16, #tpu.memory_space<vmem>>, vector<512x256xbf16>
    %cst = arith.constant dense<0.000000e+00> : vector<16x256xf32>
    %6 = tpu.matmul %4, %5, %cst {dimension_numbers = #tpu.dot_dimension_numbers<[1], [0], [0], [1], [0, 0, 1, 1], [], []>} : vector<16x512xbf16>, vector<512x256xbf16>, vector<16x256xf32> -> vector<16x256xf32>
    %7 = arith.addf %3, %6 : vector<16x256xf32>
    %c0_6 = arith.constant 0 : index
    %c0_7 = arith.constant 0 : index
    %8 = vector.load %arg7[%c0_6, %c0_7] : memref<16x256xf32, #tpu.memory_space<vmem>>, vector<16x256xf32>
    tpu.vector_store %arg7[%c0_6, %c0_7], %7 {strides = array<i32>} : memref<16x256xf32, #tpu.memory_space<vmem>>, vector<16x256xf32>,
    %c0_i32_8 = arith.constant 0 : i32
    %9 = arith.cmpi eq, %arg1, %c0_i32_8 : i32
    %10 = arith.extui %9 : i1 to i32
    %c0_i32_9 = arith.constant 0 : i32
    %11 = arith.cmpi ne, %10, %c0_i32_9 : i32
    scf.if %11 {
      %c0_10 = arith.constant 0 : index
      %c0_11 = arith.constant 0 : index
      %12 = vector.load %arg7[%c0_10, %c0_11] : memref<16x256xf32, #tpu.memory_space<vmem>>, vector<16x256xf32>
      %c0_12 = arith.constant 0 : index
      %c0_13 = arith.constant 0 : index
      %13 = vector.load %arg4[%c0_12, %c0_13] : memref<1x256xf32, #tpu.memory_space<vmem>>, vector<1x256xf32>
      %c0_14 = arith.constant 0 : index
      %c0_15 = arith.constant 0 : index
      %14 = vector.load %arg5[%c0_14, %c0_15] : memref<1x256xf32, #tpu.memory_space<vmem>>, vector<1x256xf32>
      %cst_16 = arith.constant dense<0.000000e+00> : vector<256xf32>
      %15 = vector.multi_reduction <add>, %12, %cst_16 [0] : vector<16x256xf32> to vector<256xf32>
      %16 = vector.shape_cast %15 : vector<256xf32> to vector<1x256xf32>
      %17 = arith.mulf %12, %12 : vector<16x256xf32>
      %cst_17 = arith.constant dense<0.000000e+00> : vector<256xf32>
      %18 = vector.multi_reduction <add>, %17, %cst_17 [0] : vector<16x256xf32> to vector<256xf32>
      %19 = vector.shape_cast %18 : vector<256xf32> to vector<1x256xf32>
      %cst_18 = arith.constant 1.250000e-01 : f32
      %20 = vector.broadcast %cst_18 : f32 to vector<1x256xf32>
      %21 = arith.mulf %16, %20 : vector<1x256xf32>
      %cst_19 = arith.constant 1.250000e-01 : f32
      %22 = vector.broadcast %cst_19 : f32 to vector<1x256xf32>
      %23 = arith.mulf %19, %22 : vector<1x256xf32>
      %24 = arith.mulf %21, %21 : vector<1x256xf32>
      %25 = arith.subf %23, %24 : vector<1x256xf32>
      %cst_20 = arith.constant 0.000000e+00 : f32
      %26 = vector.broadcast %cst_20 : f32 to vector<1x256xf32>
      %27 = arith.maximumf %25, %26 : vector<1x256xf32>
      %cst_21 = arith.constant 9.99999974E-6 : f32
      %28 = vector.broadcast %cst_21 : f32 to vector<1x256xf32>
      %29 = arith.addf %27, %28 : vector<1x256xf32>
      %30 = math.rsqrt %29 : vector<1x256xf32>
      %31 = arith.mulf %13, %30 : vector<1x256xf32>
      %32 = arith.mulf %21, %31 : vector<1x256xf32>
      %33 = arith.subf %14, %32 : vector<1x256xf32>
      %34 = vector.broadcast %31 : vector<1x256xf32> to vector<16x256xf32>
      %35 = arith.mulf %12, %34 : vector<16x256xf32>
      %36 = vector.broadcast %33 : vector<1x256xf32> to vector<16x256xf32>
      %37 = arith.addf %35, %36 : vector<16x256xf32>
      %cst_22 = arith.constant 0.000000e+00 : f32
      %38 = vector.broadcast %cst_22 : f32 to vector<16x256xf32>
      %39 = arith.maximumf %37, %38 : vector<16x256xf32>
      %40 = arith.truncf %39 : vector<16x256xf32> to vector<16x256xbf16>
      %c0_23 = arith.constant 0 : index
      %c0_24 = arith.constant 0 : index
      %41 = vector.load %arg6[%c0_23, %c0_24] : memref<16x256xbf16, #tpu.memory_space<vmem>>, vector<16x256xbf16>
      tpu.vector_store %arg6[%c0_23, %c0_24], %40 {strides = array<i32>} : memref<16x256xbf16, #tpu.memory_space<vmem>>, vector<16x256xbf16>,
    } else {
    }
    return
  }
  func.func @transform_0(%arg0: i32, %arg1: i32) -> (i32, i32) {
    %c0_i32 = arith.constant 0 : i32
    %c0_i32_0 = arith.constant 0 : i32
    return %c0_i32, %arg1 : i32, i32
  }
  func.func @transform_1(%arg0: i32, %arg1: i32) -> (i32, i32) {
    %c0_i32 = arith.constant 0 : i32
    return %arg1, %arg0 : i32, i32
  }
  func.func @transform_2(%arg0: i32, %arg1: i32) -> (i32, i32) {
    %c0_i32 = arith.constant 0 : i32
    %c0_i32_0 = arith.constant 0 : i32
    return %c0_i32, %arg0 : i32, i32
  }
  func.func @transform_3(%arg0: i32, %arg1: i32) -> (i32, i32) {
    %c0_i32 = arith.constant 0 : i32
    %c0_i32_0 = arith.constant 0 : i32
    return %c0_i32, %arg0 : i32, i32
  }
  func.func @transform_4(%arg0: i32, %arg1: i32) -> (i32, i32) {
    %c0_i32 = arith.constant 0 : i32
    %c0_i32_0 = arith.constant 0 : i32
    return %c0_i32, %arg0 : i32, i32
  }
}

module attributes {stable_mosaic.version = 11 : i64} {
  func.func @kernel(%arg0: i32, %arg1: i32, %arg2: memref<16x512xbf16, #tpu.memory_space<vmem>>, %arg3: memref<512x256xbf16, #tpu.memory_space<vmem>>, %arg4: memref<1x256xf32, #tpu.memory_space<vmem>>, %arg5: memref<1x256xf32, #tpu.memory_space<vmem>>, %arg6: memref<16x256xbf16, #tpu.memory_space<vmem>>, %arg7: memref<16x256xf32, #tpu.memory_space<vmem>>) attributes {dimension_semantics = [#tpu.dimension_semantics<parallel>, #tpu.dimension_semantics<arbitrary>], iteration_bounds = array<i64: 1, 5>, scalar_prefetch = 0 : i64, scratch_operands = 1 : i64, tpu.core_type = #tpu.core_type<tc>, window_params = [{transform_indices = @transform_0, window_bounds = array<i64: 16, 512>}, {transform_indices = @transform_1, window_bounds = array<i64: 512, 256>}, {transform_indices = @transform_2, window_bounds = array<i64: 1, 256>}, {transform_indices = @transform_3, window_bounds = array<i64: 1, 256>}, {transform_indices = @transform_4, window_bounds = array<i64: 16, 256>}]} {
    %c0_i32 = arith.constant 0 : i32
    %0 = arith.cmpi eq, %arg1, %c0_i32 : i32
    %1 = arith.extui %0 : i1 to i32
    %c0_i32_0 = arith.constant 0 : i32
    %2 = arith.cmpi ne, %1, %c0_i32_0 : i32
    scf.if %2 {
      %cst_9 = arith.constant 0.000000e+00 : f32
      %12 = vector.broadcast %cst_9 : f32 to vector<16x256xf32>
      %c0_10 = arith.constant 0 : index
      %c0_11 = arith.constant 0 : index
      %13 = vector.load %arg7[%c0_10, %c0_11] : memref<16x256xf32, #tpu.memory_space<vmem>>, vector<16x256xf32>
      tpu.vector_store %arg7[%c0_10, %c0_11], %12 {strides = array<i32>} : memref<16x256xf32, #tpu.memory_space<vmem>>, vector<16x256xf32>,
    } else {
    }
    %c0 = arith.constant 0 : index
    %c0_1 = arith.constant 0 : index
    %3 = vector.load %arg7[%c0, %c0_1] : memref<16x256xf32, #tpu.memory_space<vmem>>, vector<16x256xf32>
    %c0_2 = arith.constant 0 : index
    %c0_3 = arith.constant 0 : index
    %4 = vector.load %arg2[%c0_2, %c0_3] : memref<16x512xbf16, #tpu.memory_space<vmem>>, vector<16x512xbf16>
    %c0_4 = arith.constant 0 : index
    %c0_5 = arith.constant 0 : index
    %5 = vector.load %arg3[%c0_4, %c0_5] : memref<512x256xbf16, #tpu.memory_space<vmem>>, vector<512x256xbf16>
    %cst = arith.constant dense<0.000000e+00> : vector<16x256xf32>
    %6 = tpu.matmul %4, %5, %cst {dimension_numbers = #tpu.dot_dimension_numbers<[1], [0], [0], [1], [0, 0, 1, 1], [], []>} : vector<16x512xbf16>, vector<512x256xbf16>, vector<16x256xf32> -> vector<16x256xf32>
    %7 = arith.addf %3, %6 : vector<16x256xf32>
    %c0_6 = arith.constant 0 : index
    %c0_7 = arith.constant 0 : index
    %8 = vector.load %arg7[%c0_6, %c0_7] : memref<16x256xf32, #tpu.memory_space<vmem>>, vector<16x256xf32>
    tpu.vector_store %arg7[%c0_6, %c0_7], %7 {strides = array<i32>} : memref<16x256xf32, #tpu.memory_space<vmem>>, vector<16x256xf32>,
    %c4_i32 = arith.constant 4 : i32
    %9 = arith.cmpi eq, %arg1, %c4_i32 : i32
    %10 = arith.extui %9 : i1 to i32
    %c0_i32_8 = arith.constant 0 : i32
    %11 = arith.cmpi ne, %10, %c0_i32_8 : i32
    scf.if %11 {
      %c0_9 = arith.constant 0 : index
      %c0_10 = arith.constant 0 : index
      %12 = vector.load %arg7[%c0_9, %c0_10] : memref<16x256xf32, #tpu.memory_space<vmem>>, vector<16x256xf32>
      %c0_11 = arith.constant 0 : index
      %c0_12 = arith.constant 0 : index
      %13 = vector.load %arg4[%c0_11, %c0_12] : memref<1x256xf32, #tpu.memory_space<vmem>>, vector<1x256xf32>
      %c0_13 = arith.constant 0 : index
      %c0_14 = arith.constant 0 : index
      %14 = vector.load %arg5[%c0_13, %c0_14] : memref<1x256xf32, #tpu.memory_space<vmem>>, vector<1x256xf32>
      %cst_15 = arith.constant dense<0.000000e+00> : vector<256xf32>
      %15 = vector.multi_reduction <add>, %12, %cst_15 [0] : vector<16x256xf32> to vector<256xf32>
      %16 = vector.shape_cast %15 : vector<256xf32> to vector<1x256xf32>
      %17 = arith.mulf %12, %12 : vector<16x256xf32>
      %cst_16 = arith.constant dense<0.000000e+00> : vector<256xf32>
      %18 = vector.multi_reduction <add>, %17, %cst_16 [0] : vector<16x256xf32> to vector<256xf32>
      %19 = vector.shape_cast %18 : vector<256xf32> to vector<1x256xf32>
      %cst_17 = arith.constant 1.250000e-01 : f32
      %20 = vector.broadcast %cst_17 : f32 to vector<1x256xf32>
      %21 = arith.mulf %16, %20 : vector<1x256xf32>
      %cst_18 = arith.constant 1.250000e-01 : f32
      %22 = vector.broadcast %cst_18 : f32 to vector<1x256xf32>
      %23 = arith.mulf %19, %22 : vector<1x256xf32>
      %24 = arith.mulf %21, %21 : vector<1x256xf32>
      %25 = arith.subf %23, %24 : vector<1x256xf32>
      %cst_19 = arith.constant 0.000000e+00 : f32
      %26 = vector.broadcast %cst_19 : f32 to vector<1x256xf32>
      %27 = arith.maximumf %25, %26 : vector<1x256xf32>
      %cst_20 = arith.constant 9.99999974E-6 : f32
      %28 = vector.broadcast %cst_20 : f32 to vector<1x256xf32>
      %29 = arith.addf %27, %28 : vector<1x256xf32>
      %30 = math.rsqrt %29 : vector<1x256xf32>
      %31 = arith.mulf %13, %30 : vector<1x256xf32>
      %32 = arith.mulf %21, %31 : vector<1x256xf32>
      %33 = arith.subf %14, %32 : vector<1x256xf32>
      %34 = vector.broadcast %31 : vector<1x256xf32> to vector<16x256xf32>
      %35 = arith.mulf %12, %34 : vector<16x256xf32>
      %36 = vector.broadcast %33 : vector<1x256xf32> to vector<16x256xf32>
      %37 = arith.addf %35, %36 : vector<16x256xf32>
      %cst_21 = arith.constant 0.000000e+00 : f32
      %38 = vector.broadcast %cst_21 : f32 to vector<16x256xf32>
      %39 = arith.maximumf %37, %38 : vector<16x256xf32>
      %40 = arith.truncf %39 : vector<16x256xf32> to vector<16x256xbf16>
      %c0_22 = arith.constant 0 : index
      %c0_23 = arith.constant 0 : index
      %41 = vector.load %arg6[%c0_22, %c0_23] : memref<16x256xbf16, #tpu.memory_space<vmem>>, vector<16x256xbf16>
      tpu.vector_store %arg6[%c0_22, %c0_23], %40 {strides = array<i32>} : memref<16x256xbf16, #tpu.memory_space<vmem>>, vector<16x256xbf16>,
    } else {
    }
    return
  }
  func.func @transform_0(%arg0: i32, %arg1: i32) -> (i32, i32) {
    %c0_i32 = arith.constant 0 : i32
    %c0_i32_0 = arith.constant 0 : i32
    return %c0_i32, %arg1 : i32, i32
  }
  func.func @transform_1(%arg0: i32, %arg1: i32) -> (i32, i32) {
    %c0_i32 = arith.constant 0 : i32
    return %arg1, %arg0 : i32, i32
  }
  func.func @transform_2(%arg0: i32, %arg1: i32) -> (i32, i32) {
    %c0_i32 = arith.constant 0 : i32
    %c0_i32_0 = arith.constant 0 : i32
    return %c0_i32, %arg0 : i32, i32
  }
  func.func @transform_3(%arg0: i32, %arg1: i32) -> (i32, i32) {
    %c0_i32 = arith.constant 0 : i32
    %c0_i32_0 = arith.constant 0 : i32
    return %c0_i32, %arg0 : i32, i32
  }
  func.func @transform_4(%arg0: i32, %arg1: i32) -> (i32, i32) {
    %c0_i32 = arith.constant 0 : i32
    %c0_i32_0 = arith.constant 0 : i32
    return %c0_i32, %arg0 : i32, i32
  }
}

module attributes {stable_mosaic.version = 11 : i64} {
  func.func @kernel(%arg0: i32, %arg1: i32, %arg2: memref<16x512xbf16, #tpu.memory_space<vmem>>, %arg3: memref<512x512xbf16, #tpu.memory_space<vmem>>, %arg4: memref<1x512xf32, #tpu.memory_space<vmem>>, %arg5: memref<1x512xf32, #tpu.memory_space<vmem>>, %arg6: memref<16x512xbf16, #tpu.memory_space<vmem>>, %arg7: memref<16x512xf32, #tpu.memory_space<vmem>>) attributes {dimension_semantics = [#tpu.dimension_semantics<parallel>, #tpu.dimension_semantics<arbitrary>], iteration_bounds = array<i64: 2, 1>, scalar_prefetch = 0 : i64, scratch_operands = 1 : i64, tpu.core_type = #tpu.core_type<tc>, window_params = [{transform_indices = @transform_0, window_bounds = array<i64: 16, 512>}, {transform_indices = @transform_1, window_bounds = array<i64: 512, 512>}, {transform_indices = @transform_2, window_bounds = array<i64: 1, 512>}, {transform_indices = @transform_3, window_bounds = array<i64: 1, 512>}, {transform_indices = @transform_4, window_bounds = array<i64: 16, 512>}]} {
    %c0_i32 = arith.constant 0 : i32
    %0 = arith.cmpi eq, %arg1, %c0_i32 : i32
    %1 = arith.extui %0 : i1 to i32
    %c0_i32_0 = arith.constant 0 : i32
    %2 = arith.cmpi ne, %1, %c0_i32_0 : i32
    scf.if %2 {
      %cst_10 = arith.constant 0.000000e+00 : f32
      %12 = vector.broadcast %cst_10 : f32 to vector<16x512xf32>
      %c0_11 = arith.constant 0 : index
      %c0_12 = arith.constant 0 : index
      %13 = vector.load %arg7[%c0_11, %c0_12] : memref<16x512xf32, #tpu.memory_space<vmem>>, vector<16x512xf32>
      tpu.vector_store %arg7[%c0_11, %c0_12], %12 {strides = array<i32>} : memref<16x512xf32, #tpu.memory_space<vmem>>, vector<16x512xf32>,
    } else {
    }
    %c0 = arith.constant 0 : index
    %c0_1 = arith.constant 0 : index
    %3 = vector.load %arg7[%c0, %c0_1] : memref<16x512xf32, #tpu.memory_space<vmem>>, vector<16x512xf32>
    %c0_2 = arith.constant 0 : index
    %c0_3 = arith.constant 0 : index
    %4 = vector.load %arg2[%c0_2, %c0_3] : memref<16x512xbf16, #tpu.memory_space<vmem>>, vector<16x512xbf16>
    %c0_4 = arith.constant 0 : index
    %c0_5 = arith.constant 0 : index
    %5 = vector.load %arg3[%c0_4, %c0_5] : memref<512x512xbf16, #tpu.memory_space<vmem>>, vector<512x512xbf16>
    %cst = arith.constant dense<0.000000e+00> : vector<16x512xf32>
    %6 = tpu.matmul %4, %5, %cst {dimension_numbers = #tpu.dot_dimension_numbers<[1], [0], [0], [1], [0, 0, 1, 1], [], []>} : vector<16x512xbf16>, vector<512x512xbf16>, vector<16x512xf32> -> vector<16x512xf32>
    %7 = arith.addf %3, %6 : vector<16x512xf32>
    %c0_6 = arith.constant 0 : index
    %c0_7 = arith.constant 0 : index
    %8 = vector.load %arg7[%c0_6, %c0_7] : memref<16x512xf32, #tpu.memory_space<vmem>>, vector<16x512xf32>
    tpu.vector_store %arg7[%c0_6, %c0_7], %7 {strides = array<i32>} : memref<16x512xf32, #tpu.memory_space<vmem>>, vector<16x512xf32>,
    %c0_i32_8 = arith.constant 0 : i32
    %9 = arith.cmpi eq, %arg1, %c0_i32_8 : i32
    %10 = arith.extui %9 : i1 to i32
    %c0_i32_9 = arith.constant 0 : i32
    %11 = arith.cmpi ne, %10, %c0_i32_9 : i32
    scf.if %11 {
      %c0_10 = arith.constant 0 : index
      %c0_11 = arith.constant 0 : index
      %12 = vector.load %arg7[%c0_10, %c0_11] : memref<16x512xf32, #tpu.memory_space<vmem>>, vector<16x512xf32>
      %c0_12 = arith.constant 0 : index
      %c0_13 = arith.constant 0 : index
      %13 = vector.load %arg4[%c0_12, %c0_13] : memref<1x512xf32, #tpu.memory_space<vmem>>, vector<1x512xf32>
      %c0_14 = arith.constant 0 : index
      %c0_15 = arith.constant 0 : index
      %14 = vector.load %arg5[%c0_14, %c0_15] : memref<1x512xf32, #tpu.memory_space<vmem>>, vector<1x512xf32>
      %cst_16 = arith.constant dense<0.000000e+00> : vector<512xf32>
      %15 = vector.multi_reduction <add>, %12, %cst_16 [0] : vector<16x512xf32> to vector<512xf32>
      %16 = vector.shape_cast %15 : vector<512xf32> to vector<1x512xf32>
      %17 = arith.mulf %12, %12 : vector<16x512xf32>
      %cst_17 = arith.constant dense<0.000000e+00> : vector<512xf32>
      %18 = vector.multi_reduction <add>, %17, %cst_17 [0] : vector<16x512xf32> to vector<512xf32>
      %19 = vector.shape_cast %18 : vector<512xf32> to vector<1x512xf32>
      %cst_18 = arith.constant 1.250000e-01 : f32
      %20 = vector.broadcast %cst_18 : f32 to vector<1x512xf32>
      %21 = arith.mulf %16, %20 : vector<1x512xf32>
      %cst_19 = arith.constant 1.250000e-01 : f32
      %22 = vector.broadcast %cst_19 : f32 to vector<1x512xf32>
      %23 = arith.mulf %19, %22 : vector<1x512xf32>
      %24 = arith.mulf %21, %21 : vector<1x512xf32>
      %25 = arith.subf %23, %24 : vector<1x512xf32>
      %cst_20 = arith.constant 0.000000e+00 : f32
      %26 = vector.broadcast %cst_20 : f32 to vector<1x512xf32>
      %27 = arith.maximumf %25, %26 : vector<1x512xf32>
      %cst_21 = arith.constant 9.99999974E-6 : f32
      %28 = vector.broadcast %cst_21 : f32 to vector<1x512xf32>
      %29 = arith.addf %27, %28 : vector<1x512xf32>
      %30 = math.rsqrt %29 : vector<1x512xf32>
      %31 = arith.mulf %13, %30 : vector<1x512xf32>
      %32 = arith.mulf %21, %31 : vector<1x512xf32>
      %33 = arith.subf %14, %32 : vector<1x512xf32>
      %34 = vector.broadcast %31 : vector<1x512xf32> to vector<16x512xf32>
      %35 = arith.mulf %12, %34 : vector<16x512xf32>
      %36 = vector.broadcast %33 : vector<1x512xf32> to vector<16x512xf32>
      %37 = arith.addf %35, %36 : vector<16x512xf32>
      %38 = arith.truncf %37 : vector<16x512xf32> to vector<16x512xbf16>
      %c0_22 = arith.constant 0 : index
      %c0_23 = arith.constant 0 : index
      %39 = vector.load %arg6[%c0_22, %c0_23] : memref<16x512xbf16, #tpu.memory_space<vmem>>, vector<16x512xbf16>
      tpu.vector_store %arg6[%c0_22, %c0_23], %38 {strides = array<i32>} : memref<16x512xbf16, #tpu.memory_space<vmem>>, vector<16x512xbf16>,
    } else {
    }
    return
  }
  func.func @transform_0(%arg0: i32, %arg1: i32) -> (i32, i32) {
    %c0_i32 = arith.constant 0 : i32
    %c0_i32_0 = arith.constant 0 : i32
    return %c0_i32, %arg1 : i32, i32
  }
  func.func @transform_1(%arg0: i32, %arg1: i32) -> (i32, i32) {
    %c0_i32 = arith.constant 0 : i32
    return %arg1, %arg0 : i32, i32
  }
  func.func @transform_2(%arg0: i32, %arg1: i32) -> (i32, i32) {
    %c0_i32 = arith.constant 0 : i32
    %c0_i32_0 = arith.constant 0 : i32
    return %c0_i32, %arg0 : i32, i32
  }
  func.func @transform_3(%arg0: i32, %arg1: i32) -> (i32, i32) {
    %c0_i32 = arith.constant 0 : i32
    %c0_i32_0 = arith.constant 0 : i32
    return %c0_i32, %arg0 : i32, i32
  }
  func.func @transform_4(%arg0: i32, %arg1: i32) -> (i32, i32) {
    %c0_i32 = arith.constant 0 : i32
    %c0_i32_0 = arith.constant 0 : i32
    return %c0_i32, %arg0 : i32, i32
  }
}

module attributes {stable_mosaic.version = 11 : i64} {
  func.func @kernel(%arg0: i32, %arg1: i32, %arg2: memref<16x256xbf16, #tpu.memory_space<vmem>>, %arg3: memref<256x512xbf16, #tpu.memory_space<vmem>>, %arg4: memref<1x512xf32, #tpu.memory_space<vmem>>, %arg5: memref<1x512xf32, #tpu.memory_space<vmem>>, %arg6: memref<16x512xbf16, #tpu.memory_space<vmem>>, %arg7: memref<16x512xbf16, #tpu.memory_space<vmem>>, %arg8: memref<16x512xf32, #tpu.memory_space<vmem>>) attributes {dimension_semantics = [#tpu.dimension_semantics<parallel>, #tpu.dimension_semantics<arbitrary>], iteration_bounds = array<i64: 2, 1>, scalar_prefetch = 0 : i64, scratch_operands = 1 : i64, tpu.core_type = #tpu.core_type<tc>, window_params = [{transform_indices = @transform_0, window_bounds = array<i64: 16, 256>}, {transform_indices = @transform_1, window_bounds = array<i64: 256, 512>}, {transform_indices = @transform_2, window_bounds = array<i64: 1, 512>}, {transform_indices = @transform_3, window_bounds = array<i64: 1, 512>}, {transform_indices = @transform_4, window_bounds = array<i64: 16, 512>}, {transform_indices = @transform_5, window_bounds = array<i64: 16, 512>}]} {
    %c0_i32 = arith.constant 0 : i32
    %0 = arith.cmpi eq, %arg1, %c0_i32 : i32
    %1 = arith.extui %0 : i1 to i32
    %c0_i32_0 = arith.constant 0 : i32
    %2 = arith.cmpi ne, %1, %c0_i32_0 : i32
    scf.if %2 {
      %cst_10 = arith.constant 0.000000e+00 : f32
      %12 = vector.broadcast %cst_10 : f32 to vector<16x512xf32>
      %c0_11 = arith.constant 0 : index
      %c0_12 = arith.constant 0 : index
      %13 = vector.load %arg8[%c0_11, %c0_12] : memref<16x512xf32, #tpu.memory_space<vmem>>, vector<16x512xf32>
      tpu.vector_store %arg8[%c0_11, %c0_12], %12 {strides = array<i32>} : memref<16x512xf32, #tpu.memory_space<vmem>>, vector<16x512xf32>,
    } else {
    }
    %c0 = arith.constant 0 : index
    %c0_1 = arith.constant 0 : index
    %3 = vector.load %arg8[%c0, %c0_1] : memref<16x512xf32, #tpu.memory_space<vmem>>, vector<16x512xf32>
    %c0_2 = arith.constant 0 : index
    %c0_3 = arith.constant 0 : index
    %4 = vector.load %arg2[%c0_2, %c0_3] : memref<16x256xbf16, #tpu.memory_space<vmem>>, vector<16x256xbf16>
    %c0_4 = arith.constant 0 : index
    %c0_5 = arith.constant 0 : index
    %5 = vector.load %arg3[%c0_4, %c0_5] : memref<256x512xbf16, #tpu.memory_space<vmem>>, vector<256x512xbf16>
    %cst = arith.constant dense<0.000000e+00> : vector<16x512xf32>
    %6 = tpu.matmul %4, %5, %cst {dimension_numbers = #tpu.dot_dimension_numbers<[1], [0], [0], [1], [0, 0, 1, 1], [], []>} : vector<16x256xbf16>, vector<256x512xbf16>, vector<16x512xf32> -> vector<16x512xf32>
    %7 = arith.addf %3, %6 : vector<16x512xf32>
    %c0_6 = arith.constant 0 : index
    %c0_7 = arith.constant 0 : index
    %8 = vector.load %arg8[%c0_6, %c0_7] : memref<16x512xf32, #tpu.memory_space<vmem>>, vector<16x512xf32>
    tpu.vector_store %arg8[%c0_6, %c0_7], %7 {strides = array<i32>} : memref<16x512xf32, #tpu.memory_space<vmem>>, vector<16x512xf32>,
    %c0_i32_8 = arith.constant 0 : i32
    %9 = arith.cmpi eq, %arg1, %c0_i32_8 : i32
    %10 = arith.extui %9 : i1 to i32
    %c0_i32_9 = arith.constant 0 : i32
    %11 = arith.cmpi ne, %10, %c0_i32_9 : i32
    scf.if %11 {
      %c0_10 = arith.constant 0 : index
      %c0_11 = arith.constant 0 : index
      %12 = vector.load %arg8[%c0_10, %c0_11] : memref<16x512xf32, #tpu.memory_space<vmem>>, vector<16x512xf32>
      %c0_12 = arith.constant 0 : index
      %c0_13 = arith.constant 0 : index
      %13 = vector.load %arg4[%c0_12, %c0_13] : memref<1x512xf32, #tpu.memory_space<vmem>>, vector<1x512xf32>
      %c0_14 = arith.constant 0 : index
      %c0_15 = arith.constant 0 : index
      %14 = vector.load %arg5[%c0_14, %c0_15] : memref<1x512xf32, #tpu.memory_space<vmem>>, vector<1x512xf32>
      %c0_16 = arith.constant 0 : index
      %c0_17 = arith.constant 0 : index
      %15 = vector.load %arg6[%c0_16, %c0_17] : memref<16x512xbf16, #tpu.memory_space<vmem>>, vector<16x512xbf16>
      %16 = arith.extf %15 : vector<16x512xbf16> to vector<16x512xf32>
      %cst_18 = arith.constant dense<0.000000e+00> : vector<512xf32>
      %17 = vector.multi_reduction <add>, %12, %cst_18 [0] : vector<16x512xf32> to vector<512xf32>
      %18 = vector.shape_cast %17 : vector<512xf32> to vector<1x512xf32>
      %19 = arith.mulf %12, %12 : vector<16x512xf32>
      %cst_19 = arith.constant dense<0.000000e+00> : vector<512xf32>
      %20 = vector.multi_reduction <add>, %19, %cst_19 [0] : vector<16x512xf32> to vector<512xf32>
      %21 = vector.shape_cast %20 : vector<512xf32> to vector<1x512xf32>
      %cst_20 = arith.constant 1.250000e-01 : f32
      %22 = vector.broadcast %cst_20 : f32 to vector<1x512xf32>
      %23 = arith.mulf %18, %22 : vector<1x512xf32>
      %cst_21 = arith.constant 1.250000e-01 : f32
      %24 = vector.broadcast %cst_21 : f32 to vector<1x512xf32>
      %25 = arith.mulf %21, %24 : vector<1x512xf32>
      %26 = arith.mulf %23, %23 : vector<1x512xf32>
      %27 = arith.subf %25, %26 : vector<1x512xf32>
      %cst_22 = arith.constant 0.000000e+00 : f32
      %28 = vector.broadcast %cst_22 : f32 to vector<1x512xf32>
      %29 = arith.maximumf %27, %28 : vector<1x512xf32>
      %cst_23 = arith.constant 9.99999974E-6 : f32
      %30 = vector.broadcast %cst_23 : f32 to vector<1x512xf32>
      %31 = arith.addf %29, %30 : vector<1x512xf32>
      %32 = math.rsqrt %31 : vector<1x512xf32>
      %33 = arith.mulf %13, %32 : vector<1x512xf32>
      %34 = arith.mulf %23, %33 : vector<1x512xf32>
      %35 = arith.subf %14, %34 : vector<1x512xf32>
      %36 = vector.broadcast %33 : vector<1x512xf32> to vector<16x512xf32>
      %37 = arith.mulf %12, %36 : vector<16x512xf32>
      %38 = vector.broadcast %35 : vector<1x512xf32> to vector<16x512xf32>
      %39 = arith.addf %37, %38 : vector<16x512xf32>
      %40 = arith.addf %39, %16 : vector<16x512xf32>
      %cst_24 = arith.constant 0.000000e+00 : f32
      %41 = vector.broadcast %cst_24 : f32 to vector<16x512xf32>
      %42 = arith.maximumf %40, %41 : vector<16x512xf32>
      %43 = arith.truncf %42 : vector<16x512xf32> to vector<16x512xbf16>
      %c0_25 = arith.constant 0 : index
      %c0_26 = arith.constant 0 : index
      %44 = vector.load %arg7[%c0_25, %c0_26] : memref<16x512xbf16, #tpu.memory_space<vmem>>, vector<16x512xbf16>
      tpu.vector_store %arg7[%c0_25, %c0_26], %43 {strides = array<i32>} : memref<16x512xbf16, #tpu.memory_space<vmem>>, vector<16x512xbf16>,
    } else {
    }
    return
  }
  func.func @transform_0(%arg0: i32, %arg1: i32) -> (i32, i32) {
    %c0_i32 = arith.constant 0 : i32
    %c0_i32_0 = arith.constant 0 : i32
    return %c0_i32, %arg1 : i32, i32
  }
  func.func @transform_1(%arg0: i32, %arg1: i32) -> (i32, i32) {
    %c0_i32 = arith.constant 0 : i32
    return %arg1, %arg0 : i32, i32
  }
  func.func @transform_2(%arg0: i32, %arg1: i32) -> (i32, i32) {
    %c0_i32 = arith.constant 0 : i32
    %c0_i32_0 = arith.constant 0 : i32
    return %c0_i32, %arg0 : i32, i32
  }
  func.func @transform_3(%arg0: i32, %arg1: i32) -> (i32, i32) {
    %c0_i32 = arith.constant 0 : i32
    %c0_i32_0 = arith.constant 0 : i32
    return %c0_i32, %arg0 : i32, i32
  }
  func.func @transform_4(%arg0: i32, %arg1: i32) -> (i32, i32) {
    %c0_i32 = arith.constant 0 : i32
    %c0_i32_0 = arith.constant 0 : i32
    return %c0_i32, %arg0 : i32, i32
  }
  func.func @transform_5(%arg0: i32, %arg1: i32) -> (i32, i32) {
    %c0_i32 = arith.constant 0 : i32
    %c0_i32_0 = arith.constant 0 : i32
    return %c0_i32, %arg0 : i32, i32
  }
}

module attributes {stable_mosaic.version = 11 : i64} {
  func.func @kernel(%arg0: i32, %arg1: i32, %arg2: memref<16x512xbf16, #tpu.memory_space<vmem>>, %arg3: memref<512x256xbf16, #tpu.memory_space<vmem>>, %arg4: memref<1x256xf32, #tpu.memory_space<vmem>>, %arg5: memref<1x256xf32, #tpu.memory_space<vmem>>, %arg6: memref<16x256xbf16, #tpu.memory_space<vmem>>, %arg7: memref<16x256xf32, #tpu.memory_space<vmem>>) attributes {dimension_semantics = [#tpu.dimension_semantics<parallel>, #tpu.dimension_semantics<arbitrary>], iteration_bounds = array<i64: 1, 2>, scalar_prefetch = 0 : i64, scratch_operands = 1 : i64, tpu.core_type = #tpu.core_type<tc>, window_params = [{transform_indices = @transform_0, window_bounds = array<i64: 16, 512>}, {transform_indices = @transform_1, window_bounds = array<i64: 512, 256>}, {transform_indices = @transform_2, window_bounds = array<i64: 1, 256>}, {transform_indices = @transform_3, window_bounds = array<i64: 1, 256>}, {transform_indices = @transform_4, window_bounds = array<i64: 16, 256>}]} {
    %c0_i32 = arith.constant 0 : i32
    %0 = arith.cmpi eq, %arg1, %c0_i32 : i32
    %1 = arith.extui %0 : i1 to i32
    %c0_i32_0 = arith.constant 0 : i32
    %2 = arith.cmpi ne, %1, %c0_i32_0 : i32
    scf.if %2 {
      %cst_9 = arith.constant 0.000000e+00 : f32
      %12 = vector.broadcast %cst_9 : f32 to vector<16x256xf32>
      %c0_10 = arith.constant 0 : index
      %c0_11 = arith.constant 0 : index
      %13 = vector.load %arg7[%c0_10, %c0_11] : memref<16x256xf32, #tpu.memory_space<vmem>>, vector<16x256xf32>
      tpu.vector_store %arg7[%c0_10, %c0_11], %12 {strides = array<i32>} : memref<16x256xf32, #tpu.memory_space<vmem>>, vector<16x256xf32>,
    } else {
    }
    %c0 = arith.constant 0 : index
    %c0_1 = arith.constant 0 : index
    %3 = vector.load %arg7[%c0, %c0_1] : memref<16x256xf32, #tpu.memory_space<vmem>>, vector<16x256xf32>
    %c0_2 = arith.constant 0 : index
    %c0_3 = arith.constant 0 : index
    %4 = vector.load %arg2[%c0_2, %c0_3] : memref<16x512xbf16, #tpu.memory_space<vmem>>, vector<16x512xbf16>
    %c0_4 = arith.constant 0 : index
    %c0_5 = arith.constant 0 : index
    %5 = vector.load %arg3[%c0_4, %c0_5] : memref<512x256xbf16, #tpu.memory_space<vmem>>, vector<512x256xbf16>
    %cst = arith.constant dense<0.000000e+00> : vector<16x256xf32>
    %6 = tpu.matmul %4, %5, %cst {dimension_numbers = #tpu.dot_dimension_numbers<[1], [0], [0], [1], [0, 0, 1, 1], [], []>} : vector<16x512xbf16>, vector<512x256xbf16>, vector<16x256xf32> -> vector<16x256xf32>
    %7 = arith.addf %3, %6 : vector<16x256xf32>
    %c0_6 = arith.constant 0 : index
    %c0_7 = arith.constant 0 : index
    %8 = vector.load %arg7[%c0_6, %c0_7] : memref<16x256xf32, #tpu.memory_space<vmem>>, vector<16x256xf32>
    tpu.vector_store %arg7[%c0_6, %c0_7], %7 {strides = array<i32>} : memref<16x256xf32, #tpu.memory_space<vmem>>, vector<16x256xf32>,
    %c1_i32 = arith.constant 1 : i32
    %9 = arith.cmpi eq, %arg1, %c1_i32 : i32
    %10 = arith.extui %9 : i1 to i32
    %c0_i32_8 = arith.constant 0 : i32
    %11 = arith.cmpi ne, %10, %c0_i32_8 : i32
    scf.if %11 {
      %c0_9 = arith.constant 0 : index
      %c0_10 = arith.constant 0 : index
      %12 = vector.load %arg7[%c0_9, %c0_10] : memref<16x256xf32, #tpu.memory_space<vmem>>, vector<16x256xf32>
      %c0_11 = arith.constant 0 : index
      %c0_12 = arith.constant 0 : index
      %13 = vector.load %arg4[%c0_11, %c0_12] : memref<1x256xf32, #tpu.memory_space<vmem>>, vector<1x256xf32>
      %c0_13 = arith.constant 0 : index
      %c0_14 = arith.constant 0 : index
      %14 = vector.load %arg5[%c0_13, %c0_14] : memref<1x256xf32, #tpu.memory_space<vmem>>, vector<1x256xf32>
      %cst_15 = arith.constant dense<0.000000e+00> : vector<256xf32>
      %15 = vector.multi_reduction <add>, %12, %cst_15 [0] : vector<16x256xf32> to vector<256xf32>
      %16 = vector.shape_cast %15 : vector<256xf32> to vector<1x256xf32>
      %17 = arith.mulf %12, %12 : vector<16x256xf32>
      %cst_16 = arith.constant dense<0.000000e+00> : vector<256xf32>
      %18 = vector.multi_reduction <add>, %17, %cst_16 [0] : vector<16x256xf32> to vector<256xf32>
      %19 = vector.shape_cast %18 : vector<256xf32> to vector<1x256xf32>
      %cst_17 = arith.constant 1.250000e-01 : f32
      %20 = vector.broadcast %cst_17 : f32 to vector<1x256xf32>
      %21 = arith.mulf %16, %20 : vector<1x256xf32>
      %cst_18 = arith.constant 1.250000e-01 : f32
      %22 = vector.broadcast %cst_18 : f32 to vector<1x256xf32>
      %23 = arith.mulf %19, %22 : vector<1x256xf32>
      %24 = arith.mulf %21, %21 : vector<1x256xf32>
      %25 = arith.subf %23, %24 : vector<1x256xf32>
      %cst_19 = arith.constant 0.000000e+00 : f32
      %26 = vector.broadcast %cst_19 : f32 to vector<1x256xf32>
      %27 = arith.maximumf %25, %26 : vector<1x256xf32>
      %cst_20 = arith.constant 9.99999974E-6 : f32
      %28 = vector.broadcast %cst_20 : f32 to vector<1x256xf32>
      %29 = arith.addf %27, %28 : vector<1x256xf32>
      %30 = math.rsqrt %29 : vector<1x256xf32>
      %31 = arith.mulf %13, %30 : vector<1x256xf32>
      %32 = arith.mulf %21, %31 : vector<1x256xf32>
      %33 = arith.subf %14, %32 : vector<1x256xf32>
      %34 = vector.broadcast %31 : vector<1x256xf32> to vector<16x256xf32>
      %35 = arith.mulf %12, %34 : vector<16x256xf32>
      %36 = vector.broadcast %33 : vector<1x256xf32> to vector<16x256xf32>
      %37 = arith.addf %35, %36 : vector<16x256xf32>
      %cst_21 = arith.constant 0.000000e+00 : f32
      %38 = vector.broadcast %cst_21 : f32 to vector<16x256xf32>
      %39 = arith.maximumf %37, %38 : vector<16x256xf32>
      %40 = arith.truncf %39 : vector<16x256xf32> to vector<16x256xbf16>
      %c0_22 = arith.constant 0 : index
      %c0_23 = arith.constant 0 : index
      %41 = vector.load %arg6[%c0_22, %c0_23] : memref<16x256xbf16, #tpu.memory_space<vmem>>, vector<16x256xbf16>
      tpu.vector_store %arg6[%c0_22, %c0_23], %40 {strides = array<i32>} : memref<16x256xbf16, #tpu.memory_space<vmem>>, vector<16x256xbf16>,
    } else {
    }
    return
  }
  func.func @transform_0(%arg0: i32, %arg1: i32) -> (i32, i32) {
    %c0_i32 = arith.constant 0 : i32
    %c0_i32_0 = arith.constant 0 : i32
    return %c0_i32, %arg1 : i32, i32
  }
  func.func @transform_1(%arg0: i32, %arg1: i32) -> (i32, i32) {
    %c0_i32 = arith.constant 0 : i32
    return %arg1, %arg0 : i32, i32
  }
  func.func @transform_2(%arg0: i32, %arg1: i32) -> (i32, i32) {
    %c0_i32 = arith.constant 0 : i32
    %c0_i32_0 = arith.constant 0 : i32
    return %c0_i32, %arg0 : i32, i32
  }
  func.func @transform_3(%arg0: i32, %arg1: i32) -> (i32, i32) {
    %c0_i32 = arith.constant 0 : i32
    %c0_i32_0 = arith.constant 0 : i32
    return %c0_i32, %arg0 : i32, i32
  }
  func.func @transform_4(%arg0: i32, %arg1: i32) -> (i32, i32) {
    %c0_i32 = arith.constant 0 : i32
    %c0_i32_0 = arith.constant 0 : i32
    return %c0_i32, %arg0 : i32, i32
  }
}

</mosaic_0001>

<bundles_post_ra>
// kernel: icnet_backbone_forward.55
= control target key start
LH: loop header
LB: loop body
LE: loop exit
PB: predicated region body
PF: predicated region fallthrough
CT: control target
= control target key end

     0   :  { %s920_s1 = inlined_call_operand.vmem [shape: bf16[128,128], index: 1, kind: input, shape index: {}]   ;;  %s921_s0 = inlined_call_operand.vmem [shape: bf16[128,128], index: 0, kind: input, shape index: {}]   ;;  %s922_s2 = inlined_call_operand.vmem [shape: f32[1,128], index: 2, kind: input, shape index: {}]   ;;  %s923_s3 = inlined_call_operand.vmem [shape: f32[1,128], index: 3, kind: input, shape index: {}]   ;;  %s924_s4 = inlined_call_operand.vmem [shape: bf16[128,128], index: 4, kind: output, shape index: {}]  }
   0x1   :  { %v703_v0 = vld [vmem:[%s920_s1] sm:$0xff]   ;;  %v704_v1 = vld [vmem:[%s920_s1 + $0x8] sm:$0xff]   ;;  %v705_v2 = vld [vmem:[%s920_s1 + $0x10] sm:$0xff]  }
   0x2   :  { %655 = vmatprep.subr.bf16.mxu0 %v703_v0  ;;  %687 = vmatprep.subr.bf16.mxu1 %v703_v0  ;;  %v706_v3 = vld [vmem:[%s920_s1 + $0x18] sm:$0xff]   ;;  %v711_v4 = vld [vmem:[%s921_s0] sm:$0xff]   ;;  %v708_v7 = vld [vmem:[%s920_s1 + $0x28] sm:$0xff]  }
   0x3   :  { %656 = vmatpush3.bf16.msra.mxu0 %v703_v0  ;;  %695 = vmatpush3.bf16.msra.mxu1 %v703_v0  ;;  %v707_v5 = vld [vmem:[%s920_s1 + $0x20] sm:$0xff]   ;;  %v709_v8 = vld [vmem:[%s920_s1 + $0x30] sm:$0xff]   ;;  %v710_v9 = vld [vmem:[%s920_s1 + $0x38] sm:$0xff]  }
   0x4   :  { %657 = vmatprep.subr.bf16.mxu0 %v704_v1  ;;  %688 = vmatprep.subr.bf16.mxu1 %v704_v1  ;;  %v715_v6 = vld [vmem:[%s921_s0 + $0x20] sm:$0xff]   ;;  %v712_v10 = vld [vmem:[%s921_s0 + $0x8] sm:$0xff]   ;;  %v713_v12 = vld [vmem:[%s921_s0 + $0x10] sm:$0xff]  }
   0x5   :  { %671 = vmatprep.mubr.bf16.mxu0 %v711_v4  ;;  %679 = vmatprep.mubr.bf16.mxu1 %v715_v6  ;;  %v716_v11 = vld [vmem:[%s921_s0 + $0x28] sm:$0xff]   ;;  %v717_v13 = vld [vmem:[%s921_s0 + $0x30] sm:$0xff]   ;;  %v714_v14 = vld [vmem:[%s921_s0 + $0x18] sm:$0xff]  }
   0x6   :  { %v718_v15 = vld [vmem:[%s921_s0 + $0x38] sm:$0xff]  }
   0x7   :  { %658 = vmatpush3.bf16.msra.mxu0 %v704_v1  ;;  %696 = vmatpush3.bf16.msra.mxu1 %v704_v1 }
   0x8   :  { %659 = vmatprep.subr.bf16.mxu0 %v705_v2  ;;  %689 = vmatprep.subr.bf16.mxu1 %v705_v2 }
   0xb   :  { %660 = vmatpush3.bf16.msra.mxu0 %v705_v2  ;;  %697 = vmatpush3.bf16.msra.mxu1 %v705_v2 }
   0xc   :  { %661 = vmatprep.subr.bf16.mxu0 %v706_v3  ;;  %690 = vmatprep.subr.bf16.mxu1 %v706_v3 }
   0xf   :  { %662 = vmatpush3.bf16.msra.mxu0 %v706_v3  ;;  %698 = vmatpush3.bf16.msra.mxu1 %v706_v3 }
  0x10   :  { %663 = vmatprep.subr.bf16.mxu0 %v707_v5  ;;  %691 = vmatprep.subr.bf16.mxu1 %v707_v5 }
  0x13   :  { %664 = vmatpush3.bf16.msra.mxu0 %v707_v5  ;;  %699 = vmatpush3.bf16.msra.mxu1 %v707_v5 }
  0x14   :  { %665 = vmatprep.subr.bf16.mxu0 %v708_v7  ;;  %692 = vmatprep.subr.bf16.mxu1 %v708_v7 }
  0x17   :  { %666 = vmatpush3.bf16.msra.mxu0 %v708_v7  ;;  %700 = vmatpush3.bf16.msra.mxu1 %v708_v7 }
  0x18   :  { %667 = vmatprep.subr.bf16.mxu0 %v709_v8  ;;  %693 = vmatprep.subr.bf16.mxu1 %v709_v8 }
  0x1b   :  { %668 = vmatpush3.bf16.msra.mxu0 %v709_v8  ;;  %701 = vmatpush3.bf16.msra.mxu1 %v709_v8 }
  0x1c   :  { %669 = vmatprep.subr.bf16.mxu0 %v710_v9  ;;  %694 = vmatprep.subr.bf16.mxu1 %v710_v9 }
  0x1f   :  { %670 = vmatpush3.bf16.msra.mxu0 %v710_v9  ;;  %702 = vmatpush3.bf16.msra.mxu1 %v710_v9 }
  0x22   :  { %672 = vmatmul.mubr.bf16.vlgmr.msra.gmra.mrb[0].mxu0 %v712_v10  ;;  %680 = vmatmul.mubr.bf16.vlgmr.msra.gmra.mrb[0].mxu1 %v716_v11 }
  0x23   :  { %675 = vmatprep.mubr.bf16.mxu0 %v713_v12  ;;  %683 = vmatprep.mubr.bf16.mxu1 %v717_v13 }
  0x2a   :  { %676 = vmatmul.mubr.bf16.gmra.mrb[4].mxu0 %v714_v14  ;;  %684 = vmatmul.mubr.bf16.gmra.mrb[4].mxu1 %v718_v15 }
  0xf5   :  { %v794_v16 = vpop.f32.mrb[0].mxu0  ;;  %v796_v17 = vpop.f32.mrb[0].mxu1 }
  0xf6   :  { %v798_v18 = vpop.f32.mrb[1].mxu0  ;;  %v800_v19 = vpop.f32.mrb[1].mxu1  ;;  %v355_v27 = vmul.f32 %v794_v16, %v794_v16  ;;  %v363_v59 = vmul.f32 %v796_v17, %v796_v17 }
  0xf7   :  { %v802_v20 = vpop.f32.mrb[2].mxu0  ;;  %v804_v21 = vpop.f32.mrb[2].mxu1  ;;  %v353_v24 = vmul.f32 %v798_v18, %v798_v18  ;;  %v361_v53 = vmul.f32 %v800_v19, %v800_v19 }
  0xf8   :  { %v806_v22 = vpop.f32.mrb[3].mxu0  ;;  %v808_v23 = vpop.f32.mrb[3].mxu1  ;;  %v356_v30 = vmul.f32 %v802_v20, %v802_v20  ;;  %v364_v62 = vmul.f32 %v804_v21, %v804_v21 }
  0xf9   :  { %v332_v25 = vadd.f32 %v806_v22, %v798_v18  ;;  %v354_v26 = vmul.f32 %v806_v22, %v806_v22  ;;  %v362_v58 = vmul.f32 %v808_v23, %v808_v23 }
  0xfb   :  { %v333_v28 = vadd.f32 %v794_v16, %v332_v25  ;;  %v369_v29 = vadd.f32 %v354_v26, %v353_v24 }
  0xfd   :  { %v370_v31 = vadd.f32 %v369_v29, %v355_v27  ;;  %v821_v32 = vpop.f32.mrb[4].mxu0  ;;  %v334_v33 = vadd.f32 %v802_v20, %v333_v28  ;;  %v824_v34 = vpop.f32.mrb[4].mxu1 }
  0xfe   :  { %v826_v35 = vpop.f32.mrb[5].mxu0  ;;  %v828_v36 = vpop.f32.mrb[5].mxu1  ;;  %v359_v47 = vmul.f32 %v821_v32, %v821_v32  ;;  %v367_v7 = vmul.f32 %v824_v34, %v824_v34 }
  0xff   :  { %v335_v37 = vadd.f32 %v334_v33, %v826_v35  ;;  %v357_v38 = vmul.f32 %v826_v35, %v826_v35  ;;  %v371_v39 = vadd.f32 %v370_v31, %v356_v30  ;;  %v833_v40 = vpop.f32.mrb[6].mxu0  ;;  %v835_v41 = vpop.f32.mrb[6].mxu1  ;;  %v365_v1 = vmul.f32 %v828_v36, %v828_v36 }
 0x100   :  { %v837_v42 = vpop.f32.mrb[7].mxu0  ;;  %v839_v43 = vpop.f32.mrb[7].mxu1  ;;  %v360_v50 = vmul.f32 %v833_v40, %v833_v40  ;;  %v368_v10 = vmul.f32 %v835_v41, %v835_v41 }
 0x101   :  { %v372_v44 = vadd.f32 %v371_v39, %v357_v38  ;;  %v336_v45 = vadd.f32 %v335_v37, %v837_v42  ;;  %v358_v46 = vmul.f32 %v837_v42, %v837_v42  ;;  %v366_v6 = vmul.f32 %v839_v43, %v839_v43 }
 0x103   :  { %v337_v48 = vadd.f32 %v821_v32, %v336_v45  ;;  %v373_v49 = vadd.f32 %v372_v44, %v358_v46 }
 0x105   :  { %v374_v51 = vadd.f32 %v373_v49, %v359_v47  ;;  %v338_v52 = vadd.f32 %v833_v40, %v337_v48  ;;  %v401_v48 = vlaneseq }
 0x107   :  { %v339_v54 = vadd.f32 %v338_v52, %v800_v19  ;;  %v375_v55 = vadd.f32 %v374_v51, %v360_v50  ;;  %v402_v49 = vshrl.u32 %v401_v48, 7  ;;  %v330_v50 = vld [vmem:[%s922_s2] sm:$0x1] }
 0x109   :  { %v376_v56 = vadd.f32 %v375_v55, %v361_v53  ;;  %v340_v57 = vadd.f32 %v339_v54, %v808_v23  ;;  %v403_v51 = vsub.s32 0, %v402_v49  ;;  %v331_v54 = vld [vmem:[%s923_s3] sm:$0x1] }
 0x10b   :  { %v341_v60 = vadd.f32 %v796_v17, %v340_v57  ;;  %v377_v61 = vadd.f32 %v376_v56, %v362_v58 }
 0x10d   :  { %v378_v63 = vadd.f32 %v377_v61, %v363_v59  ;;  %v342_v0 = vadd.f32 %v804_v21, %v341_v60 }
 0x10f   :  { %v343_v2 = vadd.f32 %v342_v0, %v828_v36  ;;  %v379_v3 = vadd.f32 %v378_v63, %v364_v62 }
 0x111   :  { %v380_v4 = vadd.f32 %v379_v3, %v365_v1  ;;  %v344_v5 = vadd.f32 %v343_v2, %v839_v43 }
 0x113   :  { %v345_v8 = vadd.f32 %v824_v34, %v344_v5  ;;  %v381_v9 = vadd.f32 %v380_v4, %v366_v6 }
 0x115   :  { %v346_v11 = vadd.f32 %v835_v41, %v345_v8  ;;  %v382_v12 = vadd.f32 %v381_v9, %v367_v7 }
 0x117   :  { %v347_v13 = vrot.slane %v346_v11, 4  ;;  %v383_v14 = vadd.f32 %v382_v12, %v368_v10 }
 0x119   :  { %v348_v15 = vadd.f32 %v347_v13, %v346_v11  ;;  %v384_v24 = vrot.slane %v383_v14, 4 }
 0x11b   :  { %v349_v25 = vrot.slane %v348_v15, 2  ;;  %v385_v26 = vadd.f32 %v384_v24, %v383_v14 }
 0x11d   :  { %v350_v27 = vadd.f32 %v349_v25, %v348_v15  ;;  %v386_v28 = vrot.slane %v385_v26, 2 }
 0x11f   :  { %v351_v29 = vrot.slane %v350_v27, 1  ;;  %v387_v30 = vadd.f32 %v386_v28, %v385_v26 }
 0x121   :  { %v352_v31 = vadd.f32 %v351_v29, %v350_v27  ;;  %v388_v33 = vrot.slane %v387_v30, 1 }
 0x123   :  { %v389_v37 = vadd.f32 %v388_v33, %v387_v30  ;;  %v390_v38 = vmul.f32 0.0078125, %v352_v31 }
 0x125   :  { %v391_v39 = vmul.f32 0.0078125, %v389_v37  ;;  %v392_v44 = vmul.f32 %v390_v38, %v390_v38 }
 0x127   :  { %v393_v45 = vsub.f32 %v391_v39, %v392_v44 }
 0x129   :  { %v394_v46 = vmax.f32 %v393_v45, 0.0 }
 0x12b   :  { %v395_v47 = vadd.f32 1e-05, %v394_v46 }
 0x12d   :  { %719 = vrsqrt.f32 %v395_v47 }
 0x137   :  { %v720_v52 = vpop.eup %719 }
 0x138   :  { %v397_v53 = vmul.f32 %v720_v52, %v330_v50 }
 0x13a   :  { %v398_v55 = vmul.f32 %v397_v53, %v390_v38  ;;  %v404_v56 = vrot.slane %v397_v53, %v403_v51 }
 0x13c   :  { %v399_v57 = vsub.f32 %v331_v54, %v398_v55  ;;  %v406_v58 = vmul.f32 %v404_v56, %v798_v18  ;;  %v407_v59 = vmul.f32 %v404_v56, %v806_v22  ;;  %v408_v60 = vmul.f32 %v794_v16, %v404_v56 }
 0x13d   :  { %v409_v61 = vmul.f32 %v802_v20, %v404_v56  ;;  %v410_v62 = vmul.f32 %v404_v56, %v826_v35  ;;  %v411_v63 = vmul.f32 %v404_v56, %v837_v42  ;;  %v412_v0 = vmul.f32 %v821_v32, %v404_v56 }
 0x13e   :  { %v413_v1 = vmul.f32 %v833_v40, %v404_v56  ;;  %v414_v2 = vmul.f32 %v404_v56, %v800_v19  ;;  %v415_v3 = vmul.f32 %v404_v56, %v808_v23  ;;  %v416_v18 = vmul.f32 %v796_v17, %v404_v56 }
 0x13f   :  { %v417_v22 = vmul.f32 %v804_v21, %v404_v56  ;;  %v418_v16 = vmul.f32 %v404_v56, %v828_v36  ;;  %v419_v20 = vmul.f32 %v404_v56, %v839_v43  ;;  %v420_v35 = vmul.f32 %v824_v34, %v404_v56 }
 0x140   :  { %v421_v42 = vmul.f32 %v835_v41, %v404_v56  ;;  %v426_v4 = vrot.slane %v399_v57, %v403_v51 }
 0x142   :  { %v428_v32 = vadd.f32 %v426_v4, %v406_v58  ;;  %v429_v5 = vadd.f32 %v426_v4, %v407_v59  ;;  %v430_v40 = vadd.f32 %v426_v4, %v408_v60  ;;  %v431_v6 = vadd.f32 %v426_v4, %v409_v61 }
 0x143   :  { %v432_v19 = vadd.f32 %v426_v4, %v410_v62  ;;  %v433_v7 = vadd.f32 %v426_v4, %v411_v63  ;;  %v434_v23 = vadd.f32 %v426_v4, %v412_v0  ;;  %v435_v8 = vadd.f32 %v426_v4, %v413_v1 }
 0x144   :  { %v436_v17 = vadd.f32 %v426_v4, %v414_v2  ;;  %v437_v9 = vadd.f32 %v426_v4, %v415_v3  ;;  %v438_v21 = vadd.f32 %v426_v4, %v416_v18  ;;  %v439_v10 = vadd.f32 %v426_v4, %v417_v22 }
 0x145   :  { %v440_v36 = vadd.f32 %v426_v4, %v418_v16  ;;  %v441_v11 = vadd.f32 %v426_v4, %v419_v20  ;;  %v442_v43 = vadd.f32 %v426_v4, %v420_v35  ;;  %v443_v12 = vadd.f32 %v426_v4, %v421_v42 }
 0x146   :  { %v444_v34 = vmax.f32 %v428_v32, 0.0  ;;  %v445_v13 = vmax.f32 %v429_v5, 0.0  ;;  %v446_v41 = vmax.f32 %v430_v40, 0.0  ;;  %v447_v14 = vmax.f32 %v431_v6, 0.0 }
 0x147   :  { %v448_v15 = vmax.f32 %v432_v19, 0.0  ;;  %v449_v24 = vmax.f32 %v433_v7, 0.0  ;;  %v450_v25 = vmax.f32 %v434_v23, 0.0  ;;  %v451_v26 = vmax.f32 %v435_v8, 0.0 }
 0x148   :  { %v452_v27 = vmax.f32 %v436_v17, 0.0  ;;  %v453_v28 = vmax.f32 %v437_v9, 0.0  ;;  %v454_v29 = vmax.f32 %v438_v21, 0.0  ;;  %v455_v30 = vmax.f32 %v439_v10, 0.0 }
 0x149   :  { %v456_v31 = vmax.f32 %v440_v36, 0.0  ;;  %v457_v33 = vmax.f32 %v441_v11, 0.0  ;;  %v458_v37 = vmax.f32 %v442_v43, 0.0  ;;  %v459_v38 = vmax.f32 %v443_v12, 0.0 }
 0x14a   :  { %v595_v39 = vpack.c.bf16 %v445_v13, %v444_v34  ;;  %v600_v44 = vpack.c.bf16 %v447_v14, %v446_v41  ;;  %v605_v45 = vpack.c.bf16 %v449_v24, %v448_v15  ;;  %v610_v46 = vpack.c.bf16 %v451_v26, %v450_v25 }
 0x14b   :  { %v615_v47 = vpack.c.bf16 %v453_v28, %v452_v27  ;;  %v620_v48 = vpack.c.bf16 %v455_v30, %v454_v29  ;;  %v625_v49 = vpack.c.bf16 %v457_v33, %v456_v31  ;;  %v630_v50 = vpack.c.bf16 %v459_v38, %v458_v37 }
 0x14c   :  { %596 = vst [vmem:[%s924_s4] sm:$0xff] %v595_v39   ;;  %632 = vst [vmem:[%s924_s4 + $0x8] sm:$0xff] %v600_v44  }
 0x14d   :  { %633 = vst [vmem:[%s924_s4 + $0x10] sm:$0xff] %v605_v45   ;;  %634 = vst [vmem:[%s924_s4 + $0x18] sm:$0xff] %v610_v46  }
 0x14e   :  { %635 = vst [vmem:[%s924_s4 + $0x20] sm:$0xff] %v615_v47   ;;  %636 = vst [vmem:[%s924_s4 + $0x28] sm:$0xff] %v620_v48  }
 0x14f   :  { %637 = vst [vmem:[%s924_s4 + $0x30] sm:$0xff] %v625_v49   ;;  %638 = vst [vmem:[%s924_s4 + $0x38] sm:$0xff] %v630_v50  }

// kernel: icnet_backbone_forward.56
= control target key start
LH: loop header
LB: loop body
LE: loop exit
PB: predicated region body
PF: predicated region fallthrough
CT: control target
= control target key end

     0   :  { %s1439_s1 = inlined_call_operand.vmem [shape: bf16[384,128], index: 1, kind: input, shape index: {}]   ;;  %s1440_s0 = inlined_call_operand.vmem [shape: bf16[128,384], index: 0, kind: input, shape index: {}]   ;;  %s1441_s2 = inlined_call_operand.vmem [shape: f32[1,128], index: 2, kind: input, shape index: {}]   ;;  %s1442_s3 = inlined_call_operand.vmem [shape: f32[1,128], index: 3, kind: input, shape index: {}]   ;;  %s1443_s4 = inlined_call_operand.vmem [shape: bf16[128,128], index: 4, kind: output, shape index: {}]  }
   0x1   :  { %v1104_v0 = vld [vmem:[%s1439_s1 + $0x40] sm:$0xff]   ;;  %v1107_v3 = vld [vmem:[%s1439_s1 + $0x48] sm:$0xff]   ;;  %v1110_v6 = vld [vmem:[%s1439_s1 + $0x50] sm:$0xff]  }
   0x2   :  { %v1105_v1 = vld [vmem:[%s1439_s1] sm:$0xff]   ;;  %992 = vmatprep.subr.bf16.mxu0 %v1104_v0  ;;  %v1108_v4 = vld [vmem:[%s1439_s1 + $0x8] sm:$0xff]   ;;  %v1111_v7 = vld [vmem:[%s1439_s1 + $0x10] sm:$0xff]  }
   0x3   :  { %v1106_v2 = vld [vmem:[%s1439_s1 + $0x80] sm:$0xff]   ;;  %993 = vmatpush3.bf16.msra.mxu0 %v1105_v1  ;;  %v1109_v5 = vld [vmem:[%s1439_s1 + $0x88] sm:$0xff]   ;;  %v1112_v8 = vld [vmem:[%s1439_s1 + $0x90] sm:$0xff]  }
   0x4   :  { %1072 = vmatprep.subr.bf16.mxu1 %v1106_v2  ;;  %994 = vmatprep.subr.bf16.mxu0 %v1107_v3  ;;  %v1113_v9 = vld [vmem:[%s1439_s1 + $0x58] sm:$0xff]   ;;  %v1116_v12 = vld [vmem:[%s1439_s1 + $0x60] sm:$0xff]   ;;  %v1119_v15 = vld [vmem:[%s1439_s1 + $0x68] sm:$0xff]  }
   0x5   :  { %1073 = vmatpush3.bf16.msra.mxu1 %v1106_v2  ;;  %v1114_v10 = vld [vmem:[%s1439_s1 + $0x18] sm:$0xff]   ;;  %v1118_v13 = vld [vmem:[%s1439_s1 + $0xa0] sm:$0xff]   ;;  %v1121_v16 = vld [vmem:[%s1439_s1 + $0xa8] sm:$0xff]  }
   0x6   :  { %1074 = vmatprep.subr.bf16.mxu1 %v1109_v5  ;;  %v1115_v11 = vld [vmem:[%s1439_s1 + $0x98] sm:$0xff]   ;;  %v1117_v14 = vld [vmem:[%s1439_s1 + $0x20] sm:$0xff]   ;;  %v1120_v17 = vld [vmem:[%s1439_s1 + $0x28] sm:$0xff]  }
   0x7   :  { %995 = vmatpush3.bf16.msra.mxu0 %v1108_v4  ;;  %v1122_v18 = vld [vmem:[%s1439_s1 + $0x70] sm:$0xff]   ;;  %v1125_v21 = vld [vmem:[%s1439_s1 + $0x78] sm:$0xff]   ;;  %v1128_v26 = vld [vmem:[%s1440_s0] ss:$12 sps:$4 sm:$0xff]  }
   0x8   :  { %996 = vmatprep.subr.bf16.mxu0 %v1110_v6  ;;  %v1123_v19 = vld [vmem:[%s1439_s1 + $0x30] sm:$0xff]   ;;  %v1127_v22 = vld [vmem:[%s1439_s1 + $0xb8] sm:$0xff]   ;;  %v1132_v28 = vld [vmem:[%s1440_s0 + $0x20] ss:$12 sps:$4 sm:$0xff]  }
   0x9   :  { %1075 = vmatpush3.bf16.msra.mxu1 %v1109_v5  ;;  %v1124_v20 = vld [vmem:[%s1439_s1 + $0xb0] sm:$0xff]   ;;  %v1126_v25 = vld [vmem:[%s1439_s1 + $0x38] sm:$0xff]   ;;  %v1148_v36 = vld [vmem:[%s1440_s0 + $0x80] ss:$12 sps:$4 sm:$0xff]  }
   0xa   :  { %1076 = vmatprep.subr.bf16.mxu1 %v1112_v8  ;;  %v1130_v23 = vld [vmem:[%s1440_s0 + $0x4] ss:$12 sps:$4 sm:$0xff]   ;;  %v1131_v24 = vld [vmem:[%s1440_s0 + $0x8] ss:$12 sps:$4 sm:$0xff]   ;;  %v1141_v35 = vld [vmem:[%s1440_s0 + $0x4c] ss:$12 sps:$4 sm:$0xff]  }
   0xb   :  { %997 = vmatpush3.bf16.msra.mxu0 %v1111_v7  ;;  %438 = vmatprep.mubr.bf16.mxu0 %v1130_v23  ;;  %v1133_v27 = vld [vmem:[%s1440_s0 + $0x1c] ss:$12 sps:$4 sm:$0xff]   ;;  %v1139_v29 = vld [vmem:[%s1440_s0 + $0x38] ss:$12 sps:$4 sm:$0xff]   ;;  %v1136_v31 = vld [vmem:[%s1440_s0 + $0x34] ss:$12 sps:$4 sm:$0xff]  }
   0xc   :  { %998 = vmatprep.subr.bf16.mxu0 %v1113_v9  ;;  %1088 = vmatprep.mubr.bf16.mxu1 %v1131_v24  ;;  %v1135_v30 = vld [vmem:[%s1440_s0 + $0x18] ss:$12 sps:$4 sm:$0xff]   ;;  %v1140_v32 = vld [vmem:[%s1440_s0 + $0x50] ss:$12 sps:$4 sm:$0xff]   ;;  %v1147_v33 = vld [vmem:[%s1440_s0 + $0x68] ss:$12 sps:$4 sm:$0xff]  }
   0xd   :  { %1077 = vmatpush3.bf16.msra.mxu1 %v1112_v8  ;;  %v1138_v34 = vld [vmem:[%s1440_s0 + $0x30] ss:$12 sps:$4 sm:$0xff]   ;;  %v1155_v37 = vld [vmem:[%s1440_s0 + $0x98] ss:$12 sps:$4 sm:$0xff]   ;;  %v1143_v38 = vld [vmem:[%s1440_s0 + $0x48] ss:$12 sps:$4 sm:$0xff]  }
   0xe   :  { %1078 = vmatprep.subr.bf16.mxu1 %v1115_v11  ;;  %v1144_v39 = vld [vmem:[%s1440_s0 + $0x64] ss:$12 sps:$4 sm:$0xff]   ;;  %v1146_v41 = vld [vmem:[%s1440_s0 + $0x60] ss:$12 sps:$4 sm:$0xff]   ;;  %v1149_v42 = vld [vmem:[%s1440_s0 + $0x7c] ss:$12 sps:$4 sm:$0xff]  }
   0xf   :  { %999 = vmatpush3.bf16.msra.mxu0 %v1114_v10  ;;  %v1156_v40 = vld [vmem:[%s1440_s0 + $0xb0] ss:$12 sps:$4 sm:$0xff]   ;;  %v1151_v43 = vld [vmem:[%s1440_s0 + $0x78] ss:$12 sps:$4 sm:$0xff]   ;;  %v1152_v44 = vld [vmem:[%s1440_s0 + $0x94] ss:$12 sps:$4 sm:$0xff]  }
  0x10   :  { %1000 = vmatprep.subr.bf16.mxu0 %v1116_v12  ;;  %v1154_v45 = vld [vmem:[%s1440_s0 + $0x90] ss:$12 sps:$4 sm:$0xff]   ;;  %v1157_v46 = vld [vmem:[%s1440_s0 + $0xac] ss:$12 sps:$4 sm:$0xff]   ;;  %v1159_v47 = vld [vmem:[%s1440_s0 + $0xa8] ss:$12 sps:$4 sm:$0xff]  }
  0x11   :  { %1079 = vmatpush3.bf16.msra.mxu1 %v1115_v11 }
  0x12   :  { %1080 = vmatprep.subr.bf16.mxu1 %v1118_v13 }
  0x13   :  { %1001 = vmatpush3.bf16.msra.mxu0 %v1117_v14 }
  0x14   :  { %1002 = vmatprep.subr.bf16.mxu0 %v1119_v15 }
  0x15   :  { %1081 = vmatpush3.bf16.msra.mxu1 %v1118_v13 }
  0x16   :  { %1082 = vmatprep.subr.bf16.mxu1 %v1121_v16 }
  0x17   :  { %1003 = vmatpush3.bf16.msra.mxu0 %v1120_v17 }
  0x18   :  { %1004 = vmatprep.subr.bf16.mxu0 %v1122_v18 }
  0x19   :  { %1083 = vmatpush3.bf16.msra.mxu1 %v1121_v16 }
  0x1a   :  { %1084 = vmatprep.subr.bf16.mxu1 %v1124_v20 }
  0x1b   :  { %1005 = vmatpush3.bf16.msra.mxu0 %v1123_v19 }
  0x1c   :  { %1006 = vmatprep.subr.bf16.mxu0 %v1125_v21 }
  0x1d   :  { %1085 = vmatpush3.bf16.msra.mxu1 %v1124_v20 }
  0x1e   :  { %1086 = vmatprep.subr.bf16.mxu1 %v1127_v22 }
  0x1f   :  { %1007 = vmatpush3.bf16.msra.mxu0 %v1126_v25 }
  0x21   :  { %1087 = vmatpush3.bf16.msra.mxu1 %v1127_v22 }
  0x22   :  { %439 = vmatmul.mubr.bf16.vlgmr.msra.gmra.mrb[0].mxu0 %v1128_v26 }
  0x23   :  { %446 = vmatprep.mubr.bf16.mxu0 %v1133_v27 }
  0x24   :  { %1089 = vmatmul.mubr.bf16.vlgmr.msra.gmra.mrb[0].mxu1 %v1132_v28 }
  0x25   :  { %1092 = vmatprep.mubr.bf16.mxu1 %v1139_v29 }
  0x2a   :  { %447 = vmatmul.mubr.bf16.gmra.mrb[4].mxu0 %v1135_v30 }
  0x2b   :  { %454 = vmatprep.mubr.bf16.mxu0 %v1136_v31 }
  0x2c   :  { %1093 = vmatmul.mubr.bf16.gmra.mrb[4].mxu1 %v1140_v32 }
  0x2d   :  { %1096 = vmatprep.mubr.bf16.mxu1 %v1147_v33 }
  0x32   :  { %455 = vmatmul.mubr.bf16.gmra.mrb[8].mxu0 %v1138_v34 }
  0x33   :  { %462 = vmatprep.mubr.bf16.mxu0 %v1141_v35 }
  0x34   :  { %1097 = vmatmul.mubr.bf16.gmra.mrb[8].mxu1 %v1148_v36 }
  0x35   :  { %1100 = vmatprep.mubr.bf16.mxu1 %v1155_v37 }
  0x3a   :  { %463 = vmatmul.mubr.bf16.gmra.mrb[12].mxu0 %v1143_v38 }
  0x3b   :  { %470 = vmatprep.mubr.bf16.mxu0 %v1144_v39 }
  0x3c   :  { %1101 = vmatmul.mubr.bf16.gmra.mrb[12].mxu1 %v1156_v40 }
  0x42   :  { %471 = vmatmul.mubr.bf16.gmra.mrb[16].mxu0 %v1146_v41 }
  0x43   :  { %478 = vmatprep.mubr.bf16.mxu0 %v1149_v42 }
  0x4a   :  { %479 = vmatmul.mubr.bf16.gmra.mrb[20].mxu0 %v1151_v43 }
  0x4b   :  { %486 = vmatprep.mubr.bf16.mxu0 %v1152_v44 }
  0x52   :  { %487 = vmatmul.mubr.bf16.gmra.mrb[24].mxu0 %v1154_v45 }
  0x53   :  { %494 = vmatprep.mubr.bf16.mxu0 %v1157_v46 }
  0x5a   :  { %495 = vmatmul.mubr.bf16.gmra.mrb[28].mxu0 %v1159_v47 }
  0xf5   :  { %v1008_v48 = vpop.f32.mrb[0].mxu0 }
  0xf6   :  { %v1009_v49 = vpop.f32.mrb[1].mxu0 }
  0xf7   :  { %v1010_v50 = vadd.f32 %v1009_v49, %v1008_v48  ;;  %v1011_v51 = vpop.f32.mrb[2].mxu0  ;;  %v1090_v52 = vpop.f32.mrb[0].mxu1 }
  0xf8   :  { %v1012_v53 = vpop.f32.mrb[3].mxu0  ;;  %v537_v54 = vpop.f32.mrb[1].mxu1 }
  0xf9   :  { %v1013_v55 = vadd.f32 %v1012_v53, %v1011_v51  ;;  %v1331_v56 = vadd.f32 %v1010_v50, %v537_v54  ;;  %v1091_v57 = vpop.f32.mrb[2].mxu1 }
  0xfa   :  { %v540_v58 = vpop.f32.mrb[3].mxu1 }
  0xfb   :  { %v1333_v59 = vadd.f32 %v1013_v55, %v540_v58  ;;  %v674_v8 = vmul.f32 %v1331_v56, %v1331_v56 }
  0xfd   :  { %v1014_v60 = vpop.f32.mrb[4].mxu0  ;;  %v675_v3 = vmul.f32 %v1333_v59, %v1333_v59  ;;  %v653_v9 = vadd.f32 %v1333_v59, %v1331_v56 }
  0xfe   :  { %v1015_v61 = vpop.f32.mrb[5].mxu0 }
  0xff   :  { %v1016_v62 = vadd.f32 %v1015_v61, %v1014_v60  ;;  %v1017_v63 = vpop.f32.mrb[6].mxu0  ;;  %v1094_v0 = vpop.f32.mrb[4].mxu1  ;;  %v690_v12 = vadd.f32 %v675_v3, %v674_v8 }
 0x100   :  { %v1018_v1 = vpop.f32.mrb[7].mxu0  ;;  %v553_v2 = vpop.f32.mrb[5].mxu1 }
 0x101   :  { %v1337_v4 = vadd.f32 %v1090_v52, %v1016_v62  ;;  %v1019_v5 = vadd.f32 %v1018_v1, %v1017_v63  ;;  %v1095_v6 = vpop.f32.mrb[6].mxu1 }
 0x102   :  { %v556_v7 = vpop.f32.mrb[7].mxu1 }
 0x103   :  { %v676_v10 = vmul.f32 %v1337_v4, %v1337_v4  ;;  %v1345_v11 = vadd.f32 %v1091_v57, %v1019_v5  ;;  %v654_v13 = vadd.f32 %v653_v9, %v1337_v4 }
 0x105   :  { %v1020_v14 = vpop.f32.mrb[8].mxu0  ;;  %v691_v16 = vadd.f32 %v690_v12, %v676_v10  ;;  %v677_v17 = vmul.f32 %v1345_v11, %v1345_v11  ;;  %v655_v25 = vadd.f32 %v654_v13, %v1345_v11 }
 0x106   :  { %v1021_v15 = vpop.f32.mrb[9].mxu0 }
 0x107   :  { %v1022_v18 = vadd.f32 %v1021_v15, %v1020_v14  ;;  %v1023_v19 = vpop.f32.mrb[10].mxu0  ;;  %v1098_v20 = vpop.f32.mrb[8].mxu1  ;;  %v692_v30 = vadd.f32 %v691_v16, %v677_v17 }
 0x108   :  { %v1024_v21 = vpop.f32.mrb[11].mxu0  ;;  %v569_v22 = vpop.f32.mrb[9].mxu1 }
 0x109   :  { %v1025_v23 = vadd.f32 %v1024_v21, %v1023_v19  ;;  %v1350_v24 = vadd.f32 %v1022_v18, %v553_v2  ;;  %v1099_v26 = vpop.f32.mrb[10].mxu1 }
 0x10a   :  { %v572_v27 = vpop.f32.mrb[11].mxu1 }
 0x10b   :  { %v656_v28 = vadd.f32 %v655_v25, %v1350_v24  ;;  %v678_v29 = vmul.f32 %v1350_v24, %v1350_v24  ;;  %v1356_v31 = vadd.f32 %v1025_v23, %v556_v7 }
 0x10d   :  { %v693_v32 = vadd.f32 %v692_v30, %v678_v29  ;;  %v657_v33 = vadd.f32 %v656_v28, %v1356_v31  ;;  %v679_v34 = vmul.f32 %v1356_v31, %v1356_v31  ;;  %v1026_v35 = vpop.f32.mrb[12].mxu0 }
 0x10e   :  { %v1027_v36 = vpop.f32.mrb[13].mxu0 }
 0x10f   :  { %v694_v37 = vadd.f32 %v693_v32, %v679_v34  ;;  %v1028_v38 = vadd.f32 %v1027_v36, %v1026_v35  ;;  %v1029_v39 = vpop.f32.mrb[14].mxu0  ;;  %v1102_v40 = vpop.f32.mrb[12].mxu1 }
 0x110   :  { %v1030_v41 = vpop.f32.mrb[15].mxu0  ;;  %v585_v42 = vpop.f32.mrb[13].mxu1 }
 0x111   :  { %v1361_v43 = vadd.f32 %v1094_v0, %v1028_v38  ;;  %v1031_v44 = vadd.f32 %v1030_v41, %v1029_v39  ;;  %v1103_v45 = vpop.f32.mrb[14].mxu1 }
 0x112   :  { %v588_v46 = vpop.f32.mrb[15].mxu1 }
 0x113   :  { %v658_v47 = vadd.f32 %v657_v33, %v1361_v43  ;;  %v680_v48 = vmul.f32 %v1361_v43, %v1361_v43  ;;  %v1366_v49 = vadd.f32 %v1095_v6, %v1031_v44 }
 0x115   :  { %v695_v50 = vadd.f32 %v694_v37, %v680_v48  ;;  %v681_v51 = vmul.f32 %v1366_v49, %v1366_v49  ;;  %v1032_v52 = vpop.f32.mrb[16].mxu0  ;;  %v659_v53 = vadd.f32 %v658_v47, %v1366_v49 }
 0x116   :  { %v1033_v54 = vpop.f32.mrb[17].mxu0 }
 0x117   :  { %v1034_v55 = vadd.f32 %v1033_v54, %v1032_v52  ;;  %v1035_v57 = vpop.f32.mrb[18].mxu0  ;;  %v696_v58 = vadd.f32 %v695_v50, %v681_v51 }
 0x118   :  { %v1036_v60 = vpop.f32.mrb[19].mxu0 }
 0x119   :  { %v1037_v61 = vadd.f32 %v1036_v60, %v1035_v57  ;;  %v1371_v62 = vadd.f32 %v1034_v55, %v569_v22 }
 0x11b   :  { %v660_v63 = vadd.f32 %v659_v53, %v1371_v62  ;;  %v682_v0 = vmul.f32 %v1371_v62, %v1371_v62  ;;  %v1376_v1 = vadd.f32 %v1037_v61, %v572_v27 }
 0x11d   :  { %v697_v2 = vadd.f32 %v696_v58, %v682_v0  ;;  %v661_v3 = vadd.f32 %v660_v63, %v1376_v1  ;;  %v683_v5 = vmul.f32 %v1376_v1, %v1376_v1  ;;  %v1038_v6 = vpop.f32.mrb[20].mxu0 }
 0x11e   :  { %v1039_v7 = vpop.f32.mrb[21].mxu0 }
 0x11f   :  { %v698_v8 = vadd.f32 %v697_v2, %v683_v5  ;;  %v1040_v9 = vadd.f32 %v1039_v7, %v1038_v6  ;;  %v1041_v10 = vpop.f32.mrb[22].mxu0 }
 0x120   :  { %v1042_v12 = vpop.f32.mrb[23].mxu0 }
 0x121   :  { %v1381_v13 = vadd.f32 %v1098_v20, %v1040_v9  ;;  %v1043_v14 = vadd.f32 %v1042_v12, %v1041_v10 }
 0x123   :  { %v662_v15 = vadd.f32 %v661_v3, %v1381_v13  ;;  %v684_v16 = vmul.f32 %v1381_v13, %v1381_v13  ;;  %v1386_v17 = vadd.f32 %v1099_v26, %v1043_v14 }
 0x125   :  { %v699_v18 = vadd.f32 %v698_v8, %v684_v16  ;;  %v685_v19 = vmul.f32 %v1386_v17, %v1386_v17  ;;  %v1044_v21 = vpop.f32.mrb[24].mxu0  ;;  %v663_v22 = vadd.f32 %v662_v15, %v1386_v17  ;;  %v722_v15 = vlaneseq }
 0x126   :  { %v1045_v23 = vpop.f32.mrb[25].mxu0 }
 0x127   :  { %v1046_v25 = vadd.f32 %v1045_v23, %v1044_v21  ;;  %v1047_v27 = vpop.f32.mrb[26].mxu0  ;;  %v700_v20 = vadd.f32 %v699_v18, %v685_v19  ;;  %v723_v16 = vshrl.u32 %v722_v15, 7  ;;  %v651_v18 = vld [vmem:[%s1441_s2] sm:$0x1] }
 0x128   :  { %v1048_v28 = vpop.f32.mrb[27].mxu0  ;;  %v652_v23 = vld [vmem:[%s1442_s3] sm:$0x1] }
 0x129   :  { %v1049_v29 = vadd.f32 %v1048_v28, %v1047_v27  ;;  %v1391_v30 = vadd.f32 %v1046_v25, %v585_v42  ;;  %v724_v19 = vsub.s32 0, %v723_v16 }
 0x12b   :  { %v664_v32 = vadd.f32 %v663_v22, %v1391_v30  ;;  %v686_v26 = vmul.f32 %v1391_v30, %v1391_v30  ;;  %v589_v33 = vadd.f32 %v1049_v29, %v588_v46 }
 0x12d   :  { %v701_v34 = vadd.f32 %v700_v20, %v686_v26  ;;  %v665_v35 = vadd.f32 %v664_v32, %v589_v33  ;;  %v687_v36 = vmul.f32 %v589_v33, %v589_v33  ;;  %v1050_v37 = vpop.f32.mrb[28].mxu0 }
 0x12e   :  { %v1051_v38 = vpop.f32.mrb[29].mxu0 }
 0x12f   :  { %v702_v39 = vadd.f32 %v701_v34, %v687_v36  ;;  %v1052_v41 = vadd.f32 %v1051_v38, %v1050_v37  ;;  %v1053_v44 = vpop.f32.mrb[30].mxu0 }
 0x130   :  { %v1054_v47 = vpop.f32.mrb[31].mxu0 }
 0x131   :  { %v594_v48 = vadd.f32 %v1102_v40, %v1052_v41  ;;  %v1055_v50 = vadd.f32 %v1054_v47, %v1053_v44 }
 0x133   :  { %v666_v51 = vadd.f32 %v665_v35, %v594_v48  ;;  %v688_v42 = vmul.f32 %v594_v48, %v594_v48  ;;  %v597_v52 = vadd.f32 %v1103_v45, %v1055_v50 }
 0x135   :  { %v703_v53 = vadd.f32 %v702_v39, %v688_v42  ;;  %v667_v54 = vadd.f32 %v666_v51, %v597_v52  ;;  %v689_v55 = vmul.f32 %v597_v52, %v597_v52 }
 0x137   :  { %v668_v57 = vrot.slane %v667_v54, 4  ;;  %v704_v58 = vadd.f32 %v703_v53, %v689_v55 }
 0x139   :  { %v669_v46 = vadd.f32 %v668_v57, %v667_v54  ;;  %v705_v60 = vrot.slane %v704_v58, 4 }
 0x13b   :  { %v670_v61 = vrot.slane %v669_v46, 2  ;;  %v706_v63 = vadd.f32 %v705_v60, %v704_v58 }
 0x13d   :  { %v671_v0 = vadd.f32 %v670_v61, %v669_v46  ;;  %v707_v2 = vrot.slane %v706_v63, 2 }
 0x13f   :  { %v672_v3 = vrot.slane %v671_v0, 1  ;;  %v708_v5 = vadd.f32 %v707_v2, %v706_v63 }
 0x141   :  { %v673_v6 = vadd.f32 %v672_v3, %v671_v0  ;;  %v709_v7 = vrot.slane %v708_v5, 1 }
 0x143   :  { %v710_v40 = vadd.f32 %v709_v7, %v708_v5  ;;  %v711_v8 = vmul.f32 0.0078125, %v673_v6 }
 0x145   :  { %v712_v9 = vmul.f32 0.0078125, %v710_v40  ;;  %v713_v10 = vmul.f32 %v711_v8, %v711_v8 }
 0x147   :  { %v714_v45 = vsub.f32 %v712_v9, %v713_v10 }
 0x149   :  { %v715_v12 = vmax.f32 %v714_v45, 0.0 }
 0x14b   :  { %v716_v14 = vadd.f32 1e-05, %v715_v12 }
 0x14d   :  { %1160 = vrsqrt.f32 %v716_v14 }
 0x157   :  { %v1161_v21 = vpop.eup %1160 }
 0x158   :  { %v718_v22 = vmul.f32 %v1161_v21, %v651_v18 }
 0x15a   :  { %v719_v25 = vmul.f32 %v718_v22, %v711_v8  ;;  %v725_v27 = vrot.slane %v718_v22, %v724_v19 }
 0x15c   :  { %v720_v20 = vsub.f32 %v652_v23, %v719_v25  ;;  %v727_v28 = vmul.f32 %v725_v27, %v1331_v56  ;;  %v728_v29 = vmul.f32 %v725_v27, %v1333_v59  ;;  %v731_v32 = vmul.f32 %v725_v27, %v1350_v24 }
 0x15d   :  { %v732_v26 = vmul.f32 %v725_v27, %v1356_v31  ;;  %v733_v34 = vmul.f32 %v725_v27, %v1361_v43  ;;  %v734_v35 = vmul.f32 %v725_v27, %v1366_v49  ;;  %v735_v36 = vmul.f32 %v725_v27, %v1371_v62 }
 0x15e   :  { %v736_v37 = vmul.f32 %v725_v27, %v1376_v1  ;;  %v737_v38 = vmul.f32 %v725_v27, %v1381_v13  ;;  %v738_v39 = vmul.f32 %v725_v27, %v1386_v17  ;;  %v739_v56 = vmul.f32 %v725_v27, %v1391_v30 }
 0x15f   :  { %v740_v41 = vmul.f32 %v725_v27, %v589_v33  ;;  %v741_v59 = vmul.f32 %v725_v27, %v594_v48  ;;  %v729_v24 = vmul.f32 %v725_v27, %v1337_v4  ;;  %v730_v31 = vmul.f32 %v725_v27, %v1345_v11 }
 0x160   :  { %v742_v44 = vmul.f32 %v725_v27, %v597_v52  ;;  %v747_v43 = vrot.slane %v720_v20, %v724_v19 }
 0x162   :  { %v749_v47 = vadd.f32 %v747_v43, %v727_v28  ;;  %v750_v49 = vadd.f32 %v747_v43, %v728_v29  ;;  %v751_v50 = vadd.f32 %v747_v43, %v729_v24  ;;  %v752_v62 = vadd.f32 %v747_v43, %v730_v31 }
 0x163   :  { %v753_v51 = vadd.f32 %v747_v43, %v731_v32  ;;  %v754_v1 = vadd.f32 %v747_v43, %v732_v26  ;;  %v755_v42 = vadd.f32 %v747_v43, %v733_v34  ;;  %v756_v13 = vadd.f32 %v747_v43, %v734_v35 }
 0x164   :  { %v757_v53 = vadd.f32 %v747_v43, %v735_v36  ;;  %v758_v17 = vadd.f32 %v747_v43, %v736_v37  ;;  %v759_v54 = vadd.f32 %v747_v43, %v737_v38  ;;  %v760_v30 = vadd.f32 %v747_v43, %v738_v39 }
 0x165   :  { %v761_v33 = vadd.f32 %v747_v43, %v739_v56  ;;  %v762_v48 = vadd.f32 %v747_v43, %v740_v41  ;;  %v763_v55 = vadd.f32 %v747_v43, %v741_v59  ;;  %v764_v4 = vadd.f32 %v747_v43, %v742_v44 }
 0x166   :  { %v765_v57 = vmax.f32 %v749_v47, 0.0  ;;  %v766_v11 = vmax.f32 %v750_v49, 0.0  ;;  %v767_v52 = vmax.f32 %v751_v50, 0.0  ;;  %v768_v58 = vmax.f32 %v752_v62, 0.0 }
 0x167   :  { %v769_v46 = vmax.f32 %v753_v51, 0.0  ;;  %v770_v60 = vmax.f32 %v754_v1, 0.0  ;;  %v771_v61 = vmax.f32 %v755_v42, 0.0  ;;  %v772_v63 = vmax.f32 %v756_v13, 0.0 }
 0x168   :  { %v773_v0 = vmax.f32 %v757_v53, 0.0  ;;  %v774_v2 = vmax.f32 %v758_v17, 0.0  ;;  %v775_v3 = vmax.f32 %v759_v54, 0.0  ;;  %v776_v5 = vmax.f32 %v760_v30, 0.0 }
 0x169   :  { %v777_v6 = vmax.f32 %v761_v33, 0.0  ;;  %v778_v7 = vmax.f32 %v762_v48, 0.0  ;;  %v779_v40 = vmax.f32 %v763_v55, 0.0  ;;  %v780_v8 = vmax.f32 %v764_v4, 0.0 }
 0x16a   :  { %v948_v9 = vpack.c.bf16 %v766_v11, %v765_v57  ;;  %v953_v10 = vpack.c.bf16 %v768_v58, %v767_v52  ;;  %v958_v45 = vpack.c.bf16 %v770_v60, %v769_v46  ;;  %v963_v12 = vpack.c.bf16 %v772_v63, %v771_v61 }
 0x16b   :  { %v968_v14 = vpack.c.bf16 %v774_v2, %v773_v0  ;;  %v973_v15 = vpack.c.bf16 %v776_v5, %v775_v3  ;;  %v978_v16 = vpack.c.bf16 %v778_v7, %v777_v6  ;;  %v983_v18 = vpack.c.bf16 %v780_v8, %v779_v40 }
 0x16c   :  { %949 = vst [vmem:[%s1443_s4] sm:$0xff] %v948_v9   ;;  %985 = vst [vmem:[%s1443_s4 + $0x8] sm:$0xff] %v953_v10  }
 0x16d   :  { %986 = vst [vmem:[%s1443_s4 + $0x10] sm:$0xff] %v958_v45   ;;  %987 = vst [vmem:[%s1443_s4 + $0x18] sm:$0xff] %v963_v12  }
 0x16e   :  { %988 = vst [vmem:[%s1443_s4 + $0x20] sm:$0xff] %v968_v14   ;;  %989 = vst [vmem:[%s1443_s4 + $0x28] sm:$0xff] %v973_v15  }
 0x16f   :  { %990 = vst [vmem:[%s1443_s4 + $0x30] sm:$0xff] %v978_v16   ;;  %991 = vst [vmem:[%s1443_s4 + $0x38] sm:$0xff] %v983_v18  }

// kernel: icnet_backbone_forward.58
= control target key start
LH: loop header
LB: loop body
LE: loop exit
PB: predicated region body
PF: predicated region fallthrough
CT: control target
= control target key end

     0   :  { %v209_v42 = vlaneseq  ;;  %s394_s1 = inlined_call_operand.vmem [shape: bf16[128,128], index: 1, kind: input, shape index: {}]   ;;  %s395_s0 = inlined_call_operand.vmem [shape: bf16[32,128], index: 0, kind: input, shape index: {}]   ;;  %s396_s2 = inlined_call_operand.vmem [shape: f32[1,128], index: 2, kind: input, shape index: {}]   ;;  %s397_s3 = inlined_call_operand.vmem [shape: f32[1,128], index: 3, kind: input, shape index: {}]   ;;  %s398_s4 = inlined_call_operand.vmem [shape: bf16[32,128], index: 4, kind: output, shape index: {}]  }
   0x1   :  { %v315_v0 = vld [vmem:[%s394_s1] sm:$0xff]   ;;  %v316_v1 = vld [vmem:[%s394_s1 + $0x8] sm:$0xff]   ;;  %v317_v2 = vld [vmem:[%s394_s1 + $0x10] sm:$0xff]  }
   0x2   :  { %295 = vmatprep.subr.bf16.mxu0 %v315_v0  ;;  %v318_v3 = vld [vmem:[%s394_s1 + $0x18] sm:$0xff]   ;;  %v323_v4 = vld [vmem:[%s395_s0] sm:$0xff]   ;;  %v320_v6 = vld [vmem:[%s394_s1 + $0x28] sm:$0xff]   ;;  %v210_v43 = vshrl.u32 %v209_v42, 7 }
   0x3   :  { %296 = vmatpush3.bf16.msra.mxu0 %v315_v0  ;;  %311 = vmatprep.mubr.bf16.mxu0 %v323_v4  ;;  %v319_v5 = vld [vmem:[%s394_s1 + $0x20] sm:$0xff]   ;;  %v321_v7 = vld [vmem:[%s394_s1 + $0x30] sm:$0xff]   ;;  %v322_v8 = vld [vmem:[%s394_s1 + $0x38] sm:$0xff]  }
   0x4   :  { %297 = vmatprep.subr.bf16.mxu0 %v316_v1  ;;  %v324_v9 = vld [vmem:[%s395_s0 + $0x8] sm:$0xff]   ;;  %v174_v44 = vld [vmem:[%s396_s2] sm:$0x1]  ;;  %v211_v45 = vsub.s32 0, %v210_v43 }
   0x5   :  { %v175_v48 = vld [vmem:[%s397_s3] sm:$0x1] }
   0x7   :  { %298 = vmatpush3.bf16.msra.mxu0 %v316_v1 }
   0x8   :  { %299 = vmatprep.subr.bf16.mxu0 %v317_v2 }
   0xb   :  { %300 = vmatpush3.bf16.msra.mxu0 %v317_v2 }
   0xc   :  { %301 = vmatprep.subr.bf16.mxu0 %v318_v3 }
   0xf   :  { %302 = vmatpush3.bf16.msra.mxu0 %v318_v3 }
  0x10   :  { %303 = vmatprep.subr.bf16.mxu0 %v319_v5 }
  0x13   :  { %304 = vmatpush3.bf16.msra.mxu0 %v319_v5 }
  0x14   :  { %305 = vmatprep.subr.bf16.mxu0 %v320_v6 }
  0x17   :  { %306 = vmatpush3.bf16.msra.mxu0 %v320_v6 }
  0x18   :  { %307 = vmatprep.subr.bf16.mxu0 %v321_v7 }
  0x1b   :  { %308 = vmatpush3.bf16.msra.mxu0 %v321_v7 }
  0x1c   :  { %309 = vmatprep.subr.bf16.mxu0 %v322_v8 }
  0x1f   :  { %310 = vmatpush3.bf16.msra.mxu0 %v322_v8 }
  0x22   :  { %312 = vmatmul.mubr.bf16.vlgmr.msra.gmra.mrb[0].mxu0 %v324_v9 }
  0xf5   :  { %v313_v10 = vpop.f32.mrb[0].mxu0 }
  0xf6   :  { %v144_v11 = vpop.f32.mrb[1].mxu0  ;;  %v187_v17 = vmul.f32 %v313_v10, %v313_v10 }
  0xf7   :  { %v314_v12 = vpop.f32.mrb[2].mxu0  ;;  %v185_v14 = vmul.f32 %v144_v11, %v144_v11 }
  0xf8   :  { %v147_v13 = vpop.f32.mrb[3].mxu0  ;;  %v188_v20 = vmul.f32 %v314_v12, %v314_v12 }
  0xf9   :  { %v176_v15 = vadd.f32 %v147_v13, %v144_v11  ;;  %v186_v16 = vmul.f32 %v147_v13, %v147_v13 }
  0xfb   :  { %v177_v18 = vadd.f32 %v313_v10, %v176_v15  ;;  %v189_v19 = vadd.f32 %v186_v16, %v185_v14 }
  0xfd   :  { %v178_v21 = vadd.f32 %v314_v12, %v177_v18  ;;  %v190_v22 = vadd.f32 %v189_v19, %v187_v17 }
  0xff   :  { %v179_v23 = vrot.slane %v178_v21, 4  ;;  %v191_v24 = vadd.f32 %v190_v22, %v188_v20 }
 0x101   :  { %v180_v25 = vadd.f32 %v179_v23, %v178_v21  ;;  %v192_v26 = vrot.slane %v191_v24, 4 }
 0x103   :  { %v181_v27 = vrot.slane %v180_v25, 2  ;;  %v193_v28 = vadd.f32 %v192_v26, %v191_v24 }
 0x105   :  { %v182_v29 = vadd.f32 %v181_v27, %v180_v25  ;;  %v194_v30 = vrot.slane %v193_v28, 2 }
 0x107   :  { %v183_v31 = vrot.slane %v182_v29, 1  ;;  %v195_v32 = vadd.f32 %v194_v30, %v193_v28 }
 0x109   :  { %v184_v33 = vadd.f32 %v183_v31, %v182_v29  ;;  %v196_v34 = vrot.slane %v195_v32, 1 }
 0x10b   :  { %v197_v35 = vadd.f32 %v196_v34, %v195_v32  ;;  %v198_v36 = vmul.f32 0.03125, %v184_v33 }
 0x10d   :  { %v199_v37 = vmul.f32 0.03125, %v197_v35  ;;  %v200_v38 = vmul.f32 %v198_v36, %v198_v36 }
 0x10f   :  { %v201_v39 = vsub.f32 %v199_v37, %v200_v38 }
 0x111   :  { %v202_v40 = vmax.f32 %v201_v39, 0.0 }
 0x113   :  { %v203_v41 = vadd.f32 1e-05, %v202_v40 }
 0x115   :  { %325 = vrsqrt.f32 %v203_v41 }
 0x11f   :  { %v326_v46 = vpop.eup %325 }
 0x120   :  { %v205_v47 = vmul.f32 %v326_v46, %v174_v44 }
 0x122   :  { %v206_v49 = vmul.f32 %v205_v47, %v198_v36  ;;  %v212_v50 = vrot.slane %v205_v47, %v211_v45 }
 0x124   :  { %v207_v51 = vsub.f32 %v175_v48, %v206_v49  ;;  %v214_v52 = vmul.f32 %v212_v50, %v144_v11  ;;  %v215_v53 = vmul.f32 %v212_v50, %v147_v13  ;;  %v216_v54 = vmul.f32 %v313_v10, %v212_v50 }
 0x125   :  { %v217_v55 = vmul.f32 %v314_v12, %v212_v50 }
 0x126   :  { %v222_v56 = vrot.slane %v207_v51, %v211_v45 }
 0x128   :  { %v224_v57 = vadd.f32 %v222_v56, %v214_v52  ;;  %v225_v58 = vadd.f32 %v222_v56, %v215_v53  ;;  %v226_v59 = vadd.f32 %v222_v56, %v216_v54  ;;  %v227_v60 = vadd.f32 %v222_v56, %v217_v55 }
 0x12a   :  { %v228_v61 = vmax.f32 %v224_v57, 0.0  ;;  %v229_v62 = vmax.f32 %v225_v58, 0.0  ;;  %v230_v63 = vmax.f32 %v226_v59, 0.0  ;;  %v231_v0 = vmax.f32 %v227_v60, 0.0 }
 0x12c   :  { %v277_v1 = vpack.c.bf16 %v229_v62, %v228_v61  ;;  %v282_v2 = vpack.c.bf16 %v231_v0, %v230_v63 }
 0x12e   :  { %278 = vst [vmem:[%s398_s4] sm:$0xff] %v277_v1   ;;  %284 = vst [vmem:[%s398_s4 + $0x8] sm:$0xff] %v282_v2  }

// kernel: icnet_backbone_forward.59
= control target key start
LH: loop header
LB: loop body
LE: loop exit
PB: predicated region body
PF: predicated region fallthrough
CT: control target
= control target key end

     0   :  { %s725_s1 = inlined_call_operand.vmem [shape: bf16[384,128], index: 1, kind: input, shape index: {}]   ;;  %s726_s0 = inlined_call_operand.vmem [shape: bf16[32,384], index: 0, kind: input, shape index: {}]   ;;  %s727_s2 = inlined_call_operand.vmem [shape: f32[1,128], index: 2, kind: input, shape index: {}]   ;;  %s728_s3 = inlined_call_operand.vmem [shape: f32[1,128], index: 3, kind: input, shape index: {}]   ;;  %s729_s4 = inlined_call_operand.vmem [shape: bf16[32,128], index: 4, kind: output, shape index: {}]  }
   0x1   :  { %v564_v0 = vld [vmem:[%s725_s1 + $0x40] sm:$0xff]   ;;  %v567_v3 = vld [vmem:[%s725_s1 + $0x48] sm:$0xff]   ;;  %v570_v6 = vld [vmem:[%s725_s1 + $0x50] sm:$0xff]  }
   0x2   :  { %v565_v1 = vld [vmem:[%s725_s1] sm:$0xff]   ;;  %506 = vmatprep.subr.bf16.mxu0 %v564_v0  ;;  %v568_v4 = vld [vmem:[%s725_s1 + $0x8] sm:$0xff]   ;;  %v571_v7 = vld [vmem:[%s725_s1 + $0x10] sm:$0xff]  }
   0x3   :  { %v566_v2 = vld [vmem:[%s725_s1 + $0x80] sm:$0xff]   ;;  %507 = vmatpush3.bf16.msra.mxu0 %v565_v1  ;;  %v569_v5 = vld [vmem:[%s725_s1 + $0x88] sm:$0xff]   ;;  %v572_v8 = vld [vmem:[%s725_s1 + $0x90] sm:$0xff]  }
   0x4   :  { %544 = vmatprep.subr.bf16.mxu1 %v566_v2  ;;  %508 = vmatprep.subr.bf16.mxu0 %v567_v3  ;;  %v573_v9 = vld [vmem:[%s725_s1 + $0x58] sm:$0xff]   ;;  %v576_v12 = vld [vmem:[%s725_s1 + $0x60] sm:$0xff]   ;;  %v579_v15 = vld [vmem:[%s725_s1 + $0x68] sm:$0xff]  }
   0x5   :  { %545 = vmatpush3.bf16.msra.mxu1 %v566_v2  ;;  %v574_v10 = vld [vmem:[%s725_s1 + $0x18] sm:$0xff]   ;;  %v578_v13 = vld [vmem:[%s725_s1 + $0xa0] sm:$0xff]   ;;  %v581_v16 = vld [vmem:[%s725_s1 + $0xa8] sm:$0xff]  }
   0x6   :  { %546 = vmatprep.subr.bf16.mxu1 %v569_v5  ;;  %v575_v11 = vld [vmem:[%s725_s1 + $0x98] sm:$0xff]   ;;  %v577_v14 = vld [vmem:[%s725_s1 + $0x20] sm:$0xff]   ;;  %v580_v17 = vld [vmem:[%s725_s1 + $0x28] sm:$0xff]  }
   0x7   :  { %509 = vmatpush3.bf16.msra.mxu0 %v568_v4  ;;  %v582_v18 = vld [vmem:[%s725_s1 + $0x70] sm:$0xff]   ;;  %v585_v21 = vld [vmem:[%s725_s1 + $0x78] sm:$0xff]   ;;  %v588_v26 = vld [vmem:[%s726_s0] ss:$12 sps:$4 sm:$0xff]  }
   0x8   :  { %510 = vmatprep.subr.bf16.mxu0 %v570_v6  ;;  %v583_v19 = vld [vmem:[%s725_s1 + $0x30] sm:$0xff]   ;;  %v587_v22 = vld [vmem:[%s725_s1 + $0xb8] sm:$0xff]   ;;  %v592_v28 = vld [vmem:[%s726_s0 + $0x20] ss:$12 sps:$4 sm:$0xff]  }
   0x9   :  { %547 = vmatpush3.bf16.msra.mxu1 %v569_v5  ;;  %v584_v20 = vld [vmem:[%s725_s1 + $0xb0] sm:$0xff]   ;;  %v586_v25 = vld [vmem:[%s725_s1 + $0x38] sm:$0xff]  }
   0xa   :  { %548 = vmatprep.subr.bf16.mxu1 %v572_v8  ;;  %v590_v23 = vld [vmem:[%s726_s0 + $0x4] ss:$12 sps:$4 sm:$0xff]   ;;  %v591_v24 = vld [vmem:[%s726_s0 + $0x8] ss:$12 sps:$4 sm:$0xff]  }
   0xb   :  { %511 = vmatpush3.bf16.msra.mxu0 %v571_v7  ;;  %294 = vmatprep.mubr.bf16.mxu0 %v590_v23  ;;  %v593_v27 = vld [vmem:[%s726_s0 + $0x1c] ss:$12 sps:$4 sm:$0xff]   ;;  %v595_v29 = vld [vmem:[%s726_s0 + $0x18] ss:$12 sps:$4 sm:$0xff]  }
   0xc   :  { %512 = vmatprep.subr.bf16.mxu0 %v573_v9  ;;  %560 = vmatprep.mubr.bf16.mxu1 %v591_v24 }
   0xd   :  { %549 = vmatpush3.bf16.msra.mxu1 %v572_v8 }
   0xe   :  { %550 = vmatprep.subr.bf16.mxu1 %v575_v11 }
   0xf   :  { %513 = vmatpush3.bf16.msra.mxu0 %v574_v10 }
  0x10   :  { %514 = vmatprep.subr.bf16.mxu0 %v576_v12 }
  0x11   :  { %551 = vmatpush3.bf16.msra.mxu1 %v575_v11 }
  0x12   :  { %552 = vmatprep.subr.bf16.mxu1 %v578_v13 }
  0x13   :  { %515 = vmatpush3.bf16.msra.mxu0 %v577_v14  ;;  %v410_v14 = vlaneseq }
  0x14   :  { %516 = vmatprep.subr.bf16.mxu0 %v579_v15 }
  0x15   :  { %553 = vmatpush3.bf16.msra.mxu1 %v578_v13  ;;  %v411_v15 = vshrl.u32 %v410_v14, 7 }
  0x16   :  { %554 = vmatprep.subr.bf16.mxu1 %v581_v16 }
  0x17   :  { %517 = vmatpush3.bf16.msra.mxu0 %v580_v17  ;;  %v412_v17 = vsub.s32 0, %v411_v15 }
  0x18   :  { %518 = vmatprep.subr.bf16.mxu0 %v582_v18 }
  0x19   :  { %555 = vmatpush3.bf16.msra.mxu1 %v581_v16  ;;  %v375_v16 = vld [vmem:[%s727_s2] sm:$0x1] }
  0x1a   :  { %556 = vmatprep.subr.bf16.mxu1 %v584_v20 }
  0x1b   :  { %519 = vmatpush3.bf16.msra.mxu0 %v583_v19 }
  0x1c   :  { %520 = vmatprep.subr.bf16.mxu0 %v585_v21 }
  0x1d   :  { %557 = vmatpush3.bf16.msra.mxu1 %v584_v20  ;;  %v376_v20 = vld [vmem:[%s728_s3] sm:$0x1] }
  0x1e   :  { %558 = vmatprep.subr.bf16.mxu1 %v587_v22 }
  0x1f   :  { %521 = vmatpush3.bf16.msra.mxu0 %v586_v25 }
  0x21   :  { %559 = vmatpush3.bf16.msra.mxu1 %v587_v22 }
  0x22   :  { %295 = vmatmul.mubr.bf16.vlgmr.msra.gmra.mrb[0].mxu0 %v588_v26 }
  0x23   :  { %302 = vmatprep.mubr.bf16.mxu0 %v593_v27 }
  0x24   :  { %561 = vmatmul.mubr.bf16.vlgmr.msra.gmra.mrb[0].mxu1 %v592_v28 }
  0x2a   :  { %303 = vmatmul.mubr.bf16.gmra.mrb[4].mxu0 %v595_v29 }
  0xf5   :  { %v522_v30 = vpop.f32.mrb[0].mxu0 }
  0xf6   :  { %v523_v31 = vpop.f32.mrb[1].mxu0 }
  0xf7   :  { %v524_v32 = vadd.f32 %v523_v31, %v522_v30  ;;  %v525_v33 = vpop.f32.mrb[2].mxu0  ;;  %v562_v34 = vpop.f32.mrb[0].mxu1 }
  0xf8   :  { %v526_v35 = vpop.f32.mrb[3].mxu0  ;;  %v345_v36 = vpop.f32.mrb[1].mxu1 }
  0xf9   :  { %v527_v37 = vadd.f32 %v526_v35, %v525_v33  ;;  %v346_v38 = vadd.f32 %v524_v32, %v345_v36  ;;  %v563_v39 = vpop.f32.mrb[2].mxu1 }
  0xfa   :  { %v348_v40 = vpop.f32.mrb[3].mxu1 }
  0xfb   :  { %v349_v41 = vadd.f32 %v527_v37, %v348_v40  ;;  %v386_v42 = vmul.f32 %v346_v38, %v346_v38 }
  0xfd   :  { %v377_v43 = vadd.f32 %v349_v41, %v346_v38  ;;  %v387_v44 = vmul.f32 %v349_v41, %v349_v41  ;;  %v528_v45 = vpop.f32.mrb[4].mxu0 }
  0xfe   :  { %v529_v46 = vpop.f32.mrb[5].mxu0 }
  0xff   :  { %v390_v47 = vadd.f32 %v387_v44, %v386_v42  ;;  %v530_v48 = vadd.f32 %v529_v46, %v528_v45  ;;  %v531_v49 = vpop.f32.mrb[6].mxu0 }
 0x100   :  { %v532_v50 = vpop.f32.mrb[7].mxu0 }
 0x101   :  { %v354_v51 = vadd.f32 %v562_v34, %v530_v48  ;;  %v533_v52 = vadd.f32 %v532_v50, %v531_v49 }
 0x103   :  { %v378_v53 = vadd.f32 %v377_v43, %v354_v51  ;;  %v388_v54 = vmul.f32 %v354_v51, %v354_v51  ;;  %v357_v55 = vadd.f32 %v563_v39, %v533_v52 }
 0x105   :  { %v391_v56 = vadd.f32 %v390_v47, %v388_v54  ;;  %v379_v57 = vadd.f32 %v378_v53, %v357_v55  ;;  %v389_v58 = vmul.f32 %v357_v55, %v357_v55 }
 0x107   :  { %v380_v59 = vrot.slane %v379_v57, 4  ;;  %v392_v60 = vadd.f32 %v391_v56, %v389_v58 }
 0x109   :  { %v381_v61 = vadd.f32 %v380_v59, %v379_v57  ;;  %v393_v62 = vrot.slane %v392_v60, 4 }
 0x10b   :  { %v382_v63 = vrot.slane %v381_v61, 2  ;;  %v394_v0 = vadd.f32 %v393_v62, %v392_v60 }
 0x10d   :  { %v383_v1 = vadd.f32 %v382_v63, %v381_v61  ;;  %v395_v2 = vrot.slane %v394_v0, 2 }
 0x10f   :  { %v384_v3 = vrot.slane %v383_v1, 1  ;;  %v396_v4 = vadd.f32 %v395_v2, %v394_v0 }
 0x111   :  { %v385_v5 = vadd.f32 %v384_v3, %v383_v1  ;;  %v397_v6 = vrot.slane %v396_v4, 1 }
 0x113   :  { %v398_v7 = vadd.f32 %v397_v6, %v396_v4  ;;  %v399_v8 = vmul.f32 0.03125, %v385_v5 }
 0x115   :  { %v400_v9 = vmul.f32 0.03125, %v398_v7  ;;  %v401_v10 = vmul.f32 %v399_v8, %v399_v8 }
 0x117   :  { %v402_v11 = vsub.f32 %v400_v9, %v401_v10 }
 0x119   :  { %v403_v12 = vmax.f32 %v402_v11, 0.0 }
 0x11b   :  { %v404_v13 = vadd.f32 1e-05, %v403_v12 }
 0x11d   :  { %596 = vrsqrt.f32 %v404_v13 }
 0x127   :  { %v597_v18 = vpop.eup %596 }
 0x128   :  { %v406_v19 = vmul.f32 %v597_v18, %v375_v16 }
 0x12a   :  { %v407_v21 = vmul.f32 %v406_v19, %v399_v8  ;;  %v413_v22 = vrot.slane %v406_v19, %v412_v17 }
 0x12c   :  { %v408_v23 = vsub.f32 %v376_v20, %v407_v21  ;;  %v415_v24 = vmul.f32 %v413_v22, %v346_v38  ;;  %v416_v25 = vmul.f32 %v413_v22, %v349_v41  ;;  %v417_v26 = vmul.f32 %v413_v22, %v354_v51 }
 0x12d   :  { %v418_v27 = vmul.f32 %v413_v22, %v357_v55 }
 0x12e   :  { %v423_v28 = vrot.slane %v408_v23, %v412_v17 }
 0x130   :  { %v425_v29 = vadd.f32 %v423_v28, %v415_v24  ;;  %v426_v30 = vadd.f32 %v423_v28, %v416_v25  ;;  %v427_v31 = vadd.f32 %v423_v28, %v417_v26  ;;  %v428_v32 = vadd.f32 %v423_v28, %v418_v27 }
 0x132   :  { %v429_v33 = vmax.f32 %v425_v29, 0.0  ;;  %v430_v34 = vmax.f32 %v426_v30, 0.0  ;;  %v431_v35 = vmax.f32 %v427_v31, 0.0  ;;  %v432_v36 = vmax.f32 %v428_v32, 0.0 }
 0x134   :  { %v498_v37 = vpack.c.bf16 %v430_v34, %v429_v33  ;;  %v503_v39 = vpack.c.bf16 %v432_v36, %v431_v35 }
 0x136   :  { %499 = vst [vmem:[%s729_s4] sm:$0xff] %v498_v37   ;;  %505 = vst [vmem:[%s729_s4 + $0x8] sm:$0xff] %v503_v39  }

// kernel: icnet_backbone_forward.60
= control target key start
LH: loop header
LB: loop body
LE: loop exit
PB: predicated region body
PF: predicated region fallthrough
CT: control target
= control target key end

     0   :  { %v209_v42 = vlaneseq  ;;  %s390_s1 = inlined_call_operand.vmem [shape: bf16[128,128], index: 1, kind: input, shape index: {}]   ;;  %s391_s0 = inlined_call_operand.vmem [shape: bf16[32,128], index: 0, kind: input, shape index: {}]   ;;  %s392_s2 = inlined_call_operand.vmem [shape: f32[1,128], index: 2, kind: input, shape index: {}]   ;;  %s393_s3 = inlined_call_operand.vmem [shape: f32[1,128], index: 3, kind: input, shape index: {}]   ;;  %s394_s4 = inlined_call_operand.vmem [shape: bf16[32,128], index: 4, kind: output, shape index: {}]  }
   0x1   :  { %v311_v0 = vld [vmem:[%s390_s1] sm:$0xff]   ;;  %v312_v1 = vld [vmem:[%s390_s1 + $0x8] sm:$0xff]   ;;  %v313_v2 = vld [vmem:[%s390_s1 + $0x10] sm:$0xff]  }
   0x2   :  { %291 = vmatprep.subr.bf16.mxu0 %v311_v0  ;;  %v314_v3 = vld [vmem:[%s390_s1 + $0x18] sm:$0xff]   ;;  %v319_v4 = vld [vmem:[%s391_s0] sm:$0xff]   ;;  %v316_v6 = vld [vmem:[%s390_s1 + $0x28] sm:$0xff]   ;;  %v210_v43 = vshrl.u32 %v209_v42, 7 }
   0x3   :  { %292 = vmatpush3.bf16.msra.mxu0 %v311_v0  ;;  %307 = vmatprep.mubr.bf16.mxu0 %v319_v4  ;;  %v315_v5 = vld [vmem:[%s390_s1 + $0x20] sm:$0xff]   ;;  %v317_v7 = vld [vmem:[%s390_s1 + $0x30] sm:$0xff]   ;;  %v318_v8 = vld [vmem:[%s390_s1 + $0x38] sm:$0xff]  }
   0x4   :  { %293 = vmatprep.subr.bf16.mxu0 %v312_v1  ;;  %v320_v9 = vld [vmem:[%s391_s0 + $0x8] sm:$0xff]   ;;  %v174_v44 = vld [vmem:[%s392_s2] sm:$0x1]  ;;  %v211_v45 = vsub.s32 0, %v210_v43 }
   0x5   :  { %v175_v48 = vld [vmem:[%s393_s3] sm:$0x1] }
   0x7   :  { %294 = vmatpush3.bf16.msra.mxu0 %v312_v1 }
   0x8   :  { %295 = vmatprep.subr.bf16.mxu0 %v313_v2 }
   0xb   :  { %296 = vmatpush3.bf16.msra.mxu0 %v313_v2 }
   0xc   :  { %297 = vmatprep.subr.bf16.mxu0 %v314_v3 }
   0xf   :  { %298 = vmatpush3.bf16.msra.mxu0 %v314_v3 }
  0x10   :  { %299 = vmatprep.subr.bf16.mxu0 %v315_v5 }
  0x13   :  { %300 = vmatpush3.bf16.msra.mxu0 %v315_v5 }
  0x14   :  { %301 = vmatprep.subr.bf16.mxu0 %v316_v6 }
  0x17   :  { %302 = vmatpush3.bf16.msra.mxu0 %v316_v6 }
  0x18   :  { %303 = vmatprep.subr.bf16.mxu0 %v317_v7 }
  0x1b   :  { %304 = vmatpush3.bf16.msra.mxu0 %v317_v7 }
  0x1c   :  { %305 = vmatprep.subr.bf16.mxu0 %v318_v8 }
  0x1f   :  { %306 = vmatpush3.bf16.msra.mxu0 %v318_v8 }
  0x22   :  { %308 = vmatmul.mubr.bf16.vlgmr.msra.gmra.mrb[0].mxu0 %v320_v9 }
  0xf5   :  { %v309_v10 = vpop.f32.mrb[0].mxu0 }
  0xf6   :  { %v144_v11 = vpop.f32.mrb[1].mxu0  ;;  %v187_v17 = vmul.f32 %v309_v10, %v309_v10 }
  0xf7   :  { %v310_v12 = vpop.f32.mrb[2].mxu0  ;;  %v185_v14 = vmul.f32 %v144_v11, %v144_v11 }
  0xf8   :  { %v147_v13 = vpop.f32.mrb[3].mxu0  ;;  %v188_v20 = vmul.f32 %v310_v12, %v310_v12 }
  0xf9   :  { %v176_v15 = vadd.f32 %v147_v13, %v144_v11  ;;  %v186_v16 = vmul.f32 %v147_v13, %v147_v13 }
  0xfb   :  { %v177_v18 = vadd.f32 %v309_v10, %v176_v15  ;;  %v189_v19 = vadd.f32 %v186_v16, %v185_v14 }
  0xfd   :  { %v178_v21 = vadd.f32 %v310_v12, %v177_v18  ;;  %v190_v22 = vadd.f32 %v189_v19, %v187_v17 }
  0xff   :  { %v179_v23 = vrot.slane %v178_v21, 4  ;;  %v191_v24 = vadd.f32 %v190_v22, %v188_v20 }
 0x101   :  { %v180_v25 = vadd.f32 %v179_v23, %v178_v21  ;;  %v192_v26 = vrot.slane %v191_v24, 4 }
 0x103   :  { %v181_v27 = vrot.slane %v180_v25, 2  ;;  %v193_v28 = vadd.f32 %v192_v26, %v191_v24 }
 0x105   :  { %v182_v29 = vadd.f32 %v181_v27, %v180_v25  ;;  %v194_v30 = vrot.slane %v193_v28, 2 }
 0x107   :  { %v183_v31 = vrot.slane %v182_v29, 1  ;;  %v195_v32 = vadd.f32 %v194_v30, %v193_v28 }
 0x109   :  { %v184_v33 = vadd.f32 %v183_v31, %v182_v29  ;;  %v196_v34 = vrot.slane %v195_v32, 1 }
 0x10b   :  { %v197_v35 = vadd.f32 %v196_v34, %v195_v32  ;;  %v198_v36 = vmul.f32 0.03125, %v184_v33 }
 0x10d   :  { %v199_v37 = vmul.f32 0.03125, %v197_v35  ;;  %v200_v38 = vmul.f32 %v198_v36, %v198_v36 }
 0x10f   :  { %v201_v39 = vsub.f32 %v199_v37, %v200_v38 }
 0x111   :  { %v202_v40 = vmax.f32 %v201_v39, 0.0 }
 0x113   :  { %v203_v41 = vadd.f32 1e-05, %v202_v40 }
 0x115   :  { %321 = vrsqrt.f32 %v203_v41 }
 0x11f   :  { %v322_v46 = vpop.eup %321 }
 0x120   :  { %v205_v47 = vmul.f32 %v322_v46, %v174_v44 }
 0x122   :  { %v206_v49 = vmul.f32 %v205_v47, %v198_v36  ;;  %v212_v50 = vrot.slane %v205_v47, %v211_v45 }
 0x124   :  { %v207_v51 = vsub.f32 %v175_v48, %v206_v49  ;;  %v214_v52 = vmul.f32 %v212_v50, %v144_v11  ;;  %v215_v53 = vmul.f32 %v212_v50, %v147_v13  ;;  %v216_v54 = vmul.f32 %v309_v10, %v212_v50 }
 0x125   :  { %v217_v55 = vmul.f32 %v310_v12, %v212_v50 }
 0x126   :  { %v222_v56 = vrot.slane %v207_v51, %v211_v45 }
 0x128   :  { %v224_v57 = vadd.f32 %v222_v56, %v214_v52  ;;  %v225_v58 = vadd.f32 %v222_v56, %v215_v53  ;;  %v226_v59 = vadd.f32 %v222_v56, %v216_v54  ;;  %v227_v60 = vadd.f32 %v222_v56, %v217_v55 }
 0x12a   :  { %v273_v61 = vpack.c.bf16 %v225_v58, %v224_v57  ;;  %v278_v62 = vpack.c.bf16 %v227_v60, %v226_v59 }
 0x12c   :  { %274 = vst [vmem:[%s394_s4] sm:$0xff] %v273_v61   ;;  %280 = vst [vmem:[%s394_s4 + $0x8] sm:$0xff] %v278_v62  }

// kernel: icnet_backbone_forward.61
= control target key start
LH: loop header
LB: loop body
LE: loop exit
PB: predicated region body
PF: predicated region fallthrough
CT: control target
= control target key end

     0   :  { %v220_v42 = vlaneseq  ;;  %s429_s1 = inlined_call_operand.vmem [shape: bf16[128,128], index: 1, kind: input, shape index: {}]   ;;  %s430_s0 = inlined_call_operand.vmem [shape: bf16[32,128], index: 0, kind: input, shape index: {}]   ;;  %s431_s2 = inlined_call_operand.vmem [shape: f32[1,128], index: 2, kind: input, shape index: {}]   ;;  %s432_s3 = inlined_call_operand.vmem [shape: f32[1,128], index: 3, kind: input, shape index: {}]   ;;  %s433_s4 = inlined_call_operand.vmem [shape: bf16[32,128], index: 4, kind: input, shape index: {}]   ;;  %s434_s5 = inlined_call_operand.vmem [shape: bf16[32,128], index: 5, kind: output, shape index: {}]  }
   0x1   :  { %v339_v0 = vld [vmem:[%s429_s1] sm:$0xff]   ;;  %v340_v1 = vld [vmem:[%s429_s1 + $0x8] sm:$0xff]   ;;  %v341_v2 = vld [vmem:[%s429_s1 + $0x10] sm:$0xff]  }
   0x2   :  { %319 = vmatprep.subr.bf16.mxu0 %v339_v0  ;;  %v342_v3 = vld [vmem:[%s429_s1 + $0x18] sm:$0xff]   ;;  %v347_v4 = vld [vmem:[%s430_s0] sm:$0xff]   ;;  %v344_v6 = vld [vmem:[%s429_s1 + $0x28] sm:$0xff]   ;;  %v221_v43 = vshrl.u32 %v220_v42, 7 }
   0x3   :  { %320 = vmatpush3.bf16.msra.mxu0 %v339_v0  ;;  %335 = vmatprep.mubr.bf16.mxu0 %v347_v4  ;;  %v343_v5 = vld [vmem:[%s429_s1 + $0x20] sm:$0xff]   ;;  %v345_v7 = vld [vmem:[%s429_s1 + $0x30] sm:$0xff]   ;;  %v346_v8 = vld [vmem:[%s429_s1 + $0x38] sm:$0xff]  }
   0x4   :  { %321 = vmatprep.subr.bf16.mxu0 %v340_v1  ;;  %v348_v9 = vld [vmem:[%s430_s0 + $0x8] sm:$0xff]   ;;  %v177_v44 = vld [vmem:[%s431_s2] sm:$0x1]  ;;  %v222_v45 = vsub.s32 0, %v221_v43 }
   0x5   :  { %v178_v48 = vld [vmem:[%s432_s3] sm:$0x1]  ;;  %v307_v52 = vld [vmem:[%s433_s4 + $0x8] sm:$0xff]  }
   0x6   :  { %v290_v49 = vld [vmem:[%s433_s4] sm:$0xff]   ;;  %v295_v60 = vunpack.c.l.bf16 %v307_v52  ;;  %v296_v61 = vunpack.c.h.bf16 %v307_v52 }
   0x7   :  { %322 = vmatpush3.bf16.msra.mxu0 %v340_v1  ;;  %v291_v57 = vunpack.c.l.bf16 %v290_v49  ;;  %v292_v59 = vunpack.c.h.bf16 %v290_v49 }
   0x8   :  { %323 = vmatprep.subr.bf16.mxu0 %v341_v2 }
   0xb   :  { %324 = vmatpush3.bf16.msra.mxu0 %v341_v2 }
   0xc   :  { %325 = vmatprep.subr.bf16.mxu0 %v342_v3 }
   0xf   :  { %326 = vmatpush3.bf16.msra.mxu0 %v342_v3 }
  0x10   :  { %327 = vmatprep.subr.bf16.mxu0 %v343_v5 }
  0x13   :  { %328 = vmatpush3.bf16.msra.mxu0 %v343_v5 }
  0x14   :  { %329 = vmatprep.subr.bf16.mxu0 %v344_v6 }
  0x17   :  { %330 = vmatpush3.bf16.msra.mxu0 %v344_v6 }
  0x18   :  { %331 = vmatprep.subr.bf16.mxu0 %v345_v7 }
  0x1b   :  { %332 = vmatpush3.bf16.msra.mxu0 %v345_v7 }
  0x1c   :  { %333 = vmatprep.subr.bf16.mxu0 %v346_v8 }
  0x1f   :  { %334 = vmatpush3.bf16.msra.mxu0 %v346_v8 }
  0x22   :  { %336 = vmatmul.mubr.bf16.vlgmr.msra.gmra.mrb[0].mxu0 %v348_v9 }
  0xf5   :  { %v337_v10 = vpop.f32.mrb[0].mxu0 }
  0xf6   :  { %v147_v11 = vpop.f32.mrb[1].mxu0  ;;  %v198_v17 = vmul.f32 %v337_v10, %v337_v10 }
  0xf7   :  { %v338_v12 = vpop.f32.mrb[2].mxu0  ;;  %v196_v14 = vmul.f32 %v147_v11, %v147_v11 }
  0xf8   :  { %v150_v13 = vpop.f32.mrb[3].mxu0  ;;  %v199_v20 = vmul.f32 %v338_v12, %v338_v12 }
  0xf9   :  { %v187_v15 = vadd.f32 %v150_v13, %v147_v11  ;;  %v197_v16 = vmul.f32 %v150_v13, %v150_v13 }
  0xfb   :  { %v188_v18 = vadd.f32 %v337_v10, %v187_v15  ;;  %v200_v19 = vadd.f32 %v197_v16, %v196_v14 }
  0xfd   :  { %v189_v21 = vadd.f32 %v338_v12, %v188_v18  ;;  %v201_v22 = vadd.f32 %v200_v19, %v198_v17 }
  0xff   :  { %v190_v23 = vrot.slane %v189_v21, 4  ;;  %v202_v24 = vadd.f32 %v201_v22, %v199_v20 }
 0x101   :  { %v191_v25 = vadd.f32 %v190_v23, %v189_v21  ;;  %v203_v26 = vrot.slane %v202_v24, 4 }
 0x103   :  { %v192_v27 = vrot.slane %v191_v25, 2  ;;  %v204_v28 = vadd.f32 %v203_v26, %v202_v24 }
 0x105   :  { %v193_v29 = vadd.f32 %v192_v27, %v191_v25  ;;  %v205_v30 = vrot.slane %v204_v28, 2 }
 0x107   :  { %v194_v31 = vrot.slane %v193_v29, 1  ;;  %v206_v32 = vadd.f32 %v205_v30, %v204_v28 }
 0x109   :  { %v195_v33 = vadd.f32 %v194_v31, %v193_v29  ;;  %v207_v34 = vrot.slane %v206_v32, 1 }
 0x10b   :  { %v208_v35 = vadd.f32 %v207_v34, %v206_v32  ;;  %v209_v36 = vmul.f32 0.03125, %v195_v33 }
 0x10d   :  { %v210_v37 = vmul.f32 0.03125, %v208_v35  ;;  %v211_v38 = vmul.f32 %v209_v36, %v209_v36 }
 0x10f   :  { %v212_v39 = vsub.f32 %v210_v37, %v211_v38 }
 0x111   :  { %v213_v40 = vmax.f32 %v212_v39, 0.0 }
 0x113   :  { %v214_v41 = vadd.f32 1e-05, %v213_v40 }
 0x115   :  { %349 = vrsqrt.f32 %v214_v41 }
 0x11f   :  { %v350_v46 = vpop.eup %349 }
 0x120   :  { %v216_v47 = vmul.f32 %v350_v46, %v177_v44 }
 0x122   :  { %v217_v50 = vmul.f32 %v216_v47, %v209_v36  ;;  %v223_v51 = vrot.slane %v216_v47, %v222_v45 }
 0x124   :  { %v218_v53 = vsub.f32 %v178_v48, %v217_v50  ;;  %v225_v54 = vmul.f32 %v223_v51, %v147_v11  ;;  %v226_v55 = vmul.f32 %v223_v51, %v150_v13  ;;  %v227_v56 = vmul.f32 %v337_v10, %v223_v51 }
 0x125   :  { %v228_v58 = vmul.f32 %v338_v12, %v223_v51 }
 0x126   :  { %v233_v62 = vrot.slane %v218_v53, %v222_v45 }
 0x128   :  { %v235_v63 = vadd.f32 %v233_v62, %v225_v54  ;;  %v236_v0 = vadd.f32 %v233_v62, %v226_v55  ;;  %v237_v1 = vadd.f32 %v233_v62, %v227_v56  ;;  %v238_v2 = vadd.f32 %v233_v62, %v228_v58 }
 0x12a   :  { %v239_v3 = vadd.f32 %v291_v57, %v235_v63  ;;  %v240_v4 = vadd.f32 %v292_v59, %v236_v0  ;;  %v241_v5 = vadd.f32 %v295_v60, %v237_v1  ;;  %v242_v6 = vadd.f32 %v296_v61, %v238_v2 }
 0x12c   :  { %v243_v7 = vmax.f32 %v239_v3, 0.0  ;;  %v244_v8 = vmax.f32 %v240_v4, 0.0  ;;  %v245_v9 = vmax.f32 %v241_v5, 0.0  ;;  %v246_v11 = vmax.f32 %v242_v6, 0.0 }
 0x12e   :  { %v300_v13 = vpack.c.bf16 %v244_v8, %v243_v7  ;;  %v305_v10 = vpack.c.bf16 %v246_v11, %v245_v9 }
 0x130   :  { %301 = vst [vmem:[%s434_s5] sm:$0xff] %v300_v13   ;;  %308 = vst [vmem:[%s434_s5 + $0x8] sm:$0xff] %v305_v10  }

// kernel: icnet_backbone_forward.68
= control target key start
LH: loop header
LB: loop body
LE: loop exit
PB: predicated region body
PF: predicated region fallthrough
CT: control target
= control target key end

     0   :  { %v268_v0 = vmov 0.0   ;;  %vm269_vm0 = vmmov 0   ;;  %v177_v36 = vlaneseq  ;;  %s331_s1 = inlined_call_operand.vmem [shape: bf16[128,128], index: 1, kind: input, shape index: {}]   ;;  %s332_s0 = inlined_call_operand.vmem [shape: bf16[16,128], index: 0, kind: input, shape index: {}]   ;;  %s333_s2 = inlined_call_operand.vmem [shape: f32[1,128], index: 2, kind: input, shape index: {}]   ;;  %s334_s3 = inlined_call_operand.vmem [shape: f32[1,128], index: 3, kind: input, shape index: {}]   ;;  %s335_s4 = inlined_call_operand.vmem [shape: bf16[16,128], index: 4, kind: output, shape index: {}]  }
   0x1   :  { %235 = vmatprep.subr.bf16.mxu0 %v268_v0  ;;  %v257_v1 = vld [vmem:[%s331_s1] sm:$0xff]   ;;  %251 = vmatprep.mubr.msk.bf16.mxu0 %vm269_vm0, %v268_v0  ;;  %v258_v2 = vld [vmem:[%s331_s1 + $0x8] sm:$0xff]   ;;  %v259_v3 = vld [vmem:[%s331_s1 + $0x10] sm:$0xff]  }
   0x2   :  { %236 = vmatpush3.bf16.msra.mxu0 %v257_v1  ;;  %v260_v4 = vld [vmem:[%s331_s1 + $0x18] sm:$0xff]   ;;  %v261_v5 = vld [vmem:[%s331_s1 + $0x20] sm:$0xff]   ;;  %v262_v6 = vld [vmem:[%s331_s1 + $0x28] sm:$0xff]   ;;  %v178_v37 = vshrl.u32 %v177_v36, 7 }
   0x3   :  { %237 = vmatprep.subr.bf16.mxu0 %v268_v0  ;;  %v263_v7 = vld [vmem:[%s331_s1 + $0x30] sm:$0xff]   ;;  %v264_v8 = vld [vmem:[%s331_s1 + $0x38] sm:$0xff]   ;;  %v265_v9 = vld [vmem:[%s332_s0] sm:$0xff]  }
   0x4   :  { %v148_v38 = vld [vmem:[%s333_s2] sm:$0x1]  ;;  %v179_v39 = vsub.s32 0, %v178_v37 }
   0x5   :  { %v149_v42 = vld [vmem:[%s334_s3] sm:$0x1] }
   0x6   :  { %238 = vmatpush3.bf16.msra.mxu0 %v258_v2 }
   0x7   :  { %239 = vmatprep.subr.bf16.mxu0 %v268_v0 }
   0xa   :  { %240 = vmatpush3.bf16.msra.mxu0 %v259_v3 }
   0xb   :  { %241 = vmatprep.subr.bf16.mxu0 %v268_v0 }
   0xe   :  { %242 = vmatpush3.bf16.msra.mxu0 %v260_v4 }
   0xf   :  { %243 = vmatprep.subr.bf16.mxu0 %v268_v0 }
  0x12   :  { %244 = vmatpush3.bf16.msra.mxu0 %v261_v5 }
  0x13   :  { %245 = vmatprep.subr.bf16.mxu0 %v268_v0 }
  0x16   :  { %246 = vmatpush3.bf16.msra.mxu0 %v262_v6 }
  0x17   :  { %247 = vmatprep.subr.bf16.mxu0 %v268_v0 }
  0x1a   :  { %248 = vmatpush3.bf16.msra.mxu0 %v263_v7 }
  0x1b   :  { %249 = vmatprep.subr.bf16.mxu0 %v268_v0 }
  0x1e   :  { %250 = vmatpush3.bf16.msra.mxu0 %v264_v8 }
  0x21   :  { %252 = vmatmul.mubr.bf16.vlgmr.msra.gmra.mrb[0].mxu0 %v265_v9 }
  0xf4   :  { %v132_v10 = vpop.f32.mrb[0].mxu0 }
  0xf5   :  { %v253_v11 = vpop.f32.mrb[1].mxu0  ;;  %v157_v13 = vmul.f32 %v132_v10, %v132_v10 }
  0xf6   :  { %v135_v12 = vpop.f32.mrb[2].mxu0 }
  0xf7   :  { %v150_v14 = vadd.f32 %v135_v12, %v132_v10  ;;  %v158_v15 = vmul.f32 %v135_v12, %v135_v12  ;;  %v254_v16 = vpop.f32.mrb[3].mxu0 }
  0xf9   :  { %v151_v17 = vrot.slane %v150_v14, 4  ;;  %v159_v18 = vadd.f32 %v158_v15, %v157_v13 }
  0xfb   :  { %v152_v19 = vadd.f32 %v151_v17, %v150_v14  ;;  %v160_v20 = vrot.slane %v159_v18, 4 }
  0xfd   :  { %v153_v21 = vrot.slane %v152_v19, 2  ;;  %v161_v22 = vadd.f32 %v160_v20, %v159_v18 }
  0xff   :  { %v154_v23 = vadd.f32 %v153_v21, %v152_v19  ;;  %v162_v24 = vrot.slane %v161_v22, 2 }
 0x101   :  { %v155_v25 = vrot.slane %v154_v23, 1  ;;  %v163_v26 = vadd.f32 %v162_v24, %v161_v22 }
 0x103   :  { %v156_v27 = vadd.f32 %v155_v25, %v154_v23  ;;  %v164_v28 = vrot.slane %v163_v26, 1 }
 0x105   :  { %v165_v29 = vadd.f32 %v164_v28, %v163_v26  ;;  %v166_v30 = vmul.f32 0.125, %v156_v27 }
 0x107   :  { %v167_v31 = vmul.f32 0.125, %v165_v29  ;;  %v168_v32 = vmul.f32 %v166_v30, %v166_v30 }
 0x109   :  { %v169_v33 = vsub.f32 %v167_v31, %v168_v32 }
 0x10b   :  { %v170_v34 = vmax.f32 %v169_v33, 0.0 }
 0x10d   :  { %v171_v35 = vadd.f32 1e-05, %v170_v34 }
 0x10f   :  { %266 = vrsqrt.f32 %v171_v35 }
 0x119   :  { %v267_v40 = vpop.eup %266 }
 0x11a   :  { %v173_v41 = vmul.f32 %v267_v40, %v148_v38 }
 0x11c   :  { %v174_v43 = vmul.f32 %v173_v41, %v166_v30  ;;  %v180_v44 = vrot.slane %v173_v41, %v179_v39 }
 0x11e   :  { %v175_v45 = vsub.f32 %v149_v42, %v174_v43  ;;  %v182_v46 = vmul.f32 %v180_v44, %v132_v10  ;;  %v183_v47 = vmul.f32 %v180_v44, %v135_v12 }
 0x120   :  { %v188_v48 = vrot.slane %v175_v45, %v179_v39 }
 0x122   :  { %v190_v49 = vadd.f32 %v188_v48, %v182_v46  ;;  %v191_v50 = vadd.f32 %v188_v48, %v183_v47 }
 0x124   :  { %v192_v51 = vmax.f32 %v190_v49, 0.0  ;;  %v193_v52 = vmax.f32 %v191_v50, 0.0 }
 0x126   :  { %v224_v53 = vpack.c.bf16 %v193_v52, %v192_v51 }
 0x128   :  { %225 = vst [vmem:[%s335_s4] sm:$0xff] %v224_v53  }

// kernel: icnet_backbone_forward.69
= control target key start
LH: loop header
LB: loop body
LE: loop exit
PB: predicated region body
PF: predicated region fallthrough
CT: control target
= control target key end

     0   :  { %s1030_s15 = smov 0   ;;  %s1032_s16 = smov 0   ;;  %s1137_s0 = inlined_call_operand.vmem [shape: bf16[16,768], index: 0, kind: input, shape index: {}]   ;;  %s1138_s1 = inlined_call_operand.vmem [shape: bf16[768,128], index: 1, kind: input, shape index: {}]   ;;  %s1139_s2 = inlined_call_operand.vmem [shape: f32[1,128], index: 2, kind: input, shape index: {}]   ;;  %s1140_s3 = inlined_call_operand.vmem [shape: f32[1,128], index: 3, kind: input, shape index: {}]   ;;  %s1141_s4 = inlined_call_operand.vmem [shape: bf16[16,128], index: 4, kind: output, shape index: {}]  }
   0x1   :  { %s1034_s17 = smov 0   ;;  %s1036_s18 = smov 0  }
   0x2   :  { %s1038_s19 = smov 0  }
   0x3 LB: > { %s23_s20 = sadd.s32 1, %s996_s18  ;;  %p40_p1 = scmp.ne.s32.totalorder %s988_s16, %s984_s15  ;;  %s1000_s19 = sphi %s1038_s19, %s14_s19   ;;  %s996_s18 = sphi %s1036_s18, %s1145_s18   ;;  %s992_s17 = sphi %s1034_s17, %s1144_s17   ;;  %s988_s16 = sphi %s1032_s16, %s1143_s16   ;;  %s984_s15 = sphi %s1030_s15, %s1142_s15  }
   0x4   : > { %p24_p0 = scmp.ge.s32.totalorder %s23_s20, 2  ;;  %p41_p2 = scmp.eq.s32.totalorder %s1000_s19, 0 }
   0x5   : > { %s33_s22 = sadd.s32 1, %s988_s16  ;;  %p786_p5 = scmp.ge.s32.totalorder %s1000_s19, 2 }
   0x6   : > { %s1147_s20 = smov (%p24_p0, %s23_s20), 0  ;;  %p42_p3 = por %p41_p2, %p40_p1 }
   0x7   : > { %s30_s21 = ssub.s32 %s996_s18, %s1147_s20  ;;  %184 = sbr.rel (%p786_p5) target bundleno = 21 (0x15), region = 24 }
   0x8   : > { %p31_p4 = scmp.eq.s32.totalorder %s30_s21, 0 }
   0xa   : > { %s1065_s23 = scalar_select %p31_p4, %s988_s16, %s33_s22  }
   0xe   : > { %187 = sbr.rel (!%p42_p3) target bundleno = 21 (0x15), region = 28  ;;  %s189_s24 = sand.u32 (%p42_p3), 1, %s988_s16  }
   0xf   : > { %s828_s25 = smul.u32 (%p42_p3), 12, %s996_s18 }
  0x10   : > { %s887_s26 = smul.u32 (%p42_p3), 24, %s189_s24 }
  0x11   : > { %s194_s29 = scalar_lea.vmem (%p42_p3), %s1137_s0, %s828_s25 }
  0x12   : > { %v209_v0 = vld [vmem:[%s194_s29] sm:$0xff] (%p42_p3)  ;;  %v211_v1 = vld [vmem:[%s194_s29 + $0x18] sm:$0xff] (%p42_p3)  ;;  %v788_v2 = vld [vmem:[%s194_s29 + $0x8] sm:$0xf] (%p42_p3)  ;;  %s191_s30 = scalar_lea.vmem (%p42_p3), [#allocation3], %s887_s26 }
  0x13   : > { %210 = vst [vmem:[%s191_s30] sm:$0xff] (%p42_p3), %v209_v0  ;;  %212 = vst [vmem:[%s191_s30 + $0xc] sm:$0xff] (%p42_p3), %v211_v1  ;;  %v790_v3 = vld [vmem:[%s194_s29 + $0x20] sm:$0xf] (%p42_p3) }
  0x14   : > { %789 = vst [vmem:[%s191_s30 + $0x8] sm:$0xf] (%p42_p3), %v788_v2  ;;  %791 = vst [vmem:[%s191_s30 + $0x14] sm:$0xf] (%p42_p3), %v790_v3 }
  0x15 PF: > { %p792_p6 = scmp.ge.s32.totalorder %s1000_s19, 1  ;;  %p240_p7 = scmp.lt.s32.totalorder %s1000_s19, 3 }
  0x17   : > { %p241_p8 = pnand %p792_p6, %p240_p7 }
  0x18   : > { %s247_s5 = sand.u32 (!%p241_p8), 1, %s984_s15   ;;  %s286_s6 = smul.u32 (!%p241_p8), 48, %s992_s17 }
  0x19   : > { %244 = sbr.rel (%p241_p8) target bundleno = 351 (0x15f), region = 58  ;;  %p794_p10 = scmp.ne.s32.totalorder (!%p241_p8), %s992_s17, 0 }
  0x1a   : > { %s888_s7 = smul.u32 (!%p241_p8), 24, %s247_s5  ;;  %p287_p9 = scmp.lt.s32.totalorder (!%p241_p8), %s286_s6, 95 }
  0x1c   : > { %s1082_s12 = scalar_lea.vmem (!%p241_p8), [#allocation3], %s888_s7 }
  0x20   : > { %s1149_s6 = smov (!%p287_p9, %s286_s6), 95  ;;  %309 = sbr.rel (%p794_p10) target bundleno = 39 (0x27), region = 66 }
  0x21   : > { %s793_s8 = sshll.u32 %s1149_s6, 2  ;;  %v1002_v4 = vmov (!%p794_p10), 0.0  }
  0x22   : > { %s1080_s11 = scalar_lea.vmem %s1138_s1, %s793_s8  ;;  %310 = vst [vmem:[#allocation2] sm:$0xff] (!%p794_p10), %v1002_v4  ;;  %311 = vst [vmem:[#allocation2 + $0x8] sm:$0xff] (!%p794_p10), %v1002_v4 }
  0x27 PF: > { %v932_v5 = vld [vmem:[%s1080_s11 + $0x40] sm:$0xff]   ;;  %v1003_v6 = vmov 0.0   ;;  %vm1004_vm0 = vmmov 0   ;;  %v935_v9 = vld [vmem:[%s1080_s11 + $0x48] sm:$0xff]   ;;  %v938_v12 = vld [vmem:[%s1080_s11 + $0x50] sm:$0xff]   ;;  %p822_p11 = scmp.ne.s32.totalorder %s992_s17, 1 }
  0x28   : > { %867 = vmatprep.subr.bf16.mxu1 %v1003_v6  ;;  %v933_v7 = vld [vmem:[%s1080_s11] sm:$0xff]   ;;  %836 = vmatprep.subr.bf16.mxu0 %v932_v5  ;;  %v936_v10 = vld [vmem:[%s1080_s11 + $0x8] sm:$0xff]   ;;  %v939_v13 = vld [vmem:[%s1080_s11 + $0x10] sm:$0xff]  }
  0x29   : > { %v934_v8 = vld [vmem:[%s1080_s11 + $0x80] sm:$0xff]   ;;  %883 = vmatprep.mubr.msk.bf16.mxu1 %vm1004_vm0, %v1003_v6  ;;  %837 = vmatpush3.bf16.msra.mxu0 %v933_v7  ;;  %v937_v11 = vld [vmem:[%s1080_s11 + $0x88] sm:$0xff]   ;;  %v940_v14 = vld [vmem:[%s1080_s11 + $0x90] sm:$0xff]  }
  0x2a   : > { %868 = vmatpush3.bf16.msra.mxu1 %v934_v8  ;;  %838 = vmatprep.subr.bf16.mxu0 %v935_v9  ;;  %v941_v15 = vld [vmem:[%s1080_s11 + $0x58] sm:$0xff]   ;;  %v944_v18 = vld [vmem:[%s1080_s11 + $0x60] sm:$0xff]   ;;  %v947_v21 = vld [vmem:[%s1080_s11 + $0x68] sm:$0xff]   ;;  %v647_v9 = vlaneseq (!%p822_p11) }
  0x2b   : > { %869 = vmatprep.subr.bf16.mxu1 %v1003_v6  ;;  %v942_v16 = vld [vmem:[%s1080_s11 + $0x18] sm:$0xff]   ;;  %v945_v19 = vld [vmem:[%s1080_s11 + $0x20] sm:$0xff]   ;;  %v948_v22 = vld [vmem:[%s1080_s11 + $0x28] sm:$0xff]  }
  0x2c   : > { %v943_v17 = vld [vmem:[%s1080_s11 + $0x98] sm:$0xff]   ;;  %v946_v20 = vld [vmem:[%s1080_s11 + $0xa0] sm:$0xff]   ;;  %v949_v23 = vld [vmem:[%s1080_s11 + $0xa8] sm:$0xff]  }
  0x2d   : > { %839 = vmatpush3.bf16.msra.mxu0 %v936_v10  ;;  %v950_v24 = vld [vmem:[%s1080_s11 + $0x70] sm:$0xff]   ;;  %v953_v27 = vld [vmem:[%s1080_s11 + $0x78] sm:$0xff]   ;;  %v312_v39 = vld [vmem:[#allocation2] sm:$0xff]  ;;  %v648_v10 = vshrl.u32 (!%p822_p11), %v647_v9, 7 }
  0x2e   : > { %870 = vmatpush3.bf16.msra.mxu1 %v937_v11  ;;  %840 = vmatprep.subr.bf16.mxu0 %v938_v12  ;;  %v951_v25 = vld [vmem:[%s1080_s11 + $0x30] sm:$0xff]   ;;  %v954_v29 = vld [vmem:[%s1080_s11 + $0x38] sm:$0xff]   ;;  %v313_v45 = vld [vmem:[#allocation2 + $0x8] sm:$0xff] }
  0x2f   : > { %871 = vmatprep.subr.bf16.mxu1 %v1003_v6  ;;  %v952_v26 = vld [vmem:[%s1080_s11 + $0xb0] sm:$0xff]   ;;  %v955_v30 = vld [vmem:[%s1080_s11 + $0xb8] sm:$0xff]   ;;  %v618_v11 = vld [vmem:[%s1139_s2] sm:$0x1] (!%p822_p11)  ;;  %v649_v12 = vsub.s32 (!%p822_p11), 0, %v648_v10 }
  0x30   : > { %v958_v28 = vld [vmem:[%s1082_s12 + $0x4] ss:$12 sps:$4 sm:$0xff]   ;;  %v956_v31 = vld [vmem:[%s1082_s12] ss:$12 sps:$4 sm:$0xff]   ;;  %v959_v32 = vld [vmem:[%s1082_s12 + $0x8] ss:$12 sps:$4 sm:$0xff]  }
  0x31   : > { %841 = vmatpush3.bf16.msra.mxu0 %v939_v13  ;;  %558 = vmatprep.mubr.bf16.mxu0 %v958_v28 }
  0x32   : > { %872 = vmatpush3.bf16.msra.mxu1 %v940_v14  ;;  %842 = vmatprep.subr.bf16.mxu0 %v941_v15  ;;  %v619_v15 = vld [vmem:[%s1140_s3] sm:$0x1] (!%p822_p11) }
  0x33   : > { %873 = vmatprep.subr.bf16.mxu1 %v1003_v6 }
  0x35   : > { %843 = vmatpush3.bf16.msra.mxu0 %v942_v16 }
  0x36   : > { %874 = vmatpush3.bf16.msra.mxu1 %v943_v17  ;;  %844 = vmatprep.subr.bf16.mxu0 %v944_v18 }
  0x37   : > { %875 = vmatprep.subr.bf16.mxu1 %v1003_v6 }
  0x39   : > { %845 = vmatpush3.bf16.msra.mxu0 %v945_v19 }
  0x3a   : > { %876 = vmatpush3.bf16.msra.mxu1 %v946_v20  ;;  %846 = vmatprep.subr.bf16.mxu0 %v947_v21 }
  0x3b   : > { %877 = vmatprep.subr.bf16.mxu1 %v1003_v6 }
  0x3d   : > { %847 = vmatpush3.bf16.msra.mxu0 %v948_v22 }
  0x3e   : > { %878 = vmatpush3.bf16.msra.mxu1 %v949_v23  ;;  %848 = vmatprep.subr.bf16.mxu0 %v950_v24 }
  0x3f   : > { %879 = vmatprep.subr.bf16.mxu1 %v1003_v6 }
  0x41   : > { %849 = vmatpush3.bf16.msra.mxu0 %v951_v25 }
  0x42   : > { %880 = vmatpush3.bf16.msra.mxu1 %v952_v26  ;;  %850 = vmatprep.subr.bf16.mxu0 %v953_v27 }
  0x43   : > { %881 = vmatprep.subr.bf16.mxu1 %v1003_v6 }
  0x45   : > { %851 = vmatpush3.bf16.msra.mxu0 %v954_v29 }
  0x46   : > { %882 = vmatpush3.bf16.msra.mxu1 %v955_v30 }
  0x48   : > { %559 = vmatmul.mubr.bf16.vlgmr.msra.gmra.mrb[0].mxu0 %v956_v31 }
  0x49   : > { %884 = vmatmul.mubr.bf16.vlgmr.msra.gmra.mrb[0].mxu1 %v959_v32 }
 0x11b   : > { %v852_v33 = vpop.f32.mrb[0].mxu0 }
 0x11c   : > { %v601_v34 = vpop.f32.mrb[0].mxu1  ;;  %v853_v35 = vpop.f32.mrb[1].mxu0 }
 0x11d   : > { %v854_v36 = vadd.f32 %v853_v35, %v852_v33  ;;  %v885_v37 = vpop.f32.mrb[1].mxu1  ;;  %v855_v38 = vpop.f32.mrb[2].mxu0 }
 0x11e   : > { %v604_v40 = vpop.f32.mrb[2].mxu1  ;;  %v856_v41 = vpop.f32.mrb[3].mxu0 }
 0x11f   : > { %v602_v42 = vadd.f32 %v854_v36, %v601_v34  ;;  %v857_v43 = vadd.f32 %v856_v41, %v855_v38  ;;  %v886_v44 = vpop.f32.mrb[3].mxu1  ;;  %615 = sbr.rel (%p822_p11) target bundleno = 351 (0x15f), region = 70 }
 0x121   : > { %v608_v46 = vadd.f32 %v602_v42, %v312_v39  ;;  %v605_v47 = vadd.f32 %v857_v43, %v604_v40 }
 0x123   : > { %610 = vst [vmem:[#allocation2] sm:$0xff] %v608_v46  ;;  %v609_v48 = vadd.f32 %v605_v47, %v313_v45 }
 0x125   : > { %611 = vst [vmem:[#allocation2 + $0x8] sm:$0xff] %v609_v48 }
 0x12a   : > { %v616_v49 = vld [vmem:[#allocation2] sm:$0xff] }
 0x12b   : > { %v627_v52 = vmul.f32 %v616_v49, %v616_v49 }
 0x12c   : > { %v617_v50 = vld [vmem:[#allocation2 + $0x8] sm:$0xff] }
 0x12d   : > { %v620_v51 = vadd.f32 %v617_v50, %v616_v49  ;;  %v628_v53 = vmul.f32 %v617_v50, %v617_v50 }
 0x12f   : > { %v621_v54 = vrot.slane %v620_v51, 4  ;;  %v629_v55 = vadd.f32 %v628_v53, %v627_v52 }
 0x131   : > { %v622_v56 = vadd.f32 %v621_v54, %v620_v51  ;;  %v630_v57 = vrot.slane %v629_v55, 4 }
 0x133   : > { %v623_v58 = vrot.slane %v622_v56, 2  ;;  %v631_v59 = vadd.f32 %v630_v57, %v629_v55 }
 0x135   : > { %v624_v60 = vadd.f32 %v623_v58, %v622_v56  ;;  %v632_v61 = vrot.slane %v631_v59, 2 }
 0x137   : > { %v625_v62 = vrot.slane %v624_v60, 1  ;;  %v633_v63 = vadd.f32 %v632_v61, %v631_v59 }
 0x139   : > { %v626_v0 = vadd.f32 %v625_v62, %v624_v60  ;;  %v634_v1 = vrot.slane %v633_v63, 1 }
 0x13b   : > { %v635_v2 = vadd.f32 %v634_v1, %v633_v63  ;;  %v636_v3 = vmul.f32 0.125, %v626_v0 }
 0x13d   : > { %v637_v4 = vmul.f32 0.125, %v635_v2  ;;  %v638_v5 = vmul.f32 %v636_v3, %v636_v3 }
 0x13f   : > { %v639_v6 = vsub.f32 %v637_v4, %v638_v5 }
 0x141   : > { %v640_v7 = vmax.f32 %v639_v6, 0.0 }
 0x143   : > { %v641_v8 = vadd.f32 1e-05, %v640_v7 }
 0x145   : > { %960 = vrsqrt.f32 %v641_v8 }
 0x14f   : > { %v961_v13 = vpop.eup %960 }
 0x150   : > { %v643_v14 = vmul.f32 %v961_v13, %v618_v11 }
 0x152   : > { %v644_v16 = vmul.f32 %v643_v14, %v636_v3  ;;  %v650_v17 = vrot.slane %v643_v14, %v649_v12 }
 0x154   : > { %v645_v18 = vsub.f32 %v619_v15, %v644_v16  ;;  %v652_v19 = vmul.f32 %v650_v17, %v616_v49  ;;  %v653_v20 = vmul.f32 %v650_v17, %v617_v50 }
 0x156   : > { %v658_v21 = vrot.slane %v645_v18, %v649_v12 }
 0x158   : > { %v660_v22 = vadd.f32 %v658_v21, %v652_v19  ;;  %v661_v23 = vadd.f32 %v658_v21, %v653_v20 }
 0x15a   : > { %v662_v24 = vmax.f32 %v660_v22, 0.0  ;;  %v663_v25 = vmax.f32 %v661_v23, 0.0 }
 0x15c   : > { %v834_v26 = vpack.c.bf16 %v663_v25, %v662_v24 }
 0x15e   : > { %835 = vst [vmem:[%s1141_s4] sm:$0xff] %v834_v26  }
 0x15f PF: > { %s14_s19 = sadd.s32 1, %s1000_s19   ;;  %s1142_s15 = smov %s988_s16 }
 0x160   : > { %p11_p12 = scmp.ge.s32.totalorder %s14_s19, 4   ;;  %s1143_s16 = smov %s1065_s23 }
 0x161   : > { %s1144_s17 = smov %s996_s18  ;;  %s1145_s18 = smov %s1147_s20 }
 0x162   :  { %13 = sbr.rel (!%p11_p12) target bundleno = 3 (0x3), region = 120 }

// kernel: icnet_backbone_forward.70
= control target key start
LH: loop header
LB: loop body
LE: loop exit
PB: predicated region body
PF: predicated region fallthrough
CT: control target
= control target key end

     0   :  { %v380_v1 = vmov 0   ;;  %s494_s1 = inlined_call_operand.vmem [shape: bf16[128,256], index: 1, kind: input, shape index: {}]   ;;  %s495_s0 = inlined_call_operand.vmem [shape: bf16[16,128], index: 0, kind: input, shape index: {}]   ;;  %s496_s2 = inlined_call_operand.vmem [shape: f32[1,256], index: 2, kind: input, shape index: {}]   ;;  %s497_s3 = inlined_call_operand.vmem [shape: f32[1,256], index: 3, kind: input, shape index: {}]   ;;  %s498_s4 = inlined_call_operand.vmem [shape: bf16[16,256], index: 4, kind: output, shape index: {}]  }
   0x1   :  { %v351_v0 = vld [vmem:[%s494_s1 + $0x4] ss:$8 sps:$4 sm:$0xff]   ;;  %166 = vmatprep.mubr.bf16.mxu0 %v380_v1  ;;  %v353_v2 = vld [vmem:[%s494_s1] ss:$8 sps:$4 sm:$0xff]   ;;  %v354_v3 = vld [vmem:[%s494_s1 + $0x14] ss:$8 sps:$4 sm:$0xff]  }
   0x2   :  { %134 = vmatprep.subr.bf16.mxu0 %v351_v0  ;;  %v356_v4 = vld [vmem:[%s494_s1 + $0x10] ss:$8 sps:$4 sm:$0xff]   ;;  %v357_v5 = vld [vmem:[%s494_s1 + $0x24] ss:$8 sps:$4 sm:$0xff]   ;;  %v359_v6 = vld [vmem:[%s494_s1 + $0x20] ss:$8 sps:$4 sm:$0xff]  }
   0x3   :  { %135 = vmatpush1.bf16.msra.mxu0 %v353_v2  ;;  %v360_v7 = vld [vmem:[%s494_s1 + $0x34] ss:$8 sps:$4 sm:$0xff]   ;;  %v362_v8 = vld [vmem:[%s494_s1 + $0x30] ss:$8 sps:$4 sm:$0xff]   ;;  %v363_v9 = vld [vmem:[%s494_s1 + $0x44] ss:$8 sps:$4 sm:$0xff]  }
   0x4   :  { %136 = vmatprep.subr.bf16.mxu0 %v354_v3  ;;  %v365_v10 = vld [vmem:[%s494_s1 + $0x40] ss:$8 sps:$4 sm:$0xff]   ;;  %v366_v11 = vld [vmem:[%s494_s1 + $0x54] ss:$8 sps:$4 sm:$0xff]   ;;  %v368_v12 = vld [vmem:[%s494_s1 + $0x50] ss:$8 sps:$4 sm:$0xff]  }
   0x5   :  { %v369_v13 = vld [vmem:[%s494_s1 + $0x64] ss:$8 sps:$4 sm:$0xff]   ;;  %v371_v14 = vld [vmem:[%s494_s1 + $0x60] ss:$8 sps:$4 sm:$0xff]   ;;  %v372_v15 = vld [vmem:[%s494_s1 + $0x74] ss:$8 sps:$4 sm:$0xff]  }
   0x6   :  { %v374_v16 = vld [vmem:[%s494_s1 + $0x70] ss:$8 sps:$4 sm:$0xff]   ;;  %v375_v17 = vld [vmem:[%s495_s0] sm:$0xff]   ;;  %v381_v2 = vmov 1966171168  }
   0x7   :  { %137 = vmatpush1.bf16.msra.mxu0 %v356_v4  ;;  %v244_v3 = vunpack.c.l.s4 %v381_v2  ;;  %v246_v4 = vlaneseq }
   0x8   :  { %138 = vmatprep.subr.bf16.mxu0 %v357_v5 }
   0x9   :  { %v245_v5 = vunpack.c.0.s8 %v244_v3 }
   0xb   :  { %139 = vmatpush1.bf16.msra.mxu0 %v359_v6  ;;  %v247_v6 = vshrl.u32 %v246_v4, 7 }
   0xc   :  { %140 = vmatprep.subr.bf16.mxu0 %v360_v7 }
   0xf   :  { %141 = vmatpush1.bf16.msra.mxu0 %v362_v8  ;;  %v248_v8 = vsub.s32 %v245_v5, %v247_v6 }
  0x10   :  { %142 = vmatprep.subr.bf16.mxu0 %v363_v9 }
  0x13   :  { %143 = vmatpush1.bf16.msra.mxu0 %v365_v10 }
  0x14   :  { %144 = vmatprep.subr.bf16.mxu0 %v366_v11 }
  0x17   :  { %145 = vmatpush1.bf16.msra.mxu0 %v368_v12  ;;  %v192_v12 = vld [vmem:[%s496_s2] sm:$0x3] }
  0x18   :  { %146 = vmatprep.subr.bf16.mxu0 %v369_v13 }
  0x1b   :  { %147 = vmatpush1.bf16.msra.mxu0 %v371_v14  ;;  %v262_v14 = vsub.s32 0, %v247_v6 }
  0x1c   :  { %148 = vmatprep.subr.bf16.mxu0 %v372_v15  ;;  %v266_v15 = vsub.s32 1, %v247_v6 }
  0x1f   :  { %149 = vmatpush1.bf16.msra.mxu0 %v374_v16 }
  0x22   :  { %167 = vmatmul.mubr.bf16.vlgmr.msra.gmra.mrb[0].mxu0 %v375_v17 }
  0xf5   :  { %v458_v18 = vpop.f32.mrb[0].mxu0 }
  0xf6   :  { %v460_v19 = vpop.f32.mrb[1].mxu0  ;;  %v208_v21 = vmul.f32 %v458_v18, %v458_v18 }
  0xf7   :  { %v462_v20 = vpop.f32.mrb[2].mxu0  ;;  %v209_v25 = vmul.f32 %v460_v19, %v460_v19 }
  0xf8   :  { %v194_v22 = vadd.f32 %v462_v20, %v458_v18  ;;  %v210_v23 = vmul.f32 %v462_v20, %v462_v20  ;;  %v470_v24 = vpop.f32.mrb[3].mxu0 }
  0xf9   :  { %v201_v26 = vadd.f32 %v470_v24, %v460_v19  ;;  %v211_v27 = vmul.f32 %v470_v24, %v470_v24 }
  0xfa   :  { %v195_v28 = vrot.slane %v194_v22, 4  ;;  %v212_v29 = vadd.f32 %v210_v23, %v208_v21 }
  0xfb   :  { %v202_v30 = vrot.slane %v201_v26, 4  ;;  %v219_v31 = vadd.f32 %v211_v27, %v209_v25 }
  0xfc   :  { %v196_v32 = vadd.f32 %v195_v28, %v194_v22  ;;  %v213_v33 = vrot.slane %v212_v29, 4 }
  0xfd   :  { %v203_v34 = vadd.f32 %v202_v30, %v201_v26  ;;  %v220_v35 = vrot.slane %v219_v31, 4 }
  0xfe   :  { %v197_v36 = vrot.slane %v196_v32, 2  ;;  %v214_v37 = vadd.f32 %v213_v33, %v212_v29 }
  0xff   :  { %v204_v38 = vrot.slane %v203_v34, 2  ;;  %v221_v39 = vadd.f32 %v220_v35, %v219_v31  ;;  %v193_v31 = vld [vmem:[%s497_s3] sm:$0x3] }
 0x100   :  { %v198_v40 = vadd.f32 %v197_v36, %v196_v32  ;;  %v215_v41 = vrot.slane %v214_v37, 2 }
 0x101   :  { %v205_v42 = vadd.f32 %v204_v38, %v203_v34  ;;  %v222_v43 = vrot.slane %v221_v39, 2 }
 0x102   :  { %v199_v44 = vrot.slane %v198_v40, 1  ;;  %v216_v45 = vadd.f32 %v215_v41, %v214_v37 }
 0x103   :  { %v206_v46 = vrot.slane %v205_v42, 1  ;;  %v223_v47 = vadd.f32 %v222_v43, %v221_v39 }
 0x104   :  { %v200_v48 = vadd.f32 %v199_v44, %v198_v40  ;;  %v217_v49 = vrot.slane %v216_v45, 1 }
 0x105   :  { %v207_v50 = vadd.f32 %v206_v46, %v205_v42  ;;  %v224_v51 = vrot.slane %v223_v47, 1 }
 0x106   :  { %v218_v52 = vadd.f32 %v217_v49, %v216_v45  ;;  %v226_v53 = vmul.f32 0.125, %v200_v48 }
 0x107   :  { %v225_v54 = vadd.f32 %v224_v51, %v223_v47  ;;  %v227_v55 = vmul.f32 0.125, %v207_v50 }
 0x108   :  { %v228_v56 = vmul.f32 0.125, %v218_v52  ;;  %v230_v57 = vmul.f32 %v226_v53, %v226_v53 }
 0x109   :  { %v229_v58 = vmul.f32 0.125, %v225_v54  ;;  %v231_v59 = vmul.f32 %v227_v55, %v227_v55 }
 0x10a   :  { %v232_v60 = vsub.f32 %v228_v56, %v230_v57 }
 0x10b   :  { %v233_v61 = vsub.f32 %v229_v58, %v231_v59 }
 0x10c   :  { %v234_v62 = vmax.f32 %v232_v60, 0.0 }
 0x10d   :  { %v235_v63 = vmax.f32 %v233_v61, 0.0 }
 0x10e   :  { %v236_v0 = vadd.f32 1e-05, %v234_v62 }
 0x10f   :  { %v237_v1 = vadd.f32 1e-05, %v235_v63 }
 0x110   :  { %376 = vrsqrt.f32 %v236_v0 }
 0x111   :  { %378 = vrsqrt.f32 %v237_v1 }
 0x11a   :  { %v377_v7 = vpop.eup %376 }
 0x11b   :  { %v379_v9 = vpop.eup %378 }
 0x11c   :  { %v242_v10 = vcombine.low %v377_v7, %v379_v9 }
 0x11e   :  { %v249_v11 = vrot.slane %v242_v10, %v248_v8 }
 0x120   :  { %v256_v13 = vrot.slane %v249_v11, %v248_v8 }
 0x122   :  { %v258_v16 = vmul.f32 %v256_v13, %v192_v12 }
 0x124   :  { %v263_v17 = vrot.slane %v258_v16, %v262_v14  ;;  %v267_v21 = vrot.slane %v258_v16, %v266_v15 }
 0x126   :  { %v270_v22 = vmul.f32 %v263_v17, %v226_v53  ;;  %v271_v23 = vmul.f32 %v267_v21, %v227_v55  ;;  %v291_v25 = vmul.f32 %v263_v17, %v458_v18  ;;  %v292_v26 = vmul.f32 %v267_v21, %v460_v19 }
 0x127   :  { %v293_v27 = vmul.f32 %v263_v17, %v462_v20  ;;  %v294_v28 = vmul.f32 %v267_v21, %v470_v24 }
 0x128   :  { %v274_v29 = vcombine.low %v270_v22, %v271_v23 }
 0x12a   :  { %v281_v30 = vrot.slane %v274_v29, %v248_v8 }
 0x12c   :  { %v288_v32 = vrot.slane %v281_v30, %v248_v8 }
 0x12e   :  { %v290_v33 = vsub.f32 %v193_v31, %v288_v32 }
 0x130   :  { %v299_v34 = vrot.slane %v290_v33, %v262_v14  ;;  %v303_v35 = vrot.slane %v290_v33, %v266_v15 }
 0x132   :  { %v306_v36 = vadd.f32 %v299_v34, %v291_v25  ;;  %v307_v37 = vadd.f32 %v303_v35, %v292_v26  ;;  %v308_v38 = vadd.f32 %v299_v34, %v293_v27  ;;  %v309_v18 = vadd.f32 %v303_v35, %v294_v28 }
 0x134   :  { %v347_v39 = vpack.c.bf16 %v307_v37, %v306_v36  ;;  %v348_v19 = vpack.c.bf16 %v309_v18, %v308_v38 }
 0x136   :  { %322 = vst [vmem:[%s498_s4] sm:$0xff] %v347_v39  ;;  %323 = vst [vmem:[%s498_s4 + $0x8] sm:$0xff] %v348_v19 }

// kernel: icnet_backbone_forward.71
= control target key start
LH: loop header
LB: loop body
LE: loop exit
PB: predicated region body
PF: predicated region fallthrough
CT: control target
= control target key end

     0   :  { %v397_v1 = vmov 0   ;;  %s522_s1 = inlined_call_operand.vmem [shape: bf16[128,256], index: 1, kind: input, shape index: {}]   ;;  %s523_s0 = inlined_call_operand.vmem [shape: bf16[16,128], index: 0, kind: input, shape index: {}]   ;;  %s524_s2 = inlined_call_operand.vmem [shape: f32[1,256], index: 2, kind: input, shape index: {}]   ;;  %s525_s3 = inlined_call_operand.vmem [shape: f32[1,256], index: 3, kind: input, shape index: {}]   ;;  %s526_s4 = inlined_call_operand.vmem [shape: bf16[16,256], index: 4, kind: input, shape index: {}]   ;;  %s527_s5 = inlined_call_operand.vmem [shape: bf16[16,256], index: 5, kind: output, shape index: {}]  }
   0x1   :  { %v368_v0 = vld [vmem:[%s522_s1 + $0x4] ss:$8 sps:$4 sm:$0xff]   ;;  %169 = vmatprep.mubr.bf16.mxu0 %v397_v1  ;;  %v370_v2 = vld [vmem:[%s522_s1] ss:$8 sps:$4 sm:$0xff]   ;;  %v371_v3 = vld [vmem:[%s522_s1 + $0x14] ss:$8 sps:$4 sm:$0xff]  }
   0x2   :  { %137 = vmatprep.subr.bf16.mxu0 %v368_v0  ;;  %v373_v4 = vld [vmem:[%s522_s1 + $0x10] ss:$8 sps:$4 sm:$0xff]   ;;  %v374_v5 = vld [vmem:[%s522_s1 + $0x24] ss:$8 sps:$4 sm:$0xff]   ;;  %v376_v6 = vld [vmem:[%s522_s1 + $0x20] ss:$8 sps:$4 sm:$0xff]  }
   0x3   :  { %138 = vmatpush1.bf16.msra.mxu0 %v370_v2  ;;  %v377_v7 = vld [vmem:[%s522_s1 + $0x34] ss:$8 sps:$4 sm:$0xff]   ;;  %v379_v8 = vld [vmem:[%s522_s1 + $0x30] ss:$8 sps:$4 sm:$0xff]   ;;  %v380_v9 = vld [vmem:[%s522_s1 + $0x44] ss:$8 sps:$4 sm:$0xff]  }
   0x4   :  { %139 = vmatprep.subr.bf16.mxu0 %v371_v3  ;;  %v382_v10 = vld [vmem:[%s522_s1 + $0x40] ss:$8 sps:$4 sm:$0xff]   ;;  %v383_v11 = vld [vmem:[%s522_s1 + $0x54] ss:$8 sps:$4 sm:$0xff]   ;;  %v385_v12 = vld [vmem:[%s522_s1 + $0x50] ss:$8 sps:$4 sm:$0xff]  }
   0x5   :  { %v386_v13 = vld [vmem:[%s522_s1 + $0x64] ss:$8 sps:$4 sm:$0xff]   ;;  %v388_v14 = vld [vmem:[%s522_s1 + $0x60] ss:$8 sps:$4 sm:$0xff]   ;;  %v389_v15 = vld [vmem:[%s522_s1 + $0x74] ss:$8 sps:$4 sm:$0xff]  }
   0x6   :  { %v391_v16 = vld [vmem:[%s522_s1 + $0x70] ss:$8 sps:$4 sm:$0xff]   ;;  %v392_v17 = vld [vmem:[%s523_s0] sm:$0xff]   ;;  %v398_v2 = vmov 1966171168  }
   0x7   :  { %140 = vmatpush1.bf16.msra.mxu0 %v373_v4  ;;  %v253_v3 = vunpack.c.l.s4 %v398_v2  ;;  %v255_v4 = vlaneseq }
   0x8   :  { %141 = vmatprep.subr.bf16.mxu0 %v374_v5 }
   0x9   :  { %v254_v5 = vunpack.c.0.s8 %v253_v3 }
   0xb   :  { %142 = vmatpush1.bf16.msra.mxu0 %v376_v6  ;;  %v256_v6 = vshrl.u32 %v255_v4, 7 }
   0xc   :  { %143 = vmatprep.subr.bf16.mxu0 %v377_v7 }
   0xf   :  { %144 = vmatpush1.bf16.msra.mxu0 %v379_v8  ;;  %v257_v8 = vsub.s32 %v254_v5, %v256_v6 }
  0x10   :  { %145 = vmatprep.subr.bf16.mxu0 %v380_v9 }
  0x13   :  { %146 = vmatpush1.bf16.msra.mxu0 %v382_v10 }
  0x14   :  { %147 = vmatprep.subr.bf16.mxu0 %v383_v11 }
  0x17   :  { %148 = vmatpush1.bf16.msra.mxu0 %v385_v12  ;;  %v195_v12 = vld [vmem:[%s524_s2] sm:$0x3] }
  0x18   :  { %149 = vmatprep.subr.bf16.mxu0 %v386_v13 }
  0x1b   :  { %150 = vmatpush1.bf16.msra.mxu0 %v388_v14  ;;  %v271_v14 = vsub.s32 0, %v256_v6 }
  0x1c   :  { %151 = vmatprep.subr.bf16.mxu0 %v389_v15  ;;  %v275_v15 = vsub.s32 1, %v256_v6 }
  0x1f   :  { %152 = vmatpush1.bf16.msra.mxu0 %v391_v16 }
  0x22   :  { %170 = vmatmul.mubr.bf16.vlgmr.msra.gmra.mrb[0].mxu0 %v392_v17 }
  0xf5   :  { %v480_v18 = vpop.f32.mrb[0].mxu0 }
  0xf6   :  { %v482_v19 = vpop.f32.mrb[1].mxu0  ;;  %v217_v21 = vmul.f32 %v480_v18, %v480_v18 }
  0xf7   :  { %v484_v20 = vpop.f32.mrb[2].mxu0  ;;  %v218_v25 = vmul.f32 %v482_v19, %v482_v19 }
  0xf8   :  { %v203_v22 = vadd.f32 %v484_v20, %v480_v18  ;;  %v219_v23 = vmul.f32 %v484_v20, %v484_v20  ;;  %v492_v24 = vpop.f32.mrb[3].mxu0 }
  0xf9   :  { %v210_v26 = vadd.f32 %v492_v24, %v482_v19  ;;  %v220_v27 = vmul.f32 %v492_v24, %v492_v24 }
  0xfa   :  { %v204_v28 = vrot.slane %v203_v22, 4  ;;  %v221_v29 = vadd.f32 %v219_v23, %v217_v21 }
  0xfb   :  { %v211_v30 = vrot.slane %v210_v26, 4  ;;  %v228_v31 = vadd.f32 %v220_v27, %v218_v25 }
  0xfc   :  { %v205_v32 = vadd.f32 %v204_v28, %v203_v22  ;;  %v222_v33 = vrot.slane %v221_v29, 4 }
  0xfd   :  { %v212_v34 = vadd.f32 %v211_v30, %v210_v26  ;;  %v229_v35 = vrot.slane %v228_v31, 4 }
  0xfe   :  { %v206_v36 = vrot.slane %v205_v32, 2  ;;  %v223_v37 = vadd.f32 %v222_v33, %v221_v29 }
  0xff   :  { %v213_v38 = vrot.slane %v212_v34, 2  ;;  %v230_v39 = vadd.f32 %v229_v35, %v228_v31  ;;  %v196_v31 = vld [vmem:[%s525_s3] sm:$0x3] }
 0x100   :  { %v207_v40 = vadd.f32 %v206_v36, %v205_v32  ;;  %v224_v41 = vrot.slane %v223_v37, 2  ;;  %v197_v32 = vld [vmem:[%s526_s4] sm:$0xff] }
 0x101   :  { %v214_v42 = vadd.f32 %v213_v38, %v212_v34  ;;  %v231_v43 = vrot.slane %v230_v39, 2  ;;  %v199_v34 = vunpack.c.l.bf16 %v197_v32 }
 0x102   :  { %v208_v44 = vrot.slane %v207_v40, 1  ;;  %v225_v45 = vadd.f32 %v224_v41, %v223_v37 }
 0x103   :  { %v215_v46 = vrot.slane %v214_v42, 1  ;;  %v232_v47 = vadd.f32 %v231_v43, %v230_v39 }
 0x104   :  { %v209_v48 = vadd.f32 %v208_v44, %v207_v40  ;;  %v226_v49 = vrot.slane %v225_v45, 1 }
 0x105   :  { %v216_v50 = vadd.f32 %v215_v46, %v214_v42  ;;  %v233_v51 = vrot.slane %v232_v47, 1 }
 0x106   :  { %v227_v52 = vadd.f32 %v226_v49, %v225_v45  ;;  %v235_v53 = vmul.f32 0.125, %v209_v48 }
 0x107   :  { %v234_v54 = vadd.f32 %v233_v51, %v232_v47  ;;  %v236_v55 = vmul.f32 0.125, %v216_v50 }
 0x108   :  { %v237_v56 = vmul.f32 0.125, %v227_v52  ;;  %v239_v57 = vmul.f32 %v235_v53, %v235_v53 }
 0x109   :  { %v238_v58 = vmul.f32 0.125, %v234_v54  ;;  %v240_v59 = vmul.f32 %v236_v55, %v236_v55 }
 0x10a   :  { %v241_v60 = vsub.f32 %v237_v56, %v239_v57 }
 0x10b   :  { %v242_v61 = vsub.f32 %v238_v58, %v240_v59 }
 0x10c   :  { %v243_v62 = vmax.f32 %v241_v60, 0.0 }
 0x10d   :  { %v244_v63 = vmax.f32 %v242_v61, 0.0 }
 0x10e   :  { %v245_v0 = vadd.f32 1e-05, %v243_v62 }
 0x10f   :  { %v246_v1 = vadd.f32 1e-05, %v244_v63 }
 0x110   :  { %393 = vrsqrt.f32 %v245_v0 }
 0x111   :  { %395 = vrsqrt.f32 %v246_v1 }
 0x11a   :  { %v394_v7 = vpop.eup %393 }
 0x11b   :  { %v396_v9 = vpop.eup %395 }
 0x11c   :  { %v251_v10 = vcombine.low %v394_v7, %v396_v9 }
 0x11e   :  { %v258_v11 = vrot.slane %v251_v10, %v257_v8 }
 0x120   :  { %v265_v13 = vrot.slane %v258_v11, %v257_v8 }
 0x122   :  { %v267_v16 = vmul.f32 %v265_v13, %v195_v12 }
 0x124   :  { %v272_v17 = vrot.slane %v267_v16, %v271_v14  ;;  %v276_v21 = vrot.slane %v267_v16, %v275_v15 }
 0x126   :  { %v279_v22 = vmul.f32 %v272_v17, %v235_v53  ;;  %v280_v23 = vmul.f32 %v276_v21, %v236_v55  ;;  %v300_v25 = vmul.f32 %v272_v17, %v480_v18  ;;  %v301_v26 = vmul.f32 %v276_v21, %v482_v19  ;;  %v198_v18 = vld [vmem:[%s526_s4 + $0x8] sm:$0xff] }
 0x127   :  { %v302_v27 = vmul.f32 %v272_v17, %v484_v20  ;;  %v303_v28 = vmul.f32 %v276_v21, %v492_v24  ;;  %v200_v20 = vunpack.c.h.bf16 %v197_v32  ;;  %v201_v35 = vunpack.c.l.bf16 %v198_v18 }
 0x128   :  { %v283_v29 = vcombine.low %v279_v22, %v280_v23  ;;  %v202_v24 = vunpack.c.h.bf16 %v198_v18 }
 0x12a   :  { %v290_v30 = vrot.slane %v283_v29, %v257_v8 }
 0x12c   :  { %v297_v33 = vrot.slane %v290_v30, %v257_v8 }
 0x12e   :  { %v299_v19 = vsub.f32 %v196_v31, %v297_v33 }
 0x130   :  { %v308_v36 = vrot.slane %v299_v19, %v271_v14  ;;  %v312_v37 = vrot.slane %v299_v19, %v275_v15 }
 0x132   :  { %v315_v38 = vadd.f32 %v308_v36, %v300_v25  ;;  %v316_v39 = vadd.f32 %v312_v37, %v301_v26  ;;  %v317_v40 = vadd.f32 %v308_v36, %v302_v27  ;;  %v318_v41 = vadd.f32 %v312_v37, %v303_v28 }
 0x134   :  { %v319_v42 = vadd.f32 %v315_v38, %v199_v34  ;;  %v320_v43 = vadd.f32 %v316_v39, %v200_v20  ;;  %v321_v44 = vadd.f32 %v317_v40, %v201_v35  ;;  %v322_v45 = vadd.f32 %v318_v41, %v202_v24 }
 0x136   :  { %v323_v46 = vmax.f32 %v319_v42, 0.0  ;;  %v324_v47 = vmax.f32 %v320_v43, 0.0  ;;  %v325_v48 = vmax.f32 %v321_v44, 0.0  ;;  %v326_v49 = vmax.f32 %v322_v45, 0.0 }
 0x138   :  { %v364_v50 = vpack.c.bf16 %v324_v47, %v323_v46  ;;  %v365_v51 = vpack.c.bf16 %v326_v49, %v325_v48 }
 0x13a   :  { %339 = vst [vmem:[%s527_s5] sm:$0xff] %v364_v50  ;;  %340 = vst [vmem:[%s527_s5 + $0x8] sm:$0xff] %v365_v51 }

// kernel: icnet_backbone_forward.72
= control target key start
LH: loop header
LB: loop body
LE: loop exit
PB: predicated region body
PF: predicated region fallthrough
CT: control target
= control target key end

     0   :  { %v245_v46 = vlaneseq  ;;  %s434_s1 = inlined_call_operand.vmem [shape: bf16[256,128], index: 1, kind: input, shape index: {}]   ;;  %s435_s0 = inlined_call_operand.vmem [shape: bf16[16,256], index: 0, kind: input, shape index: {}]   ;;  %s436_s2 = inlined_call_operand.vmem [shape: f32[1,128], index: 2, kind: input, shape index: {}]   ;;  %s437_s3 = inlined_call_operand.vmem [shape: f32[1,128], index: 3, kind: input, shape index: {}]   ;;  %s438_s4 = inlined_call_operand.vmem [shape: bf16[16,128], index: 4, kind: output, shape index: {}]  }
   0x1   :  { %v325_v0 = vld [vmem:[%s434_s1 + $0x40] sm:$0xff]   ;;  %v327_v2 = vld [vmem:[%s434_s1 + $0x48] sm:$0xff]   ;;  %v329_v4 = vld [vmem:[%s434_s1 + $0x50] sm:$0xff]  }
   0x2   :  { %v326_v1 = vld [vmem:[%s434_s1] sm:$0xff]   ;;  %303 = vmatprep.subr.bf16.mxu0 %v325_v0  ;;  %v328_v3 = vld [vmem:[%s434_s1 + $0x8] sm:$0xff]   ;;  %v330_v5 = vld [vmem:[%s434_s1 + $0x10] sm:$0xff]   ;;  %v246_v47 = vshrl.u32 %v245_v46, 7 }
   0x3   :  { %304 = vmatpush3.bf16.msra.mxu0 %v326_v1  ;;  %v331_v6 = vld [vmem:[%s434_s1 + $0x58] sm:$0xff]   ;;  %v333_v8 = vld [vmem:[%s434_s1 + $0x60] sm:$0xff]   ;;  %v335_v10 = vld [vmem:[%s434_s1 + $0x68] sm:$0xff]  }
   0x4   :  { %305 = vmatprep.subr.bf16.mxu0 %v327_v2  ;;  %v332_v7 = vld [vmem:[%s434_s1 + $0x18] sm:$0xff]   ;;  %v334_v9 = vld [vmem:[%s434_s1 + $0x20] sm:$0xff]   ;;  %v336_v12 = vld [vmem:[%s434_s1 + $0x28] sm:$0xff]   ;;  %v247_v49 = vsub.s32 0, %v246_v47 }
   0x5   :  { %v343_v11 = vld [vmem:[%s435_s0 + $0x4] ss:$8 sps:$4 sm:$0xff]   ;;  %v337_v13 = vld [vmem:[%s434_s1 + $0x70] sm:$0xff]   ;;  %v339_v15 = vld [vmem:[%s434_s1 + $0x78] sm:$0xff]  }
   0x6   :  { %198 = vmatprep.mubr.bf16.mxu0 %v343_v11  ;;  %v338_v14 = vld [vmem:[%s434_s1 + $0x30] sm:$0xff]   ;;  %v340_v16 = vld [vmem:[%s434_s1 + $0x38] sm:$0xff]   ;;  %v341_v17 = vld [vmem:[%s435_s0] ss:$8 sps:$4 sm:$0xff]  }
   0x7   :  { %306 = vmatpush3.bf16.msra.mxu0 %v328_v3  ;;  %v216_v48 = vld [vmem:[%s436_s2] sm:$0x1] }
   0x8   :  { %307 = vmatprep.subr.bf16.mxu0 %v329_v4  ;;  %v217_v52 = vld [vmem:[%s437_s3] sm:$0x1] }
   0xb   :  { %308 = vmatpush3.bf16.msra.mxu0 %v330_v5 }
   0xc   :  { %309 = vmatprep.subr.bf16.mxu0 %v331_v6 }
   0xf   :  { %310 = vmatpush3.bf16.msra.mxu0 %v332_v7 }
  0x10   :  { %311 = vmatprep.subr.bf16.mxu0 %v333_v8 }
  0x13   :  { %312 = vmatpush3.bf16.msra.mxu0 %v334_v9 }
  0x14   :  { %313 = vmatprep.subr.bf16.mxu0 %v335_v10 }
  0x17   :  { %314 = vmatpush3.bf16.msra.mxu0 %v336_v12 }
  0x18   :  { %315 = vmatprep.subr.bf16.mxu0 %v337_v13 }
  0x1b   :  { %316 = vmatpush3.bf16.msra.mxu0 %v338_v14 }
  0x1c   :  { %317 = vmatprep.subr.bf16.mxu0 %v339_v15 }
  0x1f   :  { %318 = vmatpush3.bf16.msra.mxu0 %v340_v16 }
  0x22   :  { %199 = vmatmul.mubr.bf16.vlgmr.msra.gmra.mrb[0].mxu0 %v341_v17 }
  0xf5   :  { %v319_v18 = vpop.f32.mrb[0].mxu0 }
  0xf6   :  { %v320_v19 = vpop.f32.mrb[1].mxu0 }
  0xf7   :  { %v321_v20 = vadd.f32 %v320_v19, %v319_v18  ;;  %v322_v21 = vpop.f32.mrb[2].mxu0 }
  0xf8   :  { %v323_v22 = vpop.f32.mrb[3].mxu0 }
  0xf9   :  { %v324_v23 = vadd.f32 %v323_v22, %v322_v21  ;;  %v225_v24 = vmul.f32 %v321_v20, %v321_v20 }
  0xfb   :  { %v218_v25 = vadd.f32 %v324_v23, %v321_v20  ;;  %v226_v26 = vmul.f32 %v324_v23, %v324_v23 }
  0xfd   :  { %v219_v27 = vrot.slane %v218_v25, 4  ;;  %v227_v28 = vadd.f32 %v226_v26, %v225_v24 }
  0xff   :  { %v220_v29 = vadd.f32 %v219_v27, %v218_v25  ;;  %v228_v30 = vrot.slane %v227_v28, 4 }
 0x101   :  { %v221_v31 = vrot.slane %v220_v29, 2  ;;  %v229_v32 = vadd.f32 %v228_v30, %v227_v28 }
 0x103   :  { %v222_v33 = vadd.f32 %v221_v31, %v220_v29  ;;  %v230_v34 = vrot.slane %v229_v32, 2 }
 0x105   :  { %v223_v35 = vrot.slane %v222_v33, 1  ;;  %v231_v36 = vadd.f32 %v230_v34, %v229_v32 }
 0x107   :  { %v224_v37 = vadd.f32 %v223_v35, %v222_v33  ;;  %v232_v38 = vrot.slane %v231_v36, 1 }
 0x109   :  { %v233_v39 = vadd.f32 %v232_v38, %v231_v36  ;;  %v234_v40 = vmul.f32 0.125, %v224_v37 }
 0x10b   :  { %v235_v41 = vmul.f32 0.125, %v233_v39  ;;  %v236_v42 = vmul.f32 %v234_v40, %v234_v40 }
 0x10d   :  { %v237_v43 = vsub.f32 %v235_v41, %v236_v42 }
 0x10f   :  { %v238_v44 = vmax.f32 %v237_v43, 0.0 }
 0x111   :  { %v239_v45 = vadd.f32 1e-05, %v238_v44 }
 0x113   :  { %344 = vrsqrt.f32 %v239_v45 }
 0x11d   :  { %v345_v50 = vpop.eup %344 }
 0x11e   :  { %v241_v51 = vmul.f32 %v345_v50, %v216_v48 }
 0x120   :  { %v242_v53 = vmul.f32 %v241_v51, %v234_v40  ;;  %v248_v54 = vrot.slane %v241_v51, %v247_v49 }
 0x122   :  { %v243_v55 = vsub.f32 %v217_v52, %v242_v53  ;;  %v250_v56 = vmul.f32 %v321_v20, %v248_v54  ;;  %v251_v57 = vmul.f32 %v324_v23, %v248_v54 }
 0x124   :  { %v256_v58 = vrot.slane %v243_v55, %v247_v49 }
 0x126   :  { %v258_v59 = vadd.f32 %v256_v58, %v250_v56  ;;  %v259_v60 = vadd.f32 %v256_v58, %v251_v57 }
 0x128   :  { %v260_v61 = vmax.f32 %v258_v59, 0.0  ;;  %v261_v62 = vmax.f32 %v259_v60, 0.0 }
 0x12a   :  { %v301_v63 = vpack.c.bf16 %v261_v62, %v260_v61 }
 0x12c   :  { %302 = vst [vmem:[%s438_s4] sm:$0xff] %v301_v63  }

// kernel: icnet_backbone_forward.82
= control target key start
LH: loop header
LB: loop body
LE: loop exit
PB: predicated region body
PF: predicated region fallthrough
CT: control target
= control target key end

     0   :  { %s1030_s15 = smov 0   ;;  %s1032_s16 = smov 0   ;;  %s1137_s0 = inlined_call_operand.vmem [shape: bf16[16,1152], index: 0, kind: input, shape index: {}]   ;;  %s1138_s1 = inlined_call_operand.vmem [shape: bf16[1152,128], index: 1, kind: input, shape index: {}]   ;;  %s1139_s2 = inlined_call_operand.vmem [shape: f32[1,128], index: 2, kind: input, shape index: {}]   ;;  %s1140_s3 = inlined_call_operand.vmem [shape: f32[1,128], index: 3, kind: input, shape index: {}]   ;;  %s1141_s4 = inlined_call_operand.vmem [shape: bf16[16,128], index: 4, kind: output, shape index: {}]  }
   0x1   :  { %s1034_s17 = smov 0   ;;  %s1036_s18 = smov 0  }
   0x2   :  { %s1038_s19 = smov 0  }
   0x3 LB: > { %s23_s20 = sadd.s32 1, %s996_s18  ;;  %p40_p1 = scmp.ne.s32.totalorder %s988_s16, %s984_s15  ;;  %s1000_s19 = sphi %s1038_s19, %s14_s19   ;;  %s996_s18 = sphi %s1036_s18, %s1145_s18   ;;  %s992_s17 = sphi %s1034_s17, %s1144_s17   ;;  %s988_s16 = sphi %s1032_s16, %s1143_s16   ;;  %s984_s15 = sphi %s1030_s15, %s1142_s15  }
   0x4   : > { %p24_p0 = scmp.ge.s32.totalorder %s23_s20, 3  ;;  %p41_p2 = scmp.eq.s32.totalorder %s1000_s19, 0 }
   0x5   : > { %s33_s22 = sadd.s32 1, %s988_s16  ;;  %p786_p5 = scmp.ge.s32.totalorder %s1000_s19, 3 }
   0x6   : > { %s1147_s20 = smov (%p24_p0, %s23_s20), 0  ;;  %p42_p3 = por %p41_p2, %p40_p1 }
   0x7   : > { %s30_s21 = ssub.s32 %s996_s18, %s1147_s20  ;;  %184 = sbr.rel (%p786_p5) target bundleno = 21 (0x15), region = 24 }
   0x8   : > { %p31_p4 = scmp.eq.s32.totalorder %s30_s21, 0 }
   0xa   : > { %s1065_s23 = scalar_select %p31_p4, %s988_s16, %s33_s22  }
   0xe   : > { %187 = sbr.rel (!%p42_p3) target bundleno = 21 (0x15), region = 28  ;;  %s189_s24 = sand.u32 (%p42_p3), 1, %s988_s16  }
   0xf   : > { %s828_s25 = smul.u32 (%p42_p3), 12, %s996_s18 }
  0x10   : > { %s887_s26 = smul.u32 (%p42_p3), 24, %s189_s24 }
  0x11   : > { %s194_s29 = scalar_lea.vmem (%p42_p3), %s1137_s0, %s828_s25 }
  0x12   : > { %v209_v0 = vld [vmem:[%s194_s29] sm:$0xff] (%p42_p3)  ;;  %v788_v2 = vld [vmem:[%s194_s29 + $0x8] sm:$0xf] (%p42_p3)  ;;  %s191_s30 = scalar_lea.vmem (%p42_p3), [#allocation3], %s887_s26  ;;  %v790_v3 = vld [vmem:[%s194_s29 + $0x2c] sm:$0xf] (%p42_p3) }
  0x13   : > { %v211_v1 = vld [vmem:[%s194_s29 + $0x24] sm:$0xff] (%p42_p3)  ;;  %210 = vst [vmem:[%s191_s30] sm:$0xff] (%p42_p3), %v209_v0  ;;  %789 = vst [vmem:[%s191_s30 + $0x8] sm:$0xf] (%p42_p3), %v788_v2 }
  0x14   : > { %212 = vst [vmem:[%s191_s30 + $0xc] sm:$0xff] (%p42_p3), %v211_v1  ;;  %791 = vst [vmem:[%s191_s30 + $0x14] sm:$0xf] (%p42_p3), %v790_v3 }
  0x15 PF: > { %p792_p6 = scmp.ge.s32.totalorder %s1000_s19, 1  ;;  %p240_p7 = scmp.lt.s32.totalorder %s1000_s19, 4 }
  0x17   : > { %p241_p8 = pnand %p792_p6, %p240_p7 }
  0x18   : > { %s247_s5 = sand.u32 (!%p241_p8), 1, %s984_s15   ;;  %s286_s6 = smul.u32 (!%p241_p8), 48, %s992_s17 }
  0x19   : > { %244 = sbr.rel (%p241_p8) target bundleno = 351 (0x15f), region = 58  ;;  %p794_p10 = scmp.ne.s32.totalorder (!%p241_p8), %s992_s17, 0 }
  0x1a   : > { %s888_s7 = smul.u32 (!%p241_p8), 24, %s247_s5  ;;  %p287_p9 = scmp.lt.s32.totalorder (!%p241_p8), %s286_s6, 143 }
  0x1c   : > { %s1082_s12 = scalar_lea.vmem (!%p241_p8), [#allocation3], %s888_s7 }
  0x20   : > { %s1149_s6 = smov (!%p287_p9, %s286_s6), 143  ;;  %309 = sbr.rel (%p794_p10) target bundleno = 39 (0x27), region = 66 }
  0x21   : > { %s793_s8 = sshll.u32 %s1149_s6, 2  ;;  %v1002_v4 = vmov (!%p794_p10), 0.0  }
  0x22   : > { %s1080_s11 = scalar_lea.vmem %s1138_s1, %s793_s8  ;;  %310 = vst [vmem:[#allocation2] sm:$0xff] (!%p794_p10), %v1002_v4  ;;  %311 = vst [vmem:[#allocation2 + $0x8] sm:$0xff] (!%p794_p10), %v1002_v4 }
  0x27 PF: > { %v932_v5 = vld [vmem:[%s1080_s11 + $0x40] sm:$0xff]   ;;  %v1003_v6 = vmov 0.0   ;;  %vm1004_vm0 = vmmov 0   ;;  %v935_v9 = vld [vmem:[%s1080_s11 + $0x48] sm:$0xff]   ;;  %v938_v12 = vld [vmem:[%s1080_s11 + $0x50] sm:$0xff]   ;;  %p822_p11 = scmp.ne.s32.totalorder %s992_s17, 2 }
  0x28   : > { %867 = vmatprep.subr.bf16.mxu1 %v1003_v6  ;;  %v933_v7 = vld [vmem:[%s1080_s11] sm:$0xff]   ;;  %836 = vmatprep.subr.bf16.mxu0 %v932_v5  ;;  %v936_v10 = vld [vmem:[%s1080_s11 + $0x8] sm:$0xff]   ;;  %v939_v13 = vld [vmem:[%s1080_s11 + $0x10] sm:$0xff]  }
  0x29   : > { %v934_v8 = vld [vmem:[%s1080_s11 + $0x80] sm:$0xff]   ;;  %883 = vmatprep.mubr.msk.bf16.mxu1 %vm1004_vm0, %v1003_v6  ;;  %837 = vmatpush3.bf16.msra.mxu0 %v933_v7  ;;  %v937_v11 = vld [vmem:[%s1080_s11 + $0x88] sm:$0xff]   ;;  %v940_v14 = vld [vmem:[%s1080_s11 + $0x90] sm:$0xff]  }
  0x2a   : > { %868 = vmatpush3.bf16.msra.mxu1 %v934_v8  ;;  %838 = vmatprep.subr.bf16.mxu0 %v935_v9  ;;  %v941_v15 = vld [vmem:[%s1080_s11 + $0x58] sm:$0xff]   ;;  %v944_v18 = vld [vmem:[%s1080_s11 + $0x60] sm:$0xff]   ;;  %v947_v21 = vld [vmem:[%s1080_s11 + $0x68] sm:$0xff]   ;;  %v647_v9 = vlaneseq (!%p822_p11) }
  0x2b   : > { %869 = vmatprep.subr.bf16.mxu1 %v1003_v6  ;;  %v942_v16 = vld [vmem:[%s1080_s11 + $0x18] sm:$0xff]   ;;  %v945_v19 = vld [vmem:[%s1080_s11 + $0x20] sm:$0xff]   ;;  %v948_v22 = vld [vmem:[%s1080_s11 + $0x28] sm:$0xff]  }
  0x2c   : > { %v943_v17 = vld [vmem:[%s1080_s11 + $0x98] sm:$0xff]   ;;  %v946_v20 = vld [vmem:[%s1080_s11 + $0xa0] sm:$0xff]   ;;  %v949_v23 = vld [vmem:[%s1080_s11 + $0xa8] sm:$0xff]  }
  0x2d   : > { %839 = vmatpush3.bf16.msra.mxu0 %v936_v10  ;;  %v950_v24 = vld [vmem:[%s1080_s11 + $0x70] sm:$0xff]   ;;  %v953_v27 = vld [vmem:[%s1080_s11 + $0x78] sm:$0xff]   ;;  %v312_v39 = vld [vmem:[#allocation2] sm:$0xff]  ;;  %v648_v10 = vshrl.u32 (!%p822_p11), %v647_v9, 7 }
  0x2e   : > { %870 = vmatpush3.bf16.msra.mxu1 %v937_v11  ;;  %840 = vmatprep.subr.bf16.mxu0 %v938_v12  ;;  %v951_v25 = vld [vmem:[%s1080_s11 + $0x30] sm:$0xff]   ;;  %v954_v29 = vld [vmem:[%s1080_s11 + $0x38] sm:$0xff]   ;;  %v313_v45 = vld [vmem:[#allocation2 + $0x8] sm:$0xff] }
  0x2f   : > { %871 = vmatprep.subr.bf16.mxu1 %v1003_v6  ;;  %v952_v26 = vld [vmem:[%s1080_s11 + $0xb0] sm:$0xff]   ;;  %v955_v30 = vld [vmem:[%s1080_s11 + $0xb8] sm:$0xff]   ;;  %v618_v11 = vld [vmem:[%s1139_s2] sm:$0x1] (!%p822_p11)  ;;  %v649_v12 = vsub.s32 (!%p822_p11), 0, %v648_v10 }
  0x30   : > { %v958_v28 = vld [vmem:[%s1082_s12 + $0x4] ss:$12 sps:$4 sm:$0xff]   ;;  %v956_v31 = vld [vmem:[%s1082_s12] ss:$12 sps:$4 sm:$0xff]   ;;  %v959_v32 = vld [vmem:[%s1082_s12 + $0x8] ss:$12 sps:$4 sm:$0xff]  }
  0x31   : > { %841 = vmatpush3.bf16.msra.mxu0 %v939_v13  ;;  %558 = vmatprep.mubr.bf16.mxu0 %v958_v28 }
  0x32   : > { %872 = vmatpush3.bf16.msra.mxu1 %v940_v14  ;;  %842 = vmatprep.subr.bf16.mxu0 %v941_v15  ;;  %v619_v15 = vld [vmem:[%s1140_s3] sm:$0x1] (!%p822_p11) }
  0x33   : > { %873 = vmatprep.subr.bf16.mxu1 %v1003_v6 }
  0x35   : > { %843 = vmatpush3.bf16.msra.mxu0 %v942_v16 }
  0x36   : > { %874 = vmatpush3.bf16.msra.mxu1 %v943_v17  ;;  %844 = vmatprep.subr.bf16.mxu0 %v944_v18 }
  0x37   : > { %875 = vmatprep.subr.bf16.mxu1 %v1003_v6 }
  0x39   : > { %845 = vmatpush3.bf16.msra.mxu0 %v945_v19 }
  0x3a   : > { %876 = vmatpush3.bf16.msra.mxu1 %v946_v20  ;;  %846 = vmatprep.subr.bf16.mxu0 %v947_v21 }
  0x3b   : > { %877 = vmatprep.subr.bf16.mxu1 %v1003_v6 }
  0x3d   : > { %847 = vmatpush3.bf16.msra.mxu0 %v948_v22 }
  0x3e   : > { %878 = vmatpush3.bf16.msra.mxu1 %v949_v23  ;;  %848 = vmatprep.subr.bf16.mxu0 %v950_v24 }
  0x3f   : > { %879 = vmatprep.subr.bf16.mxu1 %v1003_v6 }
  0x41   : > { %849 = vmatpush3.bf16.msra.mxu0 %v951_v25 }
  0x42   : > { %880 = vmatpush3.bf16.msra.mxu1 %v952_v26  ;;  %850 = vmatprep.subr.bf16.mxu0 %v953_v27 }
  0x43   : > { %881 = vmatprep.subr.bf16.mxu1 %v1003_v6 }
  0x45   : > { %851 = vmatpush3.bf16.msra.mxu0 %v954_v29 }
  0x46   : > { %882 = vmatpush3.bf16.msra.mxu1 %v955_v30 }
  0x48   : > { %559 = vmatmul.mubr.bf16.vlgmr.msra.gmra.mrb[0].mxu0 %v956_v31 }
  0x49   : > { %884 = vmatmul.mubr.bf16.vlgmr.msra.gmra.mrb[0].mxu1 %v959_v32 }
 0x11b   : > { %v852_v33 = vpop.f32.mrb[0].mxu0 }
 0x11c   : > { %v601_v34 = vpop.f32.mrb[0].mxu1  ;;  %v853_v35 = vpop.f32.mrb[1].mxu0 }
 0x11d   : > { %v854_v36 = vadd.f32 %v853_v35, %v852_v33  ;;  %v885_v37 = vpop.f32.mrb[1].mxu1  ;;  %v855_v38 = vpop.f32.mrb[2].mxu0 }
 0x11e   : > { %v604_v40 = vpop.f32.mrb[2].mxu1  ;;  %v856_v41 = vpop.f32.mrb[3].mxu0 }
 0x11f   : > { %v602_v42 = vadd.f32 %v854_v36, %v601_v34  ;;  %v857_v43 = vadd.f32 %v856_v41, %v855_v38  ;;  %v886_v44 = vpop.f32.mrb[3].mxu1  ;;  %615 = sbr.rel (%p822_p11) target bundleno = 351 (0x15f), region = 70 }
 0x121   : > { %v608_v46 = vadd.f32 %v602_v42, %v312_v39  ;;  %v605_v47 = vadd.f32 %v857_v43, %v604_v40 }
 0x123   : > { %610 = vst [vmem:[#allocation2] sm:$0xff] %v608_v46  ;;  %v609_v48 = vadd.f32 %v605_v47, %v313_v45 }
 0x125   : > { %611 = vst [vmem:[#allocation2 + $0x8] sm:$0xff] %v609_v48 }
 0x12a   : > { %v616_v49 = vld [vmem:[#allocation2] sm:$0xff] }
 0x12b   : > { %v627_v52 = vmul.f32 %v616_v49, %v616_v49 }
 0x12c   : > { %v617_v50 = vld [vmem:[#allocation2 + $0x8] sm:$0xff] }
 0x12d   : > { %v620_v51 = vadd.f32 %v617_v50, %v616_v49  ;;  %v628_v53 = vmul.f32 %v617_v50, %v617_v50 }
 0x12f   : > { %v621_v54 = vrot.slane %v620_v51, 4  ;;  %v629_v55 = vadd.f32 %v628_v53, %v627_v52 }
 0x131   : > { %v622_v56 = vadd.f32 %v621_v54, %v620_v51  ;;  %v630_v57 = vrot.slane %v629_v55, 4 }
 0x133   : > { %v623_v58 = vrot.slane %v622_v56, 2  ;;  %v631_v59 = vadd.f32 %v630_v57, %v629_v55 }
 0x135   : > { %v624_v60 = vadd.f32 %v623_v58, %v622_v56  ;;  %v632_v61 = vrot.slane %v631_v59, 2 }
 0x137   : > { %v625_v62 = vrot.slane %v624_v60, 1  ;;  %v633_v63 = vadd.f32 %v632_v61, %v631_v59 }
 0x139   : > { %v626_v0 = vadd.f32 %v625_v62, %v624_v60  ;;  %v634_v1 = vrot.slane %v633_v63, 1 }
 0x13b   : > { %v635_v2 = vadd.f32 %v634_v1, %v633_v63  ;;  %v636_v3 = vmul.f32 0.125, %v626_v0 }
 0x13d   : > { %v637_v4 = vmul.f32 0.125, %v635_v2  ;;  %v638_v5 = vmul.f32 %v636_v3, %v636_v3 }
 0x13f   : > { %v639_v6 = vsub.f32 %v637_v4, %v638_v5 }
 0x141   : > { %v640_v7 = vmax.f32 %v639_v6, 0.0 }
 0x143   : > { %v641_v8 = vadd.f32 1e-05, %v640_v7 }
 0x145   : > { %960 = vrsqrt.f32 %v641_v8 }
 0x14f   : > { %v961_v13 = vpop.eup %960 }
 0x150   : > { %v643_v14 = vmul.f32 %v961_v13, %v618_v11 }
 0x152   : > { %v644_v16 = vmul.f32 %v643_v14, %v636_v3  ;;  %v650_v17 = vrot.slane %v643_v14, %v649_v12 }
 0x154   : > { %v645_v18 = vsub.f32 %v619_v15, %v644_v16  ;;  %v652_v19 = vmul.f32 %v650_v17, %v616_v49  ;;  %v653_v20 = vmul.f32 %v650_v17, %v617_v50 }
 0x156   : > { %v658_v21 = vrot.slane %v645_v18, %v649_v12 }
 0x158   : > { %v660_v22 = vadd.f32 %v658_v21, %v652_v19  ;;  %v661_v23 = vadd.f32 %v658_v21, %v653_v20 }
 0x15a   : > { %v662_v24 = vmax.f32 %v660_v22, 0.0  ;;  %v663_v25 = vmax.f32 %v661_v23, 0.0 }
 0x15c   : > { %v834_v26 = vpack.c.bf16 %v663_v25, %v662_v24 }
 0x15e   : > { %835 = vst [vmem:[%s1141_s4] sm:$0xff] %v834_v26  }
 0x15f PF: > { %s14_s19 = sadd.s32 1, %s1000_s19   ;;  %s1142_s15 = smov %s988_s16 }
 0x160   : > { %p11_p12 = scmp.ge.s32.totalorder %s14_s19, 5   ;;  %s1143_s16 = smov %s1065_s23 }
 0x161   : > { %s1144_s17 = smov %s996_s18  ;;  %s1145_s18 = smov %s1147_s20 }
 0x162   :  { %13 = sbr.rel (!%p11_p12) target bundleno = 3 (0x3), region = 120 }

// kernel: icnet_backbone_forward.83
= control target key start
LH: loop header
LB: loop body
LE: loop exit
PB: predicated region body
PF: predicated region fallthrough
CT: control target
= control target key end

     0   :  { %s1266_s1 = inlined_call_operand.vmem [shape: bf16[256,512], index: 1, kind: input, shape index: {}]   ;;  %s1267_s0 = inlined_call_operand.vmem [shape: bf16[16,256], index: 0, kind: input, shape index: {}]   ;;  %s1268_s2 = inlined_call_operand.vmem [shape: f32[1,512], index: 2, kind: input, shape index: {}]   ;;  %s1269_s3 = inlined_call_operand.vmem [shape: f32[1,512], index: 3, kind: input, shape index: {}]   ;;  %s1270_s4 = inlined_call_operand.vmem [shape: bf16[16,512], index: 4, kind: output, shape index: {}]  }
   0x1   :  { %v869_v0 = vld [vmem:[%s1266_s1 + $0x4] ss:$16 sps:$4 sm:$0xff]   ;;  %v871_v1 = vld [vmem:[%s1266_s1 + $0xc] ss:$16 sps:$4 sm:$0xff]   ;;  %v873_v2 = vld [vmem:[%s1266_s1] ss:$16 sps:$4 sm:$0xff]  }
   0x2   :  { %433 = vmatprep.subr.bf16.mxu0 %v869_v0  ;;  %v874_v3 = vld [vmem:[%s1266_s1 + $0x8] ss:$16 sps:$4 sm:$0xff]   ;;  %476 = vmatprep.subr.bf16.mxu1 %v871_v1  ;;  %v875_v4 = vld [vmem:[%s1266_s1 + $0x24] ss:$16 sps:$4 sm:$0xff]   ;;  %v877_v5 = vld [vmem:[%s1266_s1 + $0x2c] ss:$16 sps:$4 sm:$0xff]  }
   0x3   :  { %434 = vmatpush1.bf16.msra.mxu0 %v873_v2  ;;  %477 = vmatpush1.bf16.msra.mxu1 %v874_v3  ;;  %v879_v6 = vld [vmem:[%s1266_s1 + $0x20] ss:$16 sps:$4 sm:$0xff]   ;;  %v880_v7 = vld [vmem:[%s1266_s1 + $0x28] ss:$16 sps:$4 sm:$0xff]   ;;  %v881_v8 = vld [vmem:[%s1266_s1 + $0x44] ss:$16 sps:$4 sm:$0xff]  }
   0x4   :  { %435 = vmatprep.subr.bf16.mxu0 %v875_v4  ;;  %478 = vmatprep.subr.bf16.mxu1 %v877_v5  ;;  %v883_v9 = vld [vmem:[%s1266_s1 + $0x4c] ss:$16 sps:$4 sm:$0xff]   ;;  %v885_v10 = vld [vmem:[%s1266_s1 + $0x40] ss:$16 sps:$4 sm:$0xff]   ;;  %v886_v11 = vld [vmem:[%s1266_s1 + $0x48] ss:$16 sps:$4 sm:$0xff]  }
   0x5   :  { %v887_v12 = vld [vmem:[%s1266_s1 + $0x64] ss:$16 sps:$4 sm:$0xff]   ;;  %v889_v13 = vld [vmem:[%s1266_s1 + $0x6c] ss:$16 sps:$4 sm:$0xff]   ;;  %v891_v14 = vld [vmem:[%s1266_s1 + $0x60] ss:$16 sps:$4 sm:$0xff]  }
   0x6   :  { %v892_v15 = vld [vmem:[%s1266_s1 + $0x68] ss:$16 sps:$4 sm:$0xff]   ;;  %v893_v16 = vld [vmem:[%s1266_s1 + $0x84] ss:$16 sps:$4 sm:$0xff]   ;;  %v895_v17 = vld [vmem:[%s1266_s1 + $0x8c] ss:$16 sps:$4 sm:$0xff]  }
   0x7   :  { %436 = vmatpush1.bf16.msra.mxu0 %v879_v6  ;;  %479 = vmatpush1.bf16.msra.mxu1 %v880_v7  ;;  %v897_v18 = vld [vmem:[%s1266_s1 + $0x80] ss:$16 sps:$4 sm:$0xff]   ;;  %v898_v19 = vld [vmem:[%s1266_s1 + $0x88] ss:$16 sps:$4 sm:$0xff]   ;;  %v899_v20 = vld [vmem:[%s1266_s1 + $0xa4] ss:$16 sps:$4 sm:$0xff]  }
   0x8   :  { %437 = vmatprep.subr.bf16.mxu0 %v881_v8  ;;  %480 = vmatprep.subr.bf16.mxu1 %v883_v9  ;;  %v901_v21 = vld [vmem:[%s1266_s1 + $0xac] ss:$16 sps:$4 sm:$0xff]   ;;  %v903_v22 = vld [vmem:[%s1266_s1 + $0xa0] ss:$16 sps:$4 sm:$0xff]   ;;  %v904_v23 = vld [vmem:[%s1266_s1 + $0xa8] ss:$16 sps:$4 sm:$0xff]  }
   0x9   :  { %v905_v24 = vld [vmem:[%s1266_s1 + $0xc4] ss:$16 sps:$4 sm:$0xff]   ;;  %v907_v25 = vld [vmem:[%s1266_s1 + $0xcc] ss:$16 sps:$4 sm:$0xff]   ;;  %v909_v26 = vld [vmem:[%s1266_s1 + $0xc0] ss:$16 sps:$4 sm:$0xff]  }
   0xa   :  { %v910_v27 = vld [vmem:[%s1266_s1 + $0xc8] ss:$16 sps:$4 sm:$0xff]   ;;  %v911_v28 = vld [vmem:[%s1266_s1 + $0xe4] ss:$16 sps:$4 sm:$0xff]   ;;  %v913_v29 = vld [vmem:[%s1266_s1 + $0xec] ss:$16 sps:$4 sm:$0xff]  }
   0xb   :  { %438 = vmatpush1.bf16.msra.mxu0 %v885_v10  ;;  %481 = vmatpush1.bf16.msra.mxu1 %v886_v11  ;;  %v915_v30 = vld [vmem:[%s1266_s1 + $0xe0] ss:$16 sps:$4 sm:$0xff]   ;;  %v916_v31 = vld [vmem:[%s1266_s1 + $0xe8] ss:$16 sps:$4 sm:$0xff]   ;;  %v917_v32 = vld [vmem:[%s1266_s1 + $0x104] ss:$16 sps:$4 sm:$0xff]  }
   0xc   :  { %439 = vmatprep.subr.bf16.mxu0 %v887_v12  ;;  %482 = vmatprep.subr.bf16.mxu1 %v889_v13  ;;  %v919_v33 = vld [vmem:[%s1266_s1 + $0x10c] ss:$16 sps:$4 sm:$0xff]   ;;  %v921_v34 = vld [vmem:[%s1266_s1 + $0x100] ss:$16 sps:$4 sm:$0xff]   ;;  %v922_v35 = vld [vmem:[%s1266_s1 + $0x108] ss:$16 sps:$4 sm:$0xff]  }
   0xd   :  { %v923_v36 = vld [vmem:[%s1266_s1 + $0x124] ss:$16 sps:$4 sm:$0xff]   ;;  %v925_v37 = vld [vmem:[%s1266_s1 + $0x12c] ss:$16 sps:$4 sm:$0xff]   ;;  %v927_v38 = vld [vmem:[%s1266_s1 + $0x120] ss:$16 sps:$4 sm:$0xff]  }
   0xe   :  { %v928_v39 = vld [vmem:[%s1266_s1 + $0x128] ss:$16 sps:$4 sm:$0xff]   ;;  %v929_v40 = vld [vmem:[%s1266_s1 + $0x144] ss:$16 sps:$4 sm:$0xff]   ;;  %v931_v41 = vld [vmem:[%s1266_s1 + $0x14c] ss:$16 sps:$4 sm:$0xff]  }
   0xf   :  { %440 = vmatpush1.bf16.msra.mxu0 %v891_v14  ;;  %483 = vmatpush1.bf16.msra.mxu1 %v892_v15  ;;  %v933_v42 = vld [vmem:[%s1266_s1 + $0x140] ss:$16 sps:$4 sm:$0xff]   ;;  %v934_v43 = vld [vmem:[%s1266_s1 + $0x148] ss:$16 sps:$4 sm:$0xff]   ;;  %v935_v44 = vld [vmem:[%s1266_s1 + $0x164] ss:$16 sps:$4 sm:$0xff]  }
  0x10   :  { %441 = vmatprep.subr.bf16.mxu0 %v893_v16  ;;  %484 = vmatprep.subr.bf16.mxu1 %v895_v17  ;;  %v937_v45 = vld [vmem:[%s1266_s1 + $0x16c] ss:$16 sps:$4 sm:$0xff]   ;;  %v939_v47 = vld [vmem:[%s1266_s1 + $0x160] ss:$16 sps:$4 sm:$0xff]   ;;  %v940_v48 = vld [vmem:[%s1266_s1 + $0x168] ss:$16 sps:$4 sm:$0xff]  }
  0x11   :  { %v967_v46 = vld [vmem:[%s1267_s0 + $0x4] ss:$8 sps:$4 sm:$0xff]   ;;  %v945_v51 = vld [vmem:[%s1266_s1 + $0x180] ss:$16 sps:$4 sm:$0xff]   ;;  %v946_v52 = vld [vmem:[%s1266_s1 + $0x188] ss:$16 sps:$4 sm:$0xff]  }
  0x12   :  { %v941_v49 = vld [vmem:[%s1266_s1 + $0x184] ss:$16 sps:$4 sm:$0xff]   ;;  %v943_v50 = vld [vmem:[%s1266_s1 + $0x18c] ss:$16 sps:$4 sm:$0xff]   ;;  %465 = vmatprep.mubr.bf16.mxu0 %v967_v46  ;;  %508 = vmatprep.mubr.bf16.mxu1 %v967_v46  ;;  %v951_v55 = vld [vmem:[%s1266_s1 + $0x1a0] ss:$16 sps:$4 sm:$0xff]  }
  0x13   :  { %442 = vmatpush1.bf16.msra.mxu0 %v897_v18  ;;  %485 = vmatpush1.bf16.msra.mxu1 %v898_v19  ;;  %v947_v53 = vld [vmem:[%s1266_s1 + $0x1a4] ss:$16 sps:$4 sm:$0xff]   ;;  %v949_v54 = vld [vmem:[%s1266_s1 + $0x1ac] ss:$16 sps:$4 sm:$0xff]   ;;  %v952_v56 = vld [vmem:[%s1266_s1 + $0x1a8] ss:$16 sps:$4 sm:$0xff]  }
  0x14   :  { %443 = vmatprep.subr.bf16.mxu0 %v899_v20  ;;  %486 = vmatprep.subr.bf16.mxu1 %v901_v21  ;;  %v953_v57 = vld [vmem:[%s1266_s1 + $0x1c4] ss:$16 sps:$4 sm:$0xff]   ;;  %v955_v58 = vld [vmem:[%s1266_s1 + $0x1cc] ss:$16 sps:$4 sm:$0xff]   ;;  %v957_v59 = vld [vmem:[%s1266_s1 + $0x1c0] ss:$16 sps:$4 sm:$0xff]  }
  0x15   :  { %v958_v60 = vld [vmem:[%s1266_s1 + $0x1c8] ss:$16 sps:$4 sm:$0xff]   ;;  %v959_v61 = vld [vmem:[%s1266_s1 + $0x1e4] ss:$16 sps:$4 sm:$0xff]   ;;  %v961_v62 = vld [vmem:[%s1266_s1 + $0x1ec] ss:$16 sps:$4 sm:$0xff]  }
  0x16   :  { %v963_v63 = vld [vmem:[%s1266_s1 + $0x1e0] ss:$16 sps:$4 sm:$0xff]   ;;  %v964_v0 = vld [vmem:[%s1266_s1 + $0x1e8] ss:$16 sps:$4 sm:$0xff]  }
  0x17   :  { %444 = vmatpush1.bf16.msra.mxu0 %v903_v22  ;;  %487 = vmatpush1.bf16.msra.mxu1 %v904_v23  ;;  %v965_v1 = vld [vmem:[%s1267_s0] ss:$8 sps:$4 sm:$0xff]  }
  0x18   :  { %445 = vmatprep.subr.bf16.mxu0 %v905_v24  ;;  %488 = vmatprep.subr.bf16.mxu1 %v907_v25 }
  0x1b   :  { %446 = vmatpush1.bf16.msra.mxu0 %v909_v26  ;;  %489 = vmatpush1.bf16.msra.mxu1 %v910_v27 }
  0x1c   :  { %447 = vmatprep.subr.bf16.mxu0 %v911_v28  ;;  %490 = vmatprep.subr.bf16.mxu1 %v913_v29 }
  0x1f   :  { %448 = vmatpush1.bf16.msra.mxu0 %v915_v30  ;;  %491 = vmatpush1.bf16.msra.mxu1 %v916_v31 }
  0x20   :  { %449 = vmatprep.subr.bf16.mxu0 %v917_v32  ;;  %492 = vmatprep.subr.bf16.mxu1 %v919_v33 }
  0x23   :  { %450 = vmatpush1.bf16.msra.mxu0 %v921_v34  ;;  %493 = vmatpush1.bf16.msra.mxu1 %v922_v35 }
  0x24   :  { %451 = vmatprep.subr.bf16.mxu0 %v923_v36  ;;  %494 = vmatprep.subr.bf16.mxu1 %v925_v37 }
  0x27   :  { %452 = vmatpush1.bf16.msra.mxu0 %v927_v38  ;;  %495 = vmatpush1.bf16.msra.mxu1 %v928_v39 }
  0x28   :  { %453 = vmatprep.subr.bf16.mxu0 %v929_v40  ;;  %496 = vmatprep.subr.bf16.mxu1 %v931_v41 }
  0x2b   :  { %454 = vmatpush1.bf16.msra.mxu0 %v933_v42  ;;  %497 = vmatpush1.bf16.msra.mxu1 %v934_v43 }
  0x2c   :  { %455 = vmatprep.subr.bf16.mxu0 %v935_v44  ;;  %498 = vmatprep.subr.bf16.mxu1 %v937_v45 }
  0x2f   :  { %456 = vmatpush1.bf16.msra.mxu0 %v939_v47  ;;  %499 = vmatpush1.bf16.msra.mxu1 %v940_v48 }
  0x30   :  { %457 = vmatprep.subr.bf16.mxu0 %v941_v49  ;;  %500 = vmatprep.subr.bf16.mxu1 %v943_v50 }
  0x33   :  { %458 = vmatpush1.bf16.msra.mxu0 %v945_v51  ;;  %501 = vmatpush1.bf16.msra.mxu1 %v946_v52 }
  0x34   :  { %459 = vmatprep.subr.bf16.mxu0 %v947_v53  ;;  %502 = vmatprep.subr.bf16.mxu1 %v949_v54 }
  0x37   :  { %460 = vmatpush1.bf16.msra.mxu0 %v951_v55  ;;  %503 = vmatpush1.bf16.msra.mxu1 %v952_v56 }
  0x38   :  { %461 = vmatprep.subr.bf16.mxu0 %v953_v57  ;;  %504 = vmatprep.subr.bf16.mxu1 %v955_v58 }
  0x3b   :  { %462 = vmatpush1.bf16.msra.mxu0 %v957_v59  ;;  %505 = vmatpush1.bf16.msra.mxu1 %v958_v60 }
  0x3c   :  { %463 = vmatprep.subr.bf16.mxu0 %v959_v61  ;;  %506 = vmatprep.subr.bf16.mxu1 %v961_v62 }
  0x3f   :  { %464 = vmatpush1.bf16.msra.mxu0 %v963_v63  ;;  %507 = vmatpush1.bf16.msra.mxu1 %v964_v0 }
  0x42   :  { %466 = vmatmul.mubr.bf16.vlgmr.msra.gmra.mrb[0].mxu0 %v965_v1  ;;  %509 = vmatmul.mubr.bf16.vlgmr.msra.gmra.mrb[0].mxu1 %v965_v1 }
 0x115   :  { %v1200_v2 = vpop.f32.mrb[0].mxu0  ;;  %v1202_v3 = vpop.f32.mrb[0].mxu1 }
 0x116   :  { %v1204_v4 = vpop.f32.mrb[1].mxu0  ;;  %v1206_v5 = vpop.f32.mrb[1].mxu1  ;;  %v576_v6 = vmul.f32 %v1200_v2, %v1200_v2  ;;  %v578_v7 = vmul.f32 %v1202_v3, %v1202_v3 }
 0x117   :  { %v577_v8 = vmul.f32 %v1204_v4, %v1204_v4  ;;  %v579_v9 = vmul.f32 %v1206_v5, %v1206_v5  ;;  %v1216_v10 = vpop.f32.mrb[2].mxu0  ;;  %v1218_v11 = vpop.f32.mrb[2].mxu1 }
 0x118   :  { %v548_v12 = vadd.f32 %v1216_v10, %v1200_v2  ;;  %v580_v13 = vmul.f32 %v1216_v10, %v1216_v10  ;;  %v562_v14 = vadd.f32 %v1218_v11, %v1202_v3  ;;  %v582_v15 = vmul.f32 %v1218_v11, %v1218_v11  ;;  %v1228_v16 = vpop.f32.mrb[3].mxu0  ;;  %v1230_v17 = vpop.f32.mrb[3].mxu1 }
 0x119   :  { %v555_v18 = vadd.f32 %v1228_v16, %v1204_v4  ;;  %v581_v19 = vmul.f32 %v1228_v16, %v1228_v16  ;;  %v569_v20 = vadd.f32 %v1230_v17, %v1206_v5  ;;  %v583_v21 = vmul.f32 %v1230_v17, %v1230_v17 }
 0x11a   :  { %v549_v22 = vrot.slane %v548_v12, 4  ;;  %v584_v23 = vadd.f32 %v580_v13, %v576_v6  ;;  %v563_v24 = vrot.slane %v562_v14, 4  ;;  %v598_v25 = vadd.f32 %v582_v15, %v578_v7 }
 0x11b   :  { %v556_v26 = vrot.slane %v555_v18, 4  ;;  %v591_v27 = vadd.f32 %v581_v19, %v577_v8  ;;  %v570_v28 = vrot.slane %v569_v20, 4  ;;  %v605_v29 = vadd.f32 %v583_v21, %v579_v9 }
 0x11c   :  { %v550_v30 = vadd.f32 %v549_v22, %v548_v12  ;;  %v585_v31 = vrot.slane %v584_v23, 4  ;;  %v564_v32 = vadd.f32 %v563_v24, %v562_v14  ;;  %v599_v33 = vrot.slane %v598_v25, 4 }
 0x11d   :  { %v557_v34 = vadd.f32 %v556_v26, %v555_v18  ;;  %v592_v35 = vrot.slane %v591_v27, 4  ;;  %v571_v36 = vadd.f32 %v570_v28, %v569_v20  ;;  %v606_v37 = vrot.slane %v605_v29, 4 }
 0x11e   :  { %v551_v38 = vrot.slane %v550_v30, 2  ;;  %v586_v39 = vadd.f32 %v585_v31, %v584_v23  ;;  %v565_v40 = vrot.slane %v564_v32, 2  ;;  %v600_v41 = vadd.f32 %v599_v33, %v598_v25 }
 0x11f   :  { %v558_v42 = vrot.slane %v557_v34, 2  ;;  %v593_v43 = vadd.f32 %v592_v35, %v591_v27  ;;  %v572_v44 = vrot.slane %v571_v36, 2  ;;  %v607_v45 = vadd.f32 %v606_v37, %v605_v29 }
 0x120   :  { %v552_v46 = vadd.f32 %v551_v38, %v550_v30  ;;  %v587_v47 = vrot.slane %v586_v39, 2  ;;  %v566_v48 = vadd.f32 %v565_v40, %v564_v32  ;;  %v601_v49 = vrot.slane %v600_v41, 2 }
 0x121   :  { %v559_v50 = vadd.f32 %v558_v42, %v557_v34  ;;  %v594_v51 = vrot.slane %v593_v43, 2  ;;  %v573_v52 = vadd.f32 %v572_v44, %v571_v36  ;;  %v608_v53 = vrot.slane %v607_v45, 2 }
 0x122   :  { %v553_v54 = vrot.slane %v552_v46, 1  ;;  %v588_v55 = vadd.f32 %v587_v47, %v586_v39  ;;  %v567_v56 = vrot.slane %v566_v48, 1  ;;  %v602_v57 = vadd.f32 %v601_v49, %v600_v41 }
 0x123   :  { %v560_v58 = vrot.slane %v559_v50, 1  ;;  %v595_v59 = vadd.f32 %v594_v51, %v593_v43  ;;  %v574_v60 = vrot.slane %v573_v52, 1  ;;  %v609_v61 = vadd.f32 %v608_v53, %v607_v45 }
 0x124   :  { %v554_v62 = vadd.f32 %v553_v54, %v552_v46  ;;  %v589_v63 = vrot.slane %v588_v55, 1  ;;  %v568_v0 = vadd.f32 %v567_v56, %v566_v48  ;;  %v603_v1 = vrot.slane %v602_v57, 1 }
 0x125   :  { %v561_v6 = vadd.f32 %v560_v58, %v559_v50  ;;  %v596_v7 = vrot.slane %v595_v59, 1  ;;  %v575_v8 = vadd.f32 %v574_v60, %v573_v52  ;;  %v610_v9 = vrot.slane %v609_v61, 1 }
 0x126   :  { %v590_v12 = vadd.f32 %v589_v63, %v588_v55  ;;  %v612_v13 = vmul.f32 0.125, %v554_v62  ;;  %v604_v14 = vadd.f32 %v603_v1, %v602_v57  ;;  %v614_v15 = vmul.f32 0.125, %v568_v0  ;;  %v546_v57 = vld [vmem:[%s1268_s2] sm:$0xf] }
 0x127   :  { %v597_v18 = vadd.f32 %v596_v7, %v595_v59  ;;  %v613_v19 = vmul.f32 0.125, %v561_v6  ;;  %v611_v20 = vadd.f32 %v610_v9, %v609_v61  ;;  %v615_v21 = vmul.f32 0.125, %v575_v8 }
 0x128   :  { %v616_v22 = vmul.f32 0.125, %v590_v12  ;;  %v620_v23 = vmul.f32 %v612_v13, %v612_v13  ;;  %v618_v24 = vmul.f32 0.125, %v604_v14  ;;  %v622_v25 = vmul.f32 %v614_v15, %v614_v15 }
 0x129   :  { %v617_v26 = vmul.f32 0.125, %v597_v18  ;;  %v621_v27 = vmul.f32 %v613_v19, %v613_v19  ;;  %v619_v28 = vmul.f32 0.125, %v611_v20  ;;  %v623_v29 = vmul.f32 %v615_v21, %v615_v21 }
 0x12a   :  { %v624_v30 = vsub.f32 %v616_v22, %v620_v23  ;;  %v626_v31 = vsub.f32 %v618_v24, %v622_v25  ;;  %v976_v42 = vmov 1966171168   ;;  %v649_v44 = vlaneseq }
 0x12b   :  { %v625_v32 = vsub.f32 %v617_v26, %v621_v27  ;;  %v627_v33 = vsub.f32 %v619_v28, %v623_v29  ;;  %v647_v43 = vunpack.c.l.s4 %v976_v42 }
 0x12c   :  { %v628_v34 = vmax.f32 %v624_v30, 0.0  ;;  %v630_v35 = vmax.f32 %v626_v31, 0.0  ;;  %v650_v46 = vshrl.u32 %v649_v44, 7 }
 0x12d   :  { %v629_v36 = vmax.f32 %v625_v32, 0.0  ;;  %v631_v37 = vmax.f32 %v627_v33, 0.0  ;;  %v648_v45 = vunpack.c.0.s8 %v647_v43 }
 0x12e   :  { %v632_v38 = vadd.f32 1e-05, %v628_v34  ;;  %v634_v39 = vadd.f32 1e-05, %v630_v35  ;;  %v673_v58 = vsub.s32 0, %v650_v46  ;;  %v677_v60 = vsub.s32 1, %v650_v46 }
 0x12f   :  { %v633_v40 = vadd.f32 1e-05, %v629_v36  ;;  %v635_v41 = vadd.f32 1e-05, %v631_v37  ;;  %v651_v49 = vsub.s32 %v648_v45, %v650_v46  ;;  %v681_v61 = vsub.s32 2, %v650_v46 }
 0x130   :  { %968 = vrsqrt.f32 %v632_v38  ;;  %v685_v62 = vsub.s32 3, %v650_v46 }
 0x131   :  { %970 = vrsqrt.f32 %v634_v39 }
 0x132   :  { %972 = vrsqrt.f32 %v633_v40 }
 0x133   :  { %974 = vrsqrt.f32 %v635_v41 }
 0x13a   :  { %v969_v47 = vpop.eup %968 }
 0x13b   :  { %v971_v48 = vpop.eup %970 }
 0x13c   :  { %v973_v50 = vpop.eup %972 }
 0x13d   :  { %v975_v51 = vpop.eup %974  ;;  %v644_v52 = vcombine.low %v969_v47, %v973_v50 }
 0x13e   :  { %v645_v53 = vcombine.low %v971_v48, %v975_v51 }
 0x13f   :  { %v652_v54 = vrot.slane %v644_v52, %v651_v49 }
 0x140   :  { %v659_v55 = vrot.slane %v645_v53, %v651_v49 }
 0x142   :  { %v660_v56 = vcombine.low %v652_v54, %v659_v55 }
 0x144   :  { %v667_v59 = vrot.slane %v660_v56, %v651_v49 }
 0x146   :  { %v669_v63 = vmul.f32 %v667_v59, %v546_v57 }
 0x148   :  { %v674_v0 = vrot.slane %v669_v63, %v673_v58  ;;  %v678_v1 = vrot.slane %v669_v63, %v677_v60  ;;  %v682_v6 = vrot.slane %v669_v63, %v681_v61  ;;  %v686_v7 = vrot.slane %v669_v63, %v685_v62 }
 0x14a   :  { %v691_v8 = vmul.f32 %v674_v0, %v612_v13  ;;  %v692_v9 = vmul.f32 %v678_v1, %v613_v19  ;;  %v693_v12 = vmul.f32 %v682_v6, %v614_v15  ;;  %v694_v14 = vmul.f32 %v686_v7, %v615_v21 }
 0x14b   :  { %v725_v18 = vmul.f32 %v674_v0, %v1200_v2  ;;  %v726_v20 = vmul.f32 %v678_v1, %v1204_v4  ;;  %v727_v22 = vmul.f32 %v682_v6, %v1202_v3  ;;  %v728_v23 = vmul.f32 %v686_v7, %v1206_v5  ;;  %v547_v2 = vld [vmem:[%s1269_s3] sm:$0xf] }
 0x14c   :  { %v699_v24 = vcombine.low %v691_v8, %v692_v9  ;;  %v700_v25 = vcombine.low %v693_v12, %v694_v14  ;;  %v729_v26 = vmul.f32 %v674_v0, %v1216_v10  ;;  %v730_v27 = vmul.f32 %v678_v1, %v1228_v16 }
 0x14d   :  { %v731_v28 = vmul.f32 %v682_v6, %v1218_v11  ;;  %v732_v13 = vmul.f32 %v686_v7, %v1230_v17 }
 0x14e   :  { %v707_v15 = vrot.slane %v699_v24, %v651_v49  ;;  %v714_v19 = vrot.slane %v700_v25, %v651_v49 }
 0x150   :  { %v715_v21 = vcombine.low %v707_v15, %v714_v19 }
 0x152   :  { %v722_v3 = vrot.slane %v715_v21, %v651_v49 }
 0x154   :  { %v724_v4 = vsub.f32 %v547_v2, %v722_v3 }
 0x156   :  { %v737_v5 = vrot.slane %v724_v4, %v673_v58  ;;  %v741_v29 = vrot.slane %v724_v4, %v677_v60  ;;  %v745_v30 = vrot.slane %v724_v4, %v681_v61  ;;  %v749_v31 = vrot.slane %v724_v4, %v685_v62 }
 0x158   :  { %v754_v10 = vadd.f32 %v737_v5, %v725_v18  ;;  %v755_v32 = vadd.f32 %v741_v29, %v726_v20  ;;  %v756_v16 = vadd.f32 %v745_v30, %v727_v22  ;;  %v757_v33 = vadd.f32 %v749_v31, %v728_v23 }
 0x159   :  { %v758_v11 = vadd.f32 %v737_v5, %v729_v26  ;;  %v759_v34 = vadd.f32 %v741_v29, %v730_v27  ;;  %v760_v17 = vadd.f32 %v745_v30, %v731_v28  ;;  %v761_v35 = vadd.f32 %v749_v31, %v732_v13 }
 0x15a   :  { %v864_v36 = vpack.c.bf16 %v755_v32, %v754_v10  ;;  %v865_v37 = vpack.c.bf16 %v757_v33, %v756_v16 }
 0x15b   :  { %v866_v38 = vpack.c.bf16 %v759_v34, %v758_v11  ;;  %v867_v39 = vpack.c.bf16 %v761_v35, %v760_v17 }
 0x15c   :  { %786 = vst [vmem:[%s1270_s4] sm:$0xff] %v864_v36  ;;  %787 = vst [vmem:[%s1270_s4 + $0x8] sm:$0xff] %v865_v37 }
 0x15d   :  { %788 = vst [vmem:[%s1270_s4 + $0x10] sm:$0xff] %v866_v38  ;;  %789 = vst [vmem:[%s1270_s4 + $0x18] sm:$0xff] %v867_v39 }

// kernel: icnet_backbone_forward.84
= control target key start
LH: loop header
LB: loop body
LE: loop exit
PB: predicated region body
PF: predicated region fallthrough
CT: control target
= control target key end

     0   :  { %v730_v1 = vmov 0   ;;  %s939_s1 = inlined_call_operand.vmem [shape: bf16[128,512], index: 1, kind: input, shape index: {}]   ;;  %s940_s0 = inlined_call_operand.vmem [shape: bf16[16,128], index: 0, kind: input, shape index: {}]   ;;  %s941_s2 = inlined_call_operand.vmem [shape: f32[1,512], index: 2, kind: input, shape index: {}]   ;;  %s942_s3 = inlined_call_operand.vmem [shape: f32[1,512], index: 3, kind: input, shape index: {}]   ;;  %s943_s4 = inlined_call_operand.vmem [shape: bf16[16,512], index: 4, kind: input, shape index: {}]   ;;  %s944_s5 = inlined_call_operand.vmem [shape: bf16[16,512], index: 5, kind: output, shape index: {}]  }
   0x1   :  { %v673_v0 = vld [vmem:[%s939_s1 + $0x4] ss:$16 sps:$4 sm:$0xff]   ;;  %273 = vmatprep.mubr.bf16.mxu0 %v730_v1  ;;  %316 = vmatprep.mubr.bf16.mxu1 %v730_v1  ;;  %v675_v2 = vld [vmem:[%s939_s1 + $0xc] ss:$16 sps:$4 sm:$0xff]   ;;  %v677_v3 = vld [vmem:[%s939_s1] ss:$16 sps:$4 sm:$0xff]  }
   0x2   :  { %241 = vmatprep.subr.bf16.mxu0 %v673_v0  ;;  %v678_v4 = vld [vmem:[%s939_s1 + $0x8] ss:$16 sps:$4 sm:$0xff]   ;;  %284 = vmatprep.subr.bf16.mxu1 %v675_v2  ;;  %v679_v5 = vld [vmem:[%s939_s1 + $0x24] ss:$16 sps:$4 sm:$0xff]   ;;  %v681_v6 = vld [vmem:[%s939_s1 + $0x2c] ss:$16 sps:$4 sm:$0xff]  }
   0x3   :  { %242 = vmatpush1.bf16.msra.mxu0 %v677_v3  ;;  %285 = vmatpush1.bf16.msra.mxu1 %v678_v4  ;;  %v683_v7 = vld [vmem:[%s939_s1 + $0x20] ss:$16 sps:$4 sm:$0xff]   ;;  %v684_v8 = vld [vmem:[%s939_s1 + $0x28] ss:$16 sps:$4 sm:$0xff]   ;;  %v685_v9 = vld [vmem:[%s939_s1 + $0x44] ss:$16 sps:$4 sm:$0xff]  }
   0x4   :  { %243 = vmatprep.subr.bf16.mxu0 %v679_v5  ;;  %286 = vmatprep.subr.bf16.mxu1 %v681_v6  ;;  %v687_v10 = vld [vmem:[%s939_s1 + $0x4c] ss:$16 sps:$4 sm:$0xff]   ;;  %v689_v11 = vld [vmem:[%s939_s1 + $0x40] ss:$16 sps:$4 sm:$0xff]   ;;  %v690_v12 = vld [vmem:[%s939_s1 + $0x48] ss:$16 sps:$4 sm:$0xff]  }
   0x5   :  { %v691_v13 = vld [vmem:[%s939_s1 + $0x64] ss:$16 sps:$4 sm:$0xff]   ;;  %v693_v14 = vld [vmem:[%s939_s1 + $0x6c] ss:$16 sps:$4 sm:$0xff]   ;;  %v695_v15 = vld [vmem:[%s939_s1 + $0x60] ss:$16 sps:$4 sm:$0xff]  }
   0x6   :  { %v696_v16 = vld [vmem:[%s939_s1 + $0x68] ss:$16 sps:$4 sm:$0xff]   ;;  %v697_v17 = vld [vmem:[%s939_s1 + $0x84] ss:$16 sps:$4 sm:$0xff]   ;;  %v699_v18 = vld [vmem:[%s939_s1 + $0x8c] ss:$16 sps:$4 sm:$0xff]  }
   0x7   :  { %244 = vmatpush1.bf16.msra.mxu0 %v683_v7  ;;  %287 = vmatpush1.bf16.msra.mxu1 %v684_v8  ;;  %v701_v19 = vld [vmem:[%s939_s1 + $0x80] ss:$16 sps:$4 sm:$0xff]   ;;  %v702_v20 = vld [vmem:[%s939_s1 + $0x88] ss:$16 sps:$4 sm:$0xff]   ;;  %v703_v21 = vld [vmem:[%s939_s1 + $0xa4] ss:$16 sps:$4 sm:$0xff]  }
   0x8   :  { %245 = vmatprep.subr.bf16.mxu0 %v685_v9  ;;  %288 = vmatprep.subr.bf16.mxu1 %v687_v10  ;;  %v705_v22 = vld [vmem:[%s939_s1 + $0xac] ss:$16 sps:$4 sm:$0xff]   ;;  %v707_v23 = vld [vmem:[%s939_s1 + $0xa0] ss:$16 sps:$4 sm:$0xff]   ;;  %v708_v24 = vld [vmem:[%s939_s1 + $0xa8] ss:$16 sps:$4 sm:$0xff]  }
   0x9   :  { %v709_v25 = vld [vmem:[%s939_s1 + $0xc4] ss:$16 sps:$4 sm:$0xff]   ;;  %v711_v26 = vld [vmem:[%s939_s1 + $0xcc] ss:$16 sps:$4 sm:$0xff]   ;;  %v713_v27 = vld [vmem:[%s939_s1 + $0xc0] ss:$16 sps:$4 sm:$0xff]  }
   0xa   :  { %v714_v28 = vld [vmem:[%s939_s1 + $0xc8] ss:$16 sps:$4 sm:$0xff]   ;;  %v715_v29 = vld [vmem:[%s939_s1 + $0xe4] ss:$16 sps:$4 sm:$0xff]   ;;  %v717_v30 = vld [vmem:[%s939_s1 + $0xec] ss:$16 sps:$4 sm:$0xff]  }
   0xb   :  { %246 = vmatpush1.bf16.msra.mxu0 %v689_v11  ;;  %289 = vmatpush1.bf16.msra.mxu1 %v690_v12  ;;  %v719_v31 = vld [vmem:[%s939_s1 + $0xe0] ss:$16 sps:$4 sm:$0xff]   ;;  %v720_v32 = vld [vmem:[%s939_s1 + $0xe8] ss:$16 sps:$4 sm:$0xff]  }
   0xc   :  { %247 = vmatprep.subr.bf16.mxu0 %v691_v13  ;;  %290 = vmatprep.subr.bf16.mxu1 %v693_v14  ;;  %v721_v33 = vld [vmem:[%s940_s0] sm:$0xff]  }
   0xf   :  { %248 = vmatpush1.bf16.msra.mxu0 %v695_v15  ;;  %291 = vmatpush1.bf16.msra.mxu1 %v696_v16 }
  0x10   :  { %249 = vmatprep.subr.bf16.mxu0 %v697_v17  ;;  %292 = vmatprep.subr.bf16.mxu1 %v699_v18 }
  0x13   :  { %250 = vmatpush1.bf16.msra.mxu0 %v701_v19  ;;  %293 = vmatpush1.bf16.msra.mxu1 %v702_v20 }
  0x14   :  { %251 = vmatprep.subr.bf16.mxu0 %v703_v21  ;;  %294 = vmatprep.subr.bf16.mxu1 %v705_v22 }
  0x17   :  { %252 = vmatpush1.bf16.msra.mxu0 %v707_v23  ;;  %295 = vmatpush1.bf16.msra.mxu1 %v708_v24 }
  0x18   :  { %253 = vmatprep.subr.bf16.mxu0 %v709_v25  ;;  %296 = vmatprep.subr.bf16.mxu1 %v711_v26 }
  0x1b   :  { %254 = vmatpush1.bf16.msra.mxu0 %v713_v27  ;;  %297 = vmatpush1.bf16.msra.mxu1 %v714_v28 }
  0x1c   :  { %255 = vmatprep.subr.bf16.mxu0 %v715_v29  ;;  %298 = vmatprep.subr.bf16.mxu1 %v717_v30 }
  0x1f   :  { %256 = vmatpush1.bf16.msra.mxu0 %v719_v31  ;;  %299 = vmatpush1.bf16.msra.mxu1 %v720_v32 }
  0x22   :  { %274 = vmatmul.mubr.bf16.vlgmr.msra.gmra.mrb[0].mxu0 %v721_v33  ;;  %317 = vmatmul.mubr.bf16.vlgmr.msra.gmra.mrb[0].mxu1 %v721_v33 }
  0xf5   :  { %v861_v34 = vpop.f32.mrb[0].mxu0  ;;  %v863_v35 = vpop.f32.mrb[0].mxu1 }
  0xf6   :  { %v865_v36 = vpop.f32.mrb[1].mxu0  ;;  %v867_v37 = vpop.f32.mrb[1].mxu1  ;;  %v396_v38 = vmul.f32 %v861_v34, %v861_v34  ;;  %v398_v39 = vmul.f32 %v863_v35, %v863_v35 }
  0xf7   :  { %v397_v40 = vmul.f32 %v865_v36, %v865_v36  ;;  %v399_v41 = vmul.f32 %v867_v37, %v867_v37  ;;  %v877_v42 = vpop.f32.mrb[2].mxu0  ;;  %v879_v43 = vpop.f32.mrb[2].mxu1 }
  0xf8   :  { %v368_v44 = vadd.f32 %v877_v42, %v861_v34  ;;  %v400_v45 = vmul.f32 %v877_v42, %v877_v42  ;;  %v382_v46 = vadd.f32 %v879_v43, %v863_v35  ;;  %v402_v47 = vmul.f32 %v879_v43, %v879_v43  ;;  %v889_v48 = vpop.f32.mrb[3].mxu0  ;;  %v891_v49 = vpop.f32.mrb[3].mxu1 }
  0xf9   :  { %v375_v50 = vadd.f32 %v889_v48, %v865_v36  ;;  %v401_v51 = vmul.f32 %v889_v48, %v889_v48  ;;  %v389_v52 = vadd.f32 %v891_v49, %v867_v37  ;;  %v403_v53 = vmul.f32 %v891_v49, %v891_v49 }
  0xfa   :  { %v369_v54 = vrot.slane %v368_v44, 4  ;;  %v404_v55 = vadd.f32 %v400_v45, %v396_v38  ;;  %v383_v56 = vrot.slane %v382_v46, 4  ;;  %v418_v57 = vadd.f32 %v402_v47, %v398_v39 }
  0xfb   :  { %v376_v58 = vrot.slane %v375_v50, 4  ;;  %v411_v59 = vadd.f32 %v401_v51, %v397_v40  ;;  %v390_v60 = vrot.slane %v389_v52, 4  ;;  %v425_v61 = vadd.f32 %v403_v53, %v399_v41 }
  0xfc   :  { %v370_v62 = vadd.f32 %v369_v54, %v368_v44  ;;  %v405_v63 = vrot.slane %v404_v55, 4  ;;  %v384_v0 = vadd.f32 %v383_v56, %v382_v46  ;;  %v419_v1 = vrot.slane %v418_v57, 4 }
  0xfd   :  { %v377_v2 = vadd.f32 %v376_v58, %v375_v50  ;;  %v412_v3 = vrot.slane %v411_v59, 4  ;;  %v391_v4 = vadd.f32 %v390_v60, %v389_v52  ;;  %v426_v5 = vrot.slane %v425_v61, 4 }
  0xfe   :  { %v371_v6 = vrot.slane %v370_v62, 2  ;;  %v406_v7 = vadd.f32 %v405_v63, %v404_v55  ;;  %v385_v8 = vrot.slane %v384_v0, 2  ;;  %v420_v9 = vadd.f32 %v419_v1, %v418_v57 }
  0xff   :  { %v378_v10 = vrot.slane %v377_v2, 2  ;;  %v413_v11 = vadd.f32 %v412_v3, %v411_v59  ;;  %v392_v12 = vrot.slane %v391_v4, 2  ;;  %v427_v13 = vadd.f32 %v426_v5, %v425_v61 }
 0x100   :  { %v372_v14 = vadd.f32 %v371_v6, %v370_v62  ;;  %v407_v15 = vrot.slane %v406_v7, 2  ;;  %v386_v16 = vadd.f32 %v385_v8, %v384_v0  ;;  %v421_v17 = vrot.slane %v420_v9, 2 }
 0x101   :  { %v379_v18 = vadd.f32 %v378_v10, %v377_v2  ;;  %v414_v19 = vrot.slane %v413_v11, 2  ;;  %v393_v20 = vadd.f32 %v392_v12, %v391_v4  ;;  %v428_v21 = vrot.slane %v427_v13, 2 }
 0x102   :  { %v373_v22 = vrot.slane %v372_v14, 1  ;;  %v408_v23 = vadd.f32 %v407_v15, %v406_v7  ;;  %v387_v24 = vrot.slane %v386_v16, 1  ;;  %v422_v25 = vadd.f32 %v421_v17, %v420_v9 }
 0x103   :  { %v380_v26 = vrot.slane %v379_v18, 1  ;;  %v415_v27 = vadd.f32 %v414_v19, %v413_v11  ;;  %v394_v28 = vrot.slane %v393_v20, 1  ;;  %v429_v29 = vadd.f32 %v428_v21, %v427_v13 }
 0x104   :  { %v374_v30 = vadd.f32 %v373_v22, %v372_v14  ;;  %v409_v31 = vrot.slane %v408_v23, 1  ;;  %v388_v32 = vadd.f32 %v387_v24, %v386_v16  ;;  %v423_v33 = vrot.slane %v422_v25, 1 }
 0x105   :  { %v381_v38 = vadd.f32 %v380_v26, %v379_v18  ;;  %v416_v39 = vrot.slane %v415_v27, 1  ;;  %v395_v40 = vadd.f32 %v394_v28, %v393_v20  ;;  %v430_v41 = vrot.slane %v429_v29, 1 }
 0x106   :  { %v410_v44 = vadd.f32 %v409_v31, %v408_v23  ;;  %v432_v45 = vmul.f32 0.125, %v374_v30  ;;  %v424_v46 = vadd.f32 %v423_v33, %v422_v25  ;;  %v434_v47 = vmul.f32 0.125, %v388_v32  ;;  %v354_v25 = vld [vmem:[%s941_s2] sm:$0xf] }
 0x107   :  { %v417_v50 = vadd.f32 %v416_v39, %v415_v27  ;;  %v433_v51 = vmul.f32 0.125, %v381_v38  ;;  %v431_v52 = vadd.f32 %v430_v41, %v429_v29  ;;  %v435_v53 = vmul.f32 0.125, %v395_v40 }
 0x108   :  { %v436_v54 = vmul.f32 0.125, %v410_v44  ;;  %v440_v55 = vmul.f32 %v432_v45, %v432_v45  ;;  %v438_v56 = vmul.f32 0.125, %v424_v46  ;;  %v442_v57 = vmul.f32 %v434_v47, %v434_v47 }
 0x109   :  { %v437_v58 = vmul.f32 0.125, %v417_v50  ;;  %v441_v59 = vmul.f32 %v433_v51, %v433_v51  ;;  %v439_v60 = vmul.f32 0.125, %v431_v52  ;;  %v443_v61 = vmul.f32 %v435_v53, %v435_v53 }
 0x10a   :  { %v444_v62 = vsub.f32 %v436_v54, %v440_v55  ;;  %v446_v63 = vsub.f32 %v438_v56, %v442_v57  ;;  %v731_v10 = vmov 1966171168   ;;  %v469_v12 = vlaneseq }
 0x10b   :  { %v445_v0 = vsub.f32 %v437_v58, %v441_v59  ;;  %v447_v1 = vsub.f32 %v439_v60, %v443_v61  ;;  %v467_v11 = vunpack.c.l.s4 %v731_v10 }
 0x10c   :  { %v448_v2 = vmax.f32 %v444_v62, 0.0  ;;  %v450_v3 = vmax.f32 %v446_v63, 0.0  ;;  %v470_v14 = vshrl.u32 %v469_v12, 7 }
 0x10d   :  { %v449_v4 = vmax.f32 %v445_v0, 0.0  ;;  %v451_v5 = vmax.f32 %v447_v1, 0.0  ;;  %v468_v13 = vunpack.c.0.s8 %v467_v11 }
 0x10e   :  { %v452_v6 = vadd.f32 1e-05, %v448_v2  ;;  %v454_v7 = vadd.f32 1e-05, %v450_v3  ;;  %v493_v26 = vsub.s32 0, %v470_v14  ;;  %v497_v28 = vsub.s32 1, %v470_v14 }
 0x10f   :  { %v453_v8 = vadd.f32 1e-05, %v449_v4  ;;  %v455_v9 = vadd.f32 1e-05, %v451_v5  ;;  %v471_v17 = vsub.s32 %v468_v13, %v470_v14  ;;  %v501_v29 = vsub.s32 2, %v470_v14 }
 0x110   :  { %722 = vrsqrt.f32 %v452_v6  ;;  %v505_v30 = vsub.s32 3, %v470_v14 }
 0x111   :  { %724 = vrsqrt.f32 %v454_v7 }
 0x112   :  { %726 = vrsqrt.f32 %v453_v8 }
 0x113   :  { %728 = vrsqrt.f32 %v455_v9 }
 0x11a   :  { %v723_v15 = vpop.eup %722 }
 0x11b   :  { %v725_v16 = vpop.eup %724 }
 0x11c   :  { %v727_v18 = vpop.eup %726 }
 0x11d   :  { %v729_v19 = vpop.eup %728  ;;  %v464_v20 = vcombine.low %v723_v15, %v727_v18 }
 0x11e   :  { %v465_v21 = vcombine.low %v725_v16, %v729_v19 }
 0x11f   :  { %v472_v22 = vrot.slane %v464_v20, %v471_v17 }
 0x120   :  { %v479_v23 = vrot.slane %v465_v21, %v471_v17 }
 0x122   :  { %v480_v24 = vcombine.low %v472_v22, %v479_v23 }
 0x124   :  { %v487_v27 = vrot.slane %v480_v24, %v471_v17 }
 0x126   :  { %v489_v31 = vmul.f32 %v487_v27, %v354_v25 }
 0x128   :  { %v494_v32 = vrot.slane %v489_v31, %v493_v26  ;;  %v498_v33 = vrot.slane %v489_v31, %v497_v28  ;;  %v502_v38 = vrot.slane %v489_v31, %v501_v29  ;;  %v506_v39 = vrot.slane %v489_v31, %v505_v30 }
 0x12a   :  { %v511_v40 = vmul.f32 %v494_v32, %v432_v45  ;;  %v512_v41 = vmul.f32 %v498_v33, %v433_v51  ;;  %v513_v44 = vmul.f32 %v502_v38, %v434_v47  ;;  %v514_v46 = vmul.f32 %v506_v39, %v435_v53 }
 0x12b   :  { %v545_v50 = vmul.f32 %v494_v32, %v861_v34  ;;  %v546_v52 = vmul.f32 %v498_v33, %v865_v36  ;;  %v547_v54 = vmul.f32 %v502_v38, %v863_v35  ;;  %v548_v55 = vmul.f32 %v506_v39, %v867_v37  ;;  %v355_v34 = vld [vmem:[%s942_s3] sm:$0xf]  ;;  %v357_v36 = vld [vmem:[%s943_s4 + $0x8] sm:$0xff] }
 0x12c   :  { %v519_v56 = vcombine.low %v511_v40, %v512_v41  ;;  %v520_v57 = vcombine.low %v513_v44, %v514_v46  ;;  %v549_v58 = vmul.f32 %v494_v32, %v877_v42  ;;  %v550_v59 = vmul.f32 %v498_v33, %v889_v48  ;;  %v356_v35 = vld [vmem:[%s943_s4] sm:$0xff]  ;;  %v358_v42 = vld [vmem:[%s943_s4 + $0x10] sm:$0xff] }
 0x12d   :  { %v551_v60 = vmul.f32 %v502_v38, %v879_v43  ;;  %v552_v45 = vmul.f32 %v506_v39, %v891_v49  ;;  %v359_v43 = vld [vmem:[%s943_s4 + $0x18] sm:$0xff]  ;;  %v360_v49 = vunpack.c.l.bf16 %v356_v35  ;;  %v361_v61 = vunpack.c.h.bf16 %v356_v35 }
 0x12e   :  { %v527_v47 = vrot.slane %v519_v56, %v471_v17  ;;  %v534_v51 = vrot.slane %v520_v57, %v471_v17  ;;  %v362_v62 = vunpack.c.l.bf16 %v357_v36  ;;  %v363_v63 = vunpack.c.h.bf16 %v357_v36 }
 0x12f   :  { %v364_v4 = vunpack.c.l.bf16 %v358_v42  ;;  %v365_v5 = vunpack.c.h.bf16 %v358_v42  ;;  %v366_v6 = vunpack.c.l.bf16 %v359_v43  ;;  %v367_v7 = vunpack.c.h.bf16 %v359_v43 }
 0x130   :  { %v535_v53 = vcombine.low %v527_v47, %v534_v51 }
 0x132   :  { %v542_v37 = vrot.slane %v535_v53, %v471_v17 }
 0x134   :  { %v544_v48 = vsub.f32 %v355_v34, %v542_v37 }
 0x136   :  { %v557_v0 = vrot.slane %v544_v48, %v493_v26  ;;  %v561_v1 = vrot.slane %v544_v48, %v497_v28  ;;  %v565_v2 = vrot.slane %v544_v48, %v501_v29  ;;  %v569_v3 = vrot.slane %v544_v48, %v505_v30 }
 0x138   :  { %v574_v8 = vadd.f32 %v557_v0, %v545_v50  ;;  %v575_v9 = vadd.f32 %v561_v1, %v546_v52  ;;  %v576_v10 = vadd.f32 %v565_v2, %v547_v54  ;;  %v577_v11 = vadd.f32 %v569_v3, %v548_v55 }
 0x139   :  { %v578_v12 = vadd.f32 %v557_v0, %v549_v58  ;;  %v579_v13 = vadd.f32 %v561_v1, %v550_v59  ;;  %v580_v14 = vadd.f32 %v565_v2, %v551_v60  ;;  %v581_v15 = vadd.f32 %v569_v3, %v552_v45 }
 0x13a   :  { %v582_v16 = vadd.f32 %v574_v8, %v360_v49  ;;  %v583_v17 = vadd.f32 %v575_v9, %v361_v61  ;;  %v584_v18 = vadd.f32 %v576_v10, %v362_v62  ;;  %v585_v19 = vadd.f32 %v577_v11, %v363_v63 }
 0x13b   :  { %v586_v20 = vadd.f32 %v578_v12, %v364_v4  ;;  %v587_v21 = vadd.f32 %v579_v13, %v365_v5  ;;  %v588_v22 = vadd.f32 %v580_v14, %v366_v6  ;;  %v589_v23 = vadd.f32 %v581_v15, %v367_v7 }
 0x13c   :  { %v590_v24 = vmax.f32 %v582_v16, 0.0  ;;  %v591_v25 = vmax.f32 %v583_v17, 0.0  ;;  %v592_v26 = vmax.f32 %v584_v18, 0.0  ;;  %v593_v27 = vmax.f32 %v585_v19, 0.0 }
 0x13d   :  { %v594_v28 = vmax.f32 %v586_v20, 0.0  ;;  %v595_v29 = vmax.f32 %v587_v21, 0.0  ;;  %v596_v30 = vmax.f32 %v588_v22, 0.0  ;;  %v597_v31 = vmax.f32 %v589_v23, 0.0 }
 0x13e   :  { %v667_v32 = vpack.c.bf16 %v591_v25, %v590_v24  ;;  %v668_v33 = vpack.c.bf16 %v593_v27, %v592_v26 }
 0x13f   :  { %v669_v38 = vpack.c.bf16 %v595_v29, %v594_v28  ;;  %v670_v39 = vpack.c.bf16 %v597_v31, %v596_v30 }
 0x140   :  { %622 = vst [vmem:[%s944_s5] sm:$0xff] %v667_v32  ;;  %623 = vst [vmem:[%s944_s5 + $0x8] sm:$0xff] %v668_v33 }
 0x141   :  { %624 = vst [vmem:[%s944_s5 + $0x10] sm:$0xff] %v669_v38  ;;  %625 = vst [vmem:[%s944_s5 + $0x18] sm:$0xff] %v670_v39 }

// kernel: icnet_backbone_forward.85
= control target key start
LH: loop header
LB: loop body
LE: loop exit
PB: predicated region body
PF: predicated region fallthrough
CT: control target
= control target key end

     0   :  { %s728_s1 = inlined_call_operand.vmem [shape: bf16[512,128], index: 1, kind: input, shape index: {}]   ;;  %s729_s0 = inlined_call_operand.vmem [shape: bf16[16,512], index: 0, kind: input, shape index: {}]   ;;  %s730_s2 = inlined_call_operand.vmem [shape: f32[1,128], index: 2, kind: input, shape index: {}]   ;;  %s731_s3 = inlined_call_operand.vmem [shape: f32[1,128], index: 3, kind: input, shape index: {}]   ;;  %s732_s4 = inlined_call_operand.vmem [shape: bf16[16,128], index: 4, kind: output, shape index: {}]  }
   0x1   :  { %v546_v0 = vld [vmem:[%s728_s1 + $0x40] sm:$0xff]   ;;  %v550_v4 = vld [vmem:[%s728_s1 + $0x48] sm:$0xff]   ;;  %v554_v8 = vld [vmem:[%s728_s1 + $0x50] sm:$0xff]  }
   0x2   :  { %v547_v1 = vld [vmem:[%s728_s1 + $0xc0] sm:$0xff]   ;;  %502 = vmatprep.subr.bf16.mxu0 %v546_v0  ;;  %v551_v5 = vld [vmem:[%s728_s1 + $0xc8] sm:$0xff]   ;;  %v555_v9 = vld [vmem:[%s728_s1 + $0xd0] sm:$0xff]  }
   0x3   :  { %v548_v2 = vld [vmem:[%s728_s1] sm:$0xff]   ;;  %524 = vmatprep.subr.bf16.mxu1 %v547_v1  ;;  %v552_v6 = vld [vmem:[%s728_s1 + $0x8] sm:$0xff]   ;;  %v556_v10 = vld [vmem:[%s728_s1 + $0x10] sm:$0xff]  }
   0x4   :  { %v549_v3 = vld [vmem:[%s728_s1 + $0x80] sm:$0xff]   ;;  %503 = vmatpush3.bf16.msra.mxu0 %v548_v2  ;;  %v553_v7 = vld [vmem:[%s728_s1 + $0x88] sm:$0xff]   ;;  %v557_v11 = vld [vmem:[%s728_s1 + $0x90] sm:$0xff]  }
   0x5   :  { %525 = vmatpush3.bf16.msra.mxu1 %v549_v3  ;;  %504 = vmatprep.subr.bf16.mxu0 %v550_v4  ;;  %v558_v12 = vld [vmem:[%s728_s1 + $0x58] sm:$0xff]   ;;  %v562_v16 = vld [vmem:[%s728_s1 + $0x60] sm:$0xff]   ;;  %v566_v20 = vld [vmem:[%s728_s1 + $0x68] sm:$0xff]  }
   0x6   :  { %526 = vmatprep.subr.bf16.mxu1 %v551_v5  ;;  %v559_v13 = vld [vmem:[%s728_s1 + $0xd8] sm:$0xff]   ;;  %v563_v17 = vld [vmem:[%s728_s1 + $0xe0] sm:$0xff]   ;;  %v567_v21 = vld [vmem:[%s728_s1 + $0xe8] sm:$0xff]  }
   0x7   :  { %v560_v14 = vld [vmem:[%s728_s1 + $0x18] sm:$0xff]   ;;  %v564_v18 = vld [vmem:[%s728_s1 + $0x20] sm:$0xff]   ;;  %v568_v22 = vld [vmem:[%s728_s1 + $0x28] sm:$0xff]  }
   0x8   :  { %505 = vmatpush3.bf16.msra.mxu0 %v552_v6  ;;  %v561_v15 = vld [vmem:[%s728_s1 + $0x98] sm:$0xff]   ;;  %v565_v19 = vld [vmem:[%s728_s1 + $0xa0] sm:$0xff]   ;;  %v569_v23 = vld [vmem:[%s728_s1 + $0xa8] sm:$0xff]  }
   0x9   :  { %527 = vmatpush3.bf16.msra.mxu1 %v553_v7  ;;  %506 = vmatprep.subr.bf16.mxu0 %v554_v8  ;;  %v570_v24 = vld [vmem:[%s728_s1 + $0x70] sm:$0xff]   ;;  %v574_v28 = vld [vmem:[%s728_s1 + $0x78] sm:$0xff]   ;;  %v426_v8 = vlaneseq }
   0xa   :  { %528 = vmatprep.subr.bf16.mxu1 %v555_v9  ;;  %v571_v25 = vld [vmem:[%s728_s1 + $0xf0] sm:$0xff]   ;;  %v575_v29 = vld [vmem:[%s728_s1 + $0xf8] sm:$0xff]  }
   0xb   :  { %v572_v26 = vld [vmem:[%s728_s1 + $0x30] sm:$0xff]   ;;  %v576_v30 = vld [vmem:[%s728_s1 + $0x38] sm:$0xff]   ;;  %v427_v9 = vshrl.u32 %v426_v8, 7 }
   0xc   :  { %507 = vmatpush3.bf16.msra.mxu0 %v556_v10  ;;  %v573_v27 = vld [vmem:[%s728_s1 + $0xb0] sm:$0xff]   ;;  %v577_v31 = vld [vmem:[%s728_s1 + $0xb8] sm:$0xff]   ;;  %v397_v10 = vld [vmem:[%s730_s2] sm:$0x1] }
   0xd   :  { %529 = vmatpush3.bf16.msra.mxu1 %v557_v11  ;;  %508 = vmatprep.subr.bf16.mxu0 %v558_v12  ;;  %v578_v32 = vld [vmem:[%s729_s0] ss:$16 sps:$4 sm:$0xff]   ;;  %v580_v33 = vld [vmem:[%s729_s0 + $0x4] ss:$16 sps:$4 sm:$0xff]   ;;  %v581_v34 = vld [vmem:[%s729_s0 + $0x8] ss:$16 sps:$4 sm:$0xff]  }
   0xe   :  { %530 = vmatprep.subr.bf16.mxu1 %v559_v13  ;;  %v583_v35 = vld [vmem:[%s729_s0 + $0xc] ss:$16 sps:$4 sm:$0xff]   ;;  %338 = vmatprep.mubr.bf16.mxu0 %v580_v33  ;;  %v428_v11 = vsub.s32 0, %v427_v9 }
   0xf   :  { %379 = vmatprep.mubr.bf16.mxu1 %v583_v35 }
  0x10   :  { %509 = vmatpush3.bf16.msra.mxu0 %v560_v14  ;;  %v398_v14 = vld [vmem:[%s731_s3] sm:$0x1] }
  0x11   :  { %531 = vmatpush3.bf16.msra.mxu1 %v561_v15  ;;  %510 = vmatprep.subr.bf16.mxu0 %v562_v16 }
  0x12   :  { %532 = vmatprep.subr.bf16.mxu1 %v563_v17 }
  0x14   :  { %511 = vmatpush3.bf16.msra.mxu0 %v564_v18 }
  0x15   :  { %533 = vmatpush3.bf16.msra.mxu1 %v565_v19  ;;  %512 = vmatprep.subr.bf16.mxu0 %v566_v20 }
  0x16   :  { %534 = vmatprep.subr.bf16.mxu1 %v567_v21 }
  0x18   :  { %513 = vmatpush3.bf16.msra.mxu0 %v568_v22 }
  0x19   :  { %535 = vmatpush3.bf16.msra.mxu1 %v569_v23  ;;  %514 = vmatprep.subr.bf16.mxu0 %v570_v24 }
  0x1a   :  { %536 = vmatprep.subr.bf16.mxu1 %v571_v25 }
  0x1c   :  { %515 = vmatpush3.bf16.msra.mxu0 %v572_v26 }
  0x1d   :  { %537 = vmatpush3.bf16.msra.mxu1 %v573_v27  ;;  %516 = vmatprep.subr.bf16.mxu0 %v574_v28 }
  0x1e   :  { %538 = vmatprep.subr.bf16.mxu1 %v575_v29 }
  0x20   :  { %517 = vmatpush3.bf16.msra.mxu0 %v576_v30 }
  0x21   :  { %539 = vmatpush3.bf16.msra.mxu1 %v577_v31 }
  0x23   :  { %339 = vmatmul.mubr.bf16.vlgmr.msra.gmra.mrb[0].mxu0 %v578_v32 }
  0x24   :  { %380 = vmatmul.mubr.bf16.vlgmr.msra.gmra.mrb[0].mxu1 %v581_v34 }
  0xf6   :  { %v518_v36 = vpop.f32.mrb[0].mxu0 }
  0xf7   :  { %v540_v37 = vpop.f32.mrb[0].mxu1  ;;  %v519_v38 = vpop.f32.mrb[1].mxu0 }
  0xf8   :  { %v520_v39 = vadd.f32 %v519_v38, %v518_v36  ;;  %v541_v40 = vpop.f32.mrb[1].mxu1  ;;  %v521_v41 = vpop.f32.mrb[2].mxu0 }
  0xf9   :  { %v542_v42 = vadd.f32 %v541_v40, %v540_v37  ;;  %v543_v43 = vpop.f32.mrb[2].mxu1  ;;  %v522_v44 = vpop.f32.mrb[3].mxu0 }
  0xfa   :  { %v523_v45 = vadd.f32 %v522_v44, %v521_v41  ;;  %v544_v46 = vpop.f32.mrb[3].mxu1 }
  0xfb   :  { %v382_v47 = vadd.f32 %v542_v42, %v520_v39  ;;  %v545_v48 = vadd.f32 %v544_v46, %v543_v43 }
  0xfd   :  { %v385_v49 = vadd.f32 %v545_v48, %v523_v45  ;;  %v406_v50 = vmul.f32 %v382_v47, %v382_v47 }
  0xff   :  { %v399_v51 = vadd.f32 %v385_v49, %v382_v47  ;;  %v407_v52 = vmul.f32 %v385_v49, %v385_v49 }
 0x101   :  { %v400_v53 = vrot.slane %v399_v51, 4  ;;  %v408_v54 = vadd.f32 %v407_v52, %v406_v50 }
 0x103   :  { %v401_v55 = vadd.f32 %v400_v53, %v399_v51  ;;  %v409_v56 = vrot.slane %v408_v54, 4 }
 0x105   :  { %v402_v57 = vrot.slane %v401_v55, 2  ;;  %v410_v58 = vadd.f32 %v409_v56, %v408_v54 }
 0x107   :  { %v403_v59 = vadd.f32 %v402_v57, %v401_v55  ;;  %v411_v60 = vrot.slane %v410_v58, 2 }
 0x109   :  { %v404_v61 = vrot.slane %v403_v59, 1  ;;  %v412_v62 = vadd.f32 %v411_v60, %v410_v58 }
 0x10b   :  { %v405_v63 = vadd.f32 %v404_v61, %v403_v59  ;;  %v413_v0 = vrot.slane %v412_v62, 1 }
 0x10d   :  { %v414_v1 = vadd.f32 %v413_v0, %v412_v62  ;;  %v415_v2 = vmul.f32 0.125, %v405_v63 }
 0x10f   :  { %v416_v3 = vmul.f32 0.125, %v414_v1  ;;  %v417_v4 = vmul.f32 %v415_v2, %v415_v2 }
 0x111   :  { %v418_v5 = vsub.f32 %v416_v3, %v417_v4 }
 0x113   :  { %v419_v6 = vmax.f32 %v418_v5, 0.0 }
 0x115   :  { %v420_v7 = vadd.f32 1e-05, %v419_v6 }
 0x117   :  { %584 = vrsqrt.f32 %v420_v7 }
 0x121   :  { %v585_v12 = vpop.eup %584 }
 0x122   :  { %v422_v13 = vmul.f32 %v585_v12, %v397_v10 }
 0x124   :  { %v423_v15 = vmul.f32 %v422_v13, %v415_v2  ;;  %v429_v16 = vrot.slane %v422_v13, %v428_v11 }
 0x126   :  { %v424_v17 = vsub.f32 %v398_v14, %v423_v15  ;;  %v431_v18 = vmul.f32 %v429_v16, %v382_v47  ;;  %v432_v19 = vmul.f32 %v429_v16, %v385_v49 }
 0x128   :  { %v437_v20 = vrot.slane %v424_v17, %v428_v11 }
 0x12a   :  { %v439_v21 = vadd.f32 %v437_v20, %v431_v18  ;;  %v440_v22 = vadd.f32 %v437_v20, %v432_v19 }
 0x12c   :  { %v441_v23 = vmax.f32 %v439_v21, 0.0  ;;  %v442_v24 = vmax.f32 %v440_v22, 0.0 }
 0x12e   :  { %v500_v25 = vpack.c.bf16 %v442_v24, %v441_v23 }
 0x130   :  { %501 = vst [vmem:[%s732_s4] sm:$0xff] %v500_v25  }

// kernel: icnet_backbone_forward.100
= control target key start
LH: loop header
LB: loop body
LE: loop exit
PB: predicated region body
PF: predicated region fallthrough
CT: control target
= control target key end

     0   :  { %s1127_s1 = inlined_call_operand.vmem [shape: bf16[512,256], index: 1, kind: input, shape index: {}]   ;;  %s1128_s0 = inlined_call_operand.vmem [shape: bf16[16,512], index: 0, kind: input, shape index: {}]   ;;  %s1129_s2 = inlined_call_operand.vmem [shape: f32[1,256], index: 2, kind: input, shape index: {}]   ;;  %s1130_s3 = inlined_call_operand.vmem [shape: f32[1,256], index: 3, kind: input, shape index: {}]   ;;  %s1131_s4 = inlined_call_operand.vmem [shape: bf16[16,256], index: 4, kind: output, shape index: {}]  }
   0x1   :  { %v755_v0 = vld [vmem:[%s1127_s1 + $0x4] ss:$8 sps:$4 sm:$0xff]   ;;  %v759_v2 = vld [vmem:[%s1127_s1] ss:$8 sps:$4 sm:$0xff]   ;;  %v761_v4 = vld [vmem:[%s1127_s1 + $0x14] ss:$8 sps:$4 sm:$0xff]  }
   0x2   :  { %v757_v1 = vld [vmem:[%s1127_s1 + $0x104] ss:$8 sps:$4 sm:$0xff]   ;;  %437 = vmatprep.subr.bf16.mxu1 %v755_v0  ;;  %v760_v3 = vld [vmem:[%s1127_s1 + $0x100] ss:$8 sps:$4 sm:$0xff]   ;;  %v763_v5 = vld [vmem:[%s1127_s1 + $0x114] ss:$8 sps:$4 sm:$0xff]  }
   0x3   :  { %480 = vmatprep.subr.bf16.mxu0 %v757_v1  ;;  %438 = vmatpush1.bf16.msra.mxu1 %v759_v2  ;;  %v765_v6 = vld [vmem:[%s1127_s1 + $0x10] ss:$8 sps:$4 sm:$0xff]   ;;  %v767_v8 = vld [vmem:[%s1127_s1 + $0x24] ss:$8 sps:$4 sm:$0xff]   ;;  %v771_v10 = vld [vmem:[%s1127_s1 + $0x20] ss:$8 sps:$4 sm:$0xff]  }
   0x4   :  { %481 = vmatpush1.bf16.msra.mxu0 %v760_v3  ;;  %439 = vmatprep.subr.bf16.mxu1 %v761_v4  ;;  %v766_v7 = vld [vmem:[%s1127_s1 + $0x110] ss:$8 sps:$4 sm:$0xff]   ;;  %v769_v9 = vld [vmem:[%s1127_s1 + $0x124] ss:$8 sps:$4 sm:$0xff]   ;;  %v772_v11 = vld [vmem:[%s1127_s1 + $0x120] ss:$8 sps:$4 sm:$0xff]  }
   0x5   :  { %482 = vmatprep.subr.bf16.mxu0 %v763_v5  ;;  %v773_v12 = vld [vmem:[%s1127_s1 + $0x34] ss:$8 sps:$4 sm:$0xff]   ;;  %v777_v14 = vld [vmem:[%s1127_s1 + $0x30] ss:$8 sps:$4 sm:$0xff]   ;;  %v779_v16 = vld [vmem:[%s1127_s1 + $0x44] ss:$8 sps:$4 sm:$0xff]  }
   0x6   :  { %v775_v13 = vld [vmem:[%s1127_s1 + $0x134] ss:$8 sps:$4 sm:$0xff]   ;;  %v778_v15 = vld [vmem:[%s1127_s1 + $0x130] ss:$8 sps:$4 sm:$0xff]   ;;  %v781_v17 = vld [vmem:[%s1127_s1 + $0x144] ss:$8 sps:$4 sm:$0xff]  }
   0x7   :  { %440 = vmatpush1.bf16.msra.mxu1 %v765_v6  ;;  %v783_v18 = vld [vmem:[%s1127_s1 + $0x40] ss:$8 sps:$4 sm:$0xff]   ;;  %v785_v20 = vld [vmem:[%s1127_s1 + $0x54] ss:$8 sps:$4 sm:$0xff]   ;;  %v789_v22 = vld [vmem:[%s1127_s1 + $0x50] ss:$8 sps:$4 sm:$0xff]  }
   0x8   :  { %483 = vmatpush1.bf16.msra.mxu0 %v766_v7  ;;  %441 = vmatprep.subr.bf16.mxu1 %v767_v8  ;;  %v784_v19 = vld [vmem:[%s1127_s1 + $0x140] ss:$8 sps:$4 sm:$0xff]   ;;  %v787_v21 = vld [vmem:[%s1127_s1 + $0x154] ss:$8 sps:$4 sm:$0xff]   ;;  %v790_v23 = vld [vmem:[%s1127_s1 + $0x150] ss:$8 sps:$4 sm:$0xff]  }
   0x9   :  { %484 = vmatprep.subr.bf16.mxu0 %v769_v9  ;;  %v791_v24 = vld [vmem:[%s1127_s1 + $0x64] ss:$8 sps:$4 sm:$0xff]   ;;  %v795_v26 = vld [vmem:[%s1127_s1 + $0x60] ss:$8 sps:$4 sm:$0xff]   ;;  %v797_v28 = vld [vmem:[%s1127_s1 + $0x74] ss:$8 sps:$4 sm:$0xff]  }
   0xa   :  { %v793_v25 = vld [vmem:[%s1127_s1 + $0x164] ss:$8 sps:$4 sm:$0xff]   ;;  %v796_v27 = vld [vmem:[%s1127_s1 + $0x160] ss:$8 sps:$4 sm:$0xff]   ;;  %v799_v29 = vld [vmem:[%s1127_s1 + $0x174] ss:$8 sps:$4 sm:$0xff]  }
   0xb   :  { %442 = vmatpush1.bf16.msra.mxu1 %v771_v10  ;;  %v801_v30 = vld [vmem:[%s1127_s1 + $0x70] ss:$8 sps:$4 sm:$0xff]   ;;  %v803_v32 = vld [vmem:[%s1127_s1 + $0x84] ss:$8 sps:$4 sm:$0xff]   ;;  %v807_v34 = vld [vmem:[%s1127_s1 + $0x80] ss:$8 sps:$4 sm:$0xff]  }
   0xc   :  { %485 = vmatpush1.bf16.msra.mxu0 %v772_v11  ;;  %443 = vmatprep.subr.bf16.mxu1 %v773_v12  ;;  %v802_v31 = vld [vmem:[%s1127_s1 + $0x170] ss:$8 sps:$4 sm:$0xff]   ;;  %v805_v33 = vld [vmem:[%s1127_s1 + $0x184] ss:$8 sps:$4 sm:$0xff]   ;;  %v808_v35 = vld [vmem:[%s1127_s1 + $0x180] ss:$8 sps:$4 sm:$0xff]  }
   0xd   :  { %486 = vmatprep.subr.bf16.mxu0 %v775_v13  ;;  %v809_v36 = vld [vmem:[%s1127_s1 + $0x94] ss:$8 sps:$4 sm:$0xff]   ;;  %v813_v38 = vld [vmem:[%s1127_s1 + $0x90] ss:$8 sps:$4 sm:$0xff]   ;;  %v815_v40 = vld [vmem:[%s1127_s1 + $0xa4] ss:$8 sps:$4 sm:$0xff]  }
   0xe   :  { %v811_v37 = vld [vmem:[%s1127_s1 + $0x194] ss:$8 sps:$4 sm:$0xff]   ;;  %v814_v39 = vld [vmem:[%s1127_s1 + $0x190] ss:$8 sps:$4 sm:$0xff]   ;;  %v817_v41 = vld [vmem:[%s1127_s1 + $0x1a4] ss:$8 sps:$4 sm:$0xff]  }
   0xf   :  { %444 = vmatpush1.bf16.msra.mxu1 %v777_v14  ;;  %v819_v42 = vld [vmem:[%s1127_s1 + $0xa0] ss:$8 sps:$4 sm:$0xff]   ;;  %v821_v44 = vld [vmem:[%s1127_s1 + $0xb4] ss:$8 sps:$4 sm:$0xff]   ;;  %v825_v46 = vld [vmem:[%s1127_s1 + $0xb0] ss:$8 sps:$4 sm:$0xff]  }
  0x10   :  { %487 = vmatpush1.bf16.msra.mxu0 %v778_v15  ;;  %445 = vmatprep.subr.bf16.mxu1 %v779_v16  ;;  %v820_v43 = vld [vmem:[%s1127_s1 + $0x1a0] ss:$8 sps:$4 sm:$0xff]   ;;  %v823_v45 = vld [vmem:[%s1127_s1 + $0x1b4] ss:$8 sps:$4 sm:$0xff]   ;;  %v826_v48 = vld [vmem:[%s1127_s1 + $0x1b0] ss:$8 sps:$4 sm:$0xff]  }
  0x11   :  { %488 = vmatprep.subr.bf16.mxu0 %v781_v17  ;;  %v853_v47 = vld [vmem:[%s1128_s0 + $0x4] ss:$16 sps:$4 sm:$0xff]   ;;  %v856_v51 = vld [vmem:[%s1128_s0 + $0xc] ss:$16 sps:$4 sm:$0xff]   ;;  %v831_v52 = vld [vmem:[%s1127_s1 + $0xc0] ss:$8 sps:$4 sm:$0xff]  }
  0x12   :  { %v827_v49 = vld [vmem:[%s1127_s1 + $0xc4] ss:$8 sps:$4 sm:$0xff]   ;;  %469 = vmatprep.mubr.bf16.mxu1 %v853_v47  ;;  %512 = vmatprep.mubr.bf16.mxu0 %v856_v51  ;;  %v832_v53 = vld [vmem:[%s1127_s1 + $0x1c0] ss:$8 sps:$4 sm:$0xff]   ;;  %v833_v54 = vld [vmem:[%s1127_s1 + $0xd4] ss:$8 sps:$4 sm:$0xff]  }
  0x13   :  { %446 = vmatpush1.bf16.msra.mxu1 %v783_v18  ;;  %v829_v50 = vld [vmem:[%s1127_s1 + $0x1c4] ss:$8 sps:$4 sm:$0xff]   ;;  %v835_v55 = vld [vmem:[%s1127_s1 + $0x1d4] ss:$8 sps:$4 sm:$0xff]   ;;  %v837_v56 = vld [vmem:[%s1127_s1 + $0xd0] ss:$8 sps:$4 sm:$0xff]  }
  0x14   :  { %489 = vmatpush1.bf16.msra.mxu0 %v784_v19  ;;  %447 = vmatprep.subr.bf16.mxu1 %v785_v20  ;;  %v838_v57 = vld [vmem:[%s1127_s1 + $0x1d0] ss:$8 sps:$4 sm:$0xff]   ;;  %v839_v58 = vld [vmem:[%s1127_s1 + $0xe4] ss:$8 sps:$4 sm:$0xff]   ;;  %v843_v60 = vld [vmem:[%s1127_s1 + $0xe0] ss:$8 sps:$4 sm:$0xff]  }
  0x15   :  { %490 = vmatprep.subr.bf16.mxu0 %v787_v21  ;;  %v841_v59 = vld [vmem:[%s1127_s1 + $0x1e4] ss:$8 sps:$4 sm:$0xff]   ;;  %v844_v61 = vld [vmem:[%s1127_s1 + $0x1e0] ss:$8 sps:$4 sm:$0xff]   ;;  %v845_v62 = vld [vmem:[%s1127_s1 + $0xf4] ss:$8 sps:$4 sm:$0xff]  }
  0x16   :  { %v847_v63 = vld [vmem:[%s1127_s1 + $0x1f4] ss:$8 sps:$4 sm:$0xff]   ;;  %v849_v0 = vld [vmem:[%s1127_s1 + $0xf0] ss:$8 sps:$4 sm:$0xff]  }
  0x17   :  { %448 = vmatpush1.bf16.msra.mxu1 %v789_v22  ;;  %v850_v1 = vld [vmem:[%s1127_s1 + $0x1f0] ss:$8 sps:$4 sm:$0xff]  }
  0x18   :  { %491 = vmatpush1.bf16.msra.mxu0 %v790_v23  ;;  %449 = vmatprep.subr.bf16.mxu1 %v791_v24  ;;  %v851_v2 = vld [vmem:[%s1128_s0] ss:$16 sps:$4 sm:$0xff]   ;;  %v854_v3 = vld [vmem:[%s1128_s0 + $0x8] ss:$16 sps:$4 sm:$0xff]  }
  0x19   :  { %492 = vmatprep.subr.bf16.mxu0 %v793_v25 }
  0x1b   :  { %450 = vmatpush1.bf16.msra.mxu1 %v795_v26 }
  0x1c   :  { %493 = vmatpush1.bf16.msra.mxu0 %v796_v27  ;;  %451 = vmatprep.subr.bf16.mxu1 %v797_v28 }
  0x1d   :  { %494 = vmatprep.subr.bf16.mxu0 %v799_v29 }
  0x1f   :  { %452 = vmatpush1.bf16.msra.mxu1 %v801_v30 }
  0x20   :  { %495 = vmatpush1.bf16.msra.mxu0 %v802_v31  ;;  %453 = vmatprep.subr.bf16.mxu1 %v803_v32 }
  0x21   :  { %496 = vmatprep.subr.bf16.mxu0 %v805_v33 }
  0x23   :  { %454 = vmatpush1.bf16.msra.mxu1 %v807_v34 }
  0x24   :  { %497 = vmatpush1.bf16.msra.mxu0 %v808_v35  ;;  %455 = vmatprep.subr.bf16.mxu1 %v809_v36 }
  0x25   :  { %498 = vmatprep.subr.bf16.mxu0 %v811_v37 }
  0x27   :  { %456 = vmatpush1.bf16.msra.mxu1 %v813_v38 }
  0x28   :  { %499 = vmatpush1.bf16.msra.mxu0 %v814_v39  ;;  %457 = vmatprep.subr.bf16.mxu1 %v815_v40 }
  0x29   :  { %500 = vmatprep.subr.bf16.mxu0 %v817_v41 }
  0x2b   :  { %458 = vmatpush1.bf16.msra.mxu1 %v819_v42 }
  0x2c   :  { %501 = vmatpush1.bf16.msra.mxu0 %v820_v43  ;;  %459 = vmatprep.subr.bf16.mxu1 %v821_v44 }
  0x2d   :  { %502 = vmatprep.subr.bf16.mxu0 %v823_v45 }
  0x2f   :  { %460 = vmatpush1.bf16.msra.mxu1 %v825_v46 }
  0x30   :  { %503 = vmatpush1.bf16.msra.mxu0 %v826_v48  ;;  %461 = vmatprep.subr.bf16.mxu1 %v827_v49 }
  0x31   :  { %504 = vmatprep.subr.bf16.mxu0 %v829_v50 }
  0x33   :  { %462 = vmatpush1.bf16.msra.mxu1 %v831_v52 }
  0x34   :  { %505 = vmatpush1.bf16.msra.mxu0 %v832_v53  ;;  %463 = vmatprep.subr.bf16.mxu1 %v833_v54 }
  0x35   :  { %506 = vmatprep.subr.bf16.mxu0 %v835_v55 }
  0x37   :  { %464 = vmatpush1.bf16.msra.mxu1 %v837_v56 }
  0x38   :  { %507 = vmatpush1.bf16.msra.mxu0 %v838_v57  ;;  %465 = vmatprep.subr.bf16.mxu1 %v839_v58 }
  0x39   :  { %508 = vmatprep.subr.bf16.mxu0 %v841_v59 }
  0x3b   :  { %466 = vmatpush1.bf16.msra.mxu1 %v843_v60  ;;  %v861_v60 = vmov 1966171168  }
  0x3c   :  { %509 = vmatpush1.bf16.msra.mxu0 %v844_v61  ;;  %467 = vmatprep.subr.bf16.mxu1 %v845_v62  ;;  %v590_v61 = vunpack.c.l.s4 %v861_v60  ;;  %v592_v62 = vlaneseq }
  0x3d   :  { %510 = vmatprep.subr.bf16.mxu0 %v847_v63 }
  0x3e   :  { %v591_v63 = vunpack.c.0.s8 %v590_v61 }
  0x3f   :  { %468 = vmatpush1.bf16.msra.mxu1 %v849_v0  ;;  %v593_v0 = vshrl.u32 %v592_v62, 7 }
  0x40   :  { %511 = vmatpush1.bf16.msra.mxu0 %v850_v1 }
  0x42   :  { %470 = vmatmul.mubr.bf16.vlgmr.msra.gmra.mrb[0].mxu1 %v851_v2  ;;  %v594_v2 = vsub.s32 %v591_v63, %v593_v0 }
  0x43   :  { %513 = vmatmul.mubr.bf16.vlgmr.msra.gmra.mrb[0].mxu0 %v854_v3 }
 0x115   :  { %v471_v4 = vpop.f32.mrb[0].mxu1 }
 0x116   :  { %v514_v5 = vpop.f32.mrb[0].mxu0  ;;  %v473_v7 = vpop.f32.mrb[1].mxu1 }
 0x117   :  { %v1091_v6 = vadd.f32 %v514_v5, %v471_v4  ;;  %v516_v8 = vpop.f32.mrb[1].mxu0  ;;  %v475_v10 = vpop.f32.mrb[2].mxu1 }
 0x118   :  { %v1093_v9 = vadd.f32 %v516_v8, %v473_v7  ;;  %v518_v11 = vpop.f32.mrb[2].mxu0  ;;  %v477_v13 = vpop.f32.mrb[3].mxu1  ;;  %v538_v7 = vld [vmem:[%s1129_s2] sm:$0x3] }
 0x119   :  { %v1095_v12 = vadd.f32 %v518_v11, %v475_v10  ;;  %v520_v14 = vpop.f32.mrb[3].mxu0  ;;  %v554_v16 = vmul.f32 %v1091_v6, %v1091_v6  ;;  %v608_v10 = vsub.s32 0, %v593_v0  ;;  %v612_v11 = vsub.s32 1, %v593_v0 }
 0x11a   :  { %v1097_v15 = vadd.f32 %v520_v14, %v477_v13  ;;  %v555_v19 = vmul.f32 %v1093_v9, %v1093_v9 }
 0x11b   :  { %v540_v17 = vadd.f32 %v1095_v12, %v1091_v6  ;;  %v556_v18 = vmul.f32 %v1095_v12, %v1095_v12 }
 0x11c   :  { %v547_v20 = vadd.f32 %v1097_v15, %v1093_v9  ;;  %v557_v21 = vmul.f32 %v1097_v15, %v1097_v15 }
 0x11d   :  { %v541_v22 = vrot.slane %v540_v17, 4  ;;  %v558_v23 = vadd.f32 %v556_v18, %v554_v16 }
 0x11e   :  { %v548_v24 = vrot.slane %v547_v20, 4  ;;  %v565_v25 = vadd.f32 %v557_v21, %v555_v19 }
 0x11f   :  { %v542_v26 = vadd.f32 %v541_v22, %v540_v17  ;;  %v559_v27 = vrot.slane %v558_v23, 4 }
 0x120   :  { %v549_v28 = vadd.f32 %v548_v24, %v547_v20  ;;  %v566_v29 = vrot.slane %v565_v25, 4 }
 0x121   :  { %v543_v30 = vrot.slane %v542_v26, 2  ;;  %v560_v31 = vadd.f32 %v559_v27, %v558_v23 }
 0x122   :  { %v550_v32 = vrot.slane %v549_v28, 2  ;;  %v567_v33 = vadd.f32 %v566_v29, %v565_v25  ;;  %v539_v25 = vld [vmem:[%s1130_s3] sm:$0x3] }
 0x123   :  { %v544_v34 = vadd.f32 %v543_v30, %v542_v26  ;;  %v561_v35 = vrot.slane %v560_v31, 2 }
 0x124   :  { %v551_v36 = vadd.f32 %v550_v32, %v549_v28  ;;  %v568_v37 = vrot.slane %v567_v33, 2 }
 0x125   :  { %v545_v38 = vrot.slane %v544_v34, 1  ;;  %v562_v39 = vadd.f32 %v561_v35, %v560_v31 }
 0x126   :  { %v552_v40 = vrot.slane %v551_v36, 1  ;;  %v569_v41 = vadd.f32 %v568_v37, %v567_v33 }
 0x127   :  { %v546_v42 = vadd.f32 %v545_v38, %v544_v34  ;;  %v563_v43 = vrot.slane %v562_v39, 1 }
 0x128   :  { %v553_v44 = vadd.f32 %v552_v40, %v551_v36  ;;  %v570_v45 = vrot.slane %v569_v41, 1 }
 0x129   :  { %v564_v46 = vadd.f32 %v563_v43, %v562_v39  ;;  %v572_v47 = vmul.f32 0.125, %v546_v42 }
 0x12a   :  { %v571_v48 = vadd.f32 %v570_v45, %v569_v41  ;;  %v573_v49 = vmul.f32 0.125, %v553_v44 }
 0x12b   :  { %v574_v50 = vmul.f32 0.125, %v564_v46  ;;  %v576_v51 = vmul.f32 %v572_v47, %v572_v47 }
 0x12c   :  { %v575_v52 = vmul.f32 0.125, %v571_v48  ;;  %v577_v53 = vmul.f32 %v573_v49, %v573_v49 }
 0x12d   :  { %v578_v54 = vsub.f32 %v574_v50, %v576_v51 }
 0x12e   :  { %v579_v55 = vsub.f32 %v575_v52, %v577_v53 }
 0x12f   :  { %v580_v56 = vmax.f32 %v578_v54, 0.0 }
 0x130   :  { %v581_v57 = vmax.f32 %v579_v55, 0.0 }
 0x131   :  { %v582_v58 = vadd.f32 1e-05, %v580_v56 }
 0x132   :  { %v583_v59 = vadd.f32 1e-05, %v581_v57 }
 0x133   :  { %857 = vrsqrt.f32 %v582_v58 }
 0x134   :  { %859 = vrsqrt.f32 %v583_v59 }
 0x13d   :  { %v858_v1 = vpop.eup %857 }
 0x13e   :  { %v860_v3 = vpop.eup %859 }
 0x13f   :  { %v588_v4 = vcombine.low %v858_v1, %v860_v3 }
 0x141   :  { %v595_v5 = vrot.slane %v588_v4, %v594_v2 }
 0x143   :  { %v602_v8 = vrot.slane %v595_v5, %v594_v2 }
 0x145   :  { %v604_v13 = vmul.f32 %v602_v8, %v538_v7 }
 0x147   :  { %v609_v14 = vrot.slane %v604_v13, %v608_v10  ;;  %v613_v16 = vrot.slane %v604_v13, %v612_v11 }
 0x149   :  { %v616_v17 = vmul.f32 %v609_v14, %v572_v47  ;;  %v617_v18 = vmul.f32 %v613_v16, %v573_v49  ;;  %v637_v19 = vmul.f32 %v609_v14, %v1091_v6  ;;  %v638_v20 = vmul.f32 %v613_v16, %v1093_v9 }
 0x14a   :  { %v639_v21 = vmul.f32 %v609_v14, %v1095_v12  ;;  %v640_v22 = vmul.f32 %v613_v16, %v1097_v15 }
 0x14b   :  { %v620_v23 = vcombine.low %v616_v17, %v617_v18 }
 0x14d   :  { %v627_v24 = vrot.slane %v620_v23, %v594_v2 }
 0x14f   :  { %v634_v26 = vrot.slane %v627_v24, %v594_v2 }
 0x151   :  { %v636_v27 = vsub.f32 %v539_v25, %v634_v26 }
 0x153   :  { %v645_v28 = vrot.slane %v636_v27, %v608_v10  ;;  %v649_v29 = vrot.slane %v636_v27, %v612_v11 }
 0x155   :  { %v652_v30 = vadd.f32 %v645_v28, %v637_v19  ;;  %v653_v31 = vadd.f32 %v649_v29, %v638_v20  ;;  %v654_v32 = vadd.f32 %v645_v28, %v639_v21  ;;  %v655_v6 = vadd.f32 %v649_v29, %v640_v22 }
 0x157   :  { %v656_v33 = vmax.f32 %v652_v30, 0.0  ;;  %v657_v9 = vmax.f32 %v653_v31, 0.0  ;;  %v658_v34 = vmax.f32 %v654_v32, 0.0  ;;  %v659_v12 = vmax.f32 %v655_v6, 0.0 }
 0x159   :  { %v748_v35 = vpack.c.bf16 %v657_v9, %v656_v33  ;;  %v749_v15 = vpack.c.bf16 %v659_v12, %v658_v34 }
 0x15b   :  { %672 = vst [vmem:[%s1131_s4] sm:$0xff] %v748_v35  ;;  %673 = vst [vmem:[%s1131_s4 + $0x8] sm:$0xff] %v749_v15 }

// kernel: icnet_backbone_forward.101
= control target key start
LH: loop header
LB: loop body
LE: loop exit
PB: predicated region body
PF: predicated region fallthrough
CT: control target
= control target key end

     0   :  { %s1397_s15 = smov 0   ;;  %s1399_s16 = smov 0   ;;  %s1572_s0 = inlined_call_operand.vmem [shape: bf16[16,2560], index: 0, kind: input, shape index: {}]   ;;  %s1573_s1 = inlined_call_operand.vmem [shape: bf16[2560,256], index: 1, kind: input, shape index: {}]   ;;  %s1574_s2 = inlined_call_operand.vmem [shape: f32[1,256], index: 2, kind: input, shape index: {}]   ;;  %s1575_s3 = inlined_call_operand.vmem [shape: f32[1,256], index: 3, kind: input, shape index: {}]   ;;  %s1576_s4 = inlined_call_operand.vmem [shape: bf16[16,256], index: 4, kind: output, shape index: {}]  }
   0x1   :  { %s1401_s17 = smov 0   ;;  %s1403_s18 = smov 0  }
   0x2   :  { %s1405_s19 = smov 0  }
   0x3 LB: > { %s23_s20 = sadd.s32 1, %s1364_s18  ;;  %p40_p1 = scmp.ne.s32.totalorder %s1356_s16, %s1352_s15  ;;  %s1368_s19 = sphi %s1405_s19, %s14_s19   ;;  %s1364_s18 = sphi %s1403_s18, %s1580_s18   ;;  %s1360_s17 = sphi %s1401_s17, %s1579_s17   ;;  %s1356_s16 = sphi %s1399_s16, %s1578_s16   ;;  %s1352_s15 = sphi %s1397_s15, %s1577_s15  }
   0x4   : > { %p24_p0 = scmp.ge.s32.totalorder %s23_s20, 5  ;;  %p41_p2 = scmp.eq.s32.totalorder %s1368_s19, 0 }
   0x5   : > { %s33_s22 = sadd.s32 1, %s1356_s16  ;;  %p1089_p5 = scmp.ge.s32.totalorder %s1368_s19, 5 }
   0x6   : > { %s1582_s20 = smov (%p24_p0, %s23_s20), 0  ;;  %p42_p3 = por %p41_p2, %p40_p1 }
   0x7   : > { %s30_s21 = ssub.s32 %s1364_s18, %s1582_s20  ;;  %188 = sbr.rel (%p1089_p5) target bundleno = 21 (0x15), region = 24 }
   0x8   : > { %p31_p4 = scmp.eq.s32.totalorder %s30_s21, 0 }
   0xa   : > { %s1432_s23 = scalar_select %p31_p4, %s1356_s16, %s33_s22  }
   0xe   : > { %191 = sbr.rel (!%p42_p3) target bundleno = 21 (0x15), region = 28  ;;  %s193_s24 = sand.u32 (%p42_p3), 1, %s1356_s16  }
   0xf   : > { %s1174_s25 = sshll.u32 (%p42_p3), %s1364_s18, 4  ;;  %s1090_s26 = sshll.u32 (%p42_p3), %s193_s24, 5 }
  0x10   : > { %s198_s29 = scalar_lea.vmem (%p42_p3), %s1572_s0, %s1174_s25  ;;  %s195_s30 = scalar_lea.vmem (%p42_p3), [#allocation3], %s1090_s26 }
  0x11   : > { %v211_v0 = vld [vmem:[%s198_s29] sm:$0xff] (%p42_p3)  ;;  %v213_v1 = vld [vmem:[%s198_s29 + $0x8] sm:$0xff] (%p42_p3)  ;;  %v215_v2 = vld [vmem:[%s198_s29 + $0x50] sm:$0xff] (%p42_p3) }
  0x12   : > { %212 = vst [vmem:[%s195_s30] sm:$0xff] (%p42_p3), %v211_v0  ;;  %214 = vst [vmem:[%s195_s30 + $0x8] sm:$0xff] (%p42_p3), %v213_v1  ;;  %v217_v3 = vld [vmem:[%s198_s29 + $0x58] sm:$0xff] (%p42_p3) }
  0x13   : > { %216 = vst [vmem:[%s195_s30 + $0x10] sm:$0xff] (%p42_p3), %v215_v2  ;;  %218 = vst [vmem:[%s195_s30 + $0x18] sm:$0xff] (%p42_p3), %v217_v3 }
  0x15 PF: > { %p1093_p6 = scmp.ge.s32.totalorder %s1368_s19, 1  ;;  %p238_p7 = scmp.lt.s32.totalorder %s1368_s19, 6 }
  0x17   : > { %p239_p8 = pnand %p1093_p6, %p238_p7 }
  0x18   : > { %s245_s5 = sand.u32 (!%p239_p8), 1, %s1352_s15   ;;  %s1095_s6 = sshll.u32 (!%p239_p8), %s1360_s17, 6 }
  0x19   : > { %242 = sbr.rel (%p239_p8) target bundleno = 396 (0x18c), region = 55  ;;  %s1094_s7 = sshll.u32 (!%p239_p8), %s245_s5, 5 }
  0x1a   : > { %p291_p9 = scmp.lt.s32.totalorder (!%p239_p8), %s1095_s6, 319  ;;  %s1449_s12 = scalar_lea.vmem (!%p239_p8), [#allocation3], %s1094_s7 }
  0x1b   : > { %p1098_p10 = scmp.ne.s32.totalorder (!%p239_p8), %s1360_s17, 0 }
  0x20   : > { %s1584_s6 = smov (!%p291_p9, %s1095_s6), 319  ;;  %320 = sbr.rel (%p1098_p10) target bundleno = 39 (0x27), region = 63 }
  0x21   : > { %s1175_s8 = sshll.u32 %s1584_s6, 3  ;;  %v1370_v4 = vmov (!%p1098_p10), 0.0  }
  0x22   : > { %s1447_s11 = scalar_lea.vmem %s1573_s1, %s1175_s8  ;;  %321 = vst [vmem:[#allocation2] sm:$0xff] (!%p1098_p10), %v1370_v4  ;;  %322 = vst [vmem:[#allocation2 + $0x8] sm:$0xff] (!%p1098_p10), %v1370_v4 }
  0x23   : > { %323 = vst [vmem:[#allocation2 + $0x10] sm:$0xff] (!%p1098_p10), %v1370_v4  ;;  %324 = vst [vmem:[#allocation2 + $0x18] sm:$0xff] (!%p1098_p10), %v1370_v4 }
  0x27 PF: > { %v1224_v5 = vld [vmem:[%s1447_s11 + $0x4] ss:$8 sps:$4 sm:$0xff]   ;;  %v1228_v7 = vld [vmem:[%s1447_s11] ss:$8 sps:$4 sm:$0xff]   ;;  %v1230_v9 = vld [vmem:[%s1447_s11 + $0x14] ss:$8 sps:$4 sm:$0xff]  }
  0x28   : > { %v1226_v6 = vld [vmem:[%s1447_s11 + $0x104] ss:$8 sps:$4 sm:$0xff]   ;;  %737 = vmatprep.subr.bf16.mxu1 %v1224_v5  ;;  %v1229_v8 = vld [vmem:[%s1447_s11 + $0x100] ss:$8 sps:$4 sm:$0xff]   ;;  %v1232_v10 = vld [vmem:[%s1447_s11 + $0x114] ss:$8 sps:$4 sm:$0xff]  }
  0x29   : > { %780 = vmatprep.subr.bf16.mxu0 %v1226_v6  ;;  %738 = vmatpush1.bf16.msra.mxu1 %v1228_v7  ;;  %v1234_v11 = vld [vmem:[%s1447_s11 + $0x10] ss:$8 sps:$4 sm:$0xff]   ;;  %v1236_v13 = vld [vmem:[%s1447_s11 + $0x24] ss:$8 sps:$4 sm:$0xff]   ;;  %v1240_v15 = vld [vmem:[%s1447_s11 + $0x20] ss:$8 sps:$4 sm:$0xff]  }
  0x2a   : > { %781 = vmatpush1.bf16.msra.mxu0 %v1229_v8  ;;  %739 = vmatprep.subr.bf16.mxu1 %v1230_v9  ;;  %v1235_v12 = vld [vmem:[%s1447_s11 + $0x110] ss:$8 sps:$4 sm:$0xff]   ;;  %v1238_v14 = vld [vmem:[%s1447_s11 + $0x124] ss:$8 sps:$4 sm:$0xff]   ;;  %v1241_v16 = vld [vmem:[%s1447_s11 + $0x120] ss:$8 sps:$4 sm:$0xff]  }
  0x2b   : > { %782 = vmatprep.subr.bf16.mxu0 %v1232_v10  ;;  %v1242_v17 = vld [vmem:[%s1447_s11 + $0x34] ss:$8 sps:$4 sm:$0xff]   ;;  %v1246_v19 = vld [vmem:[%s1447_s11 + $0x30] ss:$8 sps:$4 sm:$0xff]   ;;  %v1248_v21 = vld [vmem:[%s1447_s11 + $0x44] ss:$8 sps:$4 sm:$0xff]  }
  0x2c   : > { %v1244_v18 = vld [vmem:[%s1447_s11 + $0x134] ss:$8 sps:$4 sm:$0xff]   ;;  %v1247_v20 = vld [vmem:[%s1447_s11 + $0x130] ss:$8 sps:$4 sm:$0xff]   ;;  %v1250_v22 = vld [vmem:[%s1447_s11 + $0x144] ss:$8 sps:$4 sm:$0xff]  }
  0x2d   : > { %740 = vmatpush1.bf16.msra.mxu1 %v1234_v11  ;;  %v1252_v23 = vld [vmem:[%s1447_s11 + $0x40] ss:$8 sps:$4 sm:$0xff]   ;;  %v1254_v25 = vld [vmem:[%s1447_s11 + $0x54] ss:$8 sps:$4 sm:$0xff]   ;;  %v1258_v27 = vld [vmem:[%s1447_s11 + $0x50] ss:$8 sps:$4 sm:$0xff]  }
  0x2e   : > { %783 = vmatpush1.bf16.msra.mxu0 %v1235_v12  ;;  %741 = vmatprep.subr.bf16.mxu1 %v1236_v13  ;;  %v1253_v24 = vld [vmem:[%s1447_s11 + $0x140] ss:$8 sps:$4 sm:$0xff]   ;;  %v1256_v26 = vld [vmem:[%s1447_s11 + $0x154] ss:$8 sps:$4 sm:$0xff]   ;;  %v1259_v28 = vld [vmem:[%s1447_s11 + $0x150] ss:$8 sps:$4 sm:$0xff]  }
  0x2f   : > { %784 = vmatprep.subr.bf16.mxu0 %v1238_v14  ;;  %v1260_v29 = vld [vmem:[%s1447_s11 + $0x64] ss:$8 sps:$4 sm:$0xff]   ;;  %v1264_v31 = vld [vmem:[%s1447_s11 + $0x60] ss:$8 sps:$4 sm:$0xff]   ;;  %v1266_v33 = vld [vmem:[%s1447_s11 + $0x74] ss:$8 sps:$4 sm:$0xff]  }
  0x30   : > { %v1262_v30 = vld [vmem:[%s1447_s11 + $0x164] ss:$8 sps:$4 sm:$0xff]   ;;  %v1265_v32 = vld [vmem:[%s1447_s11 + $0x160] ss:$8 sps:$4 sm:$0xff]   ;;  %v1268_v34 = vld [vmem:[%s1447_s11 + $0x174] ss:$8 sps:$4 sm:$0xff]  }
  0x31   : > { %742 = vmatpush1.bf16.msra.mxu1 %v1240_v15  ;;  %v1270_v35 = vld [vmem:[%s1447_s11 + $0x70] ss:$8 sps:$4 sm:$0xff]   ;;  %v1272_v37 = vld [vmem:[%s1447_s11 + $0x84] ss:$8 sps:$4 sm:$0xff]   ;;  %v1276_v39 = vld [vmem:[%s1447_s11 + $0x80] ss:$8 sps:$4 sm:$0xff]  }
  0x32   : > { %785 = vmatpush1.bf16.msra.mxu0 %v1241_v16  ;;  %743 = vmatprep.subr.bf16.mxu1 %v1242_v17  ;;  %v1271_v36 = vld [vmem:[%s1447_s11 + $0x170] ss:$8 sps:$4 sm:$0xff]   ;;  %v1274_v38 = vld [vmem:[%s1447_s11 + $0x184] ss:$8 sps:$4 sm:$0xff]   ;;  %v1277_v40 = vld [vmem:[%s1447_s11 + $0x180] ss:$8 sps:$4 sm:$0xff]  }
  0x33   : > { %786 = vmatprep.subr.bf16.mxu0 %v1244_v18  ;;  %v1278_v41 = vld [vmem:[%s1447_s11 + $0x94] ss:$8 sps:$4 sm:$0xff]   ;;  %v1282_v43 = vld [vmem:[%s1447_s11 + $0x90] ss:$8 sps:$4 sm:$0xff]   ;;  %v1284_v45 = vld [vmem:[%s1447_s11 + $0xa4] ss:$8 sps:$4 sm:$0xff]  }
  0x34   : > { %v1280_v42 = vld [vmem:[%s1447_s11 + $0x194] ss:$8 sps:$4 sm:$0xff]   ;;  %v1283_v44 = vld [vmem:[%s1447_s11 + $0x190] ss:$8 sps:$4 sm:$0xff]   ;;  %v1286_v46 = vld [vmem:[%s1447_s11 + $0x1a4] ss:$8 sps:$4 sm:$0xff]  }
  0x35   : > { %744 = vmatpush1.bf16.msra.mxu1 %v1246_v19  ;;  %v1288_v47 = vld [vmem:[%s1447_s11 + $0xa0] ss:$8 sps:$4 sm:$0xff]   ;;  %v1290_v49 = vld [vmem:[%s1447_s11 + $0xb4] ss:$8 sps:$4 sm:$0xff]   ;;  %v1294_v51 = vld [vmem:[%s1447_s11 + $0xb0] ss:$8 sps:$4 sm:$0xff]  }
  0x36   : > { %787 = vmatpush1.bf16.msra.mxu0 %v1247_v20  ;;  %745 = vmatprep.subr.bf16.mxu1 %v1248_v21  ;;  %v1289_v48 = vld [vmem:[%s1447_s11 + $0x1a0] ss:$8 sps:$4 sm:$0xff]   ;;  %v1292_v50 = vld [vmem:[%s1447_s11 + $0x1b4] ss:$8 sps:$4 sm:$0xff]   ;;  %v1295_v53 = vld [vmem:[%s1447_s11 + $0x1b0] ss:$8 sps:$4 sm:$0xff]  }
  0x37   : > { %788 = vmatprep.subr.bf16.mxu0 %v1250_v22  ;;  %v1322_v52 = vld [vmem:[%s1449_s12 + $0x4] ss:$16 sps:$4 sm:$0xff]   ;;  %v1325_v56 = vld [vmem:[%s1449_s12 + $0xc] ss:$16 sps:$4 sm:$0xff]   ;;  %v1300_v57 = vld [vmem:[%s1447_s11 + $0xc0] ss:$8 sps:$4 sm:$0xff]  }
  0x38   : > { %v1296_v54 = vld [vmem:[%s1447_s11 + $0xc4] ss:$8 sps:$4 sm:$0xff]   ;;  %769 = vmatprep.mubr.bf16.mxu1 %v1322_v52  ;;  %812 = vmatprep.mubr.bf16.mxu0 %v1325_v56  ;;  %v1301_v58 = vld [vmem:[%s1447_s11 + $0x1c0] ss:$8 sps:$4 sm:$0xff]   ;;  %v1302_v59 = vld [vmem:[%s1447_s11 + $0xd4] ss:$8 sps:$4 sm:$0xff]  }
  0x39   : > { %746 = vmatpush1.bf16.msra.mxu1 %v1252_v23  ;;  %v1298_v55 = vld [vmem:[%s1447_s11 + $0x1c4] ss:$8 sps:$4 sm:$0xff]   ;;  %v1304_v60 = vld [vmem:[%s1447_s11 + $0x1d4] ss:$8 sps:$4 sm:$0xff]   ;;  %v1306_v61 = vld [vmem:[%s1447_s11 + $0xd0] ss:$8 sps:$4 sm:$0xff]  }
  0x3a   : > { %789 = vmatpush1.bf16.msra.mxu0 %v1253_v24  ;;  %747 = vmatprep.subr.bf16.mxu1 %v1254_v25  ;;  %v1307_v62 = vld [vmem:[%s1447_s11 + $0x1d0] ss:$8 sps:$4 sm:$0xff]   ;;  %v1308_v63 = vld [vmem:[%s1447_s11 + $0xe4] ss:$8 sps:$4 sm:$0xff]   ;;  %v1312_v1 = vld [vmem:[%s1447_s11 + $0xe0] ss:$8 sps:$4 sm:$0xff]  }
  0x3b   : > { %790 = vmatprep.subr.bf16.mxu0 %v1256_v26  ;;  %v1310_v0 = vld [vmem:[%s1447_s11 + $0x1e4] ss:$8 sps:$4 sm:$0xff]   ;;  %v1313_v2 = vld [vmem:[%s1447_s11 + $0x1e0] ss:$8 sps:$4 sm:$0xff]   ;;  %v1314_v3 = vld [vmem:[%s1447_s11 + $0xf4] ss:$8 sps:$4 sm:$0xff]  }
  0x3c   : > { %v1316_v4 = vld [vmem:[%s1447_s11 + $0x1f4] ss:$8 sps:$4 sm:$0xff]   ;;  %v1318_v5 = vld [vmem:[%s1447_s11 + $0xf0] ss:$8 sps:$4 sm:$0xff]   ;;  %v325_v10 = vld [vmem:[#allocation2] sm:$0xff]  ;;  %p1167_p11 = scmp.ne.s32.totalorder %s1360_s17, 4 }
  0x3d   : > { %748 = vmatpush1.bf16.msra.mxu1 %v1258_v27  ;;  %v1319_v6 = vld [vmem:[%s1447_s11 + $0x1f0] ss:$8 sps:$4 sm:$0xff]   ;;  %v326_v14 = vld [vmem:[#allocation2 + $0x8] sm:$0xff] }
  0x3e   : > { %791 = vmatpush1.bf16.msra.mxu0 %v1259_v28  ;;  %749 = vmatprep.subr.bf16.mxu1 %v1260_v29  ;;  %v1320_v7 = vld [vmem:[%s1449_s12] ss:$16 sps:$4 sm:$0xff]   ;;  %v1323_v8 = vld [vmem:[%s1449_s12 + $0x8] ss:$16 sps:$4 sm:$0xff]  }
  0x3f   : > { %792 = vmatprep.subr.bf16.mxu0 %v1262_v30  ;;  %v327_v18 = vld [vmem:[#allocation2 + $0x10] sm:$0xff]  ;;  %v328_v23 = vld [vmem:[#allocation2 + $0x18] sm:$0xff] }
  0x41   : > { %750 = vmatpush1.bf16.msra.mxu1 %v1264_v31 }
  0x42   : > { %793 = vmatpush1.bf16.msra.mxu0 %v1265_v32  ;;  %751 = vmatprep.subr.bf16.mxu1 %v1266_v33 }
  0x43   : > { %794 = vmatprep.subr.bf16.mxu0 %v1268_v34 }
  0x45   : > { %752 = vmatpush1.bf16.msra.mxu1 %v1270_v35 }
  0x46   : > { %795 = vmatpush1.bf16.msra.mxu0 %v1271_v36  ;;  %753 = vmatprep.subr.bf16.mxu1 %v1272_v37 }
  0x47   : > { %796 = vmatprep.subr.bf16.mxu0 %v1274_v38 }
  0x49   : > { %754 = vmatpush1.bf16.msra.mxu1 %v1276_v39 }
  0x4a   : > { %797 = vmatpush1.bf16.msra.mxu0 %v1277_v40  ;;  %755 = vmatprep.subr.bf16.mxu1 %v1278_v41 }
  0x4b   : > { %798 = vmatprep.subr.bf16.mxu0 %v1280_v42 }
  0x4d   : > { %756 = vmatpush1.bf16.msra.mxu1 %v1282_v43 }
  0x4e   : > { %799 = vmatpush1.bf16.msra.mxu0 %v1283_v44  ;;  %757 = vmatprep.subr.bf16.mxu1 %v1284_v45 }
  0x4f   : > { %800 = vmatprep.subr.bf16.mxu0 %v1286_v46 }
  0x51   : > { %758 = vmatpush1.bf16.msra.mxu1 %v1288_v47 }
  0x52   : > { %801 = vmatpush1.bf16.msra.mxu0 %v1289_v48  ;;  %759 = vmatprep.subr.bf16.mxu1 %v1290_v49 }
  0x53   : > { %802 = vmatprep.subr.bf16.mxu0 %v1292_v50 }
  0x55   : > { %760 = vmatpush1.bf16.msra.mxu1 %v1294_v51 }
  0x56   : > { %803 = vmatpush1.bf16.msra.mxu0 %v1295_v53  ;;  %761 = vmatprep.subr.bf16.mxu1 %v1296_v54 }
  0x57   : > { %804 = vmatprep.subr.bf16.mxu0 %v1298_v55 }
  0x59   : > { %762 = vmatpush1.bf16.msra.mxu1 %v1300_v57 }
  0x5a   : > { %805 = vmatpush1.bf16.msra.mxu0 %v1301_v58  ;;  %763 = vmatprep.subr.bf16.mxu1 %v1302_v59 }
  0x5b   : > { %806 = vmatprep.subr.bf16.mxu0 %v1304_v60 }
  0x5d   : > { %764 = vmatpush1.bf16.msra.mxu1 %v1306_v61 }
  0x5e   : > { %807 = vmatpush1.bf16.msra.mxu0 %v1307_v62  ;;  %765 = vmatprep.subr.bf16.mxu1 %v1308_v63 }
  0x5f   : > { %808 = vmatprep.subr.bf16.mxu0 %v1310_v0 }
  0x61   : > { %766 = vmatpush1.bf16.msra.mxu1 %v1312_v1 }
  0x62   : > { %809 = vmatpush1.bf16.msra.mxu0 %v1313_v2  ;;  %767 = vmatprep.subr.bf16.mxu1 %v1314_v3 }
  0x63   : > { %810 = vmatprep.subr.bf16.mxu0 %v1316_v4 }
  0x65   : > { %768 = vmatpush1.bf16.msra.mxu1 %v1318_v5 }
  0x66   : > { %811 = vmatpush1.bf16.msra.mxu0 %v1319_v6 }
  0x68   : > { %770 = vmatmul.mubr.bf16.vlgmr.msra.gmra.mrb[0].mxu1 %v1320_v7 }
  0x69   : > { %813 = vmatmul.mubr.bf16.vlgmr.msra.gmra.mrb[0].mxu0 %v1323_v8 }
 0x13b   : > { %v771_v9 = vpop.f32.mrb[0].mxu1 }
 0x13c   : > { %v814_v11 = vpop.f32.mrb[0].mxu0  ;;  %v773_v13 = vpop.f32.mrb[1].mxu1 }
 0x13d   : > { %v815_v12 = vadd.f32 %v814_v11, %v771_v9  ;;  %v816_v15 = vpop.f32.mrb[1].mxu0  ;;  %v775_v17 = vpop.f32.mrb[2].mxu1 }
 0x13e   : > { %v817_v16 = vadd.f32 %v816_v15, %v773_v13  ;;  %v818_v19 = vpop.f32.mrb[2].mxu0  ;;  %v777_v22 = vpop.f32.mrb[3].mxu1  ;;  %834 = sbr.rel (%p1167_p11) target bundleno = 396 (0x18c), region = 67  ;;  %v1371_v13 = vmov (!%p1167_p11), 1966171168   ;;  %v893_v15 = vlaneseq (!%p1167_p11) }
 0x13f   : > { %v823_v20 = vadd.f32 %v815_v12, %v325_v10  ;;  %v819_v21 = vadd.f32 %v818_v19, %v775_v17  ;;  %v820_v24 = vpop.f32.mrb[3].mxu0 }
 0x140   : > { %v824_v25 = vadd.f32 %v817_v16, %v326_v14  ;;  %v821_v26 = vadd.f32 %v820_v24, %v777_v22  ;;  %v891_v14 = vunpack.c.l.s4 (!%p1167_p11), %v1371_v13  ;;  %v894_v17 = vshrl.u32 (!%p1167_p11), %v893_v15, 7 }
 0x141   : > { %827 = vst [vmem:[#allocation2] sm:$0xff] %v823_v20  ;;  %v825_v27 = vadd.f32 %v819_v21, %v327_v18 }
 0x142   : > { %828 = vst [vmem:[#allocation2 + $0x8] sm:$0xff] %v824_v25  ;;  %v826_v28 = vadd.f32 %v821_v26, %v328_v23  ;;  %v892_v16 = vunpack.c.0.s8 (!%p1167_p11), %v891_v14  ;;  %v839_v23 = vld [vmem:[%s1574_s2] sm:$0x3] (!%p1167_p11)  ;;  %v909_v25 = vsub.s32 (!%p1167_p11), 0, %v894_v17  ;;  %v913_v26 = vsub.s32 (!%p1167_p11), 1, %v894_v17 }
 0x143   : > { %829 = vst [vmem:[#allocation2 + $0x10] sm:$0xff] %v825_v27 }
 0x144   : > { %830 = vst [vmem:[#allocation2 + $0x18] sm:$0xff] %v826_v28  ;;  %v895_v19 = vsub.s32 (!%p1167_p11), %v892_v16, %v894_v17 }
 0x148   : > { %v1521_v29 = vld [vmem:[#allocation2] sm:$0xff] }
 0x149   : > { %v1523_v30 = vld [vmem:[#allocation2 + $0x8] sm:$0xff]  ;;  %v855_v34 = vmul.f32 %v1521_v29, %v1521_v29 }
 0x14a   : > { %v1525_v31 = vld [vmem:[#allocation2 + $0x10] sm:$0xff]  ;;  %v856_v35 = vmul.f32 %v1523_v30, %v1523_v30 }
 0x14b   : > { %v1527_v32 = vld [vmem:[#allocation2 + $0x18] sm:$0xff]  ;;  %v841_v33 = vadd.f32 %v1525_v31, %v1521_v29  ;;  %v857_v36 = vmul.f32 %v1525_v31, %v1525_v31 }
 0x14c   : > { %v848_v37 = vadd.f32 %v1527_v32, %v1523_v30  ;;  %v858_v38 = vmul.f32 %v1527_v32, %v1527_v32 }
 0x14d   : > { %v842_v39 = vrot.slane %v841_v33, 4  ;;  %v859_v40 = vadd.f32 %v857_v36, %v855_v34 }
 0x14e   : > { %v849_v41 = vrot.slane %v848_v37, 4  ;;  %v866_v42 = vadd.f32 %v858_v38, %v856_v35  ;;  %v840_v38 = vld [vmem:[%s1575_s3] sm:$0x3] }
 0x14f   : > { %v843_v43 = vadd.f32 %v842_v39, %v841_v33  ;;  %v860_v44 = vrot.slane %v859_v40, 4 }
 0x150   : > { %v850_v45 = vadd.f32 %v849_v41, %v848_v37  ;;  %v867_v46 = vrot.slane %v866_v42, 4 }
 0x151   : > { %v844_v47 = vrot.slane %v843_v43, 2  ;;  %v861_v48 = vadd.f32 %v860_v44, %v859_v40 }
 0x152   : > { %v851_v49 = vrot.slane %v850_v45, 2  ;;  %v868_v50 = vadd.f32 %v867_v46, %v866_v42 }
 0x153   : > { %v845_v51 = vadd.f32 %v844_v47, %v843_v43  ;;  %v862_v52 = vrot.slane %v861_v48, 2 }
 0x154   : > { %v852_v53 = vadd.f32 %v851_v49, %v850_v45  ;;  %v869_v54 = vrot.slane %v868_v50, 2 }
 0x155   : > { %v846_v55 = vrot.slane %v845_v51, 1  ;;  %v863_v56 = vadd.f32 %v862_v52, %v861_v48 }
 0x156   : > { %v853_v57 = vrot.slane %v852_v53, 1  ;;  %v870_v58 = vadd.f32 %v869_v54, %v868_v50 }
 0x157   : > { %v847_v59 = vadd.f32 %v846_v55, %v845_v51  ;;  %v864_v60 = vrot.slane %v863_v56, 1 }
 0x158   : > { %v854_v61 = vadd.f32 %v853_v57, %v852_v53  ;;  %v871_v62 = vrot.slane %v870_v58, 1 }
 0x159   : > { %v865_v63 = vadd.f32 %v864_v60, %v863_v56  ;;  %v873_v0 = vmul.f32 0.125, %v847_v59 }
 0x15a   : > { %v872_v1 = vadd.f32 %v871_v62, %v870_v58  ;;  %v874_v2 = vmul.f32 0.125, %v854_v61 }
 0x15b   : > { %v875_v3 = vmul.f32 0.125, %v865_v63  ;;  %v877_v4 = vmul.f32 %v873_v0, %v873_v0 }
 0x15c   : > { %v876_v5 = vmul.f32 0.125, %v872_v1  ;;  %v878_v6 = vmul.f32 %v874_v2, %v874_v2 }
 0x15d   : > { %v879_v7 = vsub.f32 %v875_v3, %v877_v4 }
 0x15e   : > { %v880_v8 = vsub.f32 %v876_v5, %v878_v6 }
 0x15f   : > { %v881_v9 = vmax.f32 %v879_v7, 0.0 }
 0x160   : > { %v882_v10 = vmax.f32 %v880_v8, 0.0 }
 0x161   : > { %v883_v11 = vadd.f32 1e-05, %v881_v9 }
 0x162   : > { %v884_v12 = vadd.f32 1e-05, %v882_v10 }
 0x163   : > { %1326 = vrsqrt.f32 %v883_v11 }
 0x164   : > { %1328 = vrsqrt.f32 %v884_v12 }
 0x16d   : > { %v1327_v18 = vpop.eup %1326 }
 0x16e   : > { %v1329_v20 = vpop.eup %1328 }
 0x16f   : > { %v889_v21 = vcombine.low %v1327_v18, %v1329_v20 }
 0x171   : > { %v896_v22 = vrot.slane %v889_v21, %v895_v19 }
 0x173   : > { %v903_v24 = vrot.slane %v896_v22, %v895_v19 }
 0x175   : > { %v905_v27 = vmul.f32 %v903_v24, %v839_v23 }
 0x177   : > { %v910_v28 = vrot.slane %v905_v27, %v909_v25  ;;  %v914_v33 = vrot.slane %v905_v27, %v913_v26 }
 0x179   : > { %v917_v34 = vmul.f32 %v910_v28, %v873_v0  ;;  %v918_v35 = vmul.f32 %v914_v33, %v874_v2  ;;  %v938_v40 = vmul.f32 %v910_v28, %v1521_v29  ;;  %v939_v42 = vmul.f32 %v914_v33, %v1523_v30 }
 0x17a   : > { %v940_v43 = vmul.f32 %v910_v28, %v1525_v31  ;;  %v941_v44 = vmul.f32 %v914_v33, %v1527_v32 }
 0x17b   : > { %v921_v36 = vcombine.low %v917_v34, %v918_v35 }
 0x17d   : > { %v928_v37 = vrot.slane %v921_v36, %v895_v19 }
 0x17f   : > { %v935_v39 = vrot.slane %v928_v37, %v895_v19 }
 0x181   : > { %v937_v41 = vsub.f32 %v840_v38, %v935_v39 }
 0x183   : > { %v946_v45 = vrot.slane %v937_v41, %v909_v25  ;;  %v950_v46 = vrot.slane %v937_v41, %v913_v26 }
 0x185   : > { %v953_v47 = vadd.f32 %v946_v45, %v938_v40  ;;  %v954_v48 = vadd.f32 %v950_v46, %v939_v42  ;;  %v955_v49 = vadd.f32 %v946_v45, %v940_v43  ;;  %v956_v50 = vadd.f32 %v950_v46, %v941_v44 }
 0x187   : > { %v957_v51 = vmax.f32 %v953_v47, 0.0  ;;  %v958_v52 = vmax.f32 %v954_v48, 0.0  ;;  %v959_v53 = vmax.f32 %v955_v49, 0.0  ;;  %v960_v54 = vmax.f32 %v956_v50, 0.0 }
 0x189   : > { %v1176_v55 = vpack.c.bf16 %v958_v52, %v957_v51  ;;  %v1177_v56 = vpack.c.bf16 %v960_v54, %v959_v53 }
 0x18b   : > { %973 = vst [vmem:[%s1576_s4] sm:$0xff] %v1176_v55  ;;  %974 = vst [vmem:[%s1576_s4 + $0x8] sm:$0xff] %v1177_v56 }
 0x18c PF: > { %s14_s19 = sadd.s32 1, %s1368_s19   ;;  %s1577_s15 = smov %s1356_s16 }
 0x18d   : > { %p11_p12 = scmp.ge.s32.totalorder %s14_s19, 7   ;;  %s1578_s16 = smov %s1432_s23 }
 0x18e   : > { %s1579_s17 = smov %s1364_s18  ;;  %s1580_s18 = smov %s1582_s20 }
 0x18f   :  { %13 = sbr.rel (!%p11_p12) target bundleno = 3 (0x3), region = 111 }

// kernel: icnet_backbone_forward.102
= control target key start
LH: loop header
LB: loop body
LE: loop exit
PB: predicated region body
PF: predicated region fallthrough
CT: control target
= control target key end

     0   :  { %s2416_s15 = smov 0   ;;  %s2418_s16 = smov 0   ;;  %s2953_s0 = inlined_call_operand.vmem [shape: bf16[16,512], index: 0, kind: input, shape index: {}]   ;;  %s2954_s1 = inlined_call_operand.vmem [shape: bf16[512,1024], index: 1, kind: input, shape index: {}]   ;;  %s2955_s2 = inlined_call_operand.vmem [shape: f32[1,1024], index: 2, kind: input, shape index: {}]   ;;  %s2956_s3 = inlined_call_operand.vmem [shape: f32[1,1024], index: 3, kind: input, shape index: {}]   ;;  %s2957_s4 = inlined_call_operand.vmem [shape: bf16[16,1024], index: 4, kind: output, shape index: {}]  }
   0x1   :  { %s2420_s17 = smov 0   ;;  %s2422_s18 = smov 0  }
   0x2   :  { %s2424_s19 = smov 0  }
   0x3 LB: > { %s26_s20 = sadd.s32 1, %s2384_s18  ;;  %s1935_s21 = sadd.s32 4294967295, %s2388_s19   ;;  %s2388_s19 = sphi %s2424_s19, %s14_s19   ;;  %s2384_s18 = sphi %s2422_s18, %s2962_s18   ;;  %s2380_s17 = sphi %s2420_s17, %s2961_s17   ;;  %s2376_s16 = sphi %s2418_s16, %s2960_s16   ;;  %s2372_s15 = sphi %s2416_s15, %s2959_s15  }
   0x4   : > { %p28_p0 = scmp.ge.s32.totalorder %s26_s20, 2  ;;  %p68_p1 = scmp.ne.s32.totalorder %s2376_s16, %s2372_s15 }
   0x5   : > { %p69_p2 = scmp.eq.s32.totalorder %s2388_s19, 0  ;;  %p150_p4 = scmp.eq.s32.totalorder %s1935_s21, 1 }
   0x6   : > { %s2964_s20 = smov (%p28_p0, %s26_s20), 0  ;;  %s61_s23 = sadd.s32 1, %s2376_s16 }
   0x7   : > { %p70_p3 = por %p69_p2, %p68_p1  ;;  %s57_s22 = ssub.s32 %s2384_s18, %s2964_s20 }
   0x8   : > { %p59_p5 = scmp.eq.s32.totalorder %s57_s22, 0  ;;  %p2451_p6 = por %p150_p4, %p68_p1 }
   0x9   : > { %p1939_p7 = scmp.ge.s32.totalorder %s2388_s19, 2 }
   0xa   : > { %s2456_s25 = scalar_select %p59_p5, %s2376_s16, %s61_s23  }
   0xb   : > { %181 = sbr.rel (%p1939_p7) target bundleno = 86 (0x56), region = 20 }
  0x12   : > { %184 = sbr.rel (!%p70_p3) target bundleno = 86 (0x56), region = 24  ;;  %s186_s26 = sand.u32 (%p70_p3), 1, %s2376_s16  }
  0x13   : > { %s2089_s27 = sshll.u32 (%p70_p3), %s2384_s18, 4  ;;  %s1940_s28 = sshll.u32 (%p70_p3), %s186_s26, 10 }
  0x14   : > { %s2464_s5 = scalar_lea.vmem (%p70_p3), %s2954_s1, %s2089_s27  ;;  %s2469_s6 = scalar_lea.vmem (%p70_p3), [#allocation3], %s1940_s28 }
  0x15   : > { %v207_v0 = vld [vmem:[%s2464_s5] sm:$0xff] (%p70_p3)  ;;  %v209_v1 = vld [vmem:[%s2464_s5 + $0x8] sm:$0xff] (%p70_p3) }
  0x16   : > { %v211_v2 = vld [vmem:[%s2464_s5 + $0x20] sm:$0xff] (%p70_p3)  ;;  %208 = vst [vmem:[%s2469_s6] sm:$0xff] (%p70_p3), %v207_v0  ;;  %210 = vst [vmem:[%s2469_s6 + $0x8] sm:$0xff] (%p70_p3), %v209_v1  ;;  %v213_v3 = vld [vmem:[%s2464_s5 + $0x28] sm:$0xff] (%p70_p3) }
  0x17   : > { %212 = vst [vmem:[%s2469_s6 + $0x10] sm:$0xff] (%p70_p3), %v211_v2  ;;  %v215_v4 = vld [vmem:[%s2464_s5 + $0x40] sm:$0xff] (%p70_p3)  ;;  %v217_v5 = vld [vmem:[%s2464_s5 + $0x48] sm:$0xff] (%p70_p3)  ;;  %214 = vst [vmem:[%s2469_s6 + $0x18] sm:$0xff] (%p70_p3), %v213_v3 }
  0x18   : > { %216 = vst [vmem:[%s2469_s6 + $0x20] sm:$0xff] (%p70_p3), %v215_v4  ;;  %218 = vst [vmem:[%s2469_s6 + $0x28] sm:$0xff] (%p70_p3), %v217_v5  ;;  %v219_v6 = vld [vmem:[%s2464_s5 + $0x60] sm:$0xff] (%p70_p3)  ;;  %v221_v7 = vld [vmem:[%s2464_s5 + $0x68] sm:$0xff] (%p70_p3) }
  0x19   : > { %v223_v8 = vld [vmem:[%s2464_s5 + $0x80] sm:$0xff]  ;;  %220 = vst [vmem:[%s2469_s6 + $0x30] sm:$0xff] %v219_v6  ;;  %222 = vst [vmem:[%s2469_s6 + $0x38] sm:$0xff] %v221_v7  ;;  %v225_v9 = vld [vmem:[%s2464_s5 + $0x88] sm:$0xff] }
  0x1a   : > { %224 = vst [vmem:[%s2469_s6 + $0x40] sm:$0xff] %v223_v8  ;;  %v227_v10 = vld [vmem:[%s2464_s5 + $0xa0] sm:$0xff]  ;;  %v229_v11 = vld [vmem:[%s2464_s5 + $0xa8] sm:$0xff]  ;;  %226 = vst [vmem:[%s2469_s6 + $0x48] sm:$0xff] %v225_v9 }
  0x1b   : > { %228 = vst [vmem:[%s2469_s6 + $0x50] sm:$0xff] %v227_v10  ;;  %230 = vst [vmem:[%s2469_s6 + $0x58] sm:$0xff] %v229_v11  ;;  %v231_v12 = vld [vmem:[%s2464_s5 + $0xc0] sm:$0xff]  ;;  %v233_v13 = vld [vmem:[%s2464_s5 + $0xc8] sm:$0xff] }
  0x1c   : > { %v235_v14 = vld [vmem:[%s2464_s5 + $0xe0] sm:$0xff]  ;;  %232 = vst [vmem:[%s2469_s6 + $0x60] sm:$0xff] %v231_v12  ;;  %234 = vst [vmem:[%s2469_s6 + $0x68] sm:$0xff] %v233_v13  ;;  %v237_v15 = vld [vmem:[%s2464_s5 + $0xe8] sm:$0xff] }
  0x1d   : > { %236 = vst [vmem:[%s2469_s6 + $0x70] sm:$0xff] %v235_v14  ;;  %v239_v16 = vld [vmem:[%s2464_s5 + $0x100] sm:$0xff]  ;;  %v241_v17 = vld [vmem:[%s2464_s5 + $0x108] sm:$0xff]  ;;  %238 = vst [vmem:[%s2469_s6 + $0x78] sm:$0xff] %v237_v15 }
  0x1e   : > { %240 = vst [vmem:[%s2469_s6 + $0x80] sm:$0xff] %v239_v16  ;;  %242 = vst [vmem:[%s2469_s6 + $0x88] sm:$0xff] %v241_v17  ;;  %v243_v18 = vld [vmem:[%s2464_s5 + $0x120] sm:$0xff]  ;;  %v245_v19 = vld [vmem:[%s2464_s5 + $0x128] sm:$0xff] }
  0x1f   : > { %v247_v20 = vld [vmem:[%s2464_s5 + $0x140] sm:$0xff]  ;;  %244 = vst [vmem:[%s2469_s6 + $0x90] sm:$0xff] %v243_v18  ;;  %246 = vst [vmem:[%s2469_s6 + $0x98] sm:$0xff] %v245_v19  ;;  %v249_v21 = vld [vmem:[%s2464_s5 + $0x148] sm:$0xff] }
  0x20   : > { %248 = vst [vmem:[%s2469_s6 + $0xa0] sm:$0xff] %v247_v20  ;;  %v251_v22 = vld [vmem:[%s2464_s5 + $0x160] sm:$0xff]  ;;  %v253_v23 = vld [vmem:[%s2464_s5 + $0x168] sm:$0xff]  ;;  %250 = vst [vmem:[%s2469_s6 + $0xa8] sm:$0xff] %v249_v21 }
  0x21   : > { %252 = vst [vmem:[%s2469_s6 + $0xb0] sm:$0xff] %v251_v22  ;;  %254 = vst [vmem:[%s2469_s6 + $0xb8] sm:$0xff] %v253_v23  ;;  %v255_v24 = vld [vmem:[%s2464_s5 + $0x180] sm:$0xff]  ;;  %v257_v25 = vld [vmem:[%s2464_s5 + $0x188] sm:$0xff] }
  0x22   : > { %v259_v26 = vld [vmem:[%s2464_s5 + $0x1a0] sm:$0xff]  ;;  %256 = vst [vmem:[%s2469_s6 + $0xc0] sm:$0xff] %v255_v24  ;;  %258 = vst [vmem:[%s2469_s6 + $0xc8] sm:$0xff] %v257_v25  ;;  %v261_v27 = vld [vmem:[%s2464_s5 + $0x1a8] sm:$0xff] }
  0x23   : > { %260 = vst [vmem:[%s2469_s6 + $0xd0] sm:$0xff] %v259_v26  ;;  %v263_v28 = vld [vmem:[%s2464_s5 + $0x1c0] sm:$0xff]  ;;  %v265_v29 = vld [vmem:[%s2464_s5 + $0x1c8] sm:$0xff]  ;;  %262 = vst [vmem:[%s2469_s6 + $0xd8] sm:$0xff] %v261_v27 }
  0x24   : > { %264 = vst [vmem:[%s2469_s6 + $0xe0] sm:$0xff] %v263_v28  ;;  %266 = vst [vmem:[%s2469_s6 + $0xe8] sm:$0xff] %v265_v29  ;;  %v267_v30 = vld [vmem:[%s2464_s5 + $0x1e0] sm:$0xff]  ;;  %v269_v31 = vld [vmem:[%s2464_s5 + $0x1e8] sm:$0xff] }
  0x25   : > { %v271_v32 = vld [vmem:[%s2464_s5 + $0x200] sm:$0xff]  ;;  %268 = vst [vmem:[%s2469_s6 + $0xf0] sm:$0xff] %v267_v30  ;;  %270 = vst [vmem:[%s2469_s6 + $0xf8] sm:$0xff] %v269_v31  ;;  %v273_v33 = vld [vmem:[%s2464_s5 + $0x208] sm:$0xff] }
  0x26   : > { %272 = vst [vmem:[%s2469_s6 + $0x100] sm:$0xff] %v271_v32  ;;  %v275_v34 = vld [vmem:[%s2464_s5 + $0x220] sm:$0xff]  ;;  %v277_v35 = vld [vmem:[%s2464_s5 + $0x228] sm:$0xff]  ;;  %274 = vst [vmem:[%s2469_s6 + $0x108] sm:$0xff] %v273_v33 }
  0x27   : > { %276 = vst [vmem:[%s2469_s6 + $0x110] sm:$0xff] %v275_v34  ;;  %278 = vst [vmem:[%s2469_s6 + $0x118] sm:$0xff] %v277_v35  ;;  %v279_v36 = vld [vmem:[%s2464_s5 + $0x240] sm:$0xff]  ;;  %v281_v37 = vld [vmem:[%s2464_s5 + $0x248] sm:$0xff] }
  0x28   : > { %v283_v38 = vld [vmem:[%s2464_s5 + $0x260] sm:$0xff]  ;;  %280 = vst [vmem:[%s2469_s6 + $0x120] sm:$0xff] %v279_v36  ;;  %282 = vst [vmem:[%s2469_s6 + $0x128] sm:$0xff] %v281_v37  ;;  %v285_v39 = vld [vmem:[%s2464_s5 + $0x268] sm:$0xff] }
  0x29   : > { %284 = vst [vmem:[%s2469_s6 + $0x130] sm:$0xff] %v283_v38  ;;  %v287_v40 = vld [vmem:[%s2464_s5 + $0x280] sm:$0xff]  ;;  %v289_v41 = vld [vmem:[%s2464_s5 + $0x288] sm:$0xff]  ;;  %286 = vst [vmem:[%s2469_s6 + $0x138] sm:$0xff] %v285_v39 }
  0x2a   : > { %288 = vst [vmem:[%s2469_s6 + $0x140] sm:$0xff] %v287_v40  ;;  %290 = vst [vmem:[%s2469_s6 + $0x148] sm:$0xff] %v289_v41  ;;  %v291_v42 = vld [vmem:[%s2464_s5 + $0x2a0] sm:$0xff]  ;;  %v293_v43 = vld [vmem:[%s2464_s5 + $0x2a8] sm:$0xff] }
  0x2b   : > { %v295_v44 = vld [vmem:[%s2464_s5 + $0x2c0] sm:$0xff]  ;;  %292 = vst [vmem:[%s2469_s6 + $0x150] sm:$0xff] %v291_v42  ;;  %294 = vst [vmem:[%s2469_s6 + $0x158] sm:$0xff] %v293_v43  ;;  %v297_v45 = vld [vmem:[%s2464_s5 + $0x2c8] sm:$0xff] }
  0x2c   : > { %296 = vst [vmem:[%s2469_s6 + $0x160] sm:$0xff] %v295_v44  ;;  %v299_v46 = vld [vmem:[%s2464_s5 + $0x2e0] sm:$0xff]  ;;  %v301_v47 = vld [vmem:[%s2464_s5 + $0x2e8] sm:$0xff]  ;;  %298 = vst [vmem:[%s2469_s6 + $0x168] sm:$0xff] %v297_v45 }
  0x2d   : > { %300 = vst [vmem:[%s2469_s6 + $0x170] sm:$0xff] %v299_v46  ;;  %302 = vst [vmem:[%s2469_s6 + $0x178] sm:$0xff] %v301_v47  ;;  %v303_v48 = vld [vmem:[%s2464_s5 + $0x300] sm:$0xff]  ;;  %v305_v49 = vld [vmem:[%s2464_s5 + $0x308] sm:$0xff] }
  0x2e   : > { %v307_v50 = vld [vmem:[%s2464_s5 + $0x320] sm:$0xff]  ;;  %304 = vst [vmem:[%s2469_s6 + $0x180] sm:$0xff] %v303_v48  ;;  %306 = vst [vmem:[%s2469_s6 + $0x188] sm:$0xff] %v305_v49  ;;  %v309_v51 = vld [vmem:[%s2464_s5 + $0x328] sm:$0xff] }
  0x2f   : > { %308 = vst [vmem:[%s2469_s6 + $0x190] sm:$0xff] %v307_v50  ;;  %v311_v52 = vld [vmem:[%s2464_s5 + $0x340] sm:$0xff]  ;;  %v313_v53 = vld [vmem:[%s2464_s5 + $0x348] sm:$0xff]  ;;  %310 = vst [vmem:[%s2469_s6 + $0x198] sm:$0xff] %v309_v51 }
  0x30   : > { %312 = vst [vmem:[%s2469_s6 + $0x1a0] sm:$0xff] %v311_v52  ;;  %314 = vst [vmem:[%s2469_s6 + $0x1a8] sm:$0xff] %v313_v53  ;;  %v315_v54 = vld [vmem:[%s2464_s5 + $0x360] sm:$0xff]  ;;  %v317_v55 = vld [vmem:[%s2464_s5 + $0x368] sm:$0xff] }
  0x31   : > { %v319_v56 = vld [vmem:[%s2464_s5 + $0x380] sm:$0xff]  ;;  %316 = vst [vmem:[%s2469_s6 + $0x1b0] sm:$0xff] %v315_v54  ;;  %318 = vst [vmem:[%s2469_s6 + $0x1b8] sm:$0xff] %v317_v55  ;;  %v321_v57 = vld [vmem:[%s2464_s5 + $0x388] sm:$0xff] }
  0x32   : > { %320 = vst [vmem:[%s2469_s6 + $0x1c0] sm:$0xff] %v319_v56  ;;  %v323_v58 = vld [vmem:[%s2464_s5 + $0x3a0] sm:$0xff]  ;;  %v325_v59 = vld [vmem:[%s2464_s5 + $0x3a8] sm:$0xff]  ;;  %322 = vst [vmem:[%s2469_s6 + $0x1c8] sm:$0xff] %v321_v57 }
  0x33   : > { %324 = vst [vmem:[%s2469_s6 + $0x1d0] sm:$0xff] %v323_v58  ;;  %326 = vst [vmem:[%s2469_s6 + $0x1d8] sm:$0xff] %v325_v59  ;;  %v327_v60 = vld [vmem:[%s2464_s5 + $0x3c0] sm:$0xff]  ;;  %v329_v61 = vld [vmem:[%s2464_s5 + $0x3c8] sm:$0xff] }
  0x34   : > { %v331_v62 = vld [vmem:[%s2464_s5 + $0x3e0] sm:$0xff]  ;;  %328 = vst [vmem:[%s2469_s6 + $0x1e0] sm:$0xff] %v327_v60  ;;  %330 = vst [vmem:[%s2469_s6 + $0x1e8] sm:$0xff] %v329_v61  ;;  %v333_v63 = vld [vmem:[%s2464_s5 + $0x3e8] sm:$0xff] }
  0x35   : > { %332 = vst [vmem:[%s2469_s6 + $0x1f0] sm:$0xff] %v331_v62  ;;  %v335_v0 = vld [vmem:[%s2464_s5 + $0x400] sm:$0xff]  ;;  %v337_v1 = vld [vmem:[%s2464_s5 + $0x408] sm:$0xff]  ;;  %334 = vst [vmem:[%s2469_s6 + $0x1f8] sm:$0xff] %v333_v63 }
  0x36   : > { %336 = vst [vmem:[%s2469_s6 + $0x200] sm:$0xff] %v335_v0  ;;  %338 = vst [vmem:[%s2469_s6 + $0x208] sm:$0xff] %v337_v1  ;;  %v339_v2 = vld [vmem:[%s2464_s5 + $0x420] sm:$0xff]  ;;  %v341_v3 = vld [vmem:[%s2464_s5 + $0x428] sm:$0xff] }
  0x37   : > { %v343_v4 = vld [vmem:[%s2464_s5 + $0x440] sm:$0xff]  ;;  %340 = vst [vmem:[%s2469_s6 + $0x210] sm:$0xff] %v339_v2  ;;  %342 = vst [vmem:[%s2469_s6 + $0x218] sm:$0xff] %v341_v3  ;;  %v345_v5 = vld [vmem:[%s2464_s5 + $0x448] sm:$0xff] }
  0x38   : > { %344 = vst [vmem:[%s2469_s6 + $0x220] sm:$0xff] %v343_v4  ;;  %v347_v6 = vld [vmem:[%s2464_s5 + $0x460] sm:$0xff]  ;;  %v349_v7 = vld [vmem:[%s2464_s5 + $0x468] sm:$0xff]  ;;  %346 = vst [vmem:[%s2469_s6 + $0x228] sm:$0xff] %v345_v5 }
  0x39   : > { %348 = vst [vmem:[%s2469_s6 + $0x230] sm:$0xff] %v347_v6  ;;  %350 = vst [vmem:[%s2469_s6 + $0x238] sm:$0xff] %v349_v7  ;;  %v351_v8 = vld [vmem:[%s2464_s5 + $0x480] sm:$0xff]  ;;  %v353_v9 = vld [vmem:[%s2464_s5 + $0x488] sm:$0xff] }
  0x3a   : > { %v355_v10 = vld [vmem:[%s2464_s5 + $0x4a0] sm:$0xff]  ;;  %352 = vst [vmem:[%s2469_s6 + $0x240] sm:$0xff] %v351_v8  ;;  %354 = vst [vmem:[%s2469_s6 + $0x248] sm:$0xff] %v353_v9  ;;  %v357_v11 = vld [vmem:[%s2464_s5 + $0x4a8] sm:$0xff] }
  0x3b   : > { %356 = vst [vmem:[%s2469_s6 + $0x250] sm:$0xff] %v355_v10  ;;  %v359_v12 = vld [vmem:[%s2464_s5 + $0x4c0] sm:$0xff]  ;;  %v361_v13 = vld [vmem:[%s2464_s5 + $0x4c8] sm:$0xff]  ;;  %358 = vst [vmem:[%s2469_s6 + $0x258] sm:$0xff] %v357_v11 }
  0x3c   : > { %360 = vst [vmem:[%s2469_s6 + $0x260] sm:$0xff] %v359_v12  ;;  %362 = vst [vmem:[%s2469_s6 + $0x268] sm:$0xff] %v361_v13  ;;  %v363_v14 = vld [vmem:[%s2464_s5 + $0x4e0] sm:$0xff]  ;;  %v365_v15 = vld [vmem:[%s2464_s5 + $0x4e8] sm:$0xff] }
  0x3d   : > { %v367_v16 = vld [vmem:[%s2464_s5 + $0x500] sm:$0xff]  ;;  %364 = vst [vmem:[%s2469_s6 + $0x270] sm:$0xff] %v363_v14  ;;  %366 = vst [vmem:[%s2469_s6 + $0x278] sm:$0xff] %v365_v15  ;;  %v369_v17 = vld [vmem:[%s2464_s5 + $0x508] sm:$0xff] }
  0x3e   : > { %368 = vst [vmem:[%s2469_s6 + $0x280] sm:$0xff] %v367_v16  ;;  %v371_v18 = vld [vmem:[%s2464_s5 + $0x520] sm:$0xff]  ;;  %v373_v19 = vld [vmem:[%s2464_s5 + $0x528] sm:$0xff]  ;;  %370 = vst [vmem:[%s2469_s6 + $0x288] sm:$0xff] %v369_v17 }
  0x3f   : > { %372 = vst [vmem:[%s2469_s6 + $0x290] sm:$0xff] %v371_v18  ;;  %374 = vst [vmem:[%s2469_s6 + $0x298] sm:$0xff] %v373_v19  ;;  %v375_v20 = vld [vmem:[%s2464_s5 + $0x540] sm:$0xff]  ;;  %v377_v21 = vld [vmem:[%s2464_s5 + $0x548] sm:$0xff] }
  0x40   : > { %v379_v22 = vld [vmem:[%s2464_s5 + $0x560] sm:$0xff]  ;;  %376 = vst [vmem:[%s2469_s6 + $0x2a0] sm:$0xff] %v375_v20  ;;  %378 = vst [vmem:[%s2469_s6 + $0x2a8] sm:$0xff] %v377_v21  ;;  %v381_v23 = vld [vmem:[%s2464_s5 + $0x568] sm:$0xff] }
  0x41   : > { %380 = vst [vmem:[%s2469_s6 + $0x2b0] sm:$0xff] %v379_v22  ;;  %v383_v24 = vld [vmem:[%s2464_s5 + $0x580] sm:$0xff]  ;;  %v385_v25 = vld [vmem:[%s2464_s5 + $0x588] sm:$0xff]  ;;  %382 = vst [vmem:[%s2469_s6 + $0x2b8] sm:$0xff] %v381_v23 }
  0x42   : > { %384 = vst [vmem:[%s2469_s6 + $0x2c0] sm:$0xff] %v383_v24  ;;  %386 = vst [vmem:[%s2469_s6 + $0x2c8] sm:$0xff] %v385_v25  ;;  %v387_v26 = vld [vmem:[%s2464_s5 + $0x5a0] sm:$0xff]  ;;  %v389_v27 = vld [vmem:[%s2464_s5 + $0x5a8] sm:$0xff] }
  0x43   : > { %v391_v28 = vld [vmem:[%s2464_s5 + $0x5c0] sm:$0xff]  ;;  %388 = vst [vmem:[%s2469_s6 + $0x2d0] sm:$0xff] %v387_v26  ;;  %390 = vst [vmem:[%s2469_s6 + $0x2d8] sm:$0xff] %v389_v27  ;;  %v393_v29 = vld [vmem:[%s2464_s5 + $0x5c8] sm:$0xff] }
  0x44   : > { %392 = vst [vmem:[%s2469_s6 + $0x2e0] sm:$0xff] %v391_v28  ;;  %v395_v30 = vld [vmem:[%s2464_s5 + $0x5e0] sm:$0xff]  ;;  %v397_v31 = vld [vmem:[%s2464_s5 + $0x5e8] sm:$0xff]  ;;  %394 = vst [vmem:[%s2469_s6 + $0x2e8] sm:$0xff] %v393_v29 }
  0x45   : > { %396 = vst [vmem:[%s2469_s6 + $0x2f0] sm:$0xff] %v395_v30  ;;  %398 = vst [vmem:[%s2469_s6 + $0x2f8] sm:$0xff] %v397_v31  ;;  %v399_v32 = vld [vmem:[%s2464_s5 + $0x600] sm:$0xff]  ;;  %v401_v33 = vld [vmem:[%s2464_s5 + $0x608] sm:$0xff] }
  0x46   : > { %v403_v34 = vld [vmem:[%s2464_s5 + $0x620] sm:$0xff]  ;;  %400 = vst [vmem:[%s2469_s6 + $0x300] sm:$0xff] %v399_v32  ;;  %402 = vst [vmem:[%s2469_s6 + $0x308] sm:$0xff] %v401_v33  ;;  %v405_v35 = vld [vmem:[%s2464_s5 + $0x628] sm:$0xff] }
  0x47   : > { %404 = vst [vmem:[%s2469_s6 + $0x310] sm:$0xff] %v403_v34  ;;  %v407_v36 = vld [vmem:[%s2464_s5 + $0x640] sm:$0xff]  ;;  %v409_v37 = vld [vmem:[%s2464_s5 + $0x648] sm:$0xff]  ;;  %406 = vst [vmem:[%s2469_s6 + $0x318] sm:$0xff] %v405_v35 }
  0x48   : > { %408 = vst [vmem:[%s2469_s6 + $0x320] sm:$0xff] %v407_v36  ;;  %410 = vst [vmem:[%s2469_s6 + $0x328] sm:$0xff] %v409_v37  ;;  %v411_v38 = vld [vmem:[%s2464_s5 + $0x660] sm:$0xff]  ;;  %v413_v39 = vld [vmem:[%s2464_s5 + $0x668] sm:$0xff] }
  0x49   : > { %v415_v40 = vld [vmem:[%s2464_s5 + $0x680] sm:$0xff]  ;;  %412 = vst [vmem:[%s2469_s6 + $0x330] sm:$0xff] %v411_v38  ;;  %414 = vst [vmem:[%s2469_s6 + $0x338] sm:$0xff] %v413_v39  ;;  %v417_v41 = vld [vmem:[%s2464_s5 + $0x688] sm:$0xff] }
  0x4a   : > { %416 = vst [vmem:[%s2469_s6 + $0x340] sm:$0xff] %v415_v40  ;;  %v419_v42 = vld [vmem:[%s2464_s5 + $0x6a0] sm:$0xff]  ;;  %v421_v43 = vld [vmem:[%s2464_s5 + $0x6a8] sm:$0xff]  ;;  %418 = vst [vmem:[%s2469_s6 + $0x348] sm:$0xff] %v417_v41 }
  0x4b   : > { %420 = vst [vmem:[%s2469_s6 + $0x350] sm:$0xff] %v419_v42  ;;  %422 = vst [vmem:[%s2469_s6 + $0x358] sm:$0xff] %v421_v43  ;;  %v423_v44 = vld [vmem:[%s2464_s5 + $0x6c0] sm:$0xff]  ;;  %v425_v45 = vld [vmem:[%s2464_s5 + $0x6c8] sm:$0xff] }
  0x4c   : > { %v427_v46 = vld [vmem:[%s2464_s5 + $0x6e0] sm:$0xff]  ;;  %424 = vst [vmem:[%s2469_s6 + $0x360] sm:$0xff] %v423_v44  ;;  %426 = vst [vmem:[%s2469_s6 + $0x368] sm:$0xff] %v425_v45  ;;  %v429_v47 = vld [vmem:[%s2464_s5 + $0x6e8] sm:$0xff] }
  0x4d   : > { %428 = vst [vmem:[%s2469_s6 + $0x370] sm:$0xff] %v427_v46  ;;  %v431_v48 = vld [vmem:[%s2464_s5 + $0x700] sm:$0xff]  ;;  %v433_v49 = vld [vmem:[%s2464_s5 + $0x708] sm:$0xff]  ;;  %430 = vst [vmem:[%s2469_s6 + $0x378] sm:$0xff] %v429_v47 }
  0x4e   : > { %432 = vst [vmem:[%s2469_s6 + $0x380] sm:$0xff] %v431_v48  ;;  %434 = vst [vmem:[%s2469_s6 + $0x388] sm:$0xff] %v433_v49  ;;  %v435_v50 = vld [vmem:[%s2464_s5 + $0x720] sm:$0xff]  ;;  %v437_v51 = vld [vmem:[%s2464_s5 + $0x728] sm:$0xff] }
  0x4f   : > { %v439_v52 = vld [vmem:[%s2464_s5 + $0x740] sm:$0xff]  ;;  %436 = vst [vmem:[%s2469_s6 + $0x390] sm:$0xff] %v435_v50  ;;  %438 = vst [vmem:[%s2469_s6 + $0x398] sm:$0xff] %v437_v51  ;;  %v441_v53 = vld [vmem:[%s2464_s5 + $0x748] sm:$0xff] }
  0x50   : > { %440 = vst [vmem:[%s2469_s6 + $0x3a0] sm:$0xff] %v439_v52  ;;  %v443_v54 = vld [vmem:[%s2464_s5 + $0x760] sm:$0xff]  ;;  %v445_v55 = vld [vmem:[%s2464_s5 + $0x768] sm:$0xff]  ;;  %442 = vst [vmem:[%s2469_s6 + $0x3a8] sm:$0xff] %v441_v53 }
  0x51   : > { %444 = vst [vmem:[%s2469_s6 + $0x3b0] sm:$0xff] %v443_v54  ;;  %446 = vst [vmem:[%s2469_s6 + $0x3b8] sm:$0xff] %v445_v55  ;;  %v447_v56 = vld [vmem:[%s2464_s5 + $0x780] sm:$0xff]  ;;  %v449_v57 = vld [vmem:[%s2464_s5 + $0x788] sm:$0xff] }
  0x52   : > { %v451_v58 = vld [vmem:[%s2464_s5 + $0x7a0] sm:$0xff]  ;;  %448 = vst [vmem:[%s2469_s6 + $0x3c0] sm:$0xff] %v447_v56  ;;  %450 = vst [vmem:[%s2469_s6 + $0x3c8] sm:$0xff] %v449_v57  ;;  %v453_v59 = vld [vmem:[%s2464_s5 + $0x7a8] sm:$0xff] }
  0x53   : > { %452 = vst [vmem:[%s2469_s6 + $0x3d0] sm:$0xff] %v451_v58  ;;  %v455_v60 = vld [vmem:[%s2464_s5 + $0x7c0] sm:$0xff]  ;;  %v457_v61 = vld [vmem:[%s2464_s5 + $0x7c8] sm:$0xff]  ;;  %454 = vst [vmem:[%s2469_s6 + $0x3d8] sm:$0xff] %v453_v59 }
  0x54   : > { %456 = vst [vmem:[%s2469_s6 + $0x3e0] sm:$0xff] %v455_v60  ;;  %458 = vst [vmem:[%s2469_s6 + $0x3e8] sm:$0xff] %v457_v61  ;;  %v459_v62 = vld [vmem:[%s2464_s5 + $0x7e0] sm:$0xff]  ;;  %v461_v63 = vld [vmem:[%s2464_s5 + $0x7e8] sm:$0xff] }
  0x55   : > { %460 = vst [vmem:[%s2469_s6 + $0x3f0] sm:$0xff] %v459_v62  ;;  %462 = vst [vmem:[%s2469_s6 + $0x3f8] sm:$0xff] %v461_v63 }
  0x56 PF: > { %p1943_p8 = scmp.ge.s32.totalorder %s2388_s19, 1  ;;  %p483_p9 = scmp.lt.s32.totalorder %s2388_s19, 3 }
  0x58   : > { %p484_p10 = pnand %p1943_p8, %p483_p9 }
  0x59   : > { %s490_s7 = sand.u32 (!%p484_p10), 1, %s2372_s15   ;;  %v2242_v0 = vld [vmem:[%s2953_s0 + $0x4] ss:$16 sps:$4 sm:$0xff] (!%p484_p10)   ;;  %s1946_s26 = sshll.u32 (!%p484_p10), %s2380_s17, 2 }
  0x5a   : > { %487 = sbr.rel (%p484_p10) target bundleno = 513 (0x201), region = 55  ;;  %s1944_s8 = sshll.u32 (!%p484_p10), %s490_s7, 10  ;;  %1390 = vmatprep.mubr.bf16.mxu0 (!%p484_p10), %v2242_v0  ;;  %1476 = vmatprep.mubr.bf16.mxu1 (!%p484_p10), %v2242_v0 }
  0x5b   : > { %s2732_s11 = scalar_lea.vmem (!%p484_p10), [#allocation3], %s1944_s8  ;;  %p536_p11 = scmp.lt.s32.totalorder (!%p484_p10), %s1946_s26, 7 }
  0x5c   : > { %v2144_v1 = vld [vmem:[%s2732_s11 + $0x4] ss:$16 sps:$4 sm:$0xff] (!%p484_p10)   ;;  %v2146_v2 = vld [vmem:[%s2732_s11 + $0xc] ss:$16 sps:$4 sm:$0xff] (!%p484_p10)   ;;  %v2148_v3 = vld [vmem:[%s2732_s11] ss:$16 sps:$4 sm:$0xff] (!%p484_p10)  }
  0x5d   : > { %1358 = vmatprep.subr.bf16.mxu0 (!%p484_p10), %v2144_v1  ;;  %v2149_v4 = vld [vmem:[%s2732_s11 + $0x8] ss:$16 sps:$4 sm:$0xff] (!%p484_p10)   ;;  %1444 = vmatprep.subr.bf16.mxu1 (!%p484_p10), %v2146_v2  ;;  %v2150_v5 = vld [vmem:[%s2732_s11 + $0x24] ss:$16 sps:$4 sm:$0xff] (!%p484_p10)   ;;  %v2152_v6 = vld [vmem:[%s2732_s11 + $0x2c] ss:$16 sps:$4 sm:$0xff] (!%p484_p10)  }
  0x5e   : > { %1359 = vmatpush1.bf16.msra.mxu0 (!%p484_p10), %v2148_v3  ;;  %1445 = vmatpush1.bf16.msra.mxu1 (!%p484_p10), %v2149_v4  ;;  %v2154_v7 = vld [vmem:[%s2732_s11 + $0x20] ss:$16 sps:$4 sm:$0xff] (!%p484_p10)   ;;  %v2155_v8 = vld [vmem:[%s2732_s11 + $0x28] ss:$16 sps:$4 sm:$0xff] (!%p484_p10)   ;;  %v2156_v9 = vld [vmem:[%s2732_s11 + $0x44] ss:$16 sps:$4 sm:$0xff] (!%p484_p10)  }
  0x5f   : > { %1360 = vmatprep.subr.bf16.mxu0 (!%p484_p10), %v2150_v5  ;;  %1446 = vmatprep.subr.bf16.mxu1 (!%p484_p10), %v2152_v6  ;;  %v2158_v10 = vld [vmem:[%s2732_s11 + $0x4c] ss:$16 sps:$4 sm:$0xff] (!%p484_p10)   ;;  %v2160_v11 = vld [vmem:[%s2732_s11 + $0x40] ss:$16 sps:$4 sm:$0xff] (!%p484_p10)   ;;  %v2161_v12 = vld [vmem:[%s2732_s11 + $0x48] ss:$16 sps:$4 sm:$0xff] (!%p484_p10)  }
  0x60   : > { %v2162_v13 = vld [vmem:[%s2732_s11 + $0x64] ss:$16 sps:$4 sm:$0xff] (!%p484_p10)   ;;  %v2164_v14 = vld [vmem:[%s2732_s11 + $0x6c] ss:$16 sps:$4 sm:$0xff] (!%p484_p10)   ;;  %v2166_v15 = vld [vmem:[%s2732_s11 + $0x60] ss:$16 sps:$4 sm:$0xff] (!%p484_p10)  }
  0x61   : > { %v2167_v16 = vld [vmem:[%s2732_s11 + $0x68] ss:$16 sps:$4 sm:$0xff]   ;;  %v2168_v17 = vld [vmem:[%s2732_s11 + $0x84] ss:$16 sps:$4 sm:$0xff]   ;;  %v2170_v18 = vld [vmem:[%s2732_s11 + $0x8c] ss:$16 sps:$4 sm:$0xff]  }
  0x62   : > { %1361 = vmatpush1.bf16.msra.mxu0 %v2154_v7  ;;  %1447 = vmatpush1.bf16.msra.mxu1 %v2155_v8  ;;  %v2172_v19 = vld [vmem:[%s2732_s11 + $0x80] ss:$16 sps:$4 sm:$0xff]   ;;  %v2173_v20 = vld [vmem:[%s2732_s11 + $0x88] ss:$16 sps:$4 sm:$0xff]   ;;  %v2174_v21 = vld [vmem:[%s2732_s11 + $0xa4] ss:$16 sps:$4 sm:$0xff]  }
  0x63   : > { %1362 = vmatprep.subr.bf16.mxu0 %v2156_v9  ;;  %1448 = vmatprep.subr.bf16.mxu1 %v2158_v10  ;;  %v2176_v22 = vld [vmem:[%s2732_s11 + $0xac] ss:$16 sps:$4 sm:$0xff]   ;;  %v2178_v23 = vld [vmem:[%s2732_s11 + $0xa0] ss:$16 sps:$4 sm:$0xff]   ;;  %v2179_v24 = vld [vmem:[%s2732_s11 + $0xa8] ss:$16 sps:$4 sm:$0xff]  }
  0x64   : > { %v2180_v25 = vld [vmem:[%s2732_s11 + $0xc4] ss:$16 sps:$4 sm:$0xff]   ;;  %v2182_v26 = vld [vmem:[%s2732_s11 + $0xcc] ss:$16 sps:$4 sm:$0xff]   ;;  %v2184_v27 = vld [vmem:[%s2732_s11 + $0xc0] ss:$16 sps:$4 sm:$0xff]  }
  0x65   : > { %v2185_v28 = vld [vmem:[%s2732_s11 + $0xc8] ss:$16 sps:$4 sm:$0xff]   ;;  %v2186_v29 = vld [vmem:[%s2732_s11 + $0xe4] ss:$16 sps:$4 sm:$0xff]   ;;  %v2188_v30 = vld [vmem:[%s2732_s11 + $0xec] ss:$16 sps:$4 sm:$0xff]  }
  0x66   : > { %1363 = vmatpush1.bf16.msra.mxu0 %v2160_v11  ;;  %1449 = vmatpush1.bf16.msra.mxu1 %v2161_v12  ;;  %v2190_v31 = vld [vmem:[%s2732_s11 + $0xe0] ss:$16 sps:$4 sm:$0xff]   ;;  %v2191_v32 = vld [vmem:[%s2732_s11 + $0xe8] ss:$16 sps:$4 sm:$0xff]   ;;  %v2192_v33 = vld [vmem:[%s2732_s11 + $0x104] ss:$16 sps:$4 sm:$0xff]  }
  0x67   : > { %1364 = vmatprep.subr.bf16.mxu0 %v2162_v13  ;;  %1450 = vmatprep.subr.bf16.mxu1 %v2164_v14  ;;  %v2194_v34 = vld [vmem:[%s2732_s11 + $0x10c] ss:$16 sps:$4 sm:$0xff]   ;;  %v2196_v35 = vld [vmem:[%s2732_s11 + $0x100] ss:$16 sps:$4 sm:$0xff]   ;;  %v2197_v36 = vld [vmem:[%s2732_s11 + $0x108] ss:$16 sps:$4 sm:$0xff]  }
  0x68   : > { %v2198_v37 = vld [vmem:[%s2732_s11 + $0x124] ss:$16 sps:$4 sm:$0xff]   ;;  %v2200_v38 = vld [vmem:[%s2732_s11 + $0x12c] ss:$16 sps:$4 sm:$0xff]   ;;  %v2202_v39 = vld [vmem:[%s2732_s11 + $0x120] ss:$16 sps:$4 sm:$0xff]  }
  0x69   : > { %v2203_v40 = vld [vmem:[%s2732_s11 + $0x128] ss:$16 sps:$4 sm:$0xff]   ;;  %v2204_v41 = vld [vmem:[%s2732_s11 + $0x144] ss:$16 sps:$4 sm:$0xff]   ;;  %v2206_v42 = vld [vmem:[%s2732_s11 + $0x14c] ss:$16 sps:$4 sm:$0xff]  }
  0x6a   : > { %1365 = vmatpush1.bf16.msra.mxu0 %v2166_v15  ;;  %1451 = vmatpush1.bf16.msra.mxu1 %v2167_v16  ;;  %v2208_v43 = vld [vmem:[%s2732_s11 + $0x140] ss:$16 sps:$4 sm:$0xff]   ;;  %v2209_v44 = vld [vmem:[%s2732_s11 + $0x148] ss:$16 sps:$4 sm:$0xff]   ;;  %v2210_v45 = vld [vmem:[%s2732_s11 + $0x164] ss:$16 sps:$4 sm:$0xff]  }
  0x6b   : > { %1366 = vmatprep.subr.bf16.mxu0 %v2168_v17  ;;  %1452 = vmatprep.subr.bf16.mxu1 %v2170_v18  ;;  %v2212_v46 = vld [vmem:[%s2732_s11 + $0x16c] ss:$16 sps:$4 sm:$0xff]   ;;  %v2214_v47 = vld [vmem:[%s2732_s11 + $0x160] ss:$16 sps:$4 sm:$0xff]   ;;  %v2215_v48 = vld [vmem:[%s2732_s11 + $0x168] ss:$16 sps:$4 sm:$0xff]  }
  0x6c   : > { %v2216_v49 = vld [vmem:[%s2732_s11 + $0x184] ss:$16 sps:$4 sm:$0xff]   ;;  %v2218_v50 = vld [vmem:[%s2732_s11 + $0x18c] ss:$16 sps:$4 sm:$0xff]   ;;  %v2220_v51 = vld [vmem:[%s2732_s11 + $0x180] ss:$16 sps:$4 sm:$0xff]  }
  0x6d   : > { %v2221_v52 = vld [vmem:[%s2732_s11 + $0x188] ss:$16 sps:$4 sm:$0xff]   ;;  %v2222_v53 = vld [vmem:[%s2732_s11 + $0x1a4] ss:$16 sps:$4 sm:$0xff]   ;;  %v2224_v54 = vld [vmem:[%s2732_s11 + $0x1ac] ss:$16 sps:$4 sm:$0xff]  }
  0x6e   : > { %1367 = vmatpush1.bf16.msra.mxu0 %v2172_v19  ;;  %1453 = vmatpush1.bf16.msra.mxu1 %v2173_v20  ;;  %v2226_v55 = vld [vmem:[%s2732_s11 + $0x1a0] ss:$16 sps:$4 sm:$0xff]   ;;  %v2227_v56 = vld [vmem:[%s2732_s11 + $0x1a8] ss:$16 sps:$4 sm:$0xff]   ;;  %v2228_v57 = vld [vmem:[%s2732_s11 + $0x1c4] ss:$16 sps:$4 sm:$0xff]  }
  0x6f   : > { %1368 = vmatprep.subr.bf16.mxu0 %v2174_v21  ;;  %1454 = vmatprep.subr.bf16.mxu1 %v2176_v22  ;;  %v2230_v58 = vld [vmem:[%s2732_s11 + $0x1cc] ss:$16 sps:$4 sm:$0xff]   ;;  %v2232_v59 = vld [vmem:[%s2732_s11 + $0x1c0] ss:$16 sps:$4 sm:$0xff]   ;;  %v2233_v60 = vld [vmem:[%s2732_s11 + $0x1c8] ss:$16 sps:$4 sm:$0xff]  }
  0x70   : > { %v2234_v61 = vld [vmem:[%s2732_s11 + $0x1e4] ss:$16 sps:$4 sm:$0xff]   ;;  %v2236_v62 = vld [vmem:[%s2732_s11 + $0x1ec] ss:$16 sps:$4 sm:$0xff]   ;;  %v2238_v63 = vld [vmem:[%s2732_s11 + $0x1e0] ss:$16 sps:$4 sm:$0xff]  }
  0x71   : > { %v2239_v0 = vld [vmem:[%s2732_s11 + $0x1e8] ss:$16 sps:$4 sm:$0xff]   ;;  %v2245_v1 = vld [vmem:[%s2732_s11 + $0x204] ss:$16 sps:$4 sm:$0xff]   ;;  %v2248_v2 = vld [vmem:[%s2732_s11 + $0x20c] ss:$16 sps:$4 sm:$0xff]  }
  0x72   : > { %1369 = vmatpush1.bf16.msra.mxu0 %v2178_v23  ;;  %1455 = vmatpush1.bf16.msra.mxu1 %v2179_v24  ;;  %v2240_v3 = vld [vmem:[%s2953_s0] ss:$16 sps:$4 sm:$0xff]   ;;  %v2246_v5 = vld [vmem:[%s2732_s11 + $0x208] ss:$16 sps:$4 sm:$0xff]   ;;  %v2251_v6 = vld [vmem:[%s2732_s11 + $0x224] ss:$16 sps:$4 sm:$0xff]  }
  0x73   : > { %1370 = vmatprep.subr.bf16.mxu0 %v2180_v25  ;;  %1456 = vmatprep.subr.bf16.mxu1 %v2182_v26  ;;  %v2243_v4 = vld [vmem:[%s2732_s11 + $0x200] ss:$16 sps:$4 sm:$0xff]   ;;  %v2254_v7 = vld [vmem:[%s2732_s11 + $0x22c] ss:$16 sps:$4 sm:$0xff]   ;;  %v2252_v9 = vld [vmem:[%s2732_s11 + $0x228] ss:$16 sps:$4 sm:$0xff]  }
  0x74   : > { %v2249_v8 = vld [vmem:[%s2732_s11 + $0x220] ss:$16 sps:$4 sm:$0xff]   ;;  %v2257_v10 = vld [vmem:[%s2732_s11 + $0x244] ss:$16 sps:$4 sm:$0xff]   ;;  %v2260_v11 = vld [vmem:[%s2732_s11 + $0x24c] ss:$16 sps:$4 sm:$0xff]  }
  0x75   : > { %v2255_v12 = vld [vmem:[%s2732_s11 + $0x240] ss:$16 sps:$4 sm:$0xff]   ;;  %v2258_v13 = vld [vmem:[%s2732_s11 + $0x248] ss:$16 sps:$4 sm:$0xff]   ;;  %v2263_v14 = vld [vmem:[%s2732_s11 + $0x264] ss:$16 sps:$4 sm:$0xff]  }
  0x76   : > { %1371 = vmatpush1.bf16.msra.mxu0 %v2184_v27  ;;  %1457 = vmatpush1.bf16.msra.mxu1 %v2185_v28  ;;  %v2266_v15 = vld [vmem:[%s2732_s11 + $0x26c] ss:$16 sps:$4 sm:$0xff]   ;;  %v2261_v16 = vld [vmem:[%s2732_s11 + $0x260] ss:$16 sps:$4 sm:$0xff]   ;;  %v2264_v17 = vld [vmem:[%s2732_s11 + $0x268] ss:$16 sps:$4 sm:$0xff]  }
  0x77   : > { %1372 = vmatprep.subr.bf16.mxu0 %v2186_v29  ;;  %1458 = vmatprep.subr.bf16.mxu1 %v2188_v30  ;;  %v2269_v18 = vld [vmem:[%s2732_s11 + $0x284] ss:$16 sps:$4 sm:$0xff]   ;;  %v2272_v19 = vld [vmem:[%s2732_s11 + $0x28c] ss:$16 sps:$4 sm:$0xff]   ;;  %v2267_v20 = vld [vmem:[%s2732_s11 + $0x280] ss:$16 sps:$4 sm:$0xff]  }
  0x78   : > { %v2270_v21 = vld [vmem:[%s2732_s11 + $0x288] ss:$16 sps:$4 sm:$0xff]   ;;  %v2275_v22 = vld [vmem:[%s2732_s11 + $0x2a4] ss:$16 sps:$4 sm:$0xff]   ;;  %v2278_v23 = vld [vmem:[%s2732_s11 + $0x2ac] ss:$16 sps:$4 sm:$0xff]  }
  0x79   : > { %v2273_v24 = vld [vmem:[%s2732_s11 + $0x2a0] ss:$16 sps:$4 sm:$0xff]   ;;  %v2276_v25 = vld [vmem:[%s2732_s11 + $0x2a8] ss:$16 sps:$4 sm:$0xff]   ;;  %v2281_v26 = vld [vmem:[%s2732_s11 + $0x2c4] ss:$16 sps:$4 sm:$0xff]  }
  0x7a   : > { %1373 = vmatpush1.bf16.msra.mxu0 %v2190_v31  ;;  %1459 = vmatpush1.bf16.msra.mxu1 %v2191_v32  ;;  %v2284_v27 = vld [vmem:[%s2732_s11 + $0x2cc] ss:$16 sps:$4 sm:$0xff]   ;;  %v2279_v29 = vld [vmem:[%s2732_s11 + $0x2c0] ss:$16 sps:$4 sm:$0xff]   ;;  %v2282_v30 = vld [vmem:[%s2732_s11 + $0x2c8] ss:$16 sps:$4 sm:$0xff]  }
  0x7b   : > { %1374 = vmatprep.subr.bf16.mxu0 %v2192_v33  ;;  %1460 = vmatprep.subr.bf16.mxu1 %v2194_v34  ;;  %v2341_v28 = vld [vmem:[%s2953_s0 + $0xc] ss:$16 sps:$4 sm:$0xff]   ;;  %v2287_v31 = vld [vmem:[%s2732_s11 + $0x2e4] ss:$16 sps:$4 sm:$0xff]   ;;  %v2285_v33 = vld [vmem:[%s2732_s11 + $0x2e0] ss:$16 sps:$4 sm:$0xff]  }
  0x7c   : > { %v2290_v32 = vld [vmem:[%s2732_s11 + $0x2ec] ss:$16 sps:$4 sm:$0xff]   ;;  %v2288_v34 = vld [vmem:[%s2732_s11 + $0x2e8] ss:$16 sps:$4 sm:$0xff]   ;;  %s2966_s26 = smov (!%p536_p11, %s1946_s26), 7  ;;  %s1945_s8 = sshll.u32 %s490_s7, 5 }
  0x7d   : > { %s538_s29 = scalar_lea.vmem %s2955_s2, %s2966_s26  ;;  %s543_s6 = scalar_lea.vmem %s2956_s3, %s2966_s26 }
  0x7e   : > { %1375 = vmatpush1.bf16.msra.mxu0 %v2196_v35  ;;  %1461 = vmatpush1.bf16.msra.mxu1 %v2197_v36  ;;  %v2293_v35 = vld [vmem:[%s2732_s11 + $0x304] ss:$16 sps:$4 sm:$0xff]   ;;  %v2296_v36 = vld [vmem:[%s2732_s11 + $0x30c] ss:$16 sps:$4 sm:$0xff]   ;;  %s526_s9 = scalar_lea.vmem [#allocation4], %s1945_s8  ;;  %s2094_s15 = sshll.u32 (%p2451_p6), %s2380_s17, 4 }
  0x7f   : > { %1376 = vmatprep.subr.bf16.mxu0 %v2198_v37  ;;  %1462 = vmatprep.subr.bf16.mxu1 %v2200_v38  ;;  %v2291_v37 = vld [vmem:[%s2732_s11 + $0x300] ss:$16 sps:$4 sm:$0xff]   ;;  %v2294_v38 = vld [vmem:[%s2732_s11 + $0x308] ss:$16 sps:$4 sm:$0xff]  }
  0x82   : > { %1377 = vmatpush1.bf16.msra.mxu0 %v2202_v39  ;;  %1463 = vmatpush1.bf16.msra.mxu1 %v2203_v40  ;;  %v2299_v39 = vld [vmem:[%s2732_s11 + $0x324] ss:$16 sps:$4 sm:$0xff]   ;;  %v2302_v40 = vld [vmem:[%s2732_s11 + $0x32c] ss:$16 sps:$4 sm:$0xff]  }
  0x83   : > { %1378 = vmatprep.subr.bf16.mxu0 %v2204_v41  ;;  %1464 = vmatprep.subr.bf16.mxu1 %v2206_v42  ;;  %v2297_v41 = vld [vmem:[%s2732_s11 + $0x320] ss:$16 sps:$4 sm:$0xff]   ;;  %v2300_v42 = vld [vmem:[%s2732_s11 + $0x328] ss:$16 sps:$4 sm:$0xff]  }
  0x86   : > { %1379 = vmatpush1.bf16.msra.mxu0 %v2208_v43  ;;  %1465 = vmatpush1.bf16.msra.mxu1 %v2209_v44  ;;  %v2305_v43 = vld [vmem:[%s2732_s11 + $0x344] ss:$16 sps:$4 sm:$0xff]   ;;  %v2308_v44 = vld [vmem:[%s2732_s11 + $0x34c] ss:$16 sps:$4 sm:$0xff]  }
  0x87   : > { %1380 = vmatprep.subr.bf16.mxu0 %v2210_v45  ;;  %1466 = vmatprep.subr.bf16.mxu1 %v2212_v46  ;;  %v2303_v45 = vld [vmem:[%s2732_s11 + $0x340] ss:$16 sps:$4 sm:$0xff]   ;;  %v2306_v46 = vld [vmem:[%s2732_s11 + $0x348] ss:$16 sps:$4 sm:$0xff]  }
  0x8a   : > { %1381 = vmatpush1.bf16.msra.mxu0 %v2214_v47  ;;  %1467 = vmatpush1.bf16.msra.mxu1 %v2215_v48  ;;  %v2311_v47 = vld [vmem:[%s2732_s11 + $0x364] ss:$16 sps:$4 sm:$0xff]   ;;  %v2314_v48 = vld [vmem:[%s2732_s11 + $0x36c] ss:$16 sps:$4 sm:$0xff]  }
  0x8b   : > { %1382 = vmatprep.subr.bf16.mxu0 %v2216_v49  ;;  %1468 = vmatprep.subr.bf16.mxu1 %v2218_v50  ;;  %v2309_v49 = vld [vmem:[%s2732_s11 + $0x360] ss:$16 sps:$4 sm:$0xff]   ;;  %v2312_v50 = vld [vmem:[%s2732_s11 + $0x368] ss:$16 sps:$4 sm:$0xff]  }
  0x8e   : > { %1383 = vmatpush1.bf16.msra.mxu0 %v2220_v51  ;;  %1469 = vmatpush1.bf16.msra.mxu1 %v2221_v52  ;;  %v2317_v51 = vld [vmem:[%s2732_s11 + $0x384] ss:$16 sps:$4 sm:$0xff]   ;;  %v2320_v52 = vld [vmem:[%s2732_s11 + $0x38c] ss:$16 sps:$4 sm:$0xff]  }
  0x8f   : > { %1384 = vmatprep.subr.bf16.mxu0 %v2222_v53  ;;  %1470 = vmatprep.subr.bf16.mxu1 %v2224_v54  ;;  %v2315_v53 = vld [vmem:[%s2732_s11 + $0x380] ss:$16 sps:$4 sm:$0xff]   ;;  %v2318_v54 = vld [vmem:[%s2732_s11 + $0x388] ss:$16 sps:$4 sm:$0xff]  }
  0x92   : > { %1385 = vmatpush1.bf16.msra.mxu0 %v2226_v55  ;;  %1471 = vmatpush1.bf16.msra.mxu1 %v2227_v56  ;;  %v2323_v55 = vld [vmem:[%s2732_s11 + $0x3a4] ss:$16 sps:$4 sm:$0xff]   ;;  %v2326_v56 = vld [vmem:[%s2732_s11 + $0x3ac] ss:$16 sps:$4 sm:$0xff]  }
  0x93   : > { %1386 = vmatprep.subr.bf16.mxu0 %v2228_v57  ;;  %1472 = vmatprep.subr.bf16.mxu1 %v2230_v58  ;;  %v2321_v57 = vld [vmem:[%s2732_s11 + $0x3a0] ss:$16 sps:$4 sm:$0xff]   ;;  %v2324_v58 = vld [vmem:[%s2732_s11 + $0x3a8] ss:$16 sps:$4 sm:$0xff]  }
  0x96   : > { %1387 = vmatpush1.bf16.msra.mxu0 %v2232_v59  ;;  %1473 = vmatpush1.bf16.msra.mxu1 %v2233_v60  ;;  %v2329_v59 = vld [vmem:[%s2732_s11 + $0x3c4] ss:$16 sps:$4 sm:$0xff]   ;;  %v2332_v60 = vld [vmem:[%s2732_s11 + $0x3cc] ss:$16 sps:$4 sm:$0xff]  }
  0x97   : > { %1388 = vmatprep.subr.bf16.mxu0 %v2234_v61  ;;  %1474 = vmatprep.subr.bf16.mxu1 %v2236_v62  ;;  %v2327_v61 = vld [vmem:[%s2732_s11 + $0x3c0] ss:$16 sps:$4 sm:$0xff]   ;;  %v2330_v62 = vld [vmem:[%s2732_s11 + $0x3c8] ss:$16 sps:$4 sm:$0xff]  }
  0x9a   : > { %1389 = vmatpush1.bf16.msra.mxu0 %v2238_v63  ;;  %1475 = vmatpush1.bf16.msra.mxu1 %v2239_v0  ;;  %v2335_v63 = vld [vmem:[%s2732_s11 + $0x3e4] ss:$16 sps:$4 sm:$0xff]   ;;  %v2338_v0 = vld [vmem:[%s2732_s11 + $0x3ec] ss:$16 sps:$4 sm:$0xff]  }
  0x9b   : > { %1401 = vmatprep.subr.bf16.mxu0 %v2245_v1  ;;  %1487 = vmatprep.subr.bf16.mxu1 %v2248_v2  ;;  %v2333_v1 = vld [vmem:[%s2732_s11 + $0x3e0] ss:$16 sps:$4 sm:$0xff]   ;;  %v2336_v2 = vld [vmem:[%s2732_s11 + $0x3e8] ss:$16 sps:$4 sm:$0xff]   ;;  %s1810_s11 = scalar_lea.vmem (%p2451_p6), %s2957_s4, %s2094_s15 }
  0x9d   : > { %1391 = vmatmul.mubr.bf16.vlgmr.msra.gmra.mrb[0].mxu0 %v2240_v3  ;;  %1477 = vmatmul.mubr.bf16.vlgmr.msra.gmra.mrb[0].mxu1 %v2240_v3  ;;  %v2339_v3 = vld [vmem:[%s2953_s0 + $0x8] ss:$16 sps:$4 sm:$0xff]  }
  0x9e   : > { %1402 = vmatpush1.bf16.msra.mxu0 %v2243_v4  ;;  %1488 = vmatpush1.bf16.msra.mxu1 %v2246_v5 }
  0x9f   : > { %1403 = vmatprep.subr.bf16.mxu0 %v2251_v6  ;;  %1489 = vmatprep.subr.bf16.mxu1 %v2254_v7 }
  0xa0   : > { %1433 = vmatprep.mubr.bf16.mxu0 %v2341_v28  ;;  %1519 = vmatprep.mubr.bf16.mxu1 %v2341_v28 }
  0xa2   : > { %1404 = vmatpush1.bf16.msra.mxu0 %v2249_v8  ;;  %1490 = vmatpush1.bf16.msra.mxu1 %v2252_v9 }
  0xa3   : > { %1405 = vmatprep.subr.bf16.mxu0 %v2257_v10  ;;  %1491 = vmatprep.subr.bf16.mxu1 %v2260_v11 }
  0xa6   : > { %1406 = vmatpush1.bf16.msra.mxu0 %v2255_v12  ;;  %1492 = vmatpush1.bf16.msra.mxu1 %v2258_v13 }
  0xa7   : > { %1407 = vmatprep.subr.bf16.mxu0 %v2263_v14  ;;  %1493 = vmatprep.subr.bf16.mxu1 %v2266_v15 }
  0xaa   : > { %1408 = vmatpush1.bf16.msra.mxu0 %v2261_v16  ;;  %1494 = vmatpush1.bf16.msra.mxu1 %v2264_v17 }
  0xab   : > { %1409 = vmatprep.subr.bf16.mxu0 %v2269_v18  ;;  %1495 = vmatprep.subr.bf16.mxu1 %v2272_v19 }
  0xae   : > { %1410 = vmatpush1.bf16.msra.mxu0 %v2267_v20  ;;  %1496 = vmatpush1.bf16.msra.mxu1 %v2270_v21 }
  0xaf   : > { %1411 = vmatprep.subr.bf16.mxu0 %v2275_v22  ;;  %1497 = vmatprep.subr.bf16.mxu1 %v2278_v23 }
  0xb2   : > { %1412 = vmatpush1.bf16.msra.mxu0 %v2273_v24  ;;  %1498 = vmatpush1.bf16.msra.mxu1 %v2276_v25 }
  0xb3   : > { %1413 = vmatprep.subr.bf16.mxu0 %v2281_v26  ;;  %1499 = vmatprep.subr.bf16.mxu1 %v2284_v27 }
  0xb6   : > { %1414 = vmatpush1.bf16.msra.mxu0 %v2279_v29  ;;  %1500 = vmatpush1.bf16.msra.mxu1 %v2282_v30 }
  0xb7   : > { %1415 = vmatprep.subr.bf16.mxu0 %v2287_v31  ;;  %1501 = vmatprep.subr.bf16.mxu1 %v2290_v32 }
  0xba   : > { %1416 = vmatpush1.bf16.msra.mxu0 %v2285_v33  ;;  %1502 = vmatpush1.bf16.msra.mxu1 %v2288_v34 }
  0xbb   : > { %1417 = vmatprep.subr.bf16.mxu0 %v2293_v35  ;;  %1503 = vmatprep.subr.bf16.mxu1 %v2296_v36 }
  0xbe   : > { %1418 = vmatpush1.bf16.msra.mxu0 %v2291_v37  ;;  %1504 = vmatpush1.bf16.msra.mxu1 %v2294_v38 }
  0xbf   : > { %1419 = vmatprep.subr.bf16.mxu0 %v2299_v39  ;;  %1505 = vmatprep.subr.bf16.mxu1 %v2302_v40 }
  0xc2   : > { %1420 = vmatpush1.bf16.msra.mxu0 %v2297_v41  ;;  %1506 = vmatpush1.bf16.msra.mxu1 %v2300_v42 }
  0xc3   : > { %1421 = vmatprep.subr.bf16.mxu0 %v2305_v43  ;;  %1507 = vmatprep.subr.bf16.mxu1 %v2308_v44 }
  0xc6   : > { %1422 = vmatpush1.bf16.msra.mxu0 %v2303_v45  ;;  %1508 = vmatpush1.bf16.msra.mxu1 %v2306_v46 }
  0xc7   : > { %1423 = vmatprep.subr.bf16.mxu0 %v2311_v47  ;;  %1509 = vmatprep.subr.bf16.mxu1 %v2314_v48 }
  0xca   : > { %1424 = vmatpush1.bf16.msra.mxu0 %v2309_v49  ;;  %1510 = vmatpush1.bf16.msra.mxu1 %v2312_v50 }
  0xcb   : > { %1425 = vmatprep.subr.bf16.mxu0 %v2317_v51  ;;  %1511 = vmatprep.subr.bf16.mxu1 %v2320_v52 }
  0xce   : > { %1426 = vmatpush1.bf16.msra.mxu0 %v2315_v53  ;;  %1512 = vmatpush1.bf16.msra.mxu1 %v2318_v54 }
  0xcf   : > { %1427 = vmatprep.subr.bf16.mxu0 %v2323_v55  ;;  %1513 = vmatprep.subr.bf16.mxu1 %v2326_v56 }
  0xd2   : > { %1428 = vmatpush1.bf16.msra.mxu0 %v2321_v57  ;;  %1514 = vmatpush1.bf16.msra.mxu1 %v2324_v58 }
  0xd3   : > { %1429 = vmatprep.subr.bf16.mxu0 %v2329_v59  ;;  %1515 = vmatprep.subr.bf16.mxu1 %v2332_v60 }
  0xd6   : > { %1430 = vmatpush1.bf16.msra.mxu0 %v2327_v61  ;;  %1516 = vmatpush1.bf16.msra.mxu1 %v2330_v62 }
  0xd7   : > { %1431 = vmatprep.subr.bf16.mxu0 %v2335_v63  ;;  %1517 = vmatprep.subr.bf16.mxu1 %v2338_v0 }
  0xda   : > { %1432 = vmatpush1.bf16.msra.mxu0 %v2333_v1  ;;  %1518 = vmatpush1.bf16.msra.mxu1 %v2336_v2 }
  0xdd   : > { %1434 = vmatmul.mubr.bf16.vlgmr.msra.gmra.mrb[0].mxu0 %v2339_v3  ;;  %1520 = vmatmul.mubr.bf16.vlgmr.msra.gmra.mrb[0].mxu1 %v2339_v3 }
 0x1b0   : > { %v2871_v4 = vpop.f32.mrb[0].mxu0  ;;  %v2873_v5 = vpop.f32.mrb[0].mxu1 }
 0x1b1   : > { %v2875_v6 = vpop.f32.mrb[1].mxu0  ;;  %v2877_v7 = vpop.f32.mrb[1].mxu1  ;;  %v1587_v8 = vmul.f32 %v2871_v4, %v2871_v4  ;;  %v1589_v9 = vmul.f32 %v2873_v5, %v2873_v5 }
 0x1b2   : > { %v1588_v10 = vmul.f32 %v2875_v6, %v2875_v6  ;;  %v1590_v11 = vmul.f32 %v2877_v7, %v2877_v7  ;;  %v2887_v12 = vpop.f32.mrb[2].mxu0  ;;  %v2889_v13 = vpop.f32.mrb[2].mxu1 }
 0x1b3   : > { %v1559_v14 = vadd.f32 %v2887_v12, %v2871_v4  ;;  %v1591_v15 = vmul.f32 %v2887_v12, %v2887_v12  ;;  %v1573_v16 = vadd.f32 %v2889_v13, %v2873_v5  ;;  %v1593_v17 = vmul.f32 %v2889_v13, %v2889_v13  ;;  %v2899_v18 = vpop.f32.mrb[3].mxu0  ;;  %v2901_v19 = vpop.f32.mrb[3].mxu1 }
 0x1b4   : > { %v1566_v20 = vadd.f32 %v2899_v18, %v2875_v6  ;;  %v1592_v21 = vmul.f32 %v2899_v18, %v2899_v18  ;;  %v1580_v22 = vadd.f32 %v2901_v19, %v2877_v7  ;;  %v1594_v23 = vmul.f32 %v2901_v19, %v2901_v19 }
 0x1b5   : > { %v1560_v24 = vrot.slane %v1559_v14, 4  ;;  %v1595_v25 = vadd.f32 %v1591_v15, %v1587_v8  ;;  %v1574_v26 = vrot.slane %v1573_v16, 4  ;;  %v1609_v27 = vadd.f32 %v1593_v17, %v1589_v9 }
 0x1b6   : > { %v1567_v28 = vrot.slane %v1566_v20, 4  ;;  %v1602_v29 = vadd.f32 %v1592_v21, %v1588_v10  ;;  %v1581_v30 = vrot.slane %v1580_v22, 4  ;;  %v1616_v31 = vadd.f32 %v1594_v23, %v1590_v11 }
 0x1b7   : > { %v1561_v32 = vadd.f32 %v1560_v24, %v1559_v14  ;;  %v1596_v33 = vrot.slane %v1595_v25, 4  ;;  %v1575_v34 = vadd.f32 %v1574_v26, %v1573_v16  ;;  %v1610_v35 = vrot.slane %v1609_v27, 4 }
 0x1b8   : > { %v1568_v36 = vadd.f32 %v1567_v28, %v1566_v20  ;;  %v1603_v37 = vrot.slane %v1602_v29, 4  ;;  %v1582_v38 = vadd.f32 %v1581_v30, %v1580_v22  ;;  %v1617_v39 = vrot.slane %v1616_v31, 4 }
 0x1b9   : > { %v1562_v40 = vrot.slane %v1561_v32, 2  ;;  %v1597_v41 = vadd.f32 %v1596_v33, %v1595_v25  ;;  %v1576_v42 = vrot.slane %v1575_v34, 2  ;;  %v1611_v43 = vadd.f32 %v1610_v35, %v1609_v27 }
 0x1ba   : > { %v1569_v44 = vrot.slane %v1568_v36, 2  ;;  %v1604_v45 = vadd.f32 %v1603_v37, %v1602_v29  ;;  %v1583_v46 = vrot.slane %v1582_v38, 2  ;;  %v1618_v47 = vadd.f32 %v1617_v39, %v1616_v31 }
 0x1bb   : > { %v1563_v48 = vadd.f32 %v1562_v40, %v1561_v32  ;;  %v1598_v49 = vrot.slane %v1597_v41, 2  ;;  %v1577_v50 = vadd.f32 %v1576_v42, %v1575_v34  ;;  %v1612_v51 = vrot.slane %v1611_v43, 2 }
 0x1bc   : > { %v1570_v52 = vadd.f32 %v1569_v44, %v1568_v36  ;;  %v1605_v53 = vrot.slane %v1604_v45, 2  ;;  %v1584_v54 = vadd.f32 %v1583_v46, %v1582_v38  ;;  %v1619_v55 = vrot.slane %v1618_v47, 2 }
 0x1bd   : > { %v1564_v56 = vrot.slane %v1563_v48, 1  ;;  %v1599_v57 = vadd.f32 %v1598_v49, %v1597_v41  ;;  %v1578_v58 = vrot.slane %v1577_v50, 1  ;;  %v1613_v59 = vadd.f32 %v1612_v51, %v1611_v43 }
 0x1be   : > { %v1571_v60 = vrot.slane %v1570_v52, 1  ;;  %v1606_v61 = vadd.f32 %v1605_v53, %v1604_v45  ;;  %v1585_v62 = vrot.slane %v1584_v54, 1  ;;  %v1620_v63 = vadd.f32 %v1619_v55, %v1618_v47 }
 0x1bf   : > { %v1565_v0 = vadd.f32 %v1564_v56, %v1563_v48  ;;  %v1600_v1 = vrot.slane %v1599_v57, 1  ;;  %v1579_v2 = vadd.f32 %v1578_v58, %v1577_v50  ;;  %v1614_v3 = vrot.slane %v1613_v59, 1 }
 0x1c0   : > { %v1572_v8 = vadd.f32 %v1571_v60, %v1570_v52  ;;  %v1607_v9 = vrot.slane %v1606_v61, 1  ;;  %v1586_v10 = vadd.f32 %v1585_v62, %v1584_v54  ;;  %v1621_v11 = vrot.slane %v1620_v63, 1 }
 0x1c1   : > { %v1601_v14 = vadd.f32 %v1600_v1, %v1599_v57  ;;  %v1623_v15 = vmul.f32 0.125, %v1565_v0  ;;  %v1615_v16 = vadd.f32 %v1614_v3, %v1613_v59  ;;  %v1625_v17 = vmul.f32 0.125, %v1579_v2  ;;  %v1557_v59 = vld [vmem:[%s538_s29] sm:$0xf] }
 0x1c2   : > { %v1608_v20 = vadd.f32 %v1607_v9, %v1606_v61  ;;  %v1624_v21 = vmul.f32 0.125, %v1572_v8  ;;  %v1622_v22 = vadd.f32 %v1621_v11, %v1620_v63  ;;  %v1626_v23 = vmul.f32 0.125, %v1586_v10 }
 0x1c3   : > { %v1627_v24 = vmul.f32 0.125, %v1601_v14  ;;  %v1631_v25 = vmul.f32 %v1623_v15, %v1623_v15  ;;  %v1629_v26 = vmul.f32 0.125, %v1615_v16  ;;  %v1633_v27 = vmul.f32 %v1625_v17, %v1625_v17 }
 0x1c4   : > { %v1628_v28 = vmul.f32 0.125, %v1608_v20  ;;  %v1632_v29 = vmul.f32 %v1624_v21, %v1624_v21  ;;  %v1630_v30 = vmul.f32 0.125, %v1622_v22  ;;  %v1634_v31 = vmul.f32 %v1626_v23, %v1626_v23 }
 0x1c5   : > { %v1635_v32 = vsub.f32 %v1627_v24, %v1631_v25  ;;  %v1637_v33 = vsub.f32 %v1629_v26, %v1633_v27  ;;  %v2390_v44 = vmov 1966171168   ;;  %v1660_v46 = vlaneseq }
 0x1c6   : > { %v1636_v34 = vsub.f32 %v1628_v28, %v1632_v29  ;;  %v1638_v35 = vsub.f32 %v1630_v30, %v1634_v31  ;;  %v1658_v45 = vunpack.c.l.s4 %v2390_v44 }
 0x1c7   : > { %v1639_v36 = vmax.f32 %v1635_v32, 0.0  ;;  %v1641_v37 = vmax.f32 %v1637_v33, 0.0  ;;  %v1661_v48 = vshrl.u32 %v1660_v46, 7 }
 0x1c8   : > { %v1640_v38 = vmax.f32 %v1636_v34, 0.0  ;;  %v1642_v39 = vmax.f32 %v1638_v35, 0.0  ;;  %v1659_v47 = vunpack.c.0.s8 %v1658_v45 }
 0x1c9   : > { %v1643_v40 = vadd.f32 1e-05, %v1639_v36  ;;  %v1645_v41 = vadd.f32 1e-05, %v1641_v37  ;;  %v1684_v60 = vsub.s32 0, %v1661_v48  ;;  %v1688_v62 = vsub.s32 1, %v1661_v48 }
 0x1ca   : > { %v1644_v42 = vadd.f32 1e-05, %v1640_v38  ;;  %v1646_v43 = vadd.f32 1e-05, %v1642_v39  ;;  %v1662_v51 = vsub.s32 %v1659_v47, %v1661_v48  ;;  %v1692_v63 = vsub.s32 2, %v1661_v48 }
 0x1cb   : > { %2342 = vrsqrt.f32 %v1643_v40  ;;  %v1696_v0 = vsub.s32 3, %v1661_v48 }
 0x1cc   : > { %2344 = vrsqrt.f32 %v1645_v41 }
 0x1cd   : > { %2346 = vrsqrt.f32 %v1644_v42 }
 0x1ce   : > { %2348 = vrsqrt.f32 %v1646_v43 }
 0x1d5   : > { %v2343_v49 = vpop.eup %2342 }
 0x1d6   : > { %v2345_v50 = vpop.eup %2344 }
 0x1d7   : > { %v2347_v52 = vpop.eup %2346 }
 0x1d8   : > { %v2349_v53 = vpop.eup %2348  ;;  %v1655_v54 = vcombine.low %v2343_v49, %v2347_v52 }
 0x1d9   : > { %v1656_v55 = vcombine.low %v2345_v50, %v2349_v53 }
 0x1da   : > { %v1663_v56 = vrot.slane %v1655_v54, %v1662_v51 }
 0x1db   : > { %v1670_v57 = vrot.slane %v1656_v55, %v1662_v51 }
 0x1dd   : > { %v1671_v58 = vcombine.low %v1663_v56, %v1670_v57 }
 0x1df   : > { %v1678_v61 = vrot.slane %v1671_v58, %v1662_v51 }
 0x1e1   : > { %v1680_v1 = vmul.f32 %v1678_v61, %v1557_v59 }
 0x1e3   : > { %v1685_v2 = vrot.slane %v1680_v1, %v1684_v60  ;;  %v1689_v3 = vrot.slane %v1680_v1, %v1688_v62  ;;  %v1693_v8 = vrot.slane %v1680_v1, %v1692_v63  ;;  %v1697_v9 = vrot.slane %v1680_v1, %v1696_v0 }
 0x1e5   : > { %v1702_v10 = vmul.f32 %v1685_v2, %v1623_v15  ;;  %v1703_v11 = vmul.f32 %v1689_v3, %v1624_v21  ;;  %v1704_v14 = vmul.f32 %v1693_v8, %v1625_v17  ;;  %v1705_v16 = vmul.f32 %v1697_v9, %v1626_v23 }
 0x1e6   : > { %v1736_v20 = vmul.f32 %v1685_v2, %v2871_v4  ;;  %v1737_v22 = vmul.f32 %v1689_v3, %v2875_v6  ;;  %v1738_v24 = vmul.f32 %v1693_v8, %v2873_v5  ;;  %v1739_v25 = vmul.f32 %v1697_v9, %v2877_v7  ;;  %v1558_v5 = vld [vmem:[%s543_s6] sm:$0xf] }
 0x1e7   : > { %v1710_v26 = vcombine.low %v1702_v10, %v1703_v11  ;;  %v1711_v27 = vcombine.low %v1704_v14, %v1705_v16  ;;  %v1740_v28 = vmul.f32 %v1685_v2, %v2887_v12  ;;  %v1741_v29 = vmul.f32 %v1689_v3, %v2899_v18 }
 0x1e8   : > { %v1742_v15 = vmul.f32 %v1693_v8, %v2889_v13  ;;  %v1743_v17 = vmul.f32 %v1697_v9, %v2901_v19 }
 0x1e9   : > { %v1718_v4 = vrot.slane %v1710_v26, %v1662_v51  ;;  %v1725_v6 = vrot.slane %v1711_v27, %v1662_v51 }
 0x1eb   : > { %v1726_v21 = vcombine.low %v1718_v4, %v1725_v6 }
 0x1ed   : > { %v1733_v23 = vrot.slane %v1726_v21, %v1662_v51 }
 0x1ef   : > { %v1735_v7 = vsub.f32 %v1558_v5, %v1733_v23 }
 0x1f1   : > { %v1748_v30 = vrot.slane %v1735_v7, %v1684_v60  ;;  %v1752_v12 = vrot.slane %v1735_v7, %v1688_v62  ;;  %v1756_v31 = vrot.slane %v1735_v7, %v1692_v63  ;;  %v1760_v18 = vrot.slane %v1735_v7, %v1696_v0 }
 0x1f2   : > { %1807 = sbr.rel (!%p2451_p6) target bundleno = 513 (0x201), region = 71 }
 0x1f3   : > { %v1765_v32 = vadd.f32 %v1748_v30, %v1736_v20  ;;  %v1766_v13 = vadd.f32 %v1752_v12, %v1737_v22  ;;  %v1767_v33 = vadd.f32 %v1756_v31, %v1738_v24  ;;  %v1768_v19 = vadd.f32 %v1760_v18, %v1739_v25 }
 0x1f4   : > { %v1769_v34 = vadd.f32 %v1748_v30, %v1740_v28  ;;  %v1770_v35 = vadd.f32 %v1752_v12, %v1741_v29  ;;  %v1771_v36 = vadd.f32 %v1756_v31, %v1742_v15  ;;  %v1772_v37 = vadd.f32 %v1760_v18, %v1743_v17 }
 0x1f5   : > { %v2090_v38 = vpack.c.bf16 %v1766_v13, %v1765_v32  ;;  %v2091_v39 = vpack.c.bf16 %v1768_v19, %v1767_v33 }
 0x1f6   : > { %v2092_v40 = vpack.c.bf16 %v1770_v35, %v1769_v34  ;;  %v2093_v41 = vpack.c.bf16 %v1772_v37, %v1771_v36 }
 0x1f7   : > { %1797 = vst [vmem:[%s526_s9] sm:$0xff] %v2090_v38  ;;  %1798 = vst [vmem:[%s526_s9 + $0x8] sm:$0xff] %v2091_v39 }
 0x1f8   : > { %1799 = vst [vmem:[%s526_s9 + $0x10] sm:$0xff] %v2092_v40  ;;  %1800 = vst [vmem:[%s526_s9 + $0x18] sm:$0xff] %v2093_v41 }
 0x1fe   : > { %v1823_v42 = vld [vmem:[%s526_s9] sm:$0xff]  ;;  %v1825_v43 = vld [vmem:[%s526_s9 + $0x8] sm:$0xff] }
 0x1ff   : > { %v1827_v44 = vld [vmem:[%s526_s9 + $0x10] sm:$0xff]  ;;  %v1829_v45 = vld [vmem:[%s526_s9 + $0x18] sm:$0xff]  ;;  %1824 = vst [vmem:[%s1810_s11] sm:$0xff] %v1823_v42  ;;  %1826 = vst [vmem:[%s1810_s11 + $0x8] sm:$0xff] %v1825_v43 }
 0x200   : > { %1828 = vst [vmem:[%s1810_s11 + $0x20] sm:$0xff] %v1827_v44  ;;  %1830 = vst [vmem:[%s1810_s11 + $0x28] sm:$0xff] %v1829_v45 }
 0x201 PF: > { %s14_s19 = sadd.s32 1, %s2388_s19   ;;  %s2959_s15 = smov %s2376_s16 }
 0x202   : > { %p11_p12 = scmp.ge.s32.totalorder %s14_s19, 4   ;;  %s2960_s16 = smov %s2456_s25 }
 0x203   : > { %s2961_s17 = smov %s2384_s18  ;;  %s2962_s18 = smov %s2964_s20 }
 0x204   :  { %13 = sbr.rel (!%p11_p12) target bundleno = 3 (0x3), region = 134 }

// kernel: icnet_backbone_forward.103
= control target key start
LH: loop header
LB: loop body
LE: loop exit
PB: predicated region body
PF: predicated region fallthrough
CT: control target
= control target key end

     0   :  { %s1763_s18 = smov 0   ;;  %s1765_s19 = smov 0   ;;  %s2119_s0 = inlined_call_operand.vmem [shape: bf16[16,256], index: 0, kind: input, shape index: {}]   ;;  %s2120_s1 = inlined_call_operand.vmem [shape: bf16[256,1024], index: 1, kind: input, shape index: {}]   ;;  %s2121_s2 = inlined_call_operand.vmem [shape: f32[1,1024], index: 2, kind: input, shape index: {}]   ;;  %s2122_s3 = inlined_call_operand.vmem [shape: f32[1,1024], index: 3, kind: input, shape index: {}]   ;;  %s2123_s4 = inlined_call_operand.vmem [shape: bf16[16,1024], index: 4, kind: input, shape index: {}]   ;;  %s2124_s5 = inlined_call_operand.vmem [shape: bf16[16,1024], index: 5, kind: output, shape index: {}]  }
   0x1   :  { %s1767_s20 = smov 0   ;;  %s1769_s21 = smov 0  }
   0x2   :  { %s1771_s22 = smov 0  }
   0x3 LB: > { %s27_s23 = sadd.s32 1, %s1726_s21  ;;  %s1445_s24 = sadd.s32 4294967295, %s1730_s22   ;;  %s1730_s22 = sphi %s1771_s22, %s15_s22   ;;  %s1726_s21 = sphi %s1769_s21, %s2130_s21   ;;  %s1722_s20 = sphi %s1767_s20, %s2129_s20   ;;  %s1718_s19 = sphi %s1765_s19, %s2128_s19   ;;  %s1714_s18 = sphi %s1763_s18, %s2127_s18  }
   0x4   : > { %p29_p0 = scmp.ge.s32.totalorder %s27_s23, 2  ;;  %p69_p1 = scmp.ne.s32.totalorder %s1718_s19, %s1714_s18 }
   0x5   : > { %p70_p2 = scmp.eq.s32.totalorder %s1730_s22, 0  ;;  %p177_p4 = scmp.eq.s32.totalorder %s1445_s24, 1 }
   0x6   : > { %s2132_s23 = smov (%p29_p0, %s27_s23), 0  ;;  %s62_s27 = sadd.s32 1, %s1718_s19 }
   0x7   : > { %p1795_p3 = por %p70_p2, %p69_p1  ;;  %s58_s26 = ssub.s32 %s1726_s21, %s2132_s23 }
   0x8   : > { %p60_p5 = scmp.eq.s32.totalorder %s58_s26, 0  ;;  %p1802_p6 = por %p177_p4, %p69_p1 }
   0x9   : > { %p1449_p7 = scmp.ge.s32.totalorder %s1730_s22, 2 }
   0xa   : > { %s1807_s29 = scalar_select %p60_p5, %s1718_s19, %s62_s27  }
   0xb   : > { %208 = sbr.rel (%p1449_p7) target bundleno = 61 (0x3d), region = 20 }
  0x12   : > { %211 = sbr.rel (!%p1795_p3) target bundleno = 54 (0x36), region = 24  ;;  %s213_s30 = sand.u32 (%p1795_p3), 1, %s1718_s19  }
  0x13   : > { %s1537_s6 = sshll.u32 (%p1795_p3), %s1726_s21, 4  ;;  %s1450_s7 = sshll.u32 (%p1795_p3), %s213_s30, 9 }
  0x14   : > { %s1817_s10 = scalar_lea.vmem (%p1795_p3), %s2120_s1, %s1537_s6  ;;  %s1822_s11 = scalar_lea.vmem (%p1795_p3), [#allocation3], %s1450_s7 }
  0x15   : > { %v234_v0 = vld [vmem:[%s1817_s10] sm:$0xff] (%p1795_p3)  ;;  %v236_v1 = vld [vmem:[%s1817_s10 + $0x8] sm:$0xff] (%p1795_p3) }
  0x16   : > { %v238_v2 = vld [vmem:[%s1817_s10 + $0x20] sm:$0xff] (%p1795_p3)  ;;  %235 = vst [vmem:[%s1822_s11] sm:$0xff] (%p1795_p3), %v234_v0  ;;  %237 = vst [vmem:[%s1822_s11 + $0x8] sm:$0xff] (%p1795_p3), %v236_v1  ;;  %v240_v3 = vld [vmem:[%s1817_s10 + $0x28] sm:$0xff] (%p1795_p3) }
  0x17   : > { %239 = vst [vmem:[%s1822_s11 + $0x10] sm:$0xff] (%p1795_p3), %v238_v2  ;;  %v242_v4 = vld [vmem:[%s1817_s10 + $0x40] sm:$0xff] (%p1795_p3)  ;;  %v244_v5 = vld [vmem:[%s1817_s10 + $0x48] sm:$0xff] (%p1795_p3)  ;;  %241 = vst [vmem:[%s1822_s11 + $0x18] sm:$0xff] (%p1795_p3), %v240_v3 }
  0x18   : > { %243 = vst [vmem:[%s1822_s11 + $0x20] sm:$0xff] (%p1795_p3), %v242_v4  ;;  %245 = vst [vmem:[%s1822_s11 + $0x28] sm:$0xff] (%p1795_p3), %v244_v5  ;;  %v246_v6 = vld [vmem:[%s1817_s10 + $0x60] sm:$0xff] (%p1795_p3)  ;;  %v248_v7 = vld [vmem:[%s1817_s10 + $0x68] sm:$0xff] (%p1795_p3) }
  0x19   : > { %v250_v8 = vld [vmem:[%s1817_s10 + $0x80] sm:$0xff]  ;;  %247 = vst [vmem:[%s1822_s11 + $0x30] sm:$0xff] %v246_v6  ;;  %249 = vst [vmem:[%s1822_s11 + $0x38] sm:$0xff] %v248_v7  ;;  %v252_v9 = vld [vmem:[%s1817_s10 + $0x88] sm:$0xff] }
  0x1a   : > { %251 = vst [vmem:[%s1822_s11 + $0x40] sm:$0xff] %v250_v8  ;;  %v254_v10 = vld [vmem:[%s1817_s10 + $0xa0] sm:$0xff]  ;;  %v256_v11 = vld [vmem:[%s1817_s10 + $0xa8] sm:$0xff]  ;;  %253 = vst [vmem:[%s1822_s11 + $0x48] sm:$0xff] %v252_v9 }
  0x1b   : > { %255 = vst [vmem:[%s1822_s11 + $0x50] sm:$0xff] %v254_v10  ;;  %257 = vst [vmem:[%s1822_s11 + $0x58] sm:$0xff] %v256_v11  ;;  %v258_v12 = vld [vmem:[%s1817_s10 + $0xc0] sm:$0xff]  ;;  %v260_v13 = vld [vmem:[%s1817_s10 + $0xc8] sm:$0xff] }
  0x1c   : > { %v262_v14 = vld [vmem:[%s1817_s10 + $0xe0] sm:$0xff]  ;;  %259 = vst [vmem:[%s1822_s11 + $0x60] sm:$0xff] %v258_v12  ;;  %261 = vst [vmem:[%s1822_s11 + $0x68] sm:$0xff] %v260_v13  ;;  %v264_v15 = vld [vmem:[%s1817_s10 + $0xe8] sm:$0xff] }
  0x1d   : > { %263 = vst [vmem:[%s1822_s11 + $0x70] sm:$0xff] %v262_v14  ;;  %v266_v16 = vld [vmem:[%s1817_s10 + $0x100] sm:$0xff]  ;;  %v268_v17 = vld [vmem:[%s1817_s10 + $0x108] sm:$0xff]  ;;  %265 = vst [vmem:[%s1822_s11 + $0x78] sm:$0xff] %v264_v15 }
  0x1e   : > { %267 = vst [vmem:[%s1822_s11 + $0x80] sm:$0xff] %v266_v16  ;;  %269 = vst [vmem:[%s1822_s11 + $0x88] sm:$0xff] %v268_v17  ;;  %v270_v18 = vld [vmem:[%s1817_s10 + $0x120] sm:$0xff]  ;;  %v272_v19 = vld [vmem:[%s1817_s10 + $0x128] sm:$0xff] }
  0x1f   : > { %v274_v20 = vld [vmem:[%s1817_s10 + $0x140] sm:$0xff]  ;;  %271 = vst [vmem:[%s1822_s11 + $0x90] sm:$0xff] %v270_v18  ;;  %273 = vst [vmem:[%s1822_s11 + $0x98] sm:$0xff] %v272_v19  ;;  %v276_v21 = vld [vmem:[%s1817_s10 + $0x148] sm:$0xff] }
  0x20   : > { %275 = vst [vmem:[%s1822_s11 + $0xa0] sm:$0xff] %v274_v20  ;;  %v278_v22 = vld [vmem:[%s1817_s10 + $0x160] sm:$0xff]  ;;  %v280_v23 = vld [vmem:[%s1817_s10 + $0x168] sm:$0xff]  ;;  %277 = vst [vmem:[%s1822_s11 + $0xa8] sm:$0xff] %v276_v21 }
  0x21   : > { %279 = vst [vmem:[%s1822_s11 + $0xb0] sm:$0xff] %v278_v22  ;;  %281 = vst [vmem:[%s1822_s11 + $0xb8] sm:$0xff] %v280_v23  ;;  %v282_v24 = vld [vmem:[%s1817_s10 + $0x180] sm:$0xff]  ;;  %v284_v25 = vld [vmem:[%s1817_s10 + $0x188] sm:$0xff] }
  0x22   : > { %v286_v26 = vld [vmem:[%s1817_s10 + $0x1a0] sm:$0xff]  ;;  %283 = vst [vmem:[%s1822_s11 + $0xc0] sm:$0xff] %v282_v24  ;;  %285 = vst [vmem:[%s1822_s11 + $0xc8] sm:$0xff] %v284_v25  ;;  %v288_v27 = vld [vmem:[%s1817_s10 + $0x1a8] sm:$0xff] }
  0x23   : > { %287 = vst [vmem:[%s1822_s11 + $0xd0] sm:$0xff] %v286_v26  ;;  %v290_v28 = vld [vmem:[%s1817_s10 + $0x1c0] sm:$0xff]  ;;  %v292_v29 = vld [vmem:[%s1817_s10 + $0x1c8] sm:$0xff]  ;;  %289 = vst [vmem:[%s1822_s11 + $0xd8] sm:$0xff] %v288_v27 }
  0x24   : > { %291 = vst [vmem:[%s1822_s11 + $0xe0] sm:$0xff] %v290_v28  ;;  %293 = vst [vmem:[%s1822_s11 + $0xe8] sm:$0xff] %v292_v29  ;;  %v294_v30 = vld [vmem:[%s1817_s10 + $0x1e0] sm:$0xff]  ;;  %v296_v31 = vld [vmem:[%s1817_s10 + $0x1e8] sm:$0xff] }
  0x25   : > { %v298_v32 = vld [vmem:[%s1817_s10 + $0x200] sm:$0xff]  ;;  %295 = vst [vmem:[%s1822_s11 + $0xf0] sm:$0xff] %v294_v30  ;;  %297 = vst [vmem:[%s1822_s11 + $0xf8] sm:$0xff] %v296_v31  ;;  %v300_v33 = vld [vmem:[%s1817_s10 + $0x208] sm:$0xff] }
  0x26   : > { %299 = vst [vmem:[%s1822_s11 + $0x100] sm:$0xff] %v298_v32  ;;  %v302_v34 = vld [vmem:[%s1817_s10 + $0x220] sm:$0xff]  ;;  %v304_v35 = vld [vmem:[%s1817_s10 + $0x228] sm:$0xff]  ;;  %301 = vst [vmem:[%s1822_s11 + $0x108] sm:$0xff] %v300_v33 }
  0x27   : > { %303 = vst [vmem:[%s1822_s11 + $0x110] sm:$0xff] %v302_v34  ;;  %305 = vst [vmem:[%s1822_s11 + $0x118] sm:$0xff] %v304_v35  ;;  %v306_v36 = vld [vmem:[%s1817_s10 + $0x240] sm:$0xff]  ;;  %v308_v37 = vld [vmem:[%s1817_s10 + $0x248] sm:$0xff] }
  0x28   : > { %v310_v38 = vld [vmem:[%s1817_s10 + $0x260] sm:$0xff]  ;;  %307 = vst [vmem:[%s1822_s11 + $0x120] sm:$0xff] %v306_v36  ;;  %309 = vst [vmem:[%s1822_s11 + $0x128] sm:$0xff] %v308_v37  ;;  %v312_v39 = vld [vmem:[%s1817_s10 + $0x268] sm:$0xff] }
  0x29   : > { %311 = vst [vmem:[%s1822_s11 + $0x130] sm:$0xff] %v310_v38  ;;  %v314_v40 = vld [vmem:[%s1817_s10 + $0x280] sm:$0xff]  ;;  %v316_v41 = vld [vmem:[%s1817_s10 + $0x288] sm:$0xff]  ;;  %313 = vst [vmem:[%s1822_s11 + $0x138] sm:$0xff] %v312_v39 }
  0x2a   : > { %315 = vst [vmem:[%s1822_s11 + $0x140] sm:$0xff] %v314_v40  ;;  %317 = vst [vmem:[%s1822_s11 + $0x148] sm:$0xff] %v316_v41  ;;  %v318_v42 = vld [vmem:[%s1817_s10 + $0x2a0] sm:$0xff]  ;;  %v320_v43 = vld [vmem:[%s1817_s10 + $0x2a8] sm:$0xff] }
  0x2b   : > { %v322_v44 = vld [vmem:[%s1817_s10 + $0x2c0] sm:$0xff]  ;;  %319 = vst [vmem:[%s1822_s11 + $0x150] sm:$0xff] %v318_v42  ;;  %321 = vst [vmem:[%s1822_s11 + $0x158] sm:$0xff] %v320_v43  ;;  %v324_v45 = vld [vmem:[%s1817_s10 + $0x2c8] sm:$0xff] }
  0x2c   : > { %323 = vst [vmem:[%s1822_s11 + $0x160] sm:$0xff] %v322_v44  ;;  %v326_v46 = vld [vmem:[%s1817_s10 + $0x2e0] sm:$0xff]  ;;  %v328_v47 = vld [vmem:[%s1817_s10 + $0x2e8] sm:$0xff]  ;;  %325 = vst [vmem:[%s1822_s11 + $0x168] sm:$0xff] %v324_v45 }
  0x2d   : > { %327 = vst [vmem:[%s1822_s11 + $0x170] sm:$0xff] %v326_v46  ;;  %329 = vst [vmem:[%s1822_s11 + $0x178] sm:$0xff] %v328_v47  ;;  %v330_v48 = vld [vmem:[%s1817_s10 + $0x300] sm:$0xff]  ;;  %v332_v49 = vld [vmem:[%s1817_s10 + $0x308] sm:$0xff] }
  0x2e   : > { %v334_v50 = vld [vmem:[%s1817_s10 + $0x320] sm:$0xff]  ;;  %331 = vst [vmem:[%s1822_s11 + $0x180] sm:$0xff] %v330_v48  ;;  %333 = vst [vmem:[%s1822_s11 + $0x188] sm:$0xff] %v332_v49  ;;  %v336_v51 = vld [vmem:[%s1817_s10 + $0x328] sm:$0xff] }
  0x2f   : > { %335 = vst [vmem:[%s1822_s11 + $0x190] sm:$0xff] %v334_v50  ;;  %v338_v52 = vld [vmem:[%s1817_s10 + $0x340] sm:$0xff]  ;;  %v340_v53 = vld [vmem:[%s1817_s10 + $0x348] sm:$0xff]  ;;  %337 = vst [vmem:[%s1822_s11 + $0x198] sm:$0xff] %v336_v51 }
  0x30   : > { %339 = vst [vmem:[%s1822_s11 + $0x1a0] sm:$0xff] %v338_v52  ;;  %341 = vst [vmem:[%s1822_s11 + $0x1a8] sm:$0xff] %v340_v53  ;;  %v342_v54 = vld [vmem:[%s1817_s10 + $0x360] sm:$0xff]  ;;  %v344_v55 = vld [vmem:[%s1817_s10 + $0x368] sm:$0xff] }
  0x31   : > { %v346_v56 = vld [vmem:[%s1817_s10 + $0x380] sm:$0xff]  ;;  %343 = vst [vmem:[%s1822_s11 + $0x1b0] sm:$0xff] %v342_v54  ;;  %345 = vst [vmem:[%s1822_s11 + $0x1b8] sm:$0xff] %v344_v55  ;;  %v348_v57 = vld [vmem:[%s1817_s10 + $0x388] sm:$0xff] }
  0x32   : > { %347 = vst [vmem:[%s1822_s11 + $0x1c0] sm:$0xff] %v346_v56  ;;  %v350_v58 = vld [vmem:[%s1817_s10 + $0x3a0] sm:$0xff]  ;;  %v352_v59 = vld [vmem:[%s1817_s10 + $0x3a8] sm:$0xff]  ;;  %349 = vst [vmem:[%s1822_s11 + $0x1c8] sm:$0xff] %v348_v57 }
  0x33   : > { %351 = vst [vmem:[%s1822_s11 + $0x1d0] sm:$0xff] %v350_v58  ;;  %353 = vst [vmem:[%s1822_s11 + $0x1d8] sm:$0xff] %v352_v59  ;;  %v354_v60 = vld [vmem:[%s1817_s10 + $0x3c0] sm:$0xff]  ;;  %v356_v61 = vld [vmem:[%s1817_s10 + $0x3c8] sm:$0xff] }
  0x34   : > { %v358_v62 = vld [vmem:[%s1817_s10 + $0x3e0] sm:$0xff]  ;;  %355 = vst [vmem:[%s1822_s11 + $0x1e0] sm:$0xff] %v354_v60  ;;  %357 = vst [vmem:[%s1822_s11 + $0x1e8] sm:$0xff] %v356_v61  ;;  %v360_v63 = vld [vmem:[%s1817_s10 + $0x3e8] sm:$0xff] }
  0x35   : > { %359 = vst [vmem:[%s1822_s11 + $0x1f0] sm:$0xff] %v358_v62  ;;  %361 = vst [vmem:[%s1822_s11 + $0x1f8] sm:$0xff] %v360_v63 }
  0x36 PF: > { %383 = sbr.rel (!%p1795_p3) target bundleno = 61 (0x3d), region = 55  ;;  %s385_s12 = sand.u32 (%p1795_p3), 1, %s1718_s19  }
  0x37   : > { %s1538_s13 = sshll.u32 (%p1795_p3), %s1726_s21, 4  ;;  %s1453_s14 = sshll.u32 (%p1795_p3), %s385_s12, 5 }
  0x38   : > { %s390_s17 = scalar_lea.vmem (%p1795_p3), %s2123_s4, %s1538_s13  ;;  %s387_s24 = scalar_lea.vmem (%p1795_p3), [#allocation4], %s1453_s14 }
  0x39   : > { %v403_v0 = vld [vmem:[%s390_s17] sm:$0xff] (%p1795_p3)  ;;  %v405_v1 = vld [vmem:[%s390_s17 + $0x8] sm:$0xff] (%p1795_p3) }
  0x3a   : > { %v407_v2 = vld [vmem:[%s390_s17 + $0x20] sm:$0xff] (%p1795_p3)  ;;  %404 = vst [vmem:[%s387_s24] sm:$0xff] (%p1795_p3), %v403_v0  ;;  %406 = vst [vmem:[%s387_s24 + $0x8] sm:$0xff] (%p1795_p3), %v405_v1  ;;  %v409_v3 = vld [vmem:[%s390_s17 + $0x28] sm:$0xff] (%p1795_p3) }
  0x3b   : > { %408 = vst [vmem:[%s387_s24 + $0x10] sm:$0xff] (%p1795_p3), %v407_v2  ;;  %410 = vst [vmem:[%s387_s24 + $0x18] sm:$0xff] (%p1795_p3), %v409_v3 }
  0x3d PF: > { %p1456_p8 = scmp.ge.s32.totalorder %s1730_s22, 1  ;;  %p415_p9 = scmp.lt.s32.totalorder %s1730_s22, 3 }
  0x3f   : > { %p416_p10 = pnand %p1456_p8, %p415_p9 }
  0x40   : > { %s422_s25 = sand.u32 (!%p416_p10), 1, %s1714_s18   ;;  %v1683_v4 = vld [vmem:[%s2119_s0 + $0x4] ss:$8 sps:$4 sm:$0xff] (!%p416_p10)   ;;  %s1460_s9 = sshll.u32 (!%p416_p10), %s1722_s20, 2 }
  0x41   : > { %419 = sbr.rel (%p416_p10) target bundleno = 428 (0x1ac), region = 78  ;;  %s1457_s26 = sshll.u32 (!%p416_p10), %s422_s25, 9  ;;  %940 = vmatprep.mubr.bf16.mxu0 (!%p416_p10), %v1683_v4  ;;  %983 = vmatprep.mubr.bf16.mxu1 (!%p416_p10), %v1683_v4 }
  0x42   : > { %s1964_s6 = scalar_lea.vmem (!%p416_p10), [#allocation3], %s1457_s26  ;;  %p481_p11 = scmp.lt.s32.totalorder (!%p416_p10), %s1460_s9, 7 }
  0x43   : > { %v1585_v5 = vld [vmem:[%s1964_s6 + $0x4] ss:$16 sps:$4 sm:$0xff] (!%p416_p10)   ;;  %v1587_v6 = vld [vmem:[%s1964_s6 + $0xc] ss:$16 sps:$4 sm:$0xff] (!%p416_p10)   ;;  %v1589_v7 = vld [vmem:[%s1964_s6] ss:$16 sps:$4 sm:$0xff] (!%p416_p10)  }
  0x44   : > { %908 = vmatprep.subr.bf16.mxu0 (!%p416_p10), %v1585_v5  ;;  %v1590_v8 = vld [vmem:[%s1964_s6 + $0x8] ss:$16 sps:$4 sm:$0xff] (!%p416_p10)   ;;  %951 = vmatprep.subr.bf16.mxu1 (!%p416_p10), %v1587_v6  ;;  %v1591_v9 = vld [vmem:[%s1964_s6 + $0x24] ss:$16 sps:$4 sm:$0xff] (!%p416_p10)   ;;  %v1593_v10 = vld [vmem:[%s1964_s6 + $0x2c] ss:$16 sps:$4 sm:$0xff] (!%p416_p10)  }
  0x45   : > { %909 = vmatpush1.bf16.msra.mxu0 (!%p416_p10), %v1589_v7  ;;  %952 = vmatpush1.bf16.msra.mxu1 (!%p416_p10), %v1590_v8  ;;  %v1595_v11 = vld [vmem:[%s1964_s6 + $0x20] ss:$16 sps:$4 sm:$0xff] (!%p416_p10)   ;;  %v1596_v12 = vld [vmem:[%s1964_s6 + $0x28] ss:$16 sps:$4 sm:$0xff] (!%p416_p10)   ;;  %v1597_v13 = vld [vmem:[%s1964_s6 + $0x44] ss:$16 sps:$4 sm:$0xff] (!%p416_p10)  }
  0x46   : > { %910 = vmatprep.subr.bf16.mxu0 (!%p416_p10), %v1591_v9  ;;  %953 = vmatprep.subr.bf16.mxu1 (!%p416_p10), %v1593_v10  ;;  %v1599_v14 = vld [vmem:[%s1964_s6 + $0x4c] ss:$16 sps:$4 sm:$0xff] (!%p416_p10)   ;;  %v1601_v15 = vld [vmem:[%s1964_s6 + $0x40] ss:$16 sps:$4 sm:$0xff] (!%p416_p10)   ;;  %v1602_v16 = vld [vmem:[%s1964_s6 + $0x48] ss:$16 sps:$4 sm:$0xff] (!%p416_p10)  }
  0x47   : > { %v1603_v17 = vld [vmem:[%s1964_s6 + $0x64] ss:$16 sps:$4 sm:$0xff] (!%p416_p10)   ;;  %v1605_v18 = vld [vmem:[%s1964_s6 + $0x6c] ss:$16 sps:$4 sm:$0xff] (!%p416_p10)   ;;  %v1607_v19 = vld [vmem:[%s1964_s6 + $0x60] ss:$16 sps:$4 sm:$0xff] (!%p416_p10)  }
  0x48   : > { %v1608_v20 = vld [vmem:[%s1964_s6 + $0x68] ss:$16 sps:$4 sm:$0xff]   ;;  %v1609_v21 = vld [vmem:[%s1964_s6 + $0x84] ss:$16 sps:$4 sm:$0xff]   ;;  %v1611_v22 = vld [vmem:[%s1964_s6 + $0x8c] ss:$16 sps:$4 sm:$0xff]  }
  0x49   : > { %911 = vmatpush1.bf16.msra.mxu0 %v1595_v11  ;;  %954 = vmatpush1.bf16.msra.mxu1 %v1596_v12  ;;  %v1613_v23 = vld [vmem:[%s1964_s6 + $0x80] ss:$16 sps:$4 sm:$0xff]   ;;  %v1614_v24 = vld [vmem:[%s1964_s6 + $0x88] ss:$16 sps:$4 sm:$0xff]   ;;  %v1615_v25 = vld [vmem:[%s1964_s6 + $0xa4] ss:$16 sps:$4 sm:$0xff]  }
  0x4a   : > { %912 = vmatprep.subr.bf16.mxu0 %v1597_v13  ;;  %955 = vmatprep.subr.bf16.mxu1 %v1599_v14  ;;  %v1617_v26 = vld [vmem:[%s1964_s6 + $0xac] ss:$16 sps:$4 sm:$0xff]   ;;  %v1619_v27 = vld [vmem:[%s1964_s6 + $0xa0] ss:$16 sps:$4 sm:$0xff]   ;;  %v1620_v28 = vld [vmem:[%s1964_s6 + $0xa8] ss:$16 sps:$4 sm:$0xff]  }
  0x4b   : > { %v1621_v29 = vld [vmem:[%s1964_s6 + $0xc4] ss:$16 sps:$4 sm:$0xff]   ;;  %v1623_v30 = vld [vmem:[%s1964_s6 + $0xcc] ss:$16 sps:$4 sm:$0xff]   ;;  %v1625_v31 = vld [vmem:[%s1964_s6 + $0xc0] ss:$16 sps:$4 sm:$0xff]  }
  0x4c   : > { %v1626_v32 = vld [vmem:[%s1964_s6 + $0xc8] ss:$16 sps:$4 sm:$0xff]   ;;  %v1627_v33 = vld [vmem:[%s1964_s6 + $0xe4] ss:$16 sps:$4 sm:$0xff]   ;;  %v1629_v34 = vld [vmem:[%s1964_s6 + $0xec] ss:$16 sps:$4 sm:$0xff]  }
  0x4d   : > { %913 = vmatpush1.bf16.msra.mxu0 %v1601_v15  ;;  %956 = vmatpush1.bf16.msra.mxu1 %v1602_v16  ;;  %v1631_v35 = vld [vmem:[%s1964_s6 + $0xe0] ss:$16 sps:$4 sm:$0xff]   ;;  %v1632_v36 = vld [vmem:[%s1964_s6 + $0xe8] ss:$16 sps:$4 sm:$0xff]   ;;  %v1633_v37 = vld [vmem:[%s1964_s6 + $0x104] ss:$16 sps:$4 sm:$0xff]  }
  0x4e   : > { %914 = vmatprep.subr.bf16.mxu0 %v1603_v17  ;;  %957 = vmatprep.subr.bf16.mxu1 %v1605_v18  ;;  %v1635_v38 = vld [vmem:[%s1964_s6 + $0x10c] ss:$16 sps:$4 sm:$0xff]   ;;  %v1637_v39 = vld [vmem:[%s1964_s6 + $0x100] ss:$16 sps:$4 sm:$0xff]   ;;  %v1638_v40 = vld [vmem:[%s1964_s6 + $0x108] ss:$16 sps:$4 sm:$0xff]  }
  0x4f   : > { %v1639_v41 = vld [vmem:[%s1964_s6 + $0x124] ss:$16 sps:$4 sm:$0xff]   ;;  %v1641_v42 = vld [vmem:[%s1964_s6 + $0x12c] ss:$16 sps:$4 sm:$0xff]   ;;  %v1643_v43 = vld [vmem:[%s1964_s6 + $0x120] ss:$16 sps:$4 sm:$0xff]  }
  0x50   : > { %v1644_v44 = vld [vmem:[%s1964_s6 + $0x128] ss:$16 sps:$4 sm:$0xff]   ;;  %v1645_v45 = vld [vmem:[%s1964_s6 + $0x144] ss:$16 sps:$4 sm:$0xff]   ;;  %v1647_v46 = vld [vmem:[%s1964_s6 + $0x14c] ss:$16 sps:$4 sm:$0xff]  }
  0x51   : > { %915 = vmatpush1.bf16.msra.mxu0 %v1607_v19  ;;  %958 = vmatpush1.bf16.msra.mxu1 %v1608_v20  ;;  %v1649_v47 = vld [vmem:[%s1964_s6 + $0x140] ss:$16 sps:$4 sm:$0xff]   ;;  %v1650_v48 = vld [vmem:[%s1964_s6 + $0x148] ss:$16 sps:$4 sm:$0xff]   ;;  %v1651_v49 = vld [vmem:[%s1964_s6 + $0x164] ss:$16 sps:$4 sm:$0xff]  }
  0x52   : > { %916 = vmatprep.subr.bf16.mxu0 %v1609_v21  ;;  %959 = vmatprep.subr.bf16.mxu1 %v1611_v22  ;;  %v1653_v50 = vld [vmem:[%s1964_s6 + $0x16c] ss:$16 sps:$4 sm:$0xff]   ;;  %v1655_v51 = vld [vmem:[%s1964_s6 + $0x160] ss:$16 sps:$4 sm:$0xff]   ;;  %v1656_v52 = vld [vmem:[%s1964_s6 + $0x168] ss:$16 sps:$4 sm:$0xff]  }
  0x53   : > { %v1657_v53 = vld [vmem:[%s1964_s6 + $0x184] ss:$16 sps:$4 sm:$0xff]   ;;  %v1659_v54 = vld [vmem:[%s1964_s6 + $0x18c] ss:$16 sps:$4 sm:$0xff]   ;;  %v1661_v55 = vld [vmem:[%s1964_s6 + $0x180] ss:$16 sps:$4 sm:$0xff]  }
  0x54   : > { %v1662_v56 = vld [vmem:[%s1964_s6 + $0x188] ss:$16 sps:$4 sm:$0xff]   ;;  %v1663_v57 = vld [vmem:[%s1964_s6 + $0x1a4] ss:$16 sps:$4 sm:$0xff]   ;;  %v1665_v58 = vld [vmem:[%s1964_s6 + $0x1ac] ss:$16 sps:$4 sm:$0xff]  }
  0x55   : > { %917 = vmatpush1.bf16.msra.mxu0 %v1613_v23  ;;  %960 = vmatpush1.bf16.msra.mxu1 %v1614_v24  ;;  %v1667_v59 = vld [vmem:[%s1964_s6 + $0x1a0] ss:$16 sps:$4 sm:$0xff]   ;;  %v1668_v60 = vld [vmem:[%s1964_s6 + $0x1a8] ss:$16 sps:$4 sm:$0xff]   ;;  %v1669_v61 = vld [vmem:[%s1964_s6 + $0x1c4] ss:$16 sps:$4 sm:$0xff]  }
  0x56   : > { %918 = vmatprep.subr.bf16.mxu0 %v1615_v25  ;;  %961 = vmatprep.subr.bf16.mxu1 %v1617_v26  ;;  %v1671_v62 = vld [vmem:[%s1964_s6 + $0x1cc] ss:$16 sps:$4 sm:$0xff]   ;;  %v1673_v63 = vld [vmem:[%s1964_s6 + $0x1c0] ss:$16 sps:$4 sm:$0xff]   ;;  %v1674_v0 = vld [vmem:[%s1964_s6 + $0x1c8] ss:$16 sps:$4 sm:$0xff]  }
  0x57   : > { %v1675_v1 = vld [vmem:[%s1964_s6 + $0x1e4] ss:$16 sps:$4 sm:$0xff]   ;;  %v1677_v2 = vld [vmem:[%s1964_s6 + $0x1ec] ss:$16 sps:$4 sm:$0xff]   ;;  %v1679_v3 = vld [vmem:[%s1964_s6 + $0x1e0] ss:$16 sps:$4 sm:$0xff]  }
  0x58   : > { %v1680_v4 = vld [vmem:[%s1964_s6 + $0x1e8] ss:$16 sps:$4 sm:$0xff]   ;;  %s2134_s9 = smov (!%p481_p11, %s1460_s9), 7  ;;  %s2086_s13 = sshll.u32 %s422_s25, 5 }
  0x59   : > { %919 = vmatpush1.bf16.msra.mxu0 %v1619_v27  ;;  %962 = vmatpush1.bf16.msra.mxu1 %v1620_v28  ;;  %v1681_v5 = vld [vmem:[%s2119_s0] ss:$8 sps:$4 sm:$0xff]   ;;  %s483_s12 = scalar_lea.vmem %s2121_s2, %s2134_s9  ;;  %s488_s16 = scalar_lea.vmem %s2122_s3, %s2134_s9 }
  0x5a   : > { %920 = vmatprep.subr.bf16.mxu0 %v1621_v29  ;;  %963 = vmatprep.subr.bf16.mxu1 %v1623_v30  ;;  %s431_s18 = scalar_lea.vmem [#allocation4], %s2086_s13  ;;  %s471_s17 = scalar_lea.vmem [#allocation5], %s2086_s13 }
  0x5b   : > { %s1543_s24 = sshll.u32 (%p1802_p6), %s1722_s20, 4 }
  0x5c   : > { %s1302_s27 = scalar_lea.vmem (%p1802_p6), %s2124_s5, %s1543_s24 }
  0x5d   : > { %921 = vmatpush1.bf16.msra.mxu0 %v1625_v31  ;;  %964 = vmatpush1.bf16.msra.mxu1 %v1626_v32 }
  0x5e   : > { %922 = vmatprep.subr.bf16.mxu0 %v1627_v33  ;;  %965 = vmatprep.subr.bf16.mxu1 %v1629_v34 }
  0x61   : > { %923 = vmatpush1.bf16.msra.mxu0 %v1631_v35  ;;  %966 = vmatpush1.bf16.msra.mxu1 %v1632_v36 }
  0x62   : > { %924 = vmatprep.subr.bf16.mxu0 %v1633_v37  ;;  %967 = vmatprep.subr.bf16.mxu1 %v1635_v38 }
  0x65   : > { %925 = vmatpush1.bf16.msra.mxu0 %v1637_v39  ;;  %968 = vmatpush1.bf16.msra.mxu1 %v1638_v40 }
  0x66   : > { %926 = vmatprep.subr.bf16.mxu0 %v1639_v41  ;;  %969 = vmatprep.subr.bf16.mxu1 %v1641_v42 }
  0x69   : > { %927 = vmatpush1.bf16.msra.mxu0 %v1643_v43  ;;  %970 = vmatpush1.bf16.msra.mxu1 %v1644_v44 }
  0x6a   : > { %928 = vmatprep.subr.bf16.mxu0 %v1645_v45  ;;  %971 = vmatprep.subr.bf16.mxu1 %v1647_v46 }
  0x6d   : > { %929 = vmatpush1.bf16.msra.mxu0 %v1649_v47  ;;  %972 = vmatpush1.bf16.msra.mxu1 %v1650_v48 }
  0x6e   : > { %930 = vmatprep.subr.bf16.mxu0 %v1651_v49  ;;  %973 = vmatprep.subr.bf16.mxu1 %v1653_v50 }
  0x71   : > { %931 = vmatpush1.bf16.msra.mxu0 %v1655_v51  ;;  %974 = vmatpush1.bf16.msra.mxu1 %v1656_v52 }
  0x72   : > { %932 = vmatprep.subr.bf16.mxu0 %v1657_v53  ;;  %975 = vmatprep.subr.bf16.mxu1 %v1659_v54 }
  0x75   : > { %933 = vmatpush1.bf16.msra.mxu0 %v1661_v55  ;;  %976 = vmatpush1.bf16.msra.mxu1 %v1662_v56 }
  0x76   : > { %934 = vmatprep.subr.bf16.mxu0 %v1663_v57  ;;  %977 = vmatprep.subr.bf16.mxu1 %v1665_v58 }
  0x79   : > { %935 = vmatpush1.bf16.msra.mxu0 %v1667_v59  ;;  %978 = vmatpush1.bf16.msra.mxu1 %v1668_v60 }
  0x7a   : > { %936 = vmatprep.subr.bf16.mxu0 %v1669_v61  ;;  %979 = vmatprep.subr.bf16.mxu1 %v1671_v62 }
  0x7d   : > { %937 = vmatpush1.bf16.msra.mxu0 %v1673_v63  ;;  %980 = vmatpush1.bf16.msra.mxu1 %v1674_v0 }
  0x7e   : > { %938 = vmatprep.subr.bf16.mxu0 %v1675_v1  ;;  %981 = vmatprep.subr.bf16.mxu1 %v1677_v2 }
  0x81   : > { %939 = vmatpush1.bf16.msra.mxu0 %v1679_v3  ;;  %982 = vmatpush1.bf16.msra.mxu1 %v1680_v4 }
  0x84   : > { %941 = vmatmul.mubr.bf16.vlgmr.msra.gmra.mrb[0].mxu0 %v1681_v5  ;;  %984 = vmatmul.mubr.bf16.vlgmr.msra.gmra.mrb[0].mxu1 %v1681_v5 }
 0x157   : > { %v2033_v6 = vpop.f32.mrb[0].mxu0  ;;  %v2035_v7 = vpop.f32.mrb[0].mxu1 }
 0x158   : > { %v2037_v8 = vpop.f32.mrb[1].mxu0  ;;  %v2039_v9 = vpop.f32.mrb[1].mxu1  ;;  %v1063_v10 = vmul.f32 %v2033_v6, %v2033_v6  ;;  %v1065_v11 = vmul.f32 %v2035_v7, %v2035_v7 }
 0x159   : > { %v1064_v12 = vmul.f32 %v2037_v8, %v2037_v8  ;;  %v1066_v13 = vmul.f32 %v2039_v9, %v2039_v9  ;;  %v2049_v14 = vpop.f32.mrb[2].mxu0  ;;  %v2051_v15 = vpop.f32.mrb[2].mxu1 }
 0x15a   : > { %v1035_v16 = vadd.f32 %v2049_v14, %v2033_v6  ;;  %v1067_v17 = vmul.f32 %v2049_v14, %v2049_v14  ;;  %v1049_v18 = vadd.f32 %v2051_v15, %v2035_v7  ;;  %v1069_v19 = vmul.f32 %v2051_v15, %v2051_v15  ;;  %v2061_v20 = vpop.f32.mrb[3].mxu0  ;;  %v2063_v21 = vpop.f32.mrb[3].mxu1 }
 0x15b   : > { %v1042_v22 = vadd.f32 %v2061_v20, %v2037_v8  ;;  %v1068_v23 = vmul.f32 %v2061_v20, %v2061_v20  ;;  %v1056_v24 = vadd.f32 %v2063_v21, %v2039_v9  ;;  %v1070_v25 = vmul.f32 %v2063_v21, %v2063_v21 }
 0x15c   : > { %v1036_v26 = vrot.slane %v1035_v16, 4  ;;  %v1071_v27 = vadd.f32 %v1067_v17, %v1063_v10  ;;  %v1050_v28 = vrot.slane %v1049_v18, 4  ;;  %v1085_v29 = vadd.f32 %v1069_v19, %v1065_v11 }
 0x15d   : > { %v1043_v30 = vrot.slane %v1042_v22, 4  ;;  %v1078_v31 = vadd.f32 %v1068_v23, %v1064_v12  ;;  %v1057_v32 = vrot.slane %v1056_v24, 4  ;;  %v1092_v33 = vadd.f32 %v1070_v25, %v1066_v13 }
 0x15e   : > { %v1037_v34 = vadd.f32 %v1036_v26, %v1035_v16  ;;  %v1072_v35 = vrot.slane %v1071_v27, 4  ;;  %v1051_v36 = vadd.f32 %v1050_v28, %v1049_v18  ;;  %v1086_v37 = vrot.slane %v1085_v29, 4 }
 0x15f   : > { %v1044_v38 = vadd.f32 %v1043_v30, %v1042_v22  ;;  %v1079_v39 = vrot.slane %v1078_v31, 4  ;;  %v1058_v40 = vadd.f32 %v1057_v32, %v1056_v24  ;;  %v1093_v41 = vrot.slane %v1092_v33, 4 }
 0x160   : > { %v1038_v42 = vrot.slane %v1037_v34, 2  ;;  %v1073_v43 = vadd.f32 %v1072_v35, %v1071_v27  ;;  %v1052_v44 = vrot.slane %v1051_v36, 2  ;;  %v1087_v45 = vadd.f32 %v1086_v37, %v1085_v29 }
 0x161   : > { %v1045_v46 = vrot.slane %v1044_v38, 2  ;;  %v1080_v47 = vadd.f32 %v1079_v39, %v1078_v31  ;;  %v1059_v48 = vrot.slane %v1058_v40, 2  ;;  %v1094_v49 = vadd.f32 %v1093_v41, %v1092_v33 }
 0x162   : > { %v1039_v50 = vadd.f32 %v1038_v42, %v1037_v34  ;;  %v1074_v51 = vrot.slane %v1073_v43, 2  ;;  %v1053_v52 = vadd.f32 %v1052_v44, %v1051_v36  ;;  %v1088_v53 = vrot.slane %v1087_v45, 2 }
 0x163   : > { %v1046_v54 = vadd.f32 %v1045_v46, %v1044_v38  ;;  %v1081_v55 = vrot.slane %v1080_v47, 2  ;;  %v1060_v56 = vadd.f32 %v1059_v48, %v1058_v40  ;;  %v1095_v57 = vrot.slane %v1094_v49, 2 }
 0x164   : > { %v1040_v58 = vrot.slane %v1039_v50, 1  ;;  %v1075_v59 = vadd.f32 %v1074_v51, %v1073_v43  ;;  %v1054_v60 = vrot.slane %v1053_v52, 1  ;;  %v1089_v61 = vadd.f32 %v1088_v53, %v1087_v45 }
 0x165   : > { %v1047_v62 = vrot.slane %v1046_v54, 1  ;;  %v1082_v63 = vadd.f32 %v1081_v55, %v1080_v47  ;;  %v1061_v0 = vrot.slane %v1060_v56, 1  ;;  %v1096_v1 = vadd.f32 %v1095_v57, %v1094_v49 }
 0x166   : > { %v1041_v2 = vadd.f32 %v1040_v58, %v1039_v50  ;;  %v1076_v3 = vrot.slane %v1075_v59, 1  ;;  %v1055_v4 = vadd.f32 %v1054_v60, %v1053_v52  ;;  %v1090_v5 = vrot.slane %v1089_v61, 1 }
 0x167   : > { %v1048_v10 = vadd.f32 %v1047_v62, %v1046_v54  ;;  %v1083_v11 = vrot.slane %v1082_v63, 1  ;;  %v1062_v12 = vadd.f32 %v1061_v0, %v1060_v56  ;;  %v1097_v13 = vrot.slane %v1096_v1, 1 }
 0x168   : > { %v1077_v16 = vadd.f32 %v1076_v3, %v1075_v59  ;;  %v1099_v17 = vmul.f32 0.125, %v1041_v2  ;;  %v1091_v18 = vadd.f32 %v1090_v5, %v1089_v61  ;;  %v1101_v19 = vmul.f32 0.125, %v1055_v4  ;;  %v1021_v61 = vld [vmem:[%s483_s12] sm:$0xf] }
 0x169   : > { %v1084_v22 = vadd.f32 %v1083_v11, %v1082_v63  ;;  %v1100_v23 = vmul.f32 0.125, %v1048_v10  ;;  %v1098_v24 = vadd.f32 %v1097_v13, %v1096_v1  ;;  %v1102_v25 = vmul.f32 0.125, %v1062_v12 }
 0x16a   : > { %v1103_v26 = vmul.f32 0.125, %v1077_v16  ;;  %v1107_v27 = vmul.f32 %v1099_v17, %v1099_v17  ;;  %v1105_v28 = vmul.f32 0.125, %v1091_v18  ;;  %v1109_v29 = vmul.f32 %v1101_v19, %v1101_v19 }
 0x16b   : > { %v1104_v30 = vmul.f32 0.125, %v1084_v22  ;;  %v1108_v31 = vmul.f32 %v1100_v23, %v1100_v23  ;;  %v1106_v32 = vmul.f32 0.125, %v1098_v24  ;;  %v1110_v33 = vmul.f32 %v1102_v25, %v1102_v25 }
 0x16c   : > { %v1111_v34 = vsub.f32 %v1103_v26, %v1107_v27  ;;  %v1113_v35 = vsub.f32 %v1105_v28, %v1109_v29  ;;  %v1732_v46 = vmov 1966171168   ;;  %v1136_v48 = vlaneseq }
 0x16d   : > { %v1112_v36 = vsub.f32 %v1104_v30, %v1108_v31  ;;  %v1114_v37 = vsub.f32 %v1106_v32, %v1110_v33  ;;  %v1134_v47 = vunpack.c.l.s4 %v1732_v46  ;;  %v1024_v31 = vld [vmem:[%s431_s18 + $0x8] sm:$0xff]  ;;  %v1025_v33 = vld [vmem:[%s431_s18 + $0x10] sm:$0xff] }
 0x16e   : > { %v1115_v38 = vmax.f32 %v1111_v34, 0.0  ;;  %v1117_v39 = vmax.f32 %v1113_v35, 0.0  ;;  %v1137_v50 = vshrl.u32 %v1136_v48, 7 }
 0x16f   : > { %v1116_v40 = vmax.f32 %v1112_v36, 0.0  ;;  %v1118_v41 = vmax.f32 %v1114_v37, 0.0  ;;  %v1135_v49 = vunpack.c.0.s8 %v1134_v47  ;;  %v1030_v36 = vunpack.c.h.bf16 %v1024_v31 }
 0x170   : > { %v1119_v42 = vadd.f32 1e-05, %v1115_v38  ;;  %v1121_v43 = vadd.f32 1e-05, %v1117_v39  ;;  %v1160_v62 = vsub.s32 0, %v1137_v50  ;;  %v1164_v0 = vsub.s32 1, %v1137_v50 }
 0x171   : > { %v1120_v44 = vadd.f32 1e-05, %v1116_v40  ;;  %v1122_v45 = vadd.f32 1e-05, %v1118_v41  ;;  %v1138_v53 = vsub.s32 %v1135_v49, %v1137_v50  ;;  %v1168_v1 = vsub.s32 2, %v1137_v50 }
 0x172   : > { %1684 = vrsqrt.f32 %v1119_v42  ;;  %v1172_v2 = vsub.s32 3, %v1137_v50  ;;  %v1031_v40 = vunpack.c.l.bf16 %v1025_v33  ;;  %v1032_v41 = vunpack.c.h.bf16 %v1025_v33 }
 0x173   : > { %1686 = vrsqrt.f32 %v1121_v43 }
 0x174   : > { %1688 = vrsqrt.f32 %v1120_v44 }
 0x175   : > { %1690 = vrsqrt.f32 %v1122_v45 }
 0x17c   : > { %v1685_v51 = vpop.eup %1684 }
 0x17d   : > { %v1687_v52 = vpop.eup %1686 }
 0x17e   : > { %v1689_v54 = vpop.eup %1688 }
 0x17f   : > { %v1691_v55 = vpop.eup %1690  ;;  %v1131_v56 = vcombine.low %v1685_v51, %v1689_v54 }
 0x180   : > { %v1132_v57 = vcombine.low %v1687_v52, %v1691_v55 }
 0x181   : > { %v1139_v58 = vrot.slane %v1131_v56, %v1138_v53 }
 0x182   : > { %v1146_v59 = vrot.slane %v1132_v57, %v1138_v53 }
 0x184   : > { %v1147_v60 = vcombine.low %v1139_v58, %v1146_v59 }
 0x186   : > { %v1154_v63 = vrot.slane %v1147_v60, %v1138_v53 }
 0x188   : > { %v1156_v3 = vmul.f32 %v1154_v63, %v1021_v61 }
 0x18a   : > { %v1161_v4 = vrot.slane %v1156_v3, %v1160_v62  ;;  %v1165_v5 = vrot.slane %v1156_v3, %v1164_v0  ;;  %v1169_v10 = vrot.slane %v1156_v3, %v1168_v1  ;;  %v1173_v11 = vrot.slane %v1156_v3, %v1172_v2 }
 0x18c   : > { %v1178_v12 = vmul.f32 %v1161_v4, %v1099_v17  ;;  %v1179_v13 = vmul.f32 %v1165_v5, %v1100_v23  ;;  %v1180_v16 = vmul.f32 %v1169_v10, %v1101_v19  ;;  %v1181_v18 = vmul.f32 %v1173_v11, %v1102_v25  ;;  %v1022_v23 = vld [vmem:[%s488_s16] sm:$0xf] }
 0x18d   : > { %v1212_v22 = vmul.f32 %v1161_v4, %v2033_v6  ;;  %v1213_v24 = vmul.f32 %v1165_v5, %v2037_v8  ;;  %v1214_v26 = vmul.f32 %v1169_v10, %v2035_v7  ;;  %v1215_v27 = vmul.f32 %v1173_v11, %v2039_v9  ;;  %v1023_v25 = vld [vmem:[%s431_s18] sm:$0xff] }
 0x18e   : > { %v1186_v28 = vcombine.low %v1178_v12, %v1179_v13  ;;  %v1187_v29 = vcombine.low %v1180_v16, %v1181_v18  ;;  %v1216_v30 = vmul.f32 %v1161_v4, %v2049_v14  ;;  %v1217_v17 = vmul.f32 %v1165_v5, %v2061_v20  ;;  %v1026_v14 = vld [vmem:[%s431_s18 + $0x18] sm:$0xff] }
 0x18f   : > { %v1218_v19 = vmul.f32 %v1169_v10, %v2051_v15  ;;  %v1219_v6 = vmul.f32 %v1173_v11, %v2063_v21  ;;  %v1027_v20 = vunpack.c.l.bf16 %v1023_v25  ;;  %v1028_v35 = vunpack.c.h.bf16 %v1023_v25 }
 0x190   : > { %v1194_v7 = vrot.slane %v1186_v28, %v1138_v53  ;;  %v1201_v8 = vrot.slane %v1187_v29, %v1138_v53  ;;  %v1029_v15 = vunpack.c.l.bf16 %v1024_v31  ;;  %v1033_v42 = vunpack.c.l.bf16 %v1026_v14 }
 0x191   : > { %v1034_v43 = vunpack.c.h.bf16 %v1026_v14 }
 0x192   : > { %v1202_v9 = vcombine.low %v1194_v7, %v1201_v8 }
 0x194   : > { %v1209_v32 = vrot.slane %v1202_v9, %v1138_v53 }
 0x196   : > { %v1211_v34 = vsub.f32 %v1022_v23, %v1209_v32 }
 0x198   : > { %v1224_v21 = vrot.slane %v1211_v34, %v1160_v62  ;;  %v1228_v37 = vrot.slane %v1211_v34, %v1164_v0  ;;  %v1232_v38 = vrot.slane %v1211_v34, %v1168_v1  ;;  %v1236_v39 = vrot.slane %v1211_v34, %v1172_v2 }
 0x19a   : > { %v1241_v44 = vadd.f32 %v1224_v21, %v1212_v22  ;;  %v1242_v45 = vadd.f32 %v1228_v37, %v1213_v24  ;;  %v1243_v46 = vadd.f32 %v1232_v38, %v1214_v26  ;;  %v1244_v47 = vadd.f32 %v1236_v39, %v1215_v27 }
 0x19b   : > { %v1245_v48 = vadd.f32 %v1224_v21, %v1216_v30  ;;  %v1246_v49 = vadd.f32 %v1228_v37, %v1217_v17  ;;  %v1247_v50 = vadd.f32 %v1232_v38, %v1218_v19  ;;  %v1248_v51 = vadd.f32 %v1236_v39, %v1219_v6 }
 0x19c   : > { %v1249_v52 = vadd.f32 %v1241_v44, %v1027_v20  ;;  %v1250_v53 = vadd.f32 %v1242_v45, %v1028_v35  ;;  %v1251_v54 = vadd.f32 %v1243_v46, %v1029_v15  ;;  %v1252_v55 = vadd.f32 %v1244_v47, %v1030_v36 }
 0x19d   : > { %v1253_v56 = vadd.f32 %v1245_v48, %v1031_v40  ;;  %v1254_v57 = vadd.f32 %v1246_v49, %v1032_v41  ;;  %v1255_v58 = vadd.f32 %v1247_v50, %v1033_v42  ;;  %v1256_v59 = vadd.f32 %v1248_v51, %v1034_v43  ;;  %1299 = sbr.rel (!%p1802_p6) target bundleno = 428 (0x1ac), region = 98 }
 0x19e   : > { %v1257_v60 = vmax.f32 %v1249_v52, 0.0  ;;  %v1258_v61 = vmax.f32 %v1250_v53, 0.0  ;;  %v1259_v62 = vmax.f32 %v1251_v54, 0.0  ;;  %v1260_v63 = vmax.f32 %v1252_v55, 0.0 }
 0x19f   : > { %v1261_v0 = vmax.f32 %v1253_v56, 0.0  ;;  %v1262_v1 = vmax.f32 %v1254_v57, 0.0  ;;  %v1263_v2 = vmax.f32 %v1255_v58, 0.0  ;;  %v1264_v3 = vmax.f32 %v1256_v59, 0.0 }
 0x1a0   : > { %v1539_v4 = vpack.c.bf16 %v1258_v61, %v1257_v60  ;;  %v1540_v5 = vpack.c.bf16 %v1260_v63, %v1259_v62 }
 0x1a1   : > { %v1541_v10 = vpack.c.bf16 %v1262_v1, %v1261_v0  ;;  %v1542_v11 = vpack.c.bf16 %v1264_v3, %v1263_v2 }
 0x1a2   : > { %1289 = vst [vmem:[%s471_s17] sm:$0xff] %v1539_v4  ;;  %1290 = vst [vmem:[%s471_s17 + $0x8] sm:$0xff] %v1540_v5 }
 0x1a3   : > { %1291 = vst [vmem:[%s471_s17 + $0x10] sm:$0xff] %v1541_v10  ;;  %1292 = vst [vmem:[%s471_s17 + $0x18] sm:$0xff] %v1542_v11 }
 0x1a9   : > { %v1315_v12 = vld [vmem:[%s471_s17] sm:$0xff]  ;;  %v1317_v13 = vld [vmem:[%s471_s17 + $0x8] sm:$0xff] }
 0x1aa   : > { %v1319_v16 = vld [vmem:[%s471_s17 + $0x10] sm:$0xff]  ;;  %v1321_v18 = vld [vmem:[%s471_s17 + $0x18] sm:$0xff]  ;;  %1316 = vst [vmem:[%s1302_s27] sm:$0xff] %v1315_v12  ;;  %1318 = vst [vmem:[%s1302_s27 + $0x8] sm:$0xff] %v1317_v13 }
 0x1ab   : > { %1320 = vst [vmem:[%s1302_s27 + $0x20] sm:$0xff] %v1319_v16  ;;  %1322 = vst [vmem:[%s1302_s27 + $0x28] sm:$0xff] %v1321_v18 }
 0x1ac PF: > { %s15_s22 = sadd.s32 1, %s1730_s22   ;;  %s2127_s18 = smov %s1718_s19 }
 0x1ad   : > { %p12_p12 = scmp.ge.s32.totalorder %s15_s22, 4   ;;  %s2128_s19 = smov %s1807_s29 }
 0x1ae   : > { %s2129_s20 = smov %s1726_s21  ;;  %s2130_s21 = smov %s2132_s23 }
 0x1af   :  { %14 = sbr.rel (!%p12_p12) target bundleno = 3 (0x3), region = 169 }

// kernel: icnet_backbone_forward.104
= control target key start
LH: loop header
LB: loop body
LE: loop exit
PB: predicated region body
PF: predicated region fallthrough
CT: control target
= control target key end

     0   :  { %s1397_s15 = smov 0   ;;  %s1399_s16 = smov 0   ;;  %s1572_s0 = inlined_call_operand.vmem [shape: bf16[16,1024], index: 0, kind: input, shape index: {}]   ;;  %s1573_s1 = inlined_call_operand.vmem [shape: bf16[1024,256], index: 1, kind: input, shape index: {}]   ;;  %s1574_s2 = inlined_call_operand.vmem [shape: f32[1,256], index: 2, kind: input, shape index: {}]   ;;  %s1575_s3 = inlined_call_operand.vmem [shape: f32[1,256], index: 3, kind: input, shape index: {}]   ;;  %s1576_s4 = inlined_call_operand.vmem [shape: bf16[16,256], index: 4, kind: output, shape index: {}]  }
   0x1   :  { %s1401_s17 = smov 0   ;;  %s1403_s18 = smov 0  }
   0x2   :  { %s1405_s19 = smov 0  }
   0x3 LB: > { %s23_s20 = sadd.s32 1, %s1364_s18  ;;  %p40_p1 = scmp.ne.s32.totalorder %s1356_s16, %s1352_s15  ;;  %s1368_s19 = sphi %s1405_s19, %s14_s19   ;;  %s1364_s18 = sphi %s1403_s18, %s1580_s18   ;;  %s1360_s17 = sphi %s1401_s17, %s1579_s17   ;;  %s1356_s16 = sphi %s1399_s16, %s1578_s16   ;;  %s1352_s15 = sphi %s1397_s15, %s1577_s15  }
   0x4   : > { %p24_p0 = scmp.ge.s32.totalorder %s23_s20, 2  ;;  %p41_p2 = scmp.eq.s32.totalorder %s1368_s19, 0 }
   0x5   : > { %s33_s22 = sadd.s32 1, %s1356_s16  ;;  %p1089_p5 = scmp.ge.s32.totalorder %s1368_s19, 2 }
   0x6   : > { %s1582_s20 = smov (%p24_p0, %s23_s20), 0  ;;  %p42_p3 = por %p41_p2, %p40_p1 }
   0x7   : > { %s30_s21 = ssub.s32 %s1364_s18, %s1582_s20  ;;  %188 = sbr.rel (%p1089_p5) target bundleno = 21 (0x15), region = 24 }
   0x8   : > { %p31_p4 = scmp.eq.s32.totalorder %s30_s21, 0 }
   0xa   : > { %s1432_s23 = scalar_select %p31_p4, %s1356_s16, %s33_s22  }
   0xe   : > { %191 = sbr.rel (!%p42_p3) target bundleno = 21 (0x15), region = 28  ;;  %s193_s24 = sand.u32 (%p42_p3), 1, %s1356_s16  }
   0xf   : > { %s1174_s25 = sshll.u32 (%p42_p3), %s1364_s18, 4  ;;  %s1090_s26 = sshll.u32 (%p42_p3), %s193_s24, 5 }
  0x10   : > { %s198_s29 = scalar_lea.vmem (%p42_p3), %s1572_s0, %s1174_s25  ;;  %s195_s30 = scalar_lea.vmem (%p42_p3), [#allocation3], %s1090_s26 }
  0x11   : > { %v211_v0 = vld [vmem:[%s198_s29] sm:$0xff] (%p42_p3)  ;;  %v213_v1 = vld [vmem:[%s198_s29 + $0x8] sm:$0xff] (%p42_p3) }
  0x12   : > { %v215_v2 = vld [vmem:[%s198_s29 + $0x20] sm:$0xff] (%p42_p3)  ;;  %212 = vst [vmem:[%s195_s30] sm:$0xff] (%p42_p3), %v211_v0  ;;  %214 = vst [vmem:[%s195_s30 + $0x8] sm:$0xff] (%p42_p3), %v213_v1  ;;  %v217_v3 = vld [vmem:[%s198_s29 + $0x28] sm:$0xff] (%p42_p3) }
  0x13   : > { %216 = vst [vmem:[%s195_s30 + $0x10] sm:$0xff] (%p42_p3), %v215_v2  ;;  %218 = vst [vmem:[%s195_s30 + $0x18] sm:$0xff] (%p42_p3), %v217_v3 }
  0x15 PF: > { %p1093_p6 = scmp.ge.s32.totalorder %s1368_s19, 1  ;;  %p238_p7 = scmp.lt.s32.totalorder %s1368_s19, 3 }
  0x17   : > { %p239_p8 = pnand %p1093_p6, %p238_p7 }
  0x18   : > { %s245_s5 = sand.u32 (!%p239_p8), 1, %s1352_s15   ;;  %s1095_s6 = sshll.u32 (!%p239_p8), %s1360_s17, 6 }
  0x19   : > { %242 = sbr.rel (%p239_p8) target bundleno = 396 (0x18c), region = 55  ;;  %s1094_s7 = sshll.u32 (!%p239_p8), %s245_s5, 5 }
  0x1a   : > { %p291_p9 = scmp.lt.s32.totalorder (!%p239_p8), %s1095_s6, 127  ;;  %s1449_s12 = scalar_lea.vmem (!%p239_p8), [#allocation3], %s1094_s7 }
  0x1b   : > { %p1098_p10 = scmp.ne.s32.totalorder (!%p239_p8), %s1360_s17, 0 }
  0x20   : > { %s1584_s6 = smov (!%p291_p9, %s1095_s6), 127  ;;  %320 = sbr.rel (%p1098_p10) target bundleno = 39 (0x27), region = 63 }
  0x21   : > { %s1175_s8 = sshll.u32 %s1584_s6, 3  ;;  %v1370_v4 = vmov (!%p1098_p10), 0.0  }
  0x22   : > { %s1447_s11 = scalar_lea.vmem %s1573_s1, %s1175_s8  ;;  %321 = vst [vmem:[#allocation2] sm:$0xff] (!%p1098_p10), %v1370_v4  ;;  %322 = vst [vmem:[#allocation2 + $0x8] sm:$0xff] (!%p1098_p10), %v1370_v4 }
  0x23   : > { %323 = vst [vmem:[#allocation2 + $0x10] sm:$0xff] (!%p1098_p10), %v1370_v4  ;;  %324 = vst [vmem:[#allocation2 + $0x18] sm:$0xff] (!%p1098_p10), %v1370_v4 }
  0x27 PF: > { %v1224_v5 = vld [vmem:[%s1447_s11 + $0x4] ss:$8 sps:$4 sm:$0xff]   ;;  %v1228_v7 = vld [vmem:[%s1447_s11] ss:$8 sps:$4 sm:$0xff]   ;;  %v1230_v9 = vld [vmem:[%s1447_s11 + $0x14] ss:$8 sps:$4 sm:$0xff]  }
  0x28   : > { %v1226_v6 = vld [vmem:[%s1447_s11 + $0x104] ss:$8 sps:$4 sm:$0xff]   ;;  %737 = vmatprep.subr.bf16.mxu1 %v1224_v5  ;;  %v1229_v8 = vld [vmem:[%s1447_s11 + $0x100] ss:$8 sps:$4 sm:$0xff]   ;;  %v1232_v10 = vld [vmem:[%s1447_s11 + $0x114] ss:$8 sps:$4 sm:$0xff]  }
  0x29   : > { %780 = vmatprep.subr.bf16.mxu0 %v1226_v6  ;;  %738 = vmatpush1.bf16.msra.mxu1 %v1228_v7  ;;  %v1234_v11 = vld [vmem:[%s1447_s11 + $0x10] ss:$8 sps:$4 sm:$0xff]   ;;  %v1236_v13 = vld [vmem:[%s1447_s11 + $0x24] ss:$8 sps:$4 sm:$0xff]   ;;  %v1240_v15 = vld [vmem:[%s1447_s11 + $0x20] ss:$8 sps:$4 sm:$0xff]  }
  0x2a   : > { %781 = vmatpush1.bf16.msra.mxu0 %v1229_v8  ;;  %739 = vmatprep.subr.bf16.mxu1 %v1230_v9  ;;  %v1235_v12 = vld [vmem:[%s1447_s11 + $0x110] ss:$8 sps:$4 sm:$0xff]   ;;  %v1238_v14 = vld [vmem:[%s1447_s11 + $0x124] ss:$8 sps:$4 sm:$0xff]   ;;  %v1241_v16 = vld [vmem:[%s1447_s11 + $0x120] ss:$8 sps:$4 sm:$0xff]  }
  0x2b   : > { %782 = vmatprep.subr.bf16.mxu0 %v1232_v10  ;;  %v1242_v17 = vld [vmem:[%s1447_s11 + $0x34] ss:$8 sps:$4 sm:$0xff]   ;;  %v1246_v19 = vld [vmem:[%s1447_s11 + $0x30] ss:$8 sps:$4 sm:$0xff]   ;;  %v1248_v21 = vld [vmem:[%s1447_s11 + $0x44] ss:$8 sps:$4 sm:$0xff]  }
  0x2c   : > { %v1244_v18 = vld [vmem:[%s1447_s11 + $0x134] ss:$8 sps:$4 sm:$0xff]   ;;  %v1247_v20 = vld [vmem:[%s1447_s11 + $0x130] ss:$8 sps:$4 sm:$0xff]   ;;  %v1250_v22 = vld [vmem:[%s1447_s11 + $0x144] ss:$8 sps:$4 sm:$0xff]  }
  0x2d   : > { %740 = vmatpush1.bf16.msra.mxu1 %v1234_v11  ;;  %v1252_v23 = vld [vmem:[%s1447_s11 + $0x40] ss:$8 sps:$4 sm:$0xff]   ;;  %v1254_v25 = vld [vmem:[%s1447_s11 + $0x54] ss:$8 sps:$4 sm:$0xff]   ;;  %v1258_v27 = vld [vmem:[%s1447_s11 + $0x50] ss:$8 sps:$4 sm:$0xff]  }
  0x2e   : > { %783 = vmatpush1.bf16.msra.mxu0 %v1235_v12  ;;  %741 = vmatprep.subr.bf16.mxu1 %v1236_v13  ;;  %v1253_v24 = vld [vmem:[%s1447_s11 + $0x140] ss:$8 sps:$4 sm:$0xff]   ;;  %v1256_v26 = vld [vmem:[%s1447_s11 + $0x154] ss:$8 sps:$4 sm:$0xff]   ;;  %v1259_v28 = vld [vmem:[%s1447_s11 + $0x150] ss:$8 sps:$4 sm:$0xff]  }
  0x2f   : > { %784 = vmatprep.subr.bf16.mxu0 %v1238_v14  ;;  %v1260_v29 = vld [vmem:[%s1447_s11 + $0x64] ss:$8 sps:$4 sm:$0xff]   ;;  %v1264_v31 = vld [vmem:[%s1447_s11 + $0x60] ss:$8 sps:$4 sm:$0xff]   ;;  %v1266_v33 = vld [vmem:[%s1447_s11 + $0x74] ss:$8 sps:$4 sm:$0xff]  }
  0x30   : > { %v1262_v30 = vld [vmem:[%s1447_s11 + $0x164] ss:$8 sps:$4 sm:$0xff]   ;;  %v1265_v32 = vld [vmem:[%s1447_s11 + $0x160] ss:$8 sps:$4 sm:$0xff]   ;;  %v1268_v34 = vld [vmem:[%s1447_s11 + $0x174] ss:$8 sps:$4 sm:$0xff]  }
  0x31   : > { %742 = vmatpush1.bf16.msra.mxu1 %v1240_v15  ;;  %v1270_v35 = vld [vmem:[%s1447_s11 + $0x70] ss:$8 sps:$4 sm:$0xff]   ;;  %v1272_v37 = vld [vmem:[%s1447_s11 + $0x84] ss:$8 sps:$4 sm:$0xff]   ;;  %v1276_v39 = vld [vmem:[%s1447_s11 + $0x80] ss:$8 sps:$4 sm:$0xff]  }
  0x32   : > { %785 = vmatpush1.bf16.msra.mxu0 %v1241_v16  ;;  %743 = vmatprep.subr.bf16.mxu1 %v1242_v17  ;;  %v1271_v36 = vld [vmem:[%s1447_s11 + $0x170] ss:$8 sps:$4 sm:$0xff]   ;;  %v1274_v38 = vld [vmem:[%s1447_s11 + $0x184] ss:$8 sps:$4 sm:$0xff]   ;;  %v1277_v40 = vld [vmem:[%s1447_s11 + $0x180] ss:$8 sps:$4 sm:$0xff]  }
  0x33   : > { %786 = vmatprep.subr.bf16.mxu0 %v1244_v18  ;;  %v1278_v41 = vld [vmem:[%s1447_s11 + $0x94] ss:$8 sps:$4 sm:$0xff]   ;;  %v1282_v43 = vld [vmem:[%s1447_s11 + $0x90] ss:$8 sps:$4 sm:$0xff]   ;;  %v1284_v45 = vld [vmem:[%s1447_s11 + $0xa4] ss:$8 sps:$4 sm:$0xff]  }
  0x34   : > { %v1280_v42 = vld [vmem:[%s1447_s11 + $0x194] ss:$8 sps:$4 sm:$0xff]   ;;  %v1283_v44 = vld [vmem:[%s1447_s11 + $0x190] ss:$8 sps:$4 sm:$0xff]   ;;  %v1286_v46 = vld [vmem:[%s1447_s11 + $0x1a4] ss:$8 sps:$4 sm:$0xff]  }
  0x35   : > { %744 = vmatpush1.bf16.msra.mxu1 %v1246_v19  ;;  %v1288_v47 = vld [vmem:[%s1447_s11 + $0xa0] ss:$8 sps:$4 sm:$0xff]   ;;  %v1290_v49 = vld [vmem:[%s1447_s11 + $0xb4] ss:$8 sps:$4 sm:$0xff]   ;;  %v1294_v51 = vld [vmem:[%s1447_s11 + $0xb0] ss:$8 sps:$4 sm:$0xff]  }
  0x36   : > { %787 = vmatpush1.bf16.msra.mxu0 %v1247_v20  ;;  %745 = vmatprep.subr.bf16.mxu1 %v1248_v21  ;;  %v1289_v48 = vld [vmem:[%s1447_s11 + $0x1a0] ss:$8 sps:$4 sm:$0xff]   ;;  %v1292_v50 = vld [vmem:[%s1447_s11 + $0x1b4] ss:$8 sps:$4 sm:$0xff]   ;;  %v1295_v53 = vld [vmem:[%s1447_s11 + $0x1b0] ss:$8 sps:$4 sm:$0xff]  }
  0x37   : > { %788 = vmatprep.subr.bf16.mxu0 %v1250_v22  ;;  %v1322_v52 = vld [vmem:[%s1449_s12 + $0x4] ss:$16 sps:$4 sm:$0xff]   ;;  %v1325_v56 = vld [vmem:[%s1449_s12 + $0xc] ss:$16 sps:$4 sm:$0xff]   ;;  %v1300_v57 = vld [vmem:[%s1447_s11 + $0xc0] ss:$8 sps:$4 sm:$0xff]  }
  0x38   : > { %v1296_v54 = vld [vmem:[%s1447_s11 + $0xc4] ss:$8 sps:$4 sm:$0xff]   ;;  %769 = vmatprep.mubr.bf16.mxu1 %v1322_v52  ;;  %812 = vmatprep.mubr.bf16.mxu0 %v1325_v56  ;;  %v1301_v58 = vld [vmem:[%s1447_s11 + $0x1c0] ss:$8 sps:$4 sm:$0xff]   ;;  %v1302_v59 = vld [vmem:[%s1447_s11 + $0xd4] ss:$8 sps:$4 sm:$0xff]  }
  0x39   : > { %746 = vmatpush1.bf16.msra.mxu1 %v1252_v23  ;;  %v1298_v55 = vld [vmem:[%s1447_s11 + $0x1c4] ss:$8 sps:$4 sm:$0xff]   ;;  %v1304_v60 = vld [vmem:[%s1447_s11 + $0x1d4] ss:$8 sps:$4 sm:$0xff]   ;;  %v1306_v61 = vld [vmem:[%s1447_s11 + $0xd0] ss:$8 sps:$4 sm:$0xff]  }
  0x3a   : > { %789 = vmatpush1.bf16.msra.mxu0 %v1253_v24  ;;  %747 = vmatprep.subr.bf16.mxu1 %v1254_v25  ;;  %v1307_v62 = vld [vmem:[%s1447_s11 + $0x1d0] ss:$8 sps:$4 sm:$0xff]   ;;  %v1308_v63 = vld [vmem:[%s1447_s11 + $0xe4] ss:$8 sps:$4 sm:$0xff]   ;;  %v1312_v1 = vld [vmem:[%s1447_s11 + $0xe0] ss:$8 sps:$4 sm:$0xff]  }
  0x3b   : > { %790 = vmatprep.subr.bf16.mxu0 %v1256_v26  ;;  %v1310_v0 = vld [vmem:[%s1447_s11 + $0x1e4] ss:$8 sps:$4 sm:$0xff]   ;;  %v1313_v2 = vld [vmem:[%s1447_s11 + $0x1e0] ss:$8 sps:$4 sm:$0xff]   ;;  %v1314_v3 = vld [vmem:[%s1447_s11 + $0xf4] ss:$8 sps:$4 sm:$0xff]  }
  0x3c   : > { %v1316_v4 = vld [vmem:[%s1447_s11 + $0x1f4] ss:$8 sps:$4 sm:$0xff]   ;;  %v1318_v5 = vld [vmem:[%s1447_s11 + $0xf0] ss:$8 sps:$4 sm:$0xff]   ;;  %v325_v10 = vld [vmem:[#allocation2] sm:$0xff]  ;;  %p1167_p11 = scmp.ne.s32.totalorder %s1360_s17, 1 }
  0x3d   : > { %748 = vmatpush1.bf16.msra.mxu1 %v1258_v27  ;;  %v1319_v6 = vld [vmem:[%s1447_s11 + $0x1f0] ss:$8 sps:$4 sm:$0xff]   ;;  %v326_v14 = vld [vmem:[#allocation2 + $0x8] sm:$0xff] }
  0x3e   : > { %791 = vmatpush1.bf16.msra.mxu0 %v1259_v28  ;;  %749 = vmatprep.subr.bf16.mxu1 %v1260_v29  ;;  %v1320_v7 = vld [vmem:[%s1449_s12] ss:$16 sps:$4 sm:$0xff]   ;;  %v1323_v8 = vld [vmem:[%s1449_s12 + $0x8] ss:$16 sps:$4 sm:$0xff]  }
  0x3f   : > { %792 = vmatprep.subr.bf16.mxu0 %v1262_v30  ;;  %v327_v18 = vld [vmem:[#allocation2 + $0x10] sm:$0xff]  ;;  %v328_v23 = vld [vmem:[#allocation2 + $0x18] sm:$0xff] }
  0x41   : > { %750 = vmatpush1.bf16.msra.mxu1 %v1264_v31 }
  0x42   : > { %793 = vmatpush1.bf16.msra.mxu0 %v1265_v32  ;;  %751 = vmatprep.subr.bf16.mxu1 %v1266_v33 }
  0x43   : > { %794 = vmatprep.subr.bf16.mxu0 %v1268_v34 }
  0x45   : > { %752 = vmatpush1.bf16.msra.mxu1 %v1270_v35 }
  0x46   : > { %795 = vmatpush1.bf16.msra.mxu0 %v1271_v36  ;;  %753 = vmatprep.subr.bf16.mxu1 %v1272_v37 }
  0x47   : > { %796 = vmatprep.subr.bf16.mxu0 %v1274_v38 }
  0x49   : > { %754 = vmatpush1.bf16.msra.mxu1 %v1276_v39 }
  0x4a   : > { %797 = vmatpush1.bf16.msra.mxu0 %v1277_v40  ;;  %755 = vmatprep.subr.bf16.mxu1 %v1278_v41 }
  0x4b   : > { %798 = vmatprep.subr.bf16.mxu0 %v1280_v42 }
  0x4d   : > { %756 = vmatpush1.bf16.msra.mxu1 %v1282_v43 }
  0x4e   : > { %799 = vmatpush1.bf16.msra.mxu0 %v1283_v44  ;;  %757 = vmatprep.subr.bf16.mxu1 %v1284_v45 }
  0x4f   : > { %800 = vmatprep.subr.bf16.mxu0 %v1286_v46 }
  0x51   : > { %758 = vmatpush1.bf16.msra.mxu1 %v1288_v47 }
  0x52   : > { %801 = vmatpush1.bf16.msra.mxu0 %v1289_v48  ;;  %759 = vmatprep.subr.bf16.mxu1 %v1290_v49 }
  0x53   : > { %802 = vmatprep.subr.bf16.mxu0 %v1292_v50 }
  0x55   : > { %760 = vmatpush1.bf16.msra.mxu1 %v1294_v51 }
  0x56   : > { %803 = vmatpush1.bf16.msra.mxu0 %v1295_v53  ;;  %761 = vmatprep.subr.bf16.mxu1 %v1296_v54 }
  0x57   : > { %804 = vmatprep.subr.bf16.mxu0 %v1298_v55 }
  0x59   : > { %762 = vmatpush1.bf16.msra.mxu1 %v1300_v57 }
  0x5a   : > { %805 = vmatpush1.bf16.msra.mxu0 %v1301_v58  ;;  %763 = vmatprep.subr.bf16.mxu1 %v1302_v59 }
  0x5b   : > { %806 = vmatprep.subr.bf16.mxu0 %v1304_v60 }
  0x5d   : > { %764 = vmatpush1.bf16.msra.mxu1 %v1306_v61 }
  0x5e   : > { %807 = vmatpush1.bf16.msra.mxu0 %v1307_v62  ;;  %765 = vmatprep.subr.bf16.mxu1 %v1308_v63 }
  0x5f   : > { %808 = vmatprep.subr.bf16.mxu0 %v1310_v0 }
  0x61   : > { %766 = vmatpush1.bf16.msra.mxu1 %v1312_v1 }
  0x62   : > { %809 = vmatpush1.bf16.msra.mxu0 %v1313_v2  ;;  %767 = vmatprep.subr.bf16.mxu1 %v1314_v3 }
  0x63   : > { %810 = vmatprep.subr.bf16.mxu0 %v1316_v4 }
  0x65   : > { %768 = vmatpush1.bf16.msra.mxu1 %v1318_v5 }
  0x66   : > { %811 = vmatpush1.bf16.msra.mxu0 %v1319_v6 }
  0x68   : > { %770 = vmatmul.mubr.bf16.vlgmr.msra.gmra.mrb[0].mxu1 %v1320_v7 }
  0x69   : > { %813 = vmatmul.mubr.bf16.vlgmr.msra.gmra.mrb[0].mxu0 %v1323_v8 }
 0x13b   : > { %v771_v9 = vpop.f32.mrb[0].mxu1 }
 0x13c   : > { %v814_v11 = vpop.f32.mrb[0].mxu0  ;;  %v773_v13 = vpop.f32.mrb[1].mxu1 }
 0x13d   : > { %v815_v12 = vadd.f32 %v814_v11, %v771_v9  ;;  %v816_v15 = vpop.f32.mrb[1].mxu0  ;;  %v775_v17 = vpop.f32.mrb[2].mxu1 }
 0x13e   : > { %v817_v16 = vadd.f32 %v816_v15, %v773_v13  ;;  %v818_v19 = vpop.f32.mrb[2].mxu0  ;;  %v777_v22 = vpop.f32.mrb[3].mxu1  ;;  %834 = sbr.rel (%p1167_p11) target bundleno = 396 (0x18c), region = 67  ;;  %v1371_v13 = vmov (!%p1167_p11), 1966171168   ;;  %v893_v15 = vlaneseq (!%p1167_p11) }
 0x13f   : > { %v823_v20 = vadd.f32 %v815_v12, %v325_v10  ;;  %v819_v21 = vadd.f32 %v818_v19, %v775_v17  ;;  %v820_v24 = vpop.f32.mrb[3].mxu0 }
 0x140   : > { %v824_v25 = vadd.f32 %v817_v16, %v326_v14  ;;  %v821_v26 = vadd.f32 %v820_v24, %v777_v22  ;;  %v891_v14 = vunpack.c.l.s4 (!%p1167_p11), %v1371_v13  ;;  %v894_v17 = vshrl.u32 (!%p1167_p11), %v893_v15, 7 }
 0x141   : > { %827 = vst [vmem:[#allocation2] sm:$0xff] %v823_v20  ;;  %v825_v27 = vadd.f32 %v819_v21, %v327_v18 }
 0x142   : > { %828 = vst [vmem:[#allocation2 + $0x8] sm:$0xff] %v824_v25  ;;  %v826_v28 = vadd.f32 %v821_v26, %v328_v23  ;;  %v892_v16 = vunpack.c.0.s8 (!%p1167_p11), %v891_v14  ;;  %v839_v23 = vld [vmem:[%s1574_s2] sm:$0x3] (!%p1167_p11)  ;;  %v909_v25 = vsub.s32 (!%p1167_p11), 0, %v894_v17  ;;  %v913_v26 = vsub.s32 (!%p1167_p11), 1, %v894_v17 }
 0x143   : > { %829 = vst [vmem:[#allocation2 + $0x10] sm:$0xff] %v825_v27 }
 0x144   : > { %830 = vst [vmem:[#allocation2 + $0x18] sm:$0xff] %v826_v28  ;;  %v895_v19 = vsub.s32 (!%p1167_p11), %v892_v16, %v894_v17 }
 0x148   : > { %v1521_v29 = vld [vmem:[#allocation2] sm:$0xff] }
 0x149   : > { %v1523_v30 = vld [vmem:[#allocation2 + $0x8] sm:$0xff]  ;;  %v855_v34 = vmul.f32 %v1521_v29, %v1521_v29 }
 0x14a   : > { %v1525_v31 = vld [vmem:[#allocation2 + $0x10] sm:$0xff]  ;;  %v856_v35 = vmul.f32 %v1523_v30, %v1523_v30 }
 0x14b   : > { %v1527_v32 = vld [vmem:[#allocation2 + $0x18] sm:$0xff]  ;;  %v841_v33 = vadd.f32 %v1525_v31, %v1521_v29  ;;  %v857_v36 = vmul.f32 %v1525_v31, %v1525_v31 }
 0x14c   : > { %v848_v37 = vadd.f32 %v1527_v32, %v1523_v30  ;;  %v858_v38 = vmul.f32 %v1527_v32, %v1527_v32 }
 0x14d   : > { %v842_v39 = vrot.slane %v841_v33, 4  ;;  %v859_v40 = vadd.f32 %v857_v36, %v855_v34 }
 0x14e   : > { %v849_v41 = vrot.slane %v848_v37, 4  ;;  %v866_v42 = vadd.f32 %v858_v38, %v856_v35  ;;  %v840_v38 = vld [vmem:[%s1575_s3] sm:$0x3] }
 0x14f   : > { %v843_v43 = vadd.f32 %v842_v39, %v841_v33  ;;  %v860_v44 = vrot.slane %v859_v40, 4 }
 0x150   : > { %v850_v45 = vadd.f32 %v849_v41, %v848_v37  ;;  %v867_v46 = vrot.slane %v866_v42, 4 }
 0x151   : > { %v844_v47 = vrot.slane %v843_v43, 2  ;;  %v861_v48 = vadd.f32 %v860_v44, %v859_v40 }
 0x152   : > { %v851_v49 = vrot.slane %v850_v45, 2  ;;  %v868_v50 = vadd.f32 %v867_v46, %v866_v42 }
 0x153   : > { %v845_v51 = vadd.f32 %v844_v47, %v843_v43  ;;  %v862_v52 = vrot.slane %v861_v48, 2 }
 0x154   : > { %v852_v53 = vadd.f32 %v851_v49, %v850_v45  ;;  %v869_v54 = vrot.slane %v868_v50, 2 }
 0x155   : > { %v846_v55 = vrot.slane %v845_v51, 1  ;;  %v863_v56 = vadd.f32 %v862_v52, %v861_v48 }
 0x156   : > { %v853_v57 = vrot.slane %v852_v53, 1  ;;  %v870_v58 = vadd.f32 %v869_v54, %v868_v50 }
 0x157   : > { %v847_v59 = vadd.f32 %v846_v55, %v845_v51  ;;  %v864_v60 = vrot.slane %v863_v56, 1 }
 0x158   : > { %v854_v61 = vadd.f32 %v853_v57, %v852_v53  ;;  %v871_v62 = vrot.slane %v870_v58, 1 }
 0x159   : > { %v865_v63 = vadd.f32 %v864_v60, %v863_v56  ;;  %v873_v0 = vmul.f32 0.125, %v847_v59 }
 0x15a   : > { %v872_v1 = vadd.f32 %v871_v62, %v870_v58  ;;  %v874_v2 = vmul.f32 0.125, %v854_v61 }
 0x15b   : > { %v875_v3 = vmul.f32 0.125, %v865_v63  ;;  %v877_v4 = vmul.f32 %v873_v0, %v873_v0 }
 0x15c   : > { %v876_v5 = vmul.f32 0.125, %v872_v1  ;;  %v878_v6 = vmul.f32 %v874_v2, %v874_v2 }
 0x15d   : > { %v879_v7 = vsub.f32 %v875_v3, %v877_v4 }
 0x15e   : > { %v880_v8 = vsub.f32 %v876_v5, %v878_v6 }
 0x15f   : > { %v881_v9 = vmax.f32 %v879_v7, 0.0 }
 0x160   : > { %v882_v10 = vmax.f32 %v880_v8, 0.0 }
 0x161   : > { %v883_v11 = vadd.f32 1e-05, %v881_v9 }
 0x162   : > { %v884_v12 = vadd.f32 1e-05, %v882_v10 }
 0x163   : > { %1326 = vrsqrt.f32 %v883_v11 }
 0x164   : > { %1328 = vrsqrt.f32 %v884_v12 }
 0x16d   : > { %v1327_v18 = vpop.eup %1326 }
 0x16e   : > { %v1329_v20 = vpop.eup %1328 }
 0x16f   : > { %v889_v21 = vcombine.low %v1327_v18, %v1329_v20 }
 0x171   : > { %v896_v22 = vrot.slane %v889_v21, %v895_v19 }
 0x173   : > { %v903_v24 = vrot.slane %v896_v22, %v895_v19 }
 0x175   : > { %v905_v27 = vmul.f32 %v903_v24, %v839_v23 }
 0x177   : > { %v910_v28 = vrot.slane %v905_v27, %v909_v25  ;;  %v914_v33 = vrot.slane %v905_v27, %v913_v26 }
 0x179   : > { %v917_v34 = vmul.f32 %v910_v28, %v873_v0  ;;  %v918_v35 = vmul.f32 %v914_v33, %v874_v2  ;;  %v938_v40 = vmul.f32 %v910_v28, %v1521_v29  ;;  %v939_v42 = vmul.f32 %v914_v33, %v1523_v30 }
 0x17a   : > { %v940_v43 = vmul.f32 %v910_v28, %v1525_v31  ;;  %v941_v44 = vmul.f32 %v914_v33, %v1527_v32 }
 0x17b   : > { %v921_v36 = vcombine.low %v917_v34, %v918_v35 }
 0x17d   : > { %v928_v37 = vrot.slane %v921_v36, %v895_v19 }
 0x17f   : > { %v935_v39 = vrot.slane %v928_v37, %v895_v19 }
 0x181   : > { %v937_v41 = vsub.f32 %v840_v38, %v935_v39 }
 0x183   : > { %v946_v45 = vrot.slane %v937_v41, %v909_v25  ;;  %v950_v46 = vrot.slane %v937_v41, %v913_v26 }
 0x185   : > { %v953_v47 = vadd.f32 %v946_v45, %v938_v40  ;;  %v954_v48 = vadd.f32 %v950_v46, %v939_v42  ;;  %v955_v49 = vadd.f32 %v946_v45, %v940_v43  ;;  %v956_v50 = vadd.f32 %v950_v46, %v941_v44 }
 0x187   : > { %v957_v51 = vmax.f32 %v953_v47, 0.0  ;;  %v958_v52 = vmax.f32 %v954_v48, 0.0  ;;  %v959_v53 = vmax.f32 %v955_v49, 0.0  ;;  %v960_v54 = vmax.f32 %v956_v50, 0.0 }
 0x189   : > { %v1176_v55 = vpack.c.bf16 %v958_v52, %v957_v51  ;;  %v1177_v56 = vpack.c.bf16 %v960_v54, %v959_v53 }
 0x18b   : > { %973 = vst [vmem:[%s1576_s4] sm:$0xff] %v1176_v55  ;;  %974 = vst [vmem:[%s1576_s4 + $0x8] sm:$0xff] %v1177_v56 }
 0x18c PF: > { %s14_s19 = sadd.s32 1, %s1368_s19   ;;  %s1577_s15 = smov %s1356_s16 }
 0x18d   : > { %p11_p12 = scmp.ge.s32.totalorder %s14_s19, 4   ;;  %s1578_s16 = smov %s1432_s23 }
 0x18e   : > { %s1579_s17 = smov %s1364_s18  ;;  %s1580_s18 = smov %s1582_s20 }
 0x18f   :  { %13 = sbr.rel (!%p11_p12) target bundleno = 3 (0x3), region = 111 }

</bundles_post_ra>
